<compile_context>
chip_gen: v5e
topology: v5e:2x2
jax: 0.10.0
libtpu: 0.0.40
codegen_flags: <defaults>
</compile_context>

<pallas_src>
import math
import numpy as np
import jax
import jax.numpy as jnp
from jax.experimental import pallas as pl
from jax.experimental.pallas import tpu as pltpu

# ----------------- small, DiT-consistent config -----------------
INPUT_SIZE = 16          # spatial size of the latent input
PATCH = 2                # patch size
IN_CH = 4                # input channels
HIDDEN = 64              # hidden_size (divisible by 4 for 2d sincos, by HEADS)
DEPTH = 2                # number of DiT blocks
HEADS = 4                # num_heads -> head_dim = 16
MLP_RATIO = 4.0
NUM_CLASSES = 10
LEARN_SIGMA = True
OUT_CH = IN_CH * 2 if LEARN_SIGMA else IN_CH
FREQ_EMB = 256           # TimestepEmbedder frequency_embedding_size
TOKENS = (INPUT_SIZE // PATCH) ** 2
MLP_HIDDEN = int(HIDDEN * MLP_RATIO)
OUT_PATCH = PATCH * PATCH * OUT_CH
CPP = IN_CH * PATCH * PATCH


# ======================= in-kernel helpers (f32 math) =======================

def _bf(x):
    return x.astype(jnp.bfloat16)


def _silu(x):
    return x * (1.0 / (1.0 + jnp.exp(-x)))


def _gelu_tanh(x):
    c = 0.7978845608028654  # sqrt(2/pi)
    return 0.5 * x * (1.0 + jnp.tanh(c * (x + 0.044715 * x * x * x)))


def _ln_modulate(x, shift, scale):
    # LayerNorm (no affine, eps=1e-6) over last dim, then adaLN modulate.
    mean = jnp.mean(x, axis=-1, keepdims=True)
    xc = x - mean
    var = jnp.mean(xc * xc, axis=-1, keepdims=True)
    y = xc * jax.lax.rsqrt(var + 1e-6)
    return y * (1.0 + scale) + shift


# ======================= the fused DiT kernel =======================

def _dit_fused_kernel(tf_ref, tw1_ref, tb1_ref, tw2_ref, tb2_ref, yemb_ref,
                      patch_ref, pos_ref, xw_ref, xb_ref,
                      ada_w_ref, ada_b_ref, qkv_w_ref, qkv_b_ref,
                      proj_w_ref, proj_b_ref, fc1_w_ref, fc1_b_ref,
                      fc2_w_ref, fc2_b_ref,
                      fada_w_ref, fada_b_ref, flin_w_ref, flin_b_ref,
                      out_ref):
    D = HIDDEN
    hd = D // HEADS
    qk_scale = hd ** -0.5

    # ---- conditioning vector: c = t_embedder(t) + y_embedder(y) ----
    th = jnp.dot(_bf(tf_ref[...]), tw1_ref[...],
                 preferred_element_type=jnp.float32) + tb1_ref[...]
    th = _silu(th)
    t_emb = jnp.dot(_bf(th), tw2_ref[...],
                    preferred_element_type=jnp.float32) + tb2_ref[...]
    c = t_emb + yemb_ref[...]                         # (1, D) f32
    silu_c = _bf(_silu(c))                            # shared by all adaLN layers

    # ---- patch embedding + positional embedding ----
    x = (jnp.dot(_bf(patch_ref[...]), xw_ref[...],
                 preferred_element_type=jnp.float32)
         + xb_ref[...] + pos_ref[...])                # (T, D) f32

    # ---- DiT blocks (statically unrolled, activations resident) ----
    for l in range(DEPTH):
        mod = jnp.dot(silu_c, ada_w_ref[l],
                      preferred_element_type=jnp.float32) + ada_b_ref[l]  # (1,6D)
        shift_msa = mod[:, 0 * D:1 * D]
        scale_msa = mod[:, 1 * D:2 * D]
        gate_msa = mod[:, 2 * D:3 * D]
        shift_mlp = mod[:, 3 * D:4 * D]
        scale_mlp = mod[:, 4 * D:5 * D]
        gate_mlp = mod[:, 5 * D:6 * D]

        # --- attention branch ---
        h = _ln_modulate(x, shift_msa, scale_msa)                       # (T, D)
        qkv = jnp.dot(_bf(h), qkv_w_ref[l],
                      preferred_element_type=jnp.float32) + qkv_b_ref[l]  # (T, 3D)
        q = qkv[:, 0:D] * qk_scale        # fold scale into q
        k = qkv[:, D:2 * D]
        v = qkv[:, 2 * D:3 * D]

        head_outs = []
        for hh in range(HEADS):
            sl = slice(hh * hd, (hh + 1) * hd)
            s = jax.lax.dot_general(_bf(q[:, sl]), _bf(k[:, sl]),
                                    (((1,), (1,)), ((), ())),
                                    preferred_element_type=jnp.float32)   # (T,T)
            s = s - jnp.max(s, axis=-1, keepdims=True)
            p = jnp.exp(s)
            p = p * pl.reciprocal(jnp.sum(p, axis=-1, keepdims=True),
                                  approx=True)
            head_outs.append(jnp.dot(_bf(p), _bf(v[:, sl]),
                                     preferred_element_type=jnp.float32))
        a = jnp.concatenate(head_outs, axis=-1)                          # (T, D)
        a = jnp.dot(_bf(a), proj_w_ref[l],
                    preferred_element_type=jnp.float32) + proj_b_ref[l]
        x = x + gate_msa * a            # fused gate + residual

        # --- MLP branch ---
        h2 = _ln_modulate(x, shift_mlp, scale_mlp)
        g = jnp.dot(_bf(h2), fc1_w_ref[l],
                    preferred_element_type=jnp.float32) + fc1_b_ref[l]   # (T, Dh)
        g = _gelu_tanh(g)
        m = jnp.dot(_bf(g), fc2_w_ref[l],
                    preferred_element_type=jnp.float32) + fc2_b_ref[l]   # (T, D)
        x = x + gate_mlp * m            # fused gate + residual

    # ---- final layer ----
    modf = jnp.dot(silu_c, fada_w_ref[...],
                   preferred_element_type=jnp.float32) + fada_b_ref[...]  # (1,2D)
    shift_f = modf[:, 0:D]
    scale_f = modf[:, D:2 * D]
    xf = _ln_modulate(x, shift_f, scale_f)
    out_ref[...] = (jnp.dot(_bf(xf), flin_w_ref[...],
                            preferred_element_type=jnp.float32)
                    + flin_b_ref[...])                                    # (T, 32)


# ======================= glue: embeddings etc. =======================

def get_1d_sincos_pos_embed_from_grid(embed_dim, pos):
    assert embed_dim % 2 == 0
    omega = np.arange(embed_dim // 2, dtype=np.float64)
    omega /= embed_dim / 2.0
    omega = 1.0 / 10000 ** omega
    pos = pos.reshape(-1)
    out = np.einsum('m,d->md', pos, omega)
    return np.concatenate([np.sin(out), np.cos(out)], axis=1)


def get_2d_sincos_pos_embed(embed_dim, grid_size):
    grid_h = np.arange(grid_size, dtype=np.float32)
    grid_w = np.arange(grid_size, dtype=np.float32)
    grid = np.meshgrid(grid_w, grid_h)
    grid = np.stack(grid, axis=0).reshape([2, 1, grid_size, grid_size])
    emb_h = get_1d_sincos_pos_embed_from_grid(embed_dim // 2, grid[0])
    emb_w = get_1d_sincos_pos_embed_from_grid(embed_dim // 2, grid[1])
    return np.concatenate([emb_h, emb_w], axis=1)


def timestep_embedding(t, dim=FREQ_EMB, max_period=10000):
    half = dim // 2
    freqs = jnp.exp(-math.log(max_period)
                    * jnp.arange(half, dtype=jnp.float32) / half)
    args = t[:, None].astype(jnp.float32) * freqs[None]
    return jnp.concatenate([jnp.cos(args), jnp.sin(args)], axis=-1)


def patchify(x):
    # x: (N, C, H, W) -> (N, T, C*p*p); equivalent to Conv2d(k=p, s=p) im2col
    N, C, H, W = x.shape
    p = PATCH
    h, w = H // p, W // p
    x = x.reshape(N, C, h, p, w, p)
    x = x.transpose(0, 2, 4, 1, 3, 5)  # (N, h, w, C, p, p)
    return x.reshape(N, h * w, C * p * p)


def unpatchify(x):
    # x: (N, T, p*p*c) -> (N, c, H, W)
    N, T, _ = x.shape
    p, c = PATCH, OUT_CH
    h = w = int(math.sqrt(T))
    x = x.reshape(N, h, w, p, p, c)
    x = jnp.einsum('nhwpqc->nchpwq', x)
    return x.reshape(N, c, h * p, w * p)


# ======================= parameters =======================

def init_params(key):
    # NOTE: the reference init zeroes adaLN / final-linear weights (making the
    # forward output trivially zero); here we use deterministic small random
    # weights so the kernels compute something non-trivial.
    D = HIDDEN
    Dh = MLP_HIDDEN
    keys = jax.random.split(key, 64)
    ki = iter(keys)

    def nrm(shape, s=0.02):
        return jax.random.normal(next(ki), shape, jnp.float32) * s

    params = {
        'x_w': nrm((CPP, D)),
        'x_b': jnp.zeros((D,), jnp.float32),
        't_w1': nrm((FREQ_EMB, D)), 't_b1': jnp.zeros((D,), jnp.float32),
        't_w2': nrm((D, D)), 't_b2': jnp.zeros((D,), jnp.float32),
        'y_table': nrm((NUM_CLASSES + 1, D)),   # +1 for CFG null class
        'pos_embed': jnp.asarray(
            get_2d_sincos_pos_embed(D, INPUT_SIZE // PATCH), jnp.float32),
        'f_ada_w': nrm((D, 2 * D)), 'f_ada_b': jnp.zeros((2 * D,), jnp.float32),
        'f_lin_w': nrm((D, OUT_PATCH)),
        'f_lin_b': jnp.zeros((OUT_PATCH,), jnp.float32),
        'blocks': [],
    }
    for _ in range(DEPTH):
        params['blocks'].append({
            'qkv_w': nrm((D, 3 * D)), 'qkv_b': jnp.zeros((3 * D,), jnp.float32),
            'proj_w': nrm((D, D)), 'proj_b': jnp.zeros((D,), jnp.float32),
            'fc1_w': nrm((D, Dh)), 'fc1_b': jnp.zeros((Dh,), jnp.float32),
            'fc2_w': nrm((Dh, D)), 'fc2_b': jnp.zeros((D,), jnp.float32),
            'ada_w': nrm((D, 6 * D)), 'ada_b': jnp.zeros((6 * D,), jnp.float32),
        })
    return params


# ======================= forward pass =======================

def dit_forward(params, x, t, y):
    N = x.shape[0]
    D = HIDDEN
    T = TOKENS

    # XLA glue (tiny / pure layout ops)
    patches = patchify(x)                               # (N, T, C*p*p)
    tfreq = timestep_embedding(t)                       # (N, 256)
    # y_embedder (inference -> no label dropout); gather stays in XLA.
    # TODO(synk): label-dropout (token_drop) path for training is not implemented.
    y_emb = params['y_table'][y]                        # (N, D)

    # Stack per-block weights along a leading DEPTH axis; weights in bf16
    # (halves DMA bytes, MXU-native), biases stay f32.
    stack = lambda name: jnp.stack([blk[name] for blk in params['blocks']], 0)
    ada_w = _bf(stack('ada_w'));  ada_b = stack('ada_b')[:, None, :]
    qkv_w = _bf(stack('qkv_w'));  qkv_b = stack('qkv_b')[:, None, :]
    proj_w = _bf(stack('proj_w')); proj_b = stack('proj_b')[:, None, :]
    fc1_w = _bf(stack('fc1_w'));  fc1_b = stack('fc1_b')[:, None, :]
    fc2_w = _bf(stack('fc2_w'));  fc2_b = stack('fc2_b')[:, None, :]

    def full2(shape):
        return pl.BlockSpec(shape, lambda b: (0, 0))

    def full3(shape):
        return pl.BlockSpec(shape, lambda b: (0, 0, 0))

    def per_batch3(shape):
        return pl.BlockSpec(shape, lambda b: (b, 0, 0))

    in_specs = [
        per_batch3((None, 1, FREQ_EMB)),        # tfreq
        full2((FREQ_EMB, D)),                   # t_w1
        full2((1, D)),                          # t_b1
        full2((D, D)),                          # t_w2
        full2((1, D)),                          # t_b2
        per_batch3((None, 1, D)),               # y_emb
        per_batch3((None, T, CPP)),             # patches
        full2((T, D)),                          # pos_embed
        full2((CPP, D)),                        # x_w
        full2((1, D)),                          # x_b
        full3((DEPTH, D, 6 * D)),               # ada_w
        full3((DEPTH, 1, 6 * D)),               # ada_b
        full3((DEPTH, D, 3 * D)),               # qkv_w
        full3((DEPTH, 1, 3 * D)),               # qkv_b
        full3((DEPTH, D, D)),                   # proj_w
        full3((DEPTH, 1, D)),                   # proj_b
        full3((DEPTH, D, MLP_HIDDEN)),          # fc1_w
        full3((DEPTH, 1, MLP_HIDDEN)),          # fc1_b
        full3((DEPTH, MLP_HIDDEN, D)),          # fc2_w
        full3((DEPTH, 1, D)),                   # fc2_b
        full2((D, 2 * D)),                      # f_ada_w
        full2((1, 2 * D)),                      # f_ada_b
        full2((D, OUT_PATCH)),                  # f_lin_w
        full2((1, OUT_PATCH)),                  # f_lin_b
    ]

    out = pl.pallas_call(
        _dit_fused_kernel,
        grid=(N,),
        in_specs=in_specs,
        out_specs=pl.BlockSpec((None, T, OUT_PATCH), lambda b: (b, 0, 0)),
        out_shape=jax.ShapeDtypeStruct((N, T, OUT_PATCH), jnp.float32),
        compiler_params=pltpu.CompilerParams(
            dimension_semantics=("parallel",)),   # 2 TCs on v7x split batch
    )(tfreq.reshape(N, 1, FREQ_EMB),
      _bf(params['t_w1']), params['t_b1'].reshape(1, D),
      _bf(params['t_w2']), params['t_b2'].reshape(1, D),
      y_emb.reshape(N, 1, D),
      patches, params['pos_embed'],
      _bf(params['x_w']), params['x_b'].reshape(1, D),
      ada_w, ada_b, qkv_w, qkv_b, proj_w, proj_b,
      fc1_w, fc1_b, fc2_w, fc2_b,
      _bf(params['f_ada_w']), params['f_ada_b'].reshape(1, 2 * D),
      _bf(params['f_lin_w']), params['f_lin_b'].reshape(1, OUT_PATCH))

    return unpatchify(out)                              # (N, out_c, H, W)


# ======================= main =======================

if __name__ == "__main__":
    key = jax.random.PRNGKey(0)
    kp, kx, kt, ky = jax.random.split(key, 4)
    params = init_params(kp)

    x = jax.random.normal(kx, (2, IN_CH, INPUT_SIZE, INPUT_SIZE), jnp.float32)
    t = jax.random.uniform(kt, (2,), jnp.float32, 0.0, 1000.0)
    y = jax.random.randint(ky, (2,), 0, NUM_CLASSES)

    out = jax.jit(dit_forward)(params, x, t, y)
    out = jax.block_until_ready(out)
    assert out.shape == (2, OUT_CH, INPUT_SIZE, INPUT_SIZE), out.shape
    assert bool(jnp.all(jnp.isfinite(out)))
    print("KERNEL_OK")
</pallas_src>

<mosaic_0001>
module attributes {stable_mosaic.version = 11 : i64} {
  func.func @_dit_fused_kernel(%arg0: i32, %arg1: memref<1x1x256xf32, #tpu.memory_space<vmem>>, %arg2: memref<256x64xbf16, #tpu.memory_space<vmem>>, %arg3: memref<1x64xf32, #tpu.memory_space<vmem>>, %arg4: memref<64x64xbf16, #tpu.memory_space<vmem>>, %arg5: memref<1x64xf32, #tpu.memory_space<vmem>>, %arg6: memref<1x1x64xf32, #tpu.memory_space<vmem>>, %arg7: memref<1x64x16xf32, #tpu.memory_space<vmem>>, %arg8: memref<64x64xf32, #tpu.memory_space<vmem>>, %arg9: memref<16x64xbf16, #tpu.memory_space<vmem>>, %arg10: memref<1x64xf32, #tpu.memory_space<vmem>>, %arg11: memref<2x64x384xbf16, #tpu.memory_space<vmem>>, %arg12: memref<2x1x384xf32, #tpu.memory_space<vmem>>, %arg13: memref<2x64x192xbf16, #tpu.memory_space<vmem>>, %arg14: memref<2x1x192xf32, #tpu.memory_space<vmem>>, %arg15: memref<2x64x64xbf16, #tpu.memory_space<vmem>>, %arg16: memref<2x1x64xf32, #tpu.memory_space<vmem>>, %arg17: memref<2x64x256xbf16, #tpu.memory_space<vmem>>, %arg18: memref<2x1x256xf32, #tpu.memory_space<vmem>>, %arg19: memref<2x256x64xbf16, #tpu.memory_space<vmem>>, %arg20: memref<2x1x64xf32, #tpu.memory_space<vmem>>, %arg21: memref<64x128xbf16, #tpu.memory_space<vmem>>, %arg22: memref<1x128xf32, #tpu.memory_space<vmem>>, %arg23: memref<64x32xbf16, #tpu.memory_space<vmem>>, %arg24: memref<1x32xf32, #tpu.memory_space<vmem>>, %arg25: memref<1x64x32xf32, #tpu.memory_space<vmem>>) attributes {dimension_semantics = [#tpu.dimension_semantics<parallel>], iteration_bounds = array<i64: 2>, scalar_prefetch = 0 : i64, scratch_operands = 0 : i64, tpu.core_type = #tpu.core_type<tc>, window_params = [{transform_indices = @transform_0, window_bounds = array<i64: 1, 1, 256>}, {pipeline_mode = #tpu.pipeline_mode<synchronous>, transform_indices = @transform_1, window_bounds = array<i64: 256, 64>}, {pipeline_mode = #tpu.pipeline_mode<synchronous>, transform_indices = @transform_2, window_bounds = array<i64: 1, 64>}, {pipeline_mode = #tpu.pipeline_mode<synchronous>, transform_indices = @transform_3, window_bounds = array<i64: 64, 64>}, {pipeline_mode = #tpu.pipeline_mode<synchronous>, transform_indices = @transform_4, window_bounds = array<i64: 1, 64>}, {transform_indices = @transform_5, window_bounds = array<i64: 1, 1, 64>}, {transform_indices = @transform_6, window_bounds = array<i64: 1, 64, 16>}, {pipeline_mode = #tpu.pipeline_mode<synchronous>, transform_indices = @transform_7, window_bounds = array<i64: 64, 64>}, {pipeline_mode = #tpu.pipeline_mode<synchronous>, transform_indices = @transform_8, window_bounds = array<i64: 16, 64>}, {pipeline_mode = #tpu.pipeline_mode<synchronous>, transform_indices = @transform_9, window_bounds = array<i64: 1, 64>}, {pipeline_mode = #tpu.pipeline_mode<synchronous>, transform_indices = @transform_10, window_bounds = array<i64: 2, 64, 384>}, {pipeline_mode = #tpu.pipeline_mode<synchronous>, transform_indices = @transform_11, window_bounds = array<i64: 2, 1, 384>}, {pipeline_mode = #tpu.pipeline_mode<synchronous>, transform_indices = @transform_12, window_bounds = array<i64: 2, 64, 192>}, {pipeline_mode = #tpu.pipeline_mode<synchronous>, transform_indices = @transform_13, window_bounds = array<i64: 2, 1, 192>}, {pipeline_mode = #tpu.pipeline_mode<synchronous>, transform_indices = @transform_14, window_bounds = array<i64: 2, 64, 64>}, {pipeline_mode = #tpu.pipeline_mode<synchronous>, transform_indices = @transform_15, window_bounds = array<i64: 2, 1, 64>}, {pipeline_mode = #tpu.pipeline_mode<synchronous>, transform_indices = @transform_16, window_bounds = array<i64: 2, 64, 256>}, {pipeline_mode = #tpu.pipeline_mode<synchronous>, transform_indices = @transform_17, window_bounds = array<i64: 2, 1, 256>}, {pipeline_mode = #tpu.pipeline_mode<synchronous>, transform_indices = @transform_18, window_bounds = array<i64: 2, 256, 64>}, {pipeline_mode = #tpu.pipeline_mode<synchronous>, transform_indices = @transform_19, window_bounds = array<i64: 2, 1, 64>}, {pipeline_mode = #tpu.pipeline_mode<synchronous>, transform_indices = @transform_20, window_bounds = array<i64: 64, 128>}, {pipeline_mode = #tpu.pipeline_mode<synchronous>, transform_indices = @transform_21, window_bounds = array<i64: 1, 128>}, {pipeline_mode = #tpu.pipeline_mode<synchronous>, transform_indices = @transform_22, window_bounds = array<i64: 64, 32>}, {pipeline_mode = #tpu.pipeline_mode<synchronous>, transform_indices = @transform_23, window_bounds = array<i64: 1, 32>}, {transform_indices = @transform_24, window_bounds = array<i64: 1, 64, 32>}]} {
    %c0 = arith.constant 0 : index
    %c0_0 = arith.constant 0 : index
    %c0_1 = arith.constant 0 : index
    %0 = vector.load %arg1[%c0, %c0_0, %c0_1] : memref<1x1x256xf32, #tpu.memory_space<vmem>>, vector<1x1x256xf32>
    %1 = vector.shape_cast %0 : vector<1x1x256xf32> to vector<1x256xf32>
    %2 = arith.truncf %1 : vector<1x256xf32> to vector<1x256xbf16>
    %c0_2 = arith.constant 0 : index
    %c0_3 = arith.constant 0 : index
    %3 = vector.load %arg2[%c0_2, %c0_3] : memref<256x64xbf16, #tpu.memory_space<vmem>>, vector<256x64xbf16>
    %cst = arith.constant dense<0.000000e+00> : vector<1x64xf32>
    %4 = tpu.matmul %2, %3, %cst {dimension_numbers = #tpu.dot_dimension_numbers<[1], [0], [0], [1], [0, 0, 1, 1], [], []>} : vector<1x256xbf16>, vector<256x64xbf16>, vector<1x64xf32> -> vector<1x64xf32>
    %c0_4 = arith.constant 0 : index
    %c0_5 = arith.constant 0 : index
    %5 = vector.load %arg3[%c0_4, %c0_5] : memref<1x64xf32, #tpu.memory_space<vmem>>, vector<1x64xf32>
    %6 = arith.addf %4, %5 : vector<1x64xf32>
    %cst_6 = arith.constant 0.000000e+00 : f32
    %7 = vector.broadcast %cst_6 : f32 to vector<1x64xf32>
    %8 = arith.subf %7, %6 : vector<1x64xf32>
    %9 = math.exp %8 : vector<1x64xf32>
    %cst_7 = arith.constant 1.000000e+00 : f32
    %10 = vector.broadcast %cst_7 : f32 to vector<1x64xf32>
    %11 = arith.addf %10, %9 : vector<1x64xf32>
    %cst_8 = arith.constant 1.000000e+00 : f32
    %12 = vector.broadcast %cst_8 : f32 to vector<1x64xf32>
    %13 = arith.divf %12, %11 : vector<1x64xf32>
    %14 = arith.mulf %6, %13 : vector<1x64xf32>
    %15 = arith.truncf %14 : vector<1x64xf32> to vector<1x64xbf16>
    %c0_9 = arith.constant 0 : index
    %c0_10 = arith.constant 0 : index
    %16 = vector.load %arg4[%c0_9, %c0_10] : memref<64x64xbf16, #tpu.memory_space<vmem>>, vector<64x64xbf16>
    %cst_11 = arith.constant dense<0.000000e+00> : vector<1x64xf32>
    %17 = tpu.matmul %15, %16, %cst_11 {dimension_numbers = #tpu.dot_dimension_numbers<[1], [0], [0], [1], [0, 0, 1, 1], [], []>} : vector<1x64xbf16>, vector<64x64xbf16>, vector<1x64xf32> -> vector<1x64xf32>
    %c0_12 = arith.constant 0 : index
    %c0_13 = arith.constant 0 : index
    %18 = vector.load %arg5[%c0_12, %c0_13] : memref<1x64xf32, #tpu.memory_space<vmem>>, vector<1x64xf32>
    %19 = arith.addf %17, %18 : vector<1x64xf32>
    %c0_14 = arith.constant 0 : index
    %c0_15 = arith.constant 0 : index
    %c0_16 = arith.constant 0 : index
    %20 = vector.load %arg6[%c0_14, %c0_15, %c0_16] : memref<1x1x64xf32, #tpu.memory_space<vmem>>, vector<1x1x64xf32>
    %21 = vector.shape_cast %20 : vector<1x1x64xf32> to vector<1x64xf32>
    %22 = arith.addf %19, %21 : vector<1x64xf32>
    %cst_17 = arith.constant 0.000000e+00 : f32
    %23 = vector.broadcast %cst_17 : f32 to vector<1x64xf32>
    %24 = arith.subf %23, %22 : vector<1x64xf32>
    %25 = math.exp %24 : vector<1x64xf32>
    %cst_18 = arith.constant 1.000000e+00 : f32
    %26 = vector.broadcast %cst_18 : f32 to vector<1x64xf32>
    %27 = arith.addf %26, %25 : vector<1x64xf32>
    %cst_19 = arith.constant 1.000000e+00 : f32
    %28 = vector.broadcast %cst_19 : f32 to vector<1x64xf32>
    %29 = arith.divf %28, %27 : vector<1x64xf32>
    %30 = arith.mulf %22, %29 : vector<1x64xf32>
    %31 = arith.truncf %30 : vector<1x64xf32> to vector<1x64xbf16>
    %c0_20 = arith.constant 0 : index
    %c0_21 = arith.constant 0 : index
    %c0_22 = arith.constant 0 : index
    %32 = vector.load %arg7[%c0_20, %c0_21, %c0_22] : memref<1x64x16xf32, #tpu.memory_space<vmem>>, vector<1x64x16xf32>
    %33 = vector.shape_cast %32 : vector<1x64x16xf32> to vector<64x16xf32>
    %34 = arith.truncf %33 : vector<64x16xf32> to vector<64x16xbf16>
    %c0_23 = arith.constant 0 : index
    %c0_24 = arith.constant 0 : index
    %35 = vector.load %arg9[%c0_23, %c0_24] : memref<16x64xbf16, #tpu.memory_space<vmem>>, vector<16x64xbf16>
    %cst_25 = arith.constant dense<0.000000e+00> : vector<64x64xf32>
    %36 = tpu.matmul %34, %35, %cst_25 {dimension_numbers = #tpu.dot_dimension_numbers<[1], [0], [0], [1], [0, 0, 1, 1], [], []>} : vector<64x16xbf16>, vector<16x64xbf16>, vector<64x64xf32> -> vector<64x64xf32>
    %c0_26 = arith.constant 0 : index
    %c0_27 = arith.constant 0 : index
    %37 = vector.load %arg10[%c0_26, %c0_27] : memref<1x64xf32, #tpu.memory_space<vmem>>, vector<1x64xf32>
    %38 = vector.broadcast %37 : vector<1x64xf32> to vector<64x64xf32>
    %39 = arith.addf %36, %38 : vector<64x64xf32>
    %c0_28 = arith.constant 0 : index
    %c0_29 = arith.constant 0 : index
    %40 = vector.load %arg8[%c0_28, %c0_29] : memref<64x64xf32, #tpu.memory_space<vmem>>, vector<64x64xf32>
    %41 = arith.addf %39, %40 : vector<64x64xf32>
    %c0_30 = arith.constant 0 : index
    %c0_31 = arith.constant 0 : index
    %c0_32 = arith.constant 0 : index
    %42 = vector.load %arg11[%c0_30, %c0_31, %c0_32] : memref<2x64x384xbf16, #tpu.memory_space<vmem>>, vector<1x64x384xbf16>
    %43 = vector.shape_cast %42 : vector<1x64x384xbf16> to vector<64x384xbf16>
    %cst_33 = arith.constant dense<0.000000e+00> : vector<1x384xf32>
    %44 = tpu.matmul %31, %43, %cst_33 {dimension_numbers = #tpu.dot_dimension_numbers<[1], [0], [0], [1], [0, 0, 1, 1], [], []>} : vector<1x64xbf16>, vector<64x384xbf16>, vector<1x384xf32> -> vector<1x384xf32>
    %c0_34 = arith.constant 0 : index
    %c0_35 = arith.constant 0 : index
    %c0_36 = arith.constant 0 : index
    %45 = vector.load %arg12[%c0_34, %c0_35, %c0_36] : memref<2x1x384xf32, #tpu.memory_space<vmem>>, vector<1x1x384xf32>
    %46 = vector.shape_cast %45 : vector<1x1x384xf32> to vector<1x384xf32>
    %47 = arith.addf %44, %46 : vector<1x384xf32>
    %48 = vector.extract_strided_slice %47 {offsets = [0, 0], sizes = [1, 64], strides = [1, 1]} : vector<1x384xf32> to vector<1x64xf32>
    %49 = vector.extract_strided_slice %47 {offsets = [0, 64], sizes = [1, 64], strides = [1, 1]} : vector<1x384xf32> to vector<1x64xf32>
    %50 = vector.extract_strided_slice %47 {offsets = [0, 128], sizes = [1, 64], strides = [1, 1]} : vector<1x384xf32> to vector<1x64xf32>
    %51 = vector.extract_strided_slice %47 {offsets = [0, 192], sizes = [1, 64], strides = [1, 1]} : vector<1x384xf32> to vector<1x64xf32>
    %52 = vector.extract_strided_slice %47 {offsets = [0, 256], sizes = [1, 64], strides = [1, 1]} : vector<1x384xf32> to vector<1x64xf32>
    %53 = vector.extract_strided_slice %47 {offsets = [0, 320], sizes = [1, 64], strides = [1, 1]} : vector<1x384xf32> to vector<1x64xf32>
    %cst_37 = arith.constant dense<0.000000e+00> : vector<64xf32>
    %54 = vector.multi_reduction <add>, %41, %cst_37 [1] : vector<64x64xf32> to vector<64xf32>
    %55 = vector.shape_cast %54 : vector<64xf32> to vector<64x1xf32>
    %cst_38 = arith.constant 6.400000e+01 : f32
    %56 = vector.broadcast %cst_38 : f32 to vector<64x1xf32>
    %57 = arith.divf %55, %56 : vector<64x1xf32>
    %58 = vector.broadcast %57 : vector<64x1xf32> to vector<64x64xf32>
    %59 = arith.subf %41, %58 : vector<64x64xf32>
    %60 = arith.mulf %59, %59 : vector<64x64xf32>
    %cst_39 = arith.constant dense<0.000000e+00> : vector<64xf32>
    %61 = vector.multi_reduction <add>, %60, %cst_39 [1] : vector<64x64xf32> to vector<64xf32>
    %62 = vector.shape_cast %61 : vector<64xf32> to vector<64x1xf32>
    %cst_40 = arith.constant 6.400000e+01 : f32
    %63 = vector.broadcast %cst_40 : f32 to vector<64x1xf32>
    %64 = arith.divf %62, %63 : vector<64x1xf32>
    %cst_41 = arith.constant 9.99999997E-7 : f32
    %65 = vector.broadcast %cst_41 : f32 to vector<64x1xf32>
    %66 = arith.addf %64, %65 : vector<64x1xf32>
    %67 = math.rsqrt %66 : vector<64x1xf32>
    %68 = vector.broadcast %67 : vector<64x1xf32> to vector<64x64xf32>
    %69 = arith.mulf %59, %68 : vector<64x64xf32>
    %cst_42 = arith.constant 1.000000e+00 : f32
    %70 = vector.broadcast %cst_42 : f32 to vector<1x64xf32>
    %71 = arith.addf %70, %49 : vector<1x64xf32>
    %72 = vector.broadcast %71 : vector<1x64xf32> to vector<64x64xf32>
    %73 = arith.mulf %69, %72 : vector<64x64xf32>
    %74 = vector.broadcast %48 : vector<1x64xf32> to vector<64x64xf32>
    %75 = arith.addf %73, %74 : vector<64x64xf32>
    %76 = arith.truncf %75 : vector<64x64xf32> to vector<64x64xbf16>
    %c0_43 = arith.constant 0 : index
    %c0_44 = arith.constant 0 : index
    %c0_45 = arith.constant 0 : index
    %77 = vector.load %arg13[%c0_43, %c0_44, %c0_45] : memref<2x64x192xbf16, #tpu.memory_space<vmem>>, vector<1x64x192xbf16>
    %78 = vector.shape_cast %77 : vector<1x64x192xbf16> to vector<64x192xbf16>
    %cst_46 = arith.constant dense<0.000000e+00> : vector<64x192xf32>
    %79 = tpu.matmul %76, %78, %cst_46 {dimension_numbers = #tpu.dot_dimension_numbers<[1], [0], [0], [1], [0, 0, 1, 1], [], []>} : vector<64x64xbf16>, vector<64x192xbf16>, vector<64x192xf32> -> vector<64x192xf32>
    %c0_47 = arith.constant 0 : index
    %c0_48 = arith.constant 0 : index
    %c0_49 = arith.constant 0 : index
    %80 = vector.load %arg14[%c0_47, %c0_48, %c0_49] : memref<2x1x192xf32, #tpu.memory_space<vmem>>, vector<1x1x192xf32>
    %81 = vector.shape_cast %80 : vector<1x1x192xf32> to vector<1x192xf32>
    %82 = vector.broadcast %81 : vector<1x192xf32> to vector<64x192xf32>
    %83 = arith.addf %79, %82 : vector<64x192xf32>
    %84 = vector.extract_strided_slice %83 {offsets = [0, 0], sizes = [64, 64], strides = [1, 1]} : vector<64x192xf32> to vector<64x64xf32>
    %cst_50 = arith.constant 2.500000e-01 : f32
    %85 = vector.broadcast %cst_50 : f32 to vector<64x64xf32>
    %86 = arith.mulf %84, %85 : vector<64x64xf32>
    %87 = vector.extract_strided_slice %83 {offsets = [0, 64], sizes = [64, 64], strides = [1, 1]} : vector<64x192xf32> to vector<64x64xf32>
    %88 = vector.extract_strided_slice %83 {offsets = [0, 128], sizes = [64, 64], strides = [1, 1]} : vector<64x192xf32> to vector<64x64xf32>
    %89 = vector.extract_strided_slice %86 {offsets = [0, 0], sizes = [64, 16], strides = [1, 1]} : vector<64x64xf32> to vector<64x16xf32>
    %90 = arith.truncf %89 : vector<64x16xf32> to vector<64x16xbf16>
    %91 = vector.extract_strided_slice %87 {offsets = [0, 0], sizes = [64, 16], strides = [1, 1]} : vector<64x64xf32> to vector<64x16xf32>
    %92 = arith.truncf %91 : vector<64x16xf32> to vector<64x16xbf16>
    %cst_51 = arith.constant dense<0.000000e+00> : vector<64x64xf32>
    %93 = tpu.matmul %90, %92, %cst_51 {dimension_numbers = #tpu.dot_dimension_numbers<[1], [1], [0], [0], [0, 0, 1, 0], [], []>} : vector<64x16xbf16>, vector<64x16xbf16>, vector<64x64xf32> -> vector<64x64xf32>
    %cst_52 = arith.constant dense<0xFF800000> : vector<64xf32>
    %94 = vector.multi_reduction <maximumf>, %93, %cst_52 [1] : vector<64x64xf32> to vector<64xf32>
    %95 = vector.shape_cast %94 : vector<64xf32> to vector<64x1xf32>
    %96 = vector.broadcast %95 : vector<64x1xf32> to vector<64x64xf32>
    %97 = arith.subf %93, %96 : vector<64x64xf32>
    %98 = math.exp %97 : vector<64x64xf32>
    %cst_53 = arith.constant dense<0.000000e+00> : vector<64xf32>
    %99 = vector.multi_reduction <add>, %98, %cst_53 [1] : vector<64x64xf32> to vector<64xf32>
    %100 = vector.shape_cast %99 : vector<64xf32> to vector<64x1xf32>
    %101 = tpu.reciprocal %100 {approx = true} : vector<64x1xf32> -> vector<64x1xf32>
    %102 = vector.broadcast %101 : vector<64x1xf32> to vector<64x64xf32>
    %103 = arith.mulf %98, %102 : vector<64x64xf32>
    %104 = arith.truncf %103 : vector<64x64xf32> to vector<64x64xbf16>
    %105 = vector.extract_strided_slice %88 {offsets = [0, 0], sizes = [64, 16], strides = [1, 1]} : vector<64x64xf32> to vector<64x16xf32>
    %106 = arith.truncf %105 : vector<64x16xf32> to vector<64x16xbf16>
    %cst_54 = arith.constant dense<0.000000e+00> : vector<64x16xf32>
    %107 = tpu.matmul %104, %106, %cst_54 {dimension_numbers = #tpu.dot_dimension_numbers<[1], [0], [0], [1], [0, 0, 1, 1], [], []>} : vector<64x64xbf16>, vector<64x16xbf16>, vector<64x16xf32> -> vector<64x16xf32>
    %108 = vector.extract_strided_slice %86 {offsets = [0, 16], sizes = [64, 16], strides = [1, 1]} : vector<64x64xf32> to vector<64x16xf32>
    %109 = arith.truncf %108 : vector<64x16xf32> to vector<64x16xbf16>
    %110 = vector.extract_strided_slice %87 {offsets = [0, 16], sizes = [64, 16], strides = [1, 1]} : vector<64x64xf32> to vector<64x16xf32>
    %111 = arith.truncf %110 : vector<64x16xf32> to vector<64x16xbf16>
    %cst_55 = arith.constant dense<0.000000e+00> : vector<64x64xf32>
    %112 = tpu.matmul %109, %111, %cst_55 {dimension_numbers = #tpu.dot_dimension_numbers<[1], [1], [0], [0], [0, 0, 1, 0], [], []>} : vector<64x16xbf16>, vector<64x16xbf16>, vector<64x64xf32> -> vector<64x64xf32>
    %cst_56 = arith.constant dense<0xFF800000> : vector<64xf32>
    %113 = vector.multi_reduction <maximumf>, %112, %cst_56 [1] : vector<64x64xf32> to vector<64xf32>
    %114 = vector.shape_cast %113 : vector<64xf32> to vector<64x1xf32>
    %115 = vector.broadcast %114 : vector<64x1xf32> to vector<64x64xf32>
    %116 = arith.subf %112, %115 : vector<64x64xf32>
    %117 = math.exp %116 : vector<64x64xf32>
    %cst_57 = arith.constant dense<0.000000e+00> : vector<64xf32>
    %118 = vector.multi_reduction <add>, %117, %cst_57 [1] : vector<64x64xf32> to vector<64xf32>
    %119 = vector.shape_cast %118 : vector<64xf32> to vector<64x1xf32>
    %120 = tpu.reciprocal %119 {approx = true} : vector<64x1xf32> -> vector<64x1xf32>
    %121 = vector.broadcast %120 : vector<64x1xf32> to vector<64x64xf32>
    %122 = arith.mulf %117, %121 : vector<64x64xf32>
    %123 = arith.truncf %122 : vector<64x64xf32> to vector<64x64xbf16>
    %124 = vector.extract_strided_slice %88 {offsets = [0, 16], sizes = [64, 16], strides = [1, 1]} : vector<64x64xf32> to vector<64x16xf32>
    %125 = arith.truncf %124 : vector<64x16xf32> to vector<64x16xbf16>
    %cst_58 = arith.constant dense<0.000000e+00> : vector<64x16xf32>
    %126 = tpu.matmul %123, %125, %cst_58 {dimension_numbers = #tpu.dot_dimension_numbers<[1], [0], [0], [1], [0, 0, 1, 1], [], []>} : vector<64x64xbf16>, vector<64x16xbf16>, vector<64x16xf32> -> vector<64x16xf32>
    %127 = vector.extract_strided_slice %86 {offsets = [0, 32], sizes = [64, 16], strides = [1, 1]} : vector<64x64xf32> to vector<64x16xf32>
    %128 = arith.truncf %127 : vector<64x16xf32> to vector<64x16xbf16>
    %129 = vector.extract_strided_slice %87 {offsets = [0, 32], sizes = [64, 16], strides = [1, 1]} : vector<64x64xf32> to vector<64x16xf32>
    %130 = arith.truncf %129 : vector<64x16xf32> to vector<64x16xbf16>
    %cst_59 = arith.constant dense<0.000000e+00> : vector<64x64xf32>
    %131 = tpu.matmul %128, %130, %cst_59 {dimension_numbers = #tpu.dot_dimension_numbers<[1], [1], [0], [0], [0, 0, 1, 0], [], []>} : vector<64x16xbf16>, vector<64x16xbf16>, vector<64x64xf32> -> vector<64x64xf32>
    %cst_60 = arith.constant dense<0xFF800000> : vector<64xf32>
    %132 = vector.multi_reduction <maximumf>, %131, %cst_60 [1] : vector<64x64xf32> to vector<64xf32>
    %133 = vector.shape_cast %132 : vector<64xf32> to vector<64x1xf32>
    %134 = vector.broadcast %133 : vector<64x1xf32> to vector<64x64xf32>
    %135 = arith.subf %131, %134 : vector<64x64xf32>
    %136 = math.exp %135 : vector<64x64xf32>
    %cst_61 = arith.constant dense<0.000000e+00> : vector<64xf32>
    %137 = vector.multi_reduction <add>, %136, %cst_61 [1] : vector<64x64xf32> to vector<64xf32>
    %138 = vector.shape_cast %137 : vector<64xf32> to vector<64x1xf32>
    %139 = tpu.reciprocal %138 {approx = true} : vector<64x1xf32> -> vector<64x1xf32>
    %140 = vector.broadcast %139 : vector<64x1xf32> to vector<64x64xf32>
    %141 = arith.mulf %136, %140 : vector<64x64xf32>
    %142 = arith.truncf %141 : vector<64x64xf32> to vector<64x64xbf16>
    %143 = vector.extract_strided_slice %88 {offsets = [0, 32], sizes = [64, 16], strides = [1, 1]} : vector<64x64xf32> to vector<64x16xf32>
    %144 = arith.truncf %143 : vector<64x16xf32> to vector<64x16xbf16>
    %cst_62 = arith.constant dense<0.000000e+00> : vector<64x16xf32>
    %145 = tpu.matmul %142, %144, %cst_62 {dimension_numbers = #tpu.dot_dimension_numbers<[1], [0], [0], [1], [0, 0, 1, 1], [], []>} : vector<64x64xbf16>, vector<64x16xbf16>, vector<64x16xf32> -> vector<64x16xf32>
    %146 = vector.extract_strided_slice %86 {offsets = [0, 48], sizes = [64, 16], strides = [1, 1]} : vector<64x64xf32> to vector<64x16xf32>
    %147 = arith.truncf %146 : vector<64x16xf32> to vector<64x16xbf16>
    %148 = vector.extract_strided_slice %87 {offsets = [0, 48], sizes = [64, 16], strides = [1, 1]} : vector<64x64xf32> to vector<64x16xf32>
    %149 = arith.truncf %148 : vector<64x16xf32> to vector<64x16xbf16>
    %cst_63 = arith.constant dense<0.000000e+00> : vector<64x64xf32>
    %150 = tpu.matmul %147, %149, %cst_63 {dimension_numbers = #tpu.dot_dimension_numbers<[1], [1], [0], [0], [0, 0, 1, 0], [], []>} : vector<64x16xbf16>, vector<64x16xbf16>, vector<64x64xf32> -> vector<64x64xf32>
    %cst_64 = arith.constant dense<0xFF800000> : vector<64xf32>
    %151 = vector.multi_reduction <maximumf>, %150, %cst_64 [1] : vector<64x64xf32> to vector<64xf32>
    %152 = vector.shape_cast %151 : vector<64xf32> to vector<64x1xf32>
    %153 = vector.broadcast %152 : vector<64x1xf32> to vector<64x64xf32>
    %154 = arith.subf %150, %153 : vector<64x64xf32>
    %155 = math.exp %154 : vector<64x64xf32>
    %cst_65 = arith.constant dense<0.000000e+00> : vector<64xf32>
    %156 = vector.multi_reduction <add>, %155, %cst_65 [1] : vector<64x64xf32> to vector<64xf32>
    %157 = vector.shape_cast %156 : vector<64xf32> to vector<64x1xf32>
    %158 = tpu.reciprocal %157 {approx = true} : vector<64x1xf32> -> vector<64x1xf32>
    %159 = vector.broadcast %158 : vector<64x1xf32> to vector<64x64xf32>
    %160 = arith.mulf %155, %159 : vector<64x64xf32>
    %161 = arith.truncf %160 : vector<64x64xf32> to vector<64x64xbf16>
    %162 = vector.extract_strided_slice %88 {offsets = [0, 48], sizes = [64, 16], strides = [1, 1]} : vector<64x64xf32> to vector<64x16xf32>
    %163 = arith.truncf %162 : vector<64x16xf32> to vector<64x16xbf16>
    %cst_66 = arith.constant dense<0.000000e+00> : vector<64x16xf32>
    %164 = tpu.matmul %161, %163, %cst_66 {dimension_numbers = #tpu.dot_dimension_numbers<[1], [0], [0], [1], [0, 0, 1, 1], [], []>} : vector<64x64xbf16>, vector<64x16xbf16>, vector<64x16xf32> -> vector<64x16xf32>
    %165 = tpu.concatenate %107, %126, %145, %164 in 1 : vector<64x16xf32>, vector<64x16xf32>, vector<64x16xf32>, vector<64x16xf32> -> vector<64x64xf32>
    %166 = arith.truncf %165 : vector<64x64xf32> to vector<64x64xbf16>
    %c0_67 = arith.constant 0 : index
    %c0_68 = arith.constant 0 : index
    %c0_69 = arith.constant 0 : index
    %167 = vector.load %arg15[%c0_67, %c0_68, %c0_69] : memref<2x64x64xbf16, #tpu.memory_space<vmem>>, vector<1x64x64xbf16>
    %168 = vector.shape_cast %167 : vector<1x64x64xbf16> to vector<64x64xbf16>
    %cst_70 = arith.constant dense<0.000000e+00> : vector<64x64xf32>
    %169 = tpu.matmul %166, %168, %cst_70 {dimension_numbers = #tpu.dot_dimension_numbers<[1], [0], [0], [1], [0, 0, 1, 1], [], []>} : vector<64x64xbf16>, vector<64x64xbf16>, vector<64x64xf32> -> vector<64x64xf32>
    %c0_71 = arith.constant 0 : index
    %c0_72 = arith.constant 0 : index
    %c0_73 = arith.constant 0 : index
    %170 = vector.load %arg16[%c0_71, %c0_72, %c0_73] : memref<2x1x64xf32, #tpu.memory_space<vmem>>, vector<1x1x64xf32>
    %171 = vector.shape_cast %170 : vector<1x1x64xf32> to vector<1x64xf32>
    %172 = vector.broadcast %171 : vector<1x64xf32> to vector<64x64xf32>
    %173 = arith.addf %169, %172 : vector<64x64xf32>
    %174 = vector.broadcast %50 : vector<1x64xf32> to vector<64x64xf32>
    %175 = arith.mulf %174, %173 : vector<64x64xf32>
    %176 = arith.addf %41, %175 : vector<64x64xf32>
    %cst_74 = arith.constant dense<0.000000e+00> : vector<64xf32>
    %177 = vector.multi_reduction <add>, %176, %cst_74 [1] : vector<64x64xf32> to vector<64xf32>
    %178 = vector.shape_cast %177 : vector<64xf32> to vector<64x1xf32>
    %cst_75 = arith.constant 6.400000e+01 : f32
    %179 = vector.broadcast %cst_75 : f32 to vector<64x1xf32>
    %180 = arith.divf %178, %179 : vector<64x1xf32>
    %181 = vector.broadcast %180 : vector<64x1xf32> to vector<64x64xf32>
    %182 = arith.subf %176, %181 : vector<64x64xf32>
    %183 = arith.mulf %182, %182 : vector<64x64xf32>
    %cst_76 = arith.constant dense<0.000000e+00> : vector<64xf32>
    %184 = vector.multi_reduction <add>, %183, %cst_76 [1] : vector<64x64xf32> to vector<64xf32>
    %185 = vector.shape_cast %184 : vector<64xf32> to vector<64x1xf32>
    %cst_77 = arith.constant 6.400000e+01 : f32
    %186 = vector.broadcast %cst_77 : f32 to vector<64x1xf32>
    %187 = arith.divf %185, %186 : vector<64x1xf32>
    %cst_78 = arith.constant 9.99999997E-7 : f32
    %188 = vector.broadcast %cst_78 : f32 to vector<64x1xf32>
    %189 = arith.addf %187, %188 : vector<64x1xf32>
    %190 = math.rsqrt %189 : vector<64x1xf32>
    %191 = vector.broadcast %190 : vector<64x1xf32> to vector<64x64xf32>
    %192 = arith.mulf %182, %191 : vector<64x64xf32>
    %cst_79 = arith.constant 1.000000e+00 : f32
    %193 = vector.broadcast %cst_79 : f32 to vector<1x64xf32>
    %194 = arith.addf %193, %52 : vector<1x64xf32>
    %195 = vector.broadcast %194 : vector<1x64xf32> to vector<64x64xf32>
    %196 = arith.mulf %192, %195 : vector<64x64xf32>
    %197 = vector.broadcast %51 : vector<1x64xf32> to vector<64x64xf32>
    %198 = arith.addf %196, %197 : vector<64x64xf32>
    %199 = arith.truncf %198 : vector<64x64xf32> to vector<64x64xbf16>
    %c0_80 = arith.constant 0 : index
    %c0_81 = arith.constant 0 : index
    %c0_82 = arith.constant 0 : index
    %200 = vector.load %arg17[%c0_80, %c0_81, %c0_82] : memref<2x64x256xbf16, #tpu.memory_space<vmem>>, vector<1x64x256xbf16>
    %201 = vector.shape_cast %200 : vector<1x64x256xbf16> to vector<64x256xbf16>
    %cst_83 = arith.constant dense<0.000000e+00> : vector<64x256xf32>
    %202 = tpu.matmul %199, %201, %cst_83 {dimension_numbers = #tpu.dot_dimension_numbers<[1], [0], [0], [1], [0, 0, 1, 1], [], []>} : vector<64x64xbf16>, vector<64x256xbf16>, vector<64x256xf32> -> vector<64x256xf32>
    %c0_84 = arith.constant 0 : index
    %c0_85 = arith.constant 0 : index
    %c0_86 = arith.constant 0 : index
    %203 = vector.load %arg18[%c0_84, %c0_85, %c0_86] : memref<2x1x256xf32, #tpu.memory_space<vmem>>, vector<1x1x256xf32>
    %204 = vector.shape_cast %203 : vector<1x1x256xf32> to vector<1x256xf32>
    %205 = vector.broadcast %204 : vector<1x256xf32> to vector<64x256xf32>
    %206 = arith.addf %202, %205 : vector<64x256xf32>
    %cst_87 = arith.constant 5.000000e-01 : f32
    %207 = vector.broadcast %cst_87 : f32 to vector<64x256xf32>
    %208 = arith.mulf %207, %206 : vector<64x256xf32>
    %cst_88 = arith.constant 4.471500e-02 : f32
    %209 = vector.broadcast %cst_88 : f32 to vector<64x256xf32>
    %210 = arith.mulf %209, %206 : vector<64x256xf32>
    %211 = arith.mulf %210, %206 : vector<64x256xf32>
    %212 = arith.mulf %211, %206 : vector<64x256xf32>
    %213 = arith.addf %206, %212 : vector<64x256xf32>
    %cst_89 = arith.constant 0.797884583 : f32
    %214 = vector.broadcast %cst_89 : f32 to vector<64x256xf32>
    %215 = arith.mulf %214, %213 : vector<64x256xf32>
    %216 = math.tanh %215 : vector<64x256xf32>
    %cst_90 = arith.constant 1.000000e+00 : f32
    %217 = vector.broadcast %cst_90 : f32 to vector<64x256xf32>
    %218 = arith.addf %217, %216 : vector<64x256xf32>
    %219 = arith.mulf %208, %218 : vector<64x256xf32>
    %220 = arith.truncf %219 : vector<64x256xf32> to vector<64x256xbf16>
    %c0_91 = arith.constant 0 : index
    %c0_92 = arith.constant 0 : index
    %c0_93 = arith.constant 0 : index
    %221 = vector.load %arg19[%c0_91, %c0_92, %c0_93] : memref<2x256x64xbf16, #tpu.memory_space<vmem>>, vector<1x256x64xbf16>
    %222 = vector.shape_cast %221 : vector<1x256x64xbf16> to vector<256x64xbf16>
    %cst_94 = arith.constant dense<0.000000e+00> : vector<64x64xf32>
    %223 = tpu.matmul %220, %222, %cst_94 {dimension_numbers = #tpu.dot_dimension_numbers<[1], [0], [0], [1], [0, 0, 1, 1], [], []>} : vector<64x256xbf16>, vector<256x64xbf16>, vector<64x64xf32> -> vector<64x64xf32>
    %c0_95 = arith.constant 0 : index
    %c0_96 = arith.constant 0 : index
    %c0_97 = arith.constant 0 : index
    %224 = vector.load %arg20[%c0_95, %c0_96, %c0_97] : memref<2x1x64xf32, #tpu.memory_space<vmem>>, vector<1x1x64xf32>
    %225 = vector.shape_cast %224 : vector<1x1x64xf32> to vector<1x64xf32>
    %226 = vector.broadcast %225 : vector<1x64xf32> to vector<64x64xf32>
    %227 = arith.addf %223, %226 : vector<64x64xf32>
    %228 = vector.broadcast %53 : vector<1x64xf32> to vector<64x64xf32>
    %229 = arith.mulf %228, %227 : vector<64x64xf32>
    %230 = arith.addf %176, %229 : vector<64x64xf32>
    %c1 = arith.constant 1 : index
    %c0_98 = arith.constant 0 : index
    %c0_99 = arith.constant 0 : index
    %231 = vector.load %arg11[%c1, %c0_98, %c0_99] : memref<2x64x384xbf16, #tpu.memory_space<vmem>>, vector<1x64x384xbf16>
    %232 = vector.shape_cast %231 : vector<1x64x384xbf16> to vector<64x384xbf16>
    %cst_100 = arith.constant dense<0.000000e+00> : vector<1x384xf32>
    %233 = tpu.matmul %31, %232, %cst_100 {dimension_numbers = #tpu.dot_dimension_numbers<[1], [0], [0], [1], [0, 0, 1, 1], [], []>} : vector<1x64xbf16>, vector<64x384xbf16>, vector<1x384xf32> -> vector<1x384xf32>
    %c1_101 = arith.constant 1 : index
    %c0_102 = arith.constant 0 : index
    %c0_103 = arith.constant 0 : index
    %234 = vector.load %arg12[%c1_101, %c0_102, %c0_103] : memref<2x1x384xf32, #tpu.memory_space<vmem>>, vector<1x1x384xf32>
    %235 = vector.shape_cast %234 : vector<1x1x384xf32> to vector<1x384xf32>
    %236 = arith.addf %233, %235 : vector<1x384xf32>
    %237 = vector.extract_strided_slice %236 {offsets = [0, 0], sizes = [1, 64], strides = [1, 1]} : vector<1x384xf32> to vector<1x64xf32>
    %238 = vector.extract_strided_slice %236 {offsets = [0, 64], sizes = [1, 64], strides = [1, 1]} : vector<1x384xf32> to vector<1x64xf32>
    %239 = vector.extract_strided_slice %236 {offsets = [0, 128], sizes = [1, 64], strides = [1, 1]} : vector<1x384xf32> to vector<1x64xf32>
    %240 = vector.extract_strided_slice %236 {offsets = [0, 192], sizes = [1, 64], strides = [1, 1]} : vector<1x384xf32> to vector<1x64xf32>
    %241 = vector.extract_strided_slice %236 {offsets = [0, 256], sizes = [1, 64], strides = [1, 1]} : vector<1x384xf32> to vector<1x64xf32>
    %242 = vector.extract_strided_slice %236 {offsets = [0, 320], sizes = [1, 64], strides = [1, 1]} : vector<1x384xf32> to vector<1x64xf32>
    %cst_104 = arith.constant dense<0.000000e+00> : vector<64xf32>
    %243 = vector.multi_reduction <add>, %230, %cst_104 [1] : vector<64x64xf32> to vector<64xf32>
    %244 = vector.shape_cast %243 : vector<64xf32> to vector<64x1xf32>
    %cst_105 = arith.constant 6.400000e+01 : f32
    %245 = vector.broadcast %cst_105 : f32 to vector<64x1xf32>
    %246 = arith.divf %244, %245 : vector<64x1xf32>
    %247 = vector.broadcast %246 : vector<64x1xf32> to vector<64x64xf32>
    %248 = arith.subf %230, %247 : vector<64x64xf32>
    %249 = arith.mulf %248, %248 : vector<64x64xf32>
    %cst_106 = arith.constant dense<0.000000e+00> : vector<64xf32>
    %250 = vector.multi_reduction <add>, %249, %cst_106 [1] : vector<64x64xf32> to vector<64xf32>
    %251 = vector.shape_cast %250 : vector<64xf32> to vector<64x1xf32>
    %cst_107 = arith.constant 6.400000e+01 : f32
    %252 = vector.broadcast %cst_107 : f32 to vector<64x1xf32>
    %253 = arith.divf %251, %252 : vector<64x1xf32>
    %cst_108 = arith.constant 9.99999997E-7 : f32
    %254 = vector.broadcast %cst_108 : f32 to vector<64x1xf32>
    %255 = arith.addf %253, %254 : vector<64x1xf32>
    %256 = math.rsqrt %255 : vector<64x1xf32>
    %257 = vector.broadcast %256 : vector<64x1xf32> to vector<64x64xf32>
    %258 = arith.mulf %248, %257 : vector<64x64xf32>
    %cst_109 = arith.constant 1.000000e+00 : f32
    %259 = vector.broadcast %cst_109 : f32 to vector<1x64xf32>
    %260 = arith.addf %259, %238 : vector<1x64xf32>
    %261 = vector.broadcast %260 : vector<1x64xf32> to vector<64x64xf32>
    %262 = arith.mulf %258, %261 : vector<64x64xf32>
    %263 = vector.broadcast %237 : vector<1x64xf32> to vector<64x64xf32>
    %264 = arith.addf %262, %263 : vector<64x64xf32>
    %265 = arith.truncf %264 : vector<64x64xf32> to vector<64x64xbf16>
    %c1_110 = arith.constant 1 : index
    %c0_111 = arith.constant 0 : index
    %c0_112 = arith.constant 0 : index
    %266 = vector.load %arg13[%c1_110, %c0_111, %c0_112] : memref<2x64x192xbf16, #tpu.memory_space<vmem>>, vector<1x64x192xbf16>
    %267 = vector.shape_cast %266 : vector<1x64x192xbf16> to vector<64x192xbf16>
    %cst_113 = arith.constant dense<0.000000e+00> : vector<64x192xf32>
    %268 = tpu.matmul %265, %267, %cst_113 {dimension_numbers = #tpu.dot_dimension_numbers<[1], [0], [0], [1], [0, 0, 1, 1], [], []>} : vector<64x64xbf16>, vector<64x192xbf16>, vector<64x192xf32> -> vector<64x192xf32>
    %c1_114 = arith.constant 1 : index
    %c0_115 = arith.constant 0 : index
    %c0_116 = arith.constant 0 : index
    %269 = vector.load %arg14[%c1_114, %c0_115, %c0_116] : memref<2x1x192xf32, #tpu.memory_space<vmem>>, vector<1x1x192xf32>
    %270 = vector.shape_cast %269 : vector<1x1x192xf32> to vector<1x192xf32>
    %271 = vector.broadcast %270 : vector<1x192xf32> to vector<64x192xf32>
    %272 = arith.addf %268, %271 : vector<64x192xf32>
    %273 = vector.extract_strided_slice %272 {offsets = [0, 0], sizes = [64, 64], strides = [1, 1]} : vector<64x192xf32> to vector<64x64xf32>
    %cst_117 = arith.constant 2.500000e-01 : f32
    %274 = vector.broadcast %cst_117 : f32 to vector<64x64xf32>
    %275 = arith.mulf %273, %274 : vector<64x64xf32>
    %276 = vector.extract_strided_slice %272 {offsets = [0, 64], sizes = [64, 64], strides = [1, 1]} : vector<64x192xf32> to vector<64x64xf32>
    %277 = vector.extract_strided_slice %272 {offsets = [0, 128], sizes = [64, 64], strides = [1, 1]} : vector<64x192xf32> to vector<64x64xf32>
    %278 = vector.extract_strided_slice %275 {offsets = [0, 0], sizes = [64, 16], strides = [1, 1]} : vector<64x64xf32> to vector<64x16xf32>
    %279 = arith.truncf %278 : vector<64x16xf32> to vector<64x16xbf16>
    %280 = vector.extract_strided_slice %276 {offsets = [0, 0], sizes = [64, 16], strides = [1, 1]} : vector<64x64xf32> to vector<64x16xf32>
    %281 = arith.truncf %280 : vector<64x16xf32> to vector<64x16xbf16>
    %cst_118 = arith.constant dense<0.000000e+00> : vector<64x64xf32>
    %282 = tpu.matmul %279, %281, %cst_118 {dimension_numbers = #tpu.dot_dimension_numbers<[1], [1], [0], [0], [0, 0, 1, 0], [], []>} : vector<64x16xbf16>, vector<64x16xbf16>, vector<64x64xf32> -> vector<64x64xf32>
    %cst_119 = arith.constant dense<0xFF800000> : vector<64xf32>
    %283 = vector.multi_reduction <maximumf>, %282, %cst_119 [1] : vector<64x64xf32> to vector<64xf32>
    %284 = vector.shape_cast %283 : vector<64xf32> to vector<64x1xf32>
    %285 = vector.broadcast %284 : vector<64x1xf32> to vector<64x64xf32>
    %286 = arith.subf %282, %285 : vector<64x64xf32>
    %287 = math.exp %286 : vector<64x64xf32>
    %cst_120 = arith.constant dense<0.000000e+00> : vector<64xf32>
    %288 = vector.multi_reduction <add>, %287, %cst_120 [1] : vector<64x64xf32> to vector<64xf32>
    %289 = vector.shape_cast %288 : vector<64xf32> to vector<64x1xf32>
    %290 = tpu.reciprocal %289 {approx = true} : vector<64x1xf32> -> vector<64x1xf32>
    %291 = vector.broadcast %290 : vector<64x1xf32> to vector<64x64xf32>
    %292 = arith.mulf %287, %291 : vector<64x64xf32>
    %293 = arith.truncf %292 : vector<64x64xf32> to vector<64x64xbf16>
    %294 = vector.extract_strided_slice %277 {offsets = [0, 0], sizes = [64, 16], strides = [1, 1]} : vector<64x64xf32> to vector<64x16xf32>
    %295 = arith.truncf %294 : vector<64x16xf32> to vector<64x16xbf16>
    %cst_121 = arith.constant dense<0.000000e+00> : vector<64x16xf32>
    %296 = tpu.matmul %293, %295, %cst_121 {dimension_numbers = #tpu.dot_dimension_numbers<[1], [0], [0], [1], [0, 0, 1, 1], [], []>} : vector<64x64xbf16>, vector<64x16xbf16>, vector<64x16xf32> -> vector<64x16xf32>
    %297 = vector.extract_strided_slice %275 {offsets = [0, 16], sizes = [64, 16], strides = [1, 1]} : vector<64x64xf32> to vector<64x16xf32>
    %298 = arith.truncf %297 : vector<64x16xf32> to vector<64x16xbf16>
    %299 = vector.extract_strided_slice %276 {offsets = [0, 16], sizes = [64, 16], strides = [1, 1]} : vector<64x64xf32> to vector<64x16xf32>
    %300 = arith.truncf %299 : vector<64x16xf32> to vector<64x16xbf16>
    %cst_122 = arith.constant dense<0.000000e+00> : vector<64x64xf32>
    %301 = tpu.matmul %298, %300, %cst_122 {dimension_numbers = #tpu.dot_dimension_numbers<[1], [1], [0], [0], [0, 0, 1, 0], [], []>} : vector<64x16xbf16>, vector<64x16xbf16>, vector<64x64xf32> -> vector<64x64xf32>
    %cst_123 = arith.constant dense<0xFF800000> : vector<64xf32>
    %302 = vector.multi_reduction <maximumf>, %301, %cst_123 [1] : vector<64x64xf32> to vector<64xf32>
    %303 = vector.shape_cast %302 : vector<64xf32> to vector<64x1xf32>
    %304 = vector.broadcast %303 : vector<64x1xf32> to vector<64x64xf32>
    %305 = arith.subf %301, %304 : vector<64x64xf32>
    %306 = math.exp %305 : vector<64x64xf32>
    %cst_124 = arith.constant dense<0.000000e+00> : vector<64xf32>
    %307 = vector.multi_reduction <add>, %306, %cst_124 [1] : vector<64x64xf32> to vector<64xf32>
    %308 = vector.shape_cast %307 : vector<64xf32> to vector<64x1xf32>
    %309 = tpu.reciprocal %308 {approx = true} : vector<64x1xf32> -> vector<64x1xf32>
    %310 = vector.broadcast %309 : vector<64x1xf32> to vector<64x64xf32>
    %311 = arith.mulf %306, %310 : vector<64x64xf32>
    %312 = arith.truncf %311 : vector<64x64xf32> to vector<64x64xbf16>
    %313 = vector.extract_strided_slice %277 {offsets = [0, 16], sizes = [64, 16], strides = [1, 1]} : vector<64x64xf32> to vector<64x16xf32>
    %314 = arith.truncf %313 : vector<64x16xf32> to vector<64x16xbf16>
    %cst_125 = arith.constant dense<0.000000e+00> : vector<64x16xf32>
    %315 = tpu.matmul %312, %314, %cst_125 {dimension_numbers = #tpu.dot_dimension_numbers<[1], [0], [0], [1], [0, 0, 1, 1], [], []>} : vector<64x64xbf16>, vector<64x16xbf16>, vector<64x16xf32> -> vector<64x16xf32>
    %316 = vector.extract_strided_slice %275 {offsets = [0, 32], sizes = [64, 16], strides = [1, 1]} : vector<64x64xf32> to vector<64x16xf32>
    %317 = arith.truncf %316 : vector<64x16xf32> to vector<64x16xbf16>
    %318 = vector.extract_strided_slice %276 {offsets = [0, 32], sizes = [64, 16], strides = [1, 1]} : vector<64x64xf32> to vector<64x16xf32>
    %319 = arith.truncf %318 : vector<64x16xf32> to vector<64x16xbf16>
    %cst_126 = arith.constant dense<0.000000e+00> : vector<64x64xf32>
    %320 = tpu.matmul %317, %319, %cst_126 {dimension_numbers = #tpu.dot_dimension_numbers<[1], [1], [0], [0], [0, 0, 1, 0], [], []>} : vector<64x16xbf16>, vector<64x16xbf16>, vector<64x64xf32> -> vector<64x64xf32>
    %cst_127 = arith.constant dense<0xFF800000> : vector<64xf32>
    %321 = vector.multi_reduction <maximumf>, %320, %cst_127 [1] : vector<64x64xf32> to vector<64xf32>
    %322 = vector.shape_cast %321 : vector<64xf32> to vector<64x1xf32>
    %323 = vector.broadcast %322 : vector<64x1xf32> to vector<64x64xf32>
    %324 = arith.subf %320, %323 : vector<64x64xf32>
    %325 = math.exp %324 : vector<64x64xf32>
    %cst_128 = arith.constant dense<0.000000e+00> : vector<64xf32>
    %326 = vector.multi_reduction <add>, %325, %cst_128 [1] : vector<64x64xf32> to vector<64xf32>
    %327 = vector.shape_cast %326 : vector<64xf32> to vector<64x1xf32>
    %328 = tpu.reciprocal %327 {approx = true} : vector<64x1xf32> -> vector<64x1xf32>
    %329 = vector.broadcast %328 : vector<64x1xf32> to vector<64x64xf32>
    %330 = arith.mulf %325, %329 : vector<64x64xf32>
    %331 = arith.truncf %330 : vector<64x64xf32> to vector<64x64xbf16>
    %332 = vector.extract_strided_slice %277 {offsets = [0, 32], sizes = [64, 16], strides = [1, 1]} : vector<64x64xf32> to vector<64x16xf32>
    %333 = arith.truncf %332 : vector<64x16xf32> to vector<64x16xbf16>
    %cst_129 = arith.constant dense<0.000000e+00> : vector<64x16xf32>
    %334 = tpu.matmul %331, %333, %cst_129 {dimension_numbers = #tpu.dot_dimension_numbers<[1], [0], [0], [1], [0, 0, 1, 1], [], []>} : vector<64x64xbf16>, vector<64x16xbf16>, vector<64x16xf32> -> vector<64x16xf32>
    %335 = vector.extract_strided_slice %275 {offsets = [0, 48], sizes = [64, 16], strides = [1, 1]} : vector<64x64xf32> to vector<64x16xf32>
    %336 = arith.truncf %335 : vector<64x16xf32> to vector<64x16xbf16>
    %337 = vector.extract_strided_slice %276 {offsets = [0, 48], sizes = [64, 16], strides = [1, 1]} : vector<64x64xf32> to vector<64x16xf32>
    %338 = arith.truncf %337 : vector<64x16xf32> to vector<64x16xbf16>
    %cst_130 = arith.constant dense<0.000000e+00> : vector<64x64xf32>
    %339 = tpu.matmul %336, %338, %cst_130 {dimension_numbers = #tpu.dot_dimension_numbers<[1], [1], [0], [0], [0, 0, 1, 0], [], []>} : vector<64x16xbf16>, vector<64x16xbf16>, vector<64x64xf32> -> vector<64x64xf32>
    %cst_131 = arith.constant dense<0xFF800000> : vector<64xf32>
    %340 = vector.multi_reduction <maximumf>, %339, %cst_131 [1] : vector<64x64xf32> to vector<64xf32>
    %341 = vector.shape_cast %340 : vector<64xf32> to vector<64x1xf32>
    %342 = vector.broadcast %341 : vector<64x1xf32> to vector<64x64xf32>
    %343 = arith.subf %339, %342 : vector<64x64xf32>
    %344 = math.exp %343 : vector<64x64xf32>
    %cst_132 = arith.constant dense<0.000000e+00> : vector<64xf32>
    %345 = vector.multi_reduction <add>, %344, %cst_132 [1] : vector<64x64xf32> to vector<64xf32>
    %346 = vector.shape_cast %345 : vector<64xf32> to vector<64x1xf32>
    %347 = tpu.reciprocal %346 {approx = true} : vector<64x1xf32> -> vector<64x1xf32>
    %348 = vector.broadcast %347 : vector<64x1xf32> to vector<64x64xf32>
    %349 = arith.mulf %344, %348 : vector<64x64xf32>
    %350 = arith.truncf %349 : vector<64x64xf32> to vector<64x64xbf16>
    %351 = vector.extract_strided_slice %277 {offsets = [0, 48], sizes = [64, 16], strides = [1, 1]} : vector<64x64xf32> to vector<64x16xf32>
    %352 = arith.truncf %351 : vector<64x16xf32> to vector<64x16xbf16>
    %cst_133 = arith.constant dense<0.000000e+00> : vector<64x16xf32>
    %353 = tpu.matmul %350, %352, %cst_133 {dimension_numbers = #tpu.dot_dimension_numbers<[1], [0], [0], [1], [0, 0, 1, 1], [], []>} : vector<64x64xbf16>, vector<64x16xbf16>, vector<64x16xf32> -> vector<64x16xf32>
    %354 = tpu.concatenate %296, %315, %334, %353 in 1 : vector<64x16xf32>, vector<64x16xf32>, vector<64x16xf32>, vector<64x16xf32> -> vector<64x64xf32>
    %355 = arith.truncf %354 : vector<64x64xf32> to vector<64x64xbf16>
    %c1_134 = arith.constant 1 : index
    %c0_135 = arith.constant 0 : index
    %c0_136 = arith.constant 0 : index
    %356 = vector.load %arg15[%c1_134, %c0_135, %c0_136] : memref<2x64x64xbf16, #tpu.memory_space<vmem>>, vector<1x64x64xbf16>
    %357 = vector.shape_cast %356 : vector<1x64x64xbf16> to vector<64x64xbf16>
    %cst_137 = arith.constant dense<0.000000e+00> : vector<64x64xf32>
    %358 = tpu.matmul %355, %357, %cst_137 {dimension_numbers = #tpu.dot_dimension_numbers<[1], [0], [0], [1], [0, 0, 1, 1], [], []>} : vector<64x64xbf16>, vector<64x64xbf16>, vector<64x64xf32> -> vector<64x64xf32>
    %c1_138 = arith.constant 1 : index
    %c0_139 = arith.constant 0 : index
    %c0_140 = arith.constant 0 : index
    %359 = vector.load %arg16[%c1_138, %c0_139, %c0_140] : memref<2x1x64xf32, #tpu.memory_space<vmem>>, vector<1x1x64xf32>
    %360 = vector.shape_cast %359 : vector<1x1x64xf32> to vector<1x64xf32>
    %361 = vector.broadcast %360 : vector<1x64xf32> to vector<64x64xf32>
    %362 = arith.addf %358, %361 : vector<64x64xf32>
    %363 = vector.broadcast %239 : vector<1x64xf32> to vector<64x64xf32>
    %364 = arith.mulf %363, %362 : vector<64x64xf32>
    %365 = arith.addf %230, %364 : vector<64x64xf32>
    %cst_141 = arith.constant dense<0.000000e+00> : vector<64xf32>
    %366 = vector.multi_reduction <add>, %365, %cst_141 [1] : vector<64x64xf32> to vector<64xf32>
    %367 = vector.shape_cast %366 : vector<64xf32> to vector<64x1xf32>
    %cst_142 = arith.constant 6.400000e+01 : f32
    %368 = vector.broadcast %cst_142 : f32 to vector<64x1xf32>
    %369 = arith.divf %367, %368 : vector<64x1xf32>
    %370 = vector.broadcast %369 : vector<64x1xf32> to vector<64x64xf32>
    %371 = arith.subf %365, %370 : vector<64x64xf32>
    %372 = arith.mulf %371, %371 : vector<64x64xf32>
    %cst_143 = arith.constant dense<0.000000e+00> : vector<64xf32>
    %373 = vector.multi_reduction <add>, %372, %cst_143 [1] : vector<64x64xf32> to vector<64xf32>
    %374 = vector.shape_cast %373 : vector<64xf32> to vector<64x1xf32>
    %cst_144 = arith.constant 6.400000e+01 : f32
    %375 = vector.broadcast %cst_144 : f32 to vector<64x1xf32>
    %376 = arith.divf %374, %375 : vector<64x1xf32>
    %cst_145 = arith.constant 9.99999997E-7 : f32
    %377 = vector.broadcast %cst_145 : f32 to vector<64x1xf32>
    %378 = arith.addf %376, %377 : vector<64x1xf32>
    %379 = math.rsqrt %378 : vector<64x1xf32>
    %380 = vector.broadcast %379 : vector<64x1xf32> to vector<64x64xf32>
    %381 = arith.mulf %371, %380 : vector<64x64xf32>
    %cst_146 = arith.constant 1.000000e+00 : f32
    %382 = vector.broadcast %cst_146 : f32 to vector<1x64xf32>
    %383 = arith.addf %382, %241 : vector<1x64xf32>
    %384 = vector.broadcast %383 : vector<1x64xf32> to vector<64x64xf32>
    %385 = arith.mulf %381, %384 : vector<64x64xf32>
    %386 = vector.broadcast %240 : vector<1x64xf32> to vector<64x64xf32>
    %387 = arith.addf %385, %386 : vector<64x64xf32>
    %388 = arith.truncf %387 : vector<64x64xf32> to vector<64x64xbf16>
    %c1_147 = arith.constant 1 : index
    %c0_148 = arith.constant 0 : index
    %c0_149 = arith.constant 0 : index
    %389 = vector.load %arg17[%c1_147, %c0_148, %c0_149] : memref<2x64x256xbf16, #tpu.memory_space<vmem>>, vector<1x64x256xbf16>
    %390 = vector.shape_cast %389 : vector<1x64x256xbf16> to vector<64x256xbf16>
    %cst_150 = arith.constant dense<0.000000e+00> : vector<64x256xf32>
    %391 = tpu.matmul %388, %390, %cst_150 {dimension_numbers = #tpu.dot_dimension_numbers<[1], [0], [0], [1], [0, 0, 1, 1], [], []>} : vector<64x64xbf16>, vector<64x256xbf16>, vector<64x256xf32> -> vector<64x256xf32>
    %c1_151 = arith.constant 1 : index
    %c0_152 = arith.constant 0 : index
    %c0_153 = arith.constant 0 : index
    %392 = vector.load %arg18[%c1_151, %c0_152, %c0_153] : memref<2x1x256xf32, #tpu.memory_space<vmem>>, vector<1x1x256xf32>
    %393 = vector.shape_cast %392 : vector<1x1x256xf32> to vector<1x256xf32>
    %394 = vector.broadcast %393 : vector<1x256xf32> to vector<64x256xf32>
    %395 = arith.addf %391, %394 : vector<64x256xf32>
    %cst_154 = arith.constant 5.000000e-01 : f32
    %396 = vector.broadcast %cst_154 : f32 to vector<64x256xf32>
    %397 = arith.mulf %396, %395 : vector<64x256xf32>
    %cst_155 = arith.constant 4.471500e-02 : f32
    %398 = vector.broadcast %cst_155 : f32 to vector<64x256xf32>
    %399 = arith.mulf %398, %395 : vector<64x256xf32>
    %400 = arith.mulf %399, %395 : vector<64x256xf32>
    %401 = arith.mulf %400, %395 : vector<64x256xf32>
    %402 = arith.addf %395, %401 : vector<64x256xf32>
    %cst_156 = arith.constant 0.797884583 : f32
    %403 = vector.broadcast %cst_156 : f32 to vector<64x256xf32>
    %404 = arith.mulf %403, %402 : vector<64x256xf32>
    %405 = math.tanh %404 : vector<64x256xf32>
    %cst_157 = arith.constant 1.000000e+00 : f32
    %406 = vector.broadcast %cst_157 : f32 to vector<64x256xf32>
    %407 = arith.addf %406, %405 : vector<64x256xf32>
    %408 = arith.mulf %397, %407 : vector<64x256xf32>
    %409 = arith.truncf %408 : vector<64x256xf32> to vector<64x256xbf16>
    %c1_158 = arith.constant 1 : index
    %c0_159 = arith.constant 0 : index
    %c0_160 = arith.constant 0 : index
    %410 = vector.load %arg19[%c1_158, %c0_159, %c0_160] : memref<2x256x64xbf16, #tpu.memory_space<vmem>>, vector<1x256x64xbf16>
    %411 = vector.shape_cast %410 : vector<1x256x64xbf16> to vector<256x64xbf16>
    %cst_161 = arith.constant dense<0.000000e+00> : vector<64x64xf32>
    %412 = tpu.matmul %409, %411, %cst_161 {dimension_numbers = #tpu.dot_dimension_numbers<[1], [0], [0], [1], [0, 0, 1, 1], [], []>} : vector<64x256xbf16>, vector<256x64xbf16>, vector<64x64xf32> -> vector<64x64xf32>
    %c1_162 = arith.constant 1 : index
    %c0_163 = arith.constant 0 : index
    %c0_164 = arith.constant 0 : index
    %413 = vector.load %arg20[%c1_162, %c0_163, %c0_164] : memref<2x1x64xf32, #tpu.memory_space<vmem>>, vector<1x1x64xf32>
    %414 = vector.shape_cast %413 : vector<1x1x64xf32> to vector<1x64xf32>
    %415 = vector.broadcast %414 : vector<1x64xf32> to vector<64x64xf32>
    %416 = arith.addf %412, %415 : vector<64x64xf32>
    %417 = vector.broadcast %242 : vector<1x64xf32> to vector<64x64xf32>
    %418 = arith.mulf %417, %416 : vector<64x64xf32>
    %419 = arith.addf %365, %418 : vector<64x64xf32>
    %c0_165 = arith.constant 0 : index
    %c0_166 = arith.constant 0 : index
    %420 = vector.load %arg21[%c0_165, %c0_166] : memref<64x128xbf16, #tpu.memory_space<vmem>>, vector<64x128xbf16>
    %cst_167 = arith.constant dense<0.000000e+00> : vector<1x128xf32>
    %421 = tpu.matmul %31, %420, %cst_167 {dimension_numbers = #tpu.dot_dimension_numbers<[1], [0], [0], [1], [0, 0, 1, 1], [], []>} : vector<1x64xbf16>, vector<64x128xbf16>, vector<1x128xf32> -> vector<1x128xf32>
    %c0_168 = arith.constant 0 : index
    %c0_169 = arith.constant 0 : index
    %422 = vector.load %arg22[%c0_168, %c0_169] : memref<1x128xf32, #tpu.memory_space<vmem>>, vector<1x128xf32>
    %423 = arith.addf %421, %422 : vector<1x128xf32>
    %424 = vector.extract_strided_slice %423 {offsets = [0, 0], sizes = [1, 64], strides = [1, 1]} : vector<1x128xf32> to vector<1x64xf32>
    %425 = vector.extract_strided_slice %423 {offsets = [0, 64], sizes = [1, 64], strides = [1, 1]} : vector<1x128xf32> to vector<1x64xf32>
    %cst_170 = arith.constant dense<0.000000e+00> : vector<64xf32>
    %426 = vector.multi_reduction <add>, %419, %cst_170 [1] : vector<64x64xf32> to vector<64xf32>
    %427 = vector.shape_cast %426 : vector<64xf32> to vector<64x1xf32>
    %cst_171 = arith.constant 6.400000e+01 : f32
    %428 = vector.broadcast %cst_171 : f32 to vector<64x1xf32>
    %429 = arith.divf %427, %428 : vector<64x1xf32>
    %430 = vector.broadcast %429 : vector<64x1xf32> to vector<64x64xf32>
    %431 = arith.subf %419, %430 : vector<64x64xf32>
    %432 = arith.mulf %431, %431 : vector<64x64xf32>
    %cst_172 = arith.constant dense<0.000000e+00> : vector<64xf32>
    %433 = vector.multi_reduction <add>, %432, %cst_172 [1] : vector<64x64xf32> to vector<64xf32>
    %434 = vector.shape_cast %433 : vector<64xf32> to vector<64x1xf32>
    %cst_173 = arith.constant 6.400000e+01 : f32
    %435 = vector.broadcast %cst_173 : f32 to vector<64x1xf32>
    %436 = arith.divf %434, %435 : vector<64x1xf32>
    %cst_174 = arith.constant 9.99999997E-7 : f32
    %437 = vector.broadcast %cst_174 : f32 to vector<64x1xf32>
    %438 = arith.addf %436, %437 : vector<64x1xf32>
    %439 = math.rsqrt %438 : vector<64x1xf32>
    %440 = vector.broadcast %439 : vector<64x1xf32> to vector<64x64xf32>
    %441 = arith.mulf %431, %440 : vector<64x64xf32>
    %cst_175 = arith.constant 1.000000e+00 : f32
    %442 = vector.broadcast %cst_175 : f32 to vector<1x64xf32>
    %443 = arith.addf %442, %425 : vector<1x64xf32>
    %444 = vector.broadcast %443 : vector<1x64xf32> to vector<64x64xf32>
    %445 = arith.mulf %441, %444 : vector<64x64xf32>
    %446 = vector.broadcast %424 : vector<1x64xf32> to vector<64x64xf32>
    %447 = arith.addf %445, %446 : vector<64x64xf32>
    %448 = arith.truncf %447 : vector<64x64xf32> to vector<64x64xbf16>
    %c0_176 = arith.constant 0 : index
    %c0_177 = arith.constant 0 : index
    %449 = vector.load %arg23[%c0_176, %c0_177] : memref<64x32xbf16, #tpu.memory_space<vmem>>, vector<64x32xbf16>
    %cst_178 = arith.constant dense<0.000000e+00> : vector<64x32xf32>
    %450 = tpu.matmul %448, %449, %cst_178 {dimension_numbers = #tpu.dot_dimension_numbers<[1], [0], [0], [1], [0, 0, 1, 1], [], []>} : vector<64x64xbf16>, vector<64x32xbf16>, vector<64x32xf32> -> vector<64x32xf32>
    %c0_179 = arith.constant 0 : index
    %c0_180 = arith.constant 0 : index
    %451 = vector.load %arg24[%c0_179, %c0_180] : memref<1x32xf32, #tpu.memory_space<vmem>>, vector<1x32xf32>
    %452 = vector.broadcast %451 : vector<1x32xf32> to vector<64x32xf32>
    %453 = arith.addf %450, %452 : vector<64x32xf32>
    %c0_181 = arith.constant 0 : index
    %c0_182 = arith.constant 0 : index
    %c0_183 = arith.constant 0 : index
    %454 = vector.load %arg25[%c0_181, %c0_182, %c0_183] : memref<1x64x32xf32, #tpu.memory_space<vmem>>, vector<1x64x32xf32>
    %455 = vector.shape_cast %454 : vector<1x64x32xf32> to vector<64x32xf32>
    %456 = vector.shape_cast %453 : vector<64x32xf32> to vector<1x64x32xf32>
    tpu.vector_store %arg25[%c0_181, %c0_182, %c0_183], %456 {strides = array<i32>} : memref<1x64x32xf32, #tpu.memory_space<vmem>>, vector<1x64x32xf32>,
    return
  }
  func.func @transform_0(%arg0: i32) -> (i32, i32, i32) {
    %c0_i32 = arith.constant 0 : i32
    %c0_i32_0 = arith.constant 0 : i32
    %c0_i32_1 = arith.constant 0 : i32
    return %arg0, %c0_i32, %c0_i32_0 : i32, i32, i32
  }
  func.func @transform_1(%arg0: i32) -> (i32, i32) {
    %c0_i32 = arith.constant 0 : i32
    %c0_i32_0 = arith.constant 0 : i32
    %c0_i32_1 = arith.constant 0 : i32
    return %c0_i32, %c0_i32_0 : i32, i32
  }
  func.func @transform_2(%arg0: i32) -> (i32, i32) {
    %c0_i32 = arith.constant 0 : i32
    %c0_i32_0 = arith.constant 0 : i32
    %c0_i32_1 = arith.constant 0 : i32
    return %c0_i32, %c0_i32_0 : i32, i32
  }
  func.func @transform_3(%arg0: i32) -> (i32, i32) {
    %c0_i32 = arith.constant 0 : i32
    %c0_i32_0 = arith.constant 0 : i32
    %c0_i32_1 = arith.constant 0 : i32
    return %c0_i32, %c0_i32_0 : i32, i32
  }
  func.func @transform_4(%arg0: i32) -> (i32, i32) {
    %c0_i32 = arith.constant 0 : i32
    %c0_i32_0 = arith.constant 0 : i32
    %c0_i32_1 = arith.constant 0 : i32
    return %c0_i32, %c0_i32_0 : i32, i32
  }
  func.func @transform_5(%arg0: i32) -> (i32, i32, i32) {
    %c0_i32 = arith.constant 0 : i32
    %c0_i32_0 = arith.constant 0 : i32
    %c0_i32_1 = arith.constant 0 : i32
    return %arg0, %c0_i32, %c0_i32_0 : i32, i32, i32
  }
  func.func @transform_6(%arg0: i32) -> (i32, i32, i32) {
    %c0_i32 = arith.constant 0 : i32
    %c0_i32_0 = arith.constant 0 : i32
    %c0_i32_1 = arith.constant 0 : i32
    return %arg0, %c0_i32, %c0_i32_0 : i32, i32, i32
  }
  func.func @transform_7(%arg0: i32) -> (i32, i32) {
    %c0_i32 = arith.constant 0 : i32
    %c0_i32_0 = arith.constant 0 : i32
    %c0_i32_1 = arith.constant 0 : i32
    return %c0_i32, %c0_i32_0 : i32, i32
  }
  func.func @transform_8(%arg0: i32) -> (i32, i32) {
    %c0_i32 = arith.constant 0 : i32
    %c0_i32_0 = arith.constant 0 : i32
    %c0_i32_1 = arith.constant 0 : i32
    return %c0_i32, %c0_i32_0 : i32, i32
  }
  func.func @transform_9(%arg0: i32) -> (i32, i32) {
    %c0_i32 = arith.constant 0 : i32
    %c0_i32_0 = arith.constant 0 : i32
    %c0_i32_1 = arith.constant 0 : i32
    return %c0_i32, %c0_i32_0 : i32, i32
  }
  func.func @transform_10(%arg0: i32) -> (i32, i32, i32) {
    %c0_i32 = arith.constant 0 : i32
    %c0_i32_0 = arith.constant 0 : i32
    %c0_i32_1 = arith.constant 0 : i32
    %c0_i32_2 = arith.constant 0 : i32
    return %c0_i32, %c0_i32_0, %c0_i32_1 : i32, i32, i32
  }
  func.func @transform_11(%arg0: i32) -> (i32, i32, i32) {
    %c0_i32 = arith.constant 0 : i32
    %c0_i32_0 = arith.constant 0 : i32
    %c0_i32_1 = arith.constant 0 : i32
    %c0_i32_2 = arith.constant 0 : i32
    return %c0_i32, %c0_i32_0, %c0_i32_1 : i32, i32, i32
  }
  func.func @transform_12(%arg0: i32) -> (i32, i32, i32) {
    %c0_i32 = arith.constant 0 : i32
    %c0_i32_0 = arith.constant 0 : i32
    %c0_i32_1 = arith.constant 0 : i32
    %c0_i32_2 = arith.constant 0 : i32
    return %c0_i32, %c0_i32_0, %c0_i32_1 : i32, i32, i32
  }
  func.func @transform_13(%arg0: i32) -> (i32, i32, i32) {
    %c0_i32 = arith.constant 0 : i32
    %c0_i32_0 = arith.constant 0 : i32
    %c0_i32_1 = arith.constant 0 : i32
    %c0_i32_2 = arith.constant 0 : i32
    return %c0_i32, %c0_i32_0, %c0_i32_1 : i32, i32, i32
  }
  func.func @transform_14(%arg0: i32) -> (i32, i32, i32) {
    %c0_i32 = arith.constant 0 : i32
    %c0_i32_0 = arith.constant 0 : i32
    %c0_i32_1 = arith.constant 0 : i32
    %c0_i32_2 = arith.constant 0 : i32
    return %c0_i32, %c0_i32_0, %c0_i32_1 : i32, i32, i32
  }
  func.func @transform_15(%arg0: i32) -> (i32, i32, i32) {
    %c0_i32 = arith.constant 0 : i32
    %c0_i32_0 = arith.constant 0 : i32
    %c0_i32_1 = arith.constant 0 : i32
    %c0_i32_2 = arith.constant 0 : i32
    return %c0_i32, %c0_i32_0, %c0_i32_1 : i32, i32, i32
  }
  func.func @transform_16(%arg0: i32) -> (i32, i32, i32) {
    %c0_i32 = arith.constant 0 : i32
    %c0_i32_0 = arith.constant 0 : i32
    %c0_i32_1 = arith.constant 0 : i32
    %c0_i32_2 = arith.constant 0 : i32
    return %c0_i32, %c0_i32_0, %c0_i32_1 : i32, i32, i32
  }
  func.func @transform_17(%arg0: i32) -> (i32, i32, i32) {
    %c0_i32 = arith.constant 0 : i32
    %c0_i32_0 = arith.constant 0 : i32
    %c0_i32_1 = arith.constant 0 : i32
    %c0_i32_2 = arith.constant 0 : i32
    return %c0_i32, %c0_i32_0, %c0_i32_1 : i32, i32, i32
  }
  func.func @transform_18(%arg0: i32) -> (i32, i32, i32) {
    %c0_i32 = arith.constant 0 : i32
    %c0_i32_0 = arith.constant 0 : i32
    %c0_i32_1 = arith.constant 0 : i32
    %c0_i32_2 = arith.constant 0 : i32
    return %c0_i32, %c0_i32_0, %c0_i32_1 : i32, i32, i32
  }
  func.func @transform_19(%arg0: i32) -> (i32, i32, i32) {
    %c0_i32 = arith.constant 0 : i32
    %c0_i32_0 = arith.constant 0 : i32
    %c0_i32_1 = arith.constant 0 : i32
    %c0_i32_2 = arith.constant 0 : i32
    return %c0_i32, %c0_i32_0, %c0_i32_1 : i32, i32, i32
  }
  func.func @transform_20(%arg0: i32) -> (i32, i32) {
    %c0_i32 = arith.constant 0 : i32
    %c0_i32_0 = arith.constant 0 : i32
    %c0_i32_1 = arith.constant 0 : i32
    return %c0_i32, %c0_i32_0 : i32, i32
  }
  func.func @transform_21(%arg0: i32) -> (i32, i32) {
    %c0_i32 = arith.constant 0 : i32
    %c0_i32_0 = arith.constant 0 : i32
    %c0_i32_1 = arith.constant 0 : i32
    return %c0_i32, %c0_i32_0 : i32, i32
  }
  func.func @transform_22(%arg0: i32) -> (i32, i32) {
    %c0_i32 = arith.constant 0 : i32
    %c0_i32_0 = arith.constant 0 : i32
    %c0_i32_1 = arith.constant 0 : i32
    return %c0_i32, %c0_i32_0 : i32, i32
  }
  func.func @transform_23(%arg0: i32) -> (i32, i32) {
    %c0_i32 = arith.constant 0 : i32
    %c0_i32_0 = arith.constant 0 : i32
    %c0_i32_1 = arith.constant 0 : i32
    return %c0_i32, %c0_i32_0 : i32, i32
  }
  func.func @transform_24(%arg0: i32) -> (i32, i32, i32) {
    %c0_i32 = arith.constant 0 : i32
    %c0_i32_0 = arith.constant 0 : i32
    %c0_i32_1 = arith.constant 0 : i32
    return %arg0, %c0_i32, %c0_i32_0 : i32, i32, i32
  }
}

</mosaic_0001>

<bundles_post_ra>
// kernel: dit_forward.1
= control target key start
LH: loop header
LB: loop body
LE: loop exit
PB: predicated region body
PF: predicated region fallthrough
CT: control target
= control target key end

     0   :  { %s10275_s0 = inlined_call_operand.vmem [shape: f32[2,1,256], index: 0, kind: input, shape index: {}]   ;;  %s10276_s1 = inlined_call_operand.vmem [shape: bf16[256,64], index: 1, kind: input, shape index: {}]   ;;  %s10277_s2 = inlined_call_operand.vmem [shape: f32[1,64], index: 2, kind: input, shape index: {}]   ;;  %s10278_s3 = inlined_call_operand.vmem [shape: bf16[64,64], index: 3, kind: input, shape index: {}]   ;;  %s10279_s4 = inlined_call_operand.vmem [shape: f32[1,64], index: 4, kind: input, shape index: {}]   ;;  %s10280_s5 = inlined_call_operand.vmem [shape: f32[2,1,64], index: 5, kind: input, shape index: {}]   ;;  %s10281_s6 = inlined_call_operand.vmem [shape: f32[2,64,16], index: 6, kind: input, shape index: {}]   ;;  %s10282_s7 = inlined_call_operand.vmem [shape: f32[64,64], index: 7, kind: input, shape index: {}]   ;;  %s10283_s8 = inlined_call_operand.vmem [shape: bf16[16,64], index: 8, kind: input, shape index: {}]   ;;  %s10284_s9 = inlined_call_operand.vmem [shape: f32[1,64], index: 9, kind: input, shape index: {}]   ;;  %s10285_s10 = inlined_call_operand.vmem [shape: bf16[2,64,384], index: 10, kind: input, shape index: {}]   ;;  %s10286_s11 = inlined_call_operand.vmem [shape: f32[2,1,384], index: 11, kind: input, shape index: {}]   ;;  %s10287_s12 = inlined_call_operand.vmem [shape: bf16[2,64,192], index: 12, kind: input, shape index: {}]   ;;  %s10288_s13 = inlined_call_operand.vmem [shape: f32[2,1,192], index: 13, kind: input, shape index: {}]   ;;  %s10289_s14 = inlined_call_operand.vmem [shape: bf16[2,64,64], index: 14, kind: input, shape index: {}]   ;;  %s10290_s15 = inlined_call_operand.vmem [shape: f32[2,1,64], index: 15, kind: input, shape index: {}]   ;;  %s10291_s16 = inlined_call_operand.vmem [shape: bf16[2,64,256], index: 16, kind: input, shape index: {}]   ;;  %s10292_s17 = inlined_call_operand.vmem [shape: f32[2,1,256], index: 17, kind: input, shape index: {}]   ;;  %s10293_s18 = inlined_call_operand.vmem [shape: bf16[2,256,64], index: 18, kind: input, shape index: {}]   ;;  %s10294_s19 = inlined_call_operand.vmem [shape: f32[2,1,64], index: 19, kind: input, shape index: {}]   ;;  %s10295_s20 = inlined_call_operand.vmem [shape: bf16[64,128], index: 20, kind: input, shape index: {}]   ;;  %s10296_s21 = inlined_call_operand.vmem [shape: f32[1,128], index: 21, kind: input, shape index: {}]   ;;  %s10297_s22 = inlined_call_operand.vmem [shape: bf16[64,32], index: 22, kind: input, shape index: {}]   ;;  %s10298_s23 = inlined_call_operand.vmem [shape: f32[1,32], index: 23, kind: input, shape index: {}]   ;;  %s10299_s24 = inlined_call_operand.vmem [shape: f32[2,64,32], index: 24, kind: output, shape index: {}]  }
   0x1   :  { %10315 = sst [smem:[#allocation2_spill]] %s10275_s0 }
   0x2   :  { %10316 = sst [smem:[#allocation3_spill]] %s10276_s1 }
   0x3   :  { %10317 = sst [smem:[#allocation4_spill]] %s10277_s2 }
   0x4   :  { %10318 = sst [smem:[#allocation5_spill]] %s10278_s3 }
   0x5   :  { %10319 = sst [smem:[#allocation6_spill]] %s10279_s4 }
   0x6   :  { %10320 = sst [smem:[#allocation7_spill]] %s10280_s5  ;;  %s7648_s5 = smov 0  }
   0x7   :  { %10321 = sst [smem:[#allocation8_spill]] %s10281_s6 }
   0x8   :  { %10322 = sst [smem:[#allocation9_spill]] %s10282_s7 }
   0x9   :  { %10323 = sst [smem:[#allocation10_spill]] %s10283_s8 }
   0xa LB: > { %s6119_s26 = sadd.s32 4294967295, %s7513_s5   ;;  %p6123_p0 = scmp.ge.s32.totalorder %s7513_s5, 1  ;;  %s7513_s5 = sphi %s7648_s5, %s34_s5  }
   0xb   : > { %p679_p1 = scmp.lt.s32.totalorder %s7513_s5, 3 }
   0xd   : > { %p680_p2 = pnand %p6123_p0, %p679_p1 }
   0xe   : > { %s10324_s6 = sld [smem:[#allocation3_spill]] (!%p680_p2)  ;;  %p752_p3 = scmp.lt.s32.totalorder (!%p680_p2), %s6119_s26, 1 }
   0xf   : > { %683 = sbr.rel (%p680_p2) target bundleno = 6145 (0x1801), region = 116  ;;  %s10325_s30 = sld [smem:[#allocation10_spill]] (!%p680_p2) }
  0x10   : > { %s10326_s2 = sld [smem:[#allocation8_spill]] (!%p680_p2)  ;;  %s7517_s3 = smov (!%p680_p2), 48  }
  0x11   : > { %s10328_s7 = sld [smem:[#allocation9_spill]] (!%p680_p2)  ;;  %s10307_s25 = smov (!%p680_p2), 80  }
  0x12   : > { %s10329_s8 = sld [smem:[#allocation5_spill]] (!%p680_p2)  ;;  %s7520_s4 = smov (!%p680_p2), 16  }
  0x13   : > { %s10313_s27 = smov (!%p680_p2), 32   ;;  %s10336_s28 = smov (!%p680_p2), 112  }
  0x14   : > { %v6837_v0 = vld [vmem:[%s10324_s6 + $0x38] sm:$0xff]  ;;  %v6836_v3 = vld [vmem:[%s10324_s6 + $0x30] sm:$0xff]  ;;  %s10341_s26 = smov (!%p752_p3, %s6119_s26), 1  ;;  %v6835_v5 = vld [vmem:[%s10324_s6 + $0x28] sm:$0xff]  ;;  %vm1051_vm0 = vcmask 130048   ;;  %vm987_vm1 = vcmask 523264  }
  0x15   : > { %v6845_v1 = vld [vmem:[%s10324_s6 + $0x78] sm:$0xff]  ;;  %v6850_v2 = vld [vmem:[%s10325_s30] sm:$0xff]  ;;  %907 = vmatpush.bf16.msra.mxu0 %v6837_v0  ;;  %v6844_v4 = vld [vmem:[%s10324_s6 + $0x70] sm:$0xff]  ;;  %s10303_s1 = sshll.u32 %s10341_s26, 6  ;;  %s6124_s30 = sshll.u32 %s10341_s26, 1 }
  0x16   : > { %920 = vmatpush.bf16.msra.mxu1 %v6845_v1  ;;  %1071 = vmatpush.bf16.msra.mxu3 %v6850_v2  ;;  %s7679_s29 = scalar_lea.vmem %s10326_s2, %s10303_s1  ;;  %v6843_v8 = vld [vmem:[%s10324_s6 + $0x68] sm:$0xff]  ;;  %v6834_v10 = vld [vmem:[%s10324_s6 + $0x20] sm:$0xff]  ;;  %v6833_v12 = vld [vmem:[%s10324_s6 + $0x18] sm:$0xff]  ;;  %s10327_s2 = sld [smem:[#allocation2_spill]] }
  0x17   : > { %v1027_v6 = vld [vmem:[%s7679_s29] sm:$0xff]  ;;  %v1028_v7 = vld [vmem:[%s7679_s29 + $0x8] sm:$0xff]  ;;  %v6841_v13 = vld [vmem:[%s10324_s6 + $0x58] sm:$0xff] }
  0x18   : > { %v1035_v9 = vpack.c.bf16 %v1028_v7, %v1027_v6  ;;  %v6842_v11 = vld [vmem:[%s10324_s6 + $0x60] sm:$0xff]  ;;  %v6832_v14 = vld [vmem:[%s10324_s6 + $0x10] sm:$0xff]  ;;  %v1030_v17 = vld [vmem:[%s7679_s29 + $0x18] sm:$0xff] }
  0x19   : > { %908 = vmatpush.bf16.msra.mxu0 %v6836_v3  ;;  %v6840_v15 = vld [vmem:[%s10324_s6 + $0x50] sm:$0xff]  ;;  %v6831_v19 = vld [vmem:[%s10324_s6 + $0x8] sm:$0xff]  ;;  %v6830_v24 = vld [vmem:[%s10324_s6] sm:$0xff] }
  0x1a   : > { %921 = vmatpush.bf16.msra.mxu1 %v6844_v4  ;;  %6214 = vmatmul.msk.bf16.vlgmr.msra.gmra.mxu3 %vm1051_vm0, %v1035_v9  ;;  %v1029_v16 = vld [vmem:[%s7679_s29 + $0x10] sm:$0xff]  ;;  %v6839_v20 = vld [vmem:[%s10324_s6 + $0x48] sm:$0xff]  ;;  %v6838_v25 = vld [vmem:[%s10324_s6 + $0x40] sm:$0xff]  ;;  %s10331_s6 = sld [smem:[#allocation7_spill]] }
  0x1b   : > { %v1036_v18 = vpack.c.bf16 %v1030_v17, %v1029_v16  ;;  %v1031_v28 = vld [vmem:[%s7679_s29 + $0x20] sm:$0xff]  ;;  %v1032_v29 = vld [vmem:[%s7679_s29 + $0x28] sm:$0xff]  ;;  %v1033_v31 = vld [vmem:[%s7679_s29 + $0x30] sm:$0xff] }
  0x1c   : > { %s755_s1 = scalar_lea.vmem %s10327_s2, %s6124_s30  ;;  %v1037_v30 = vpack.c.bf16 %v1032_v29, %v1031_v28  ;;  %v1034_v32 = vld [vmem:[%s7679_s29 + $0x38] sm:$0xff]  ;;  %v7736_v34 = vld [vmem:[%s10284_s9] ss:$0 sm:$0xff]  ;;  %v1094_v41 = vld [vmem:[%s10328_s7 + $0x8] sm:$0xff]  ;;  %s10330_s29 = sld [smem:[#allocation4_spill]] }
  0x1d   : > { %909 = vmatpush.bf16.msra.mxu0 %v6835_v5  ;;  %v770_v21 = vld [vmem:[%s755_s1] sm:$0x3]  ;;  %v1038_v33 = vpack.c.bf16 %v1034_v32, %v1033_v31  ;;  %v6849_v42 = vld [vmem:[%s10329_s8 + $0x18] sm:$0xff]  ;;  %v6848_v45 = vld [vmem:[%s10329_s8 + $0x10] sm:$0xff]  ;;  %s10335_s1 = smov 32   ;;  %s10337_s2 = smov 96  }
  0x1e   : > { %922 = vmatpush.bf16.msra.mxu1 %v6843_v8  ;;  %v772_v22 = vperm.slane %v770_v21, 0  ;;  %v773_v23 = vperm.slane %v770_v21, 1  ;;  %v1093_v36 = vld [vmem:[%s10328_s7] sm:$0xff]  ;;  %995 = vmatpush.bf16.msra.mxu2 %v6849_v42  ;;  %v1095_v48 = vld [vmem:[%s10328_s7 + $0x10] sm:$0xff]  ;;  %v6847_v50 = vld [vmem:[%s10329_s8 + $0x8] sm:$0xff] }
  0x1f   : > { %v6846_v56 = vld [vmem:[%s10329_s8] sm:$0xff]  ;;  %v1096_v61 = vld [vmem:[%s10328_s7 + $0x18] sm:$0xff]  ;;  %s10332_s8 = sld [smem:[#allocation6_spill]] }
  0x20   : > { %v776_v26 = vpack.c.bf16 %v772_v22, %v772_v22  ;;  %v777_v27 = vpack.c.bf16 %v773_v23, %v773_v23  ;;  %v1097_v5 = vld [vmem:[%s10328_s7 + $0x20] sm:$0xff]  ;;  %v1099_v23 = vld [vmem:[%s10328_s7 + $0x30] sm:$0xff]  ;;  %s758_s30 = scalar_lea.vmem %s10331_s6, %s10341_s26  ;;  %s10311_s6 = smov 112  }
  0x21   : > { %910 = vmatpush.bf16.msra.mxu0 %v6834_v10 }
  0x22   : > { %923 = vmatpush.bf16.msra.mxu1 %v6842_v11  ;;  %996 = vmatpush.bf16.msra.mxu2 %v6848_v45  ;;  %v810_v49 = vld [vmem:[%s10330_s29] sm:$0x1] }
  0x25   : > { %911 = vmatpush.bf16.msra.mxu0 %v6833_v12  ;;  %v1098_v12 = vld [vmem:[%s10328_s7 + $0x28] sm:$0xff] }
  0x26   : > { %924 = vmatpush.bf16.msra.mxu1 %v6841_v13  ;;  %997 = vmatpush.bf16.msra.mxu2 %v6847_v50 }
  0x29   : > { %912 = vmatpush.bf16.msra.mxu0 %v6832_v14 }
  0x2a   : > { %925 = vmatpush.bf16.msra.mxu1 %v6840_v15  ;;  %6215 = vmatmul.msk.bf16.gmra.mxu3 %vm1051_vm0, %v1036_v18 }
  0x2b   : > { %998 = vmatpush.bf16.msra.mxu2 %v6846_v56 }
  0x2d   : > { %913 = vmatpush.bf16.msra.mxu0 %v6831_v19 }
  0x2e   : > { %926 = vmatpush.bf16.msra.mxu1 %v6839_v20 }
  0x31   : > { %914 = vmatpush.bf16.msra.mxu0 %v6830_v24 }
  0x32   : > { %927 = vmatpush.bf16.msra.mxu1 %v6838_v25 }
  0x34   : > { %915 = vmatmul.bf16.vlgmr.msra.gmra.mxu0 %v776_v26 }
  0x35   : > { %928 = vmatmul.bf16.vlgmr.msra.gmra.mxu1 %v777_v27 }
  0x3a   : > { %6216 = vmatmul.msk.bf16.gmra.mxu3 %vm1051_vm0, %v1037_v30 }
  0x4a   : > { %6217 = vmatmul.msk.bf16.gmra.mxu3 %vm1051_vm0, %v1038_v33  ;;  %v7515_v33 = vmov 64.0  }
  0x9d   : > { %v1073_v35 = vpop.f32.mrf.mxu3 }
  0x9e   : > { %v1074_v37 = vadd.f32 %v7736_v34, %v1073_v35 }
  0xa0   : > { %v7742_v38 = vadd.f32 %v1093_v36, %v1074_v37 }
  0xa2   : > { %v1239_v39 = vsel %vm987_vm1, %v7742_v38, 0.0 }
  0xa3   : > { %1240 = vadd.xlane.f32.xlu0 %v1239_v39 }
  0xa5   : > { %v1075_v40 = vpop.f32.mrf.mxu3 }
  0xa6   : > { %v1076_v43 = vadd.f32 %v7736_v34, %v1075_v40 }
  0xa8   : > { %v7753_v44 = vadd.f32 %v1094_v41, %v1076_v43 }
  0xaa   : > { %v1242_v46 = vsel %vm987_vm1, %v7753_v44, 0.0 }
  0xab   : > { %1243 = vadd.xlane.f32.xlu0 %v1242_v46 }
  0xad   : > { %v1078_v47 = vpop.f32.mrf.mxu3 }
  0xae   : > { %v1079_v51 = vadd.f32 %v7736_v34, %v1078_v47 }
  0xb0   : > { %v7770_v54 = vadd.f32 %v1095_v48, %v1079_v51 }
  0xb1   : > { %v916_v52 = vpop.f32.mrf.mxu0 }
  0xb2   : > { %v929_v53 = vpop.f32.mrf.mxu1  ;;  %v917_v55 = vadd.f32 %v916_v52, %v810_v49  ;;  %v1245_v58 = vsel %vm987_vm1, %v7770_v54, 0.0  ;;  %v1100_v49 = vld [vmem:[%s10328_s7 + $0x38] sm:$0xff]  ;;  %s7516_s7 = smov 64  }
  0xb3   : > { %1246 = vadd.xlane.f32.xlu1 %v1245_v58 }
  0xb4   : > { %v930_v57 = vadd.f32 %v929_v53, %v917_v55 }
  0xb5   : > { %v1080_v60 = vpop.f32.mrf.mxu3 }
  0xb6   : > { %v933_v59 = vsub.f32 0.0, %v930_v57  ;;  %v1081_v63 = vadd.f32 %v7736_v34, %v1080_v60 }
  0xb8   : > { %v934_v62 = vmul.f32 1.442695, %v933_v59  ;;  %v7781_v2 = vadd.f32 %v1096_v61, %v1081_v63 }
  0xb9   : > { %v918_v0 = vpop.f32.mrf.mxu0 }
  0xba   : > { %v931_v1 = vpop.f32.mrf.mxu1  ;;  %7097 = vpow2.f32 %v934_v62  ;;  %v1248_v3 = vsel %vm987_vm1, %v7781_v2, 0.0 }
  0xbb   : > { %1249 = vadd.xlane.f32.xlu1 %v1248_v3 }
  0xbd   : > { %v1083_v4 = vpop.f32.mrf.mxu3 }
  0xbe   : > { %v1084_v7 = vadd.f32 %v7736_v34, %v1083_v4 }
  0xc0   : > { %v7098_v6 = vpop.eup %7097  ;;  %v7789_v9 = vadd.f32 %v1097_v5, %v1084_v7 }
  0xc1   : > { %v936_v8 = vadd.f32 1.0, %v7098_v6 }
  0xc2   : > { %v1251_v10 = vsel %vm987_vm1, %v7789_v9, 0.0 }
  0xc3   : > { %7099 = vrcp.f32 %v936_v8  ;;  %1252 = vadd.xlane.f32.xlu2 %v1251_v10  ;;  %v948_v19 = vand.u32 2147483648, %v936_v8  ;;  %v946_v21 = vand.u32 2147483647, %v936_v8  ;;  %vm942_vm3 = vweird.f32 %v936_v8 }
  0xc4   : > { %7101 = vrcp.f32 %v7515_v33  ;;  %v6246_v33 = vld [vmem:[%s10285_s10 + $0x3c] sm:$0xf0] }
  0xc5   : > { %v1085_v11 = vpop.f32.mrf.mxu3  ;;  %v949_v26 = vor.u32 1.1754944e-38, %v948_v19  ;;  %vm947_vm5 = vcmp.eq.f32.partialorder %v946_v21, 8.507059e+37 }
  0xc6   : > { %v1086_v13 = vadd.f32 %v7736_v34, %v1085_v11 }
  0xc8   : > { %v7797_v16 = vadd.f32 %v1098_v12, %v1086_v13 }
  0xc9   : > { %v7100_v14 = vpop.eup %7099 }
  0xca   : > { %v938_v15 = vmul.f32 %v7100_v14, %v936_v8  ;;  %v1254_v18 = vsel %vm987_vm1, %v7797_v16, 0.0  ;;  %vm943_vm2 = vweird.f32 %v7100_v14  ;;  %v7102_v35 = vpop.eup %7101 }
  0xcb   : > { %1255 = vadd.xlane.f32.xlu2 %v1254_v18  ;;  %vm944_vm4 = vmor %vm942_vm3, %vm943_vm2  ;;  %v1264_v36 = vmul.f32 64.0, %v7102_v35  ;;  %vm1268_vm6 = vweird.f32 %v7102_v35 }
  0xcc   : > { %v939_v17 = vsub.f32 1.0, %v938_v15 }
  0xcd   : > { %v1088_v22 = vpop.f32.mrf.mxu3  ;;  %v1265_v37 = vsub.f32 1.0, %v1264_v36  ;;  %v6232_v36 = vld [vmem:[%s10285_s10 + $0x18] sm:$0xf] }
  0xce   : > { %v940_v20 = vmul.f32 %v7100_v14, %v939_v17  ;;  %v1089_v25 = vadd.f32 %v7736_v34, %v1088_v22  ;;  %v6256_v22 = vld [vmem:[%s10285_s10 + $0x48] sm:$0xf] }
  0xcf   : > { %v1266_v39 = vmul.f32 %v7102_v35, %v1265_v37  ;;  %v6855_v37 = vld [vmem:[%s10285_s10 + $0x20] sm:$0xf0] }
  0xd0   : > { %v941_v24 = vadd.f32 %v7100_v14, %v940_v20  ;;  %v7805_v28 = vadd.f32 %v1099_v23, %v1089_v25  ;;  %v6861_v23 = vld [vmem:[%s10285_s10 + $0x50] sm:$0xf0] }
  0xd1   : > { %v1267_v40 = vadd.f32 %v7102_v35, %v1266_v39  ;;  %v6257_v25 = vor.u32 %v6861_v23, %v6256_v22  ;;  %v6854_v39 = vld [vmem:[%s10285_s10 + $0x1c] sm:$0xf] }
  0xd2   : > { %v945_v27 = vsel %vm944_vm4, %v7100_v14, %v941_v24  ;;  %v1257_v31 = vsel %vm987_vm1, %v7805_v28, 0.0  ;;  %v6860_v24 = vld [vmem:[%s10285_s10 + $0x4c] sm:$0xf] }
  0xd3   : > { %v950_v29 = vsel %vm947_vm5, %v949_v26, %v945_v27  ;;  %1258 = vadd.xlane.f32.xlu2 %v1257_v31  ;;  %v7810_v41 = vsel %vm1268_vm6, %v7102_v35, %v1267_v40  ;;  %v6258_v26 = vld [vmem:[%s10285_s10 + $0x54] sm:$0xf0]  ;;  %1204 = vmatpush.bf16.msrb.mxu2 %v6257_v25  ;;  %v6857_v31 = vld [vmem:[%s10285_s10 + $0x34] sm:$0xf]  ;;  %v962_v40 = vld [vmem:[%s10332_s8] sm:$0x1] }
  0xd4   : > { %v952_v30 = vmul.f32 %v950_v29, %v930_v57  ;;  %v6261_v27 = vor.u32 %v6860_v24, %v6258_v26  ;;  %v6244_v29 = vld [vmem:[%s10285_s10 + $0x30] sm:$0xf]  ;;  %v6249_v35 = vor.u32 %v6857_v31, %v6246_v33  ;;  %s10309_s8 = smov 96  }
  0xd5   : > { %v1090_v45 = vpop.f32.mrf.mxu3 }
  0xd6   : > { %v953_v32 = vpack.c.bf16 %v952_v30, %v952_v30  ;;  %v1091_v48 = vadd.f32 %v7736_v34, %v1090_v45  ;;  %1217 = vmatpush.bf16.msrb.mxu0 %v6261_v27  ;;  %v6858_v30 = vld [vmem:[%s10285_s10 + $0x38] sm:$0xf0] }
  0xd8   : > { %6209 = vmatmul.msk.bf16.vlgmr.msra.gmra.mxu2 %vm987_vm1, %v953_v32  ;;  %v7824_v53 = vadd.f32 %v1100_v49, %v1091_v48  ;;  %v6245_v32 = vor.u32 %v6858_v30, %v6244_v29  ;;  %v1004_v48 = vld [vmem:[%s758_s30] sm:$0x1]  ;;  %s10338_s30 = smov 80  }
  0xda   : > { %v1260_v56 = vsel %vm987_vm1, %v7824_v53, 0.0  ;;  %1205 = vmatpush.bf16.msrb.mxu2 %v6245_v32  ;;  %1218 = vmatpush.bf16.msrb.mxu0 %v6249_v35 }
 0x116   : > { %v1241_v42 = vpop.xlane.xlu0 %1240 }
 0x117   : > { %v1270_v43 = vmul.f32 %v7810_v41, %v1241_v42  ;;  %v6233_v42 = vor.u32 %v6855_v37, %v6232_v36 }
 0x119   : > { %v7814_v46 = vsub.f32 %v7742_v38, %v1270_v43  ;;  %v6234_v43 = vld [vmem:[%s10285_s10 + $0x24] sm:$0xf0]  ;;  %1206 = vmatpush.bf16.msrb.mxu2 %v6233_v42  ;;  %v1125_v42 = vld [vmem:[%s10286_s11] sm:$0x7] }
 0x11a   : > { %v6237_v45 = vor.u32 %v6854_v39, %v6234_v43  ;;  %v1192_v43 = vperm.slane %v1125_v42, 1 }
 0x11b   : > { %v1286_v47 = vmul.f32 %v7814_v46, %v7814_v46 }
 0x11c   : > { %1219 = vmatpush.bf16.msrb.mxu0 %v6237_v45 }
 0x11d   : > { %v1294_v50 = vsel %vm987_vm1, %v1286_v47, 0.0 }
 0x11e   : > { %1295 = vadd.xlane.f32.xlu0 %v1294_v50  ;;  %v1244_v51 = vpop.xlane.xlu0 %1243  ;;  %v6220_v50 = vld [vmem:[%s10285_s10] sm:$0xf] }
 0x11f   : > { %v1271_v52 = vmul.f32 %v7810_v41, %v1244_v51  ;;  %v6852_v51 = vld [vmem:[%s10285_s10 + $0x8] sm:$0xf0] }
 0x121   : > { %v7827_v55 = vsub.f32 %v7753_v44, %v1271_v52  ;;  %v6851_v52 = vld [vmem:[%s10285_s10 + $0x4] sm:$0xf] }
 0x123   : > { %v1287_v34 = vmul.f32 %v7827_v55, %v7827_v55 }
 0x125   : > { %v1297_v57 = vsel %vm987_vm1, %v1287_v34, 0.0  ;;  %v6222_v34 = vld [vmem:[%s10285_s10 + $0xc] sm:$0xf0] }
 0x126   : > { %v1247_v58 = vpop.xlane.xlu1 %1246  ;;  %1261 = vadd.xlane.f32.xlu0 %v1260_v56  ;;  %1298 = vadd.xlane.f32.xlu1 %v1297_v57  ;;  %v6221_v56 = vor.u32 %v6852_v51, %v6220_v50 }
 0x127   : > { %v1272_v59 = vmul.f32 %v7810_v41, %v1247_v58  ;;  %v6225_v58 = vor.u32 %v6851_v52, %v6222_v34  ;;  %v6295_v34 = vld [vmem:[%s10287_s12 + $0x30] sm:$0xf] }
 0x128   : > { %1207 = vmatpush.bf16.msrb.mxu2 %v6221_v56 }
 0x129   : > { %v7836_v60 = vsub.f32 %v7770_v54, %v1272_v59  ;;  %1220 = vmatpush.bf16.msrb.mxu0 %v6225_v58  ;;  %v6869_v58 = vld [vmem:[%s10287_s12 + $0x34] sm:$0xf] }
 0x12b   : > { %v1288_v61 = vmul.f32 %v7836_v60, %v7836_v60 }
 0x12d   : > { %v1300_v62 = vsel %vm987_vm1, %v1288_v61, 0.0  ;;  %v6264_v61 = vld [vmem:[%s10285_s10 + $0x50] sm:$0xf] }
 0x12e   : > { %v1250_v63 = vpop.xlane.xlu1 %1249  ;;  %1301 = vadd.xlane.f32.xlu1 %v1300_v62  ;;  %v6862_v62 = vld [vmem:[%s10285_s10 + $0x58] sm:$0xf0] }
 0x12f   : > { %v1273_v0 = vmul.f32 %v7810_v41, %v1250_v63  ;;  %v6265_v63 = vor.u32 %v6862_v62, %v6264_v61  ;;  %v6297_v62 = vld [vmem:[%s10287_s12 + $0x38] sm:$0xf0] }
 0x131   : > { %v7843_v1 = vsub.f32 %v7781_v2, %v1273_v0  ;;  %1230 = vmatpush.bf16.msra.mxu2 %v6265_v63  ;;  %v6287_v63 = vld [vmem:[%s10287_s12 + $0x20] sm:$0xf] }
 0x133   : > { %v1289_v3 = vmul.f32 %v7843_v1, %v7843_v1 }
 0x135   : > { %v1303_v4 = vsel %vm987_vm1, %v1289_v3, 0.0  ;;  %v6252_v3 = vld [vmem:[%s10285_s10 + $0x38] sm:$0xf] }
 0x136   : > { %v1253_v5 = vpop.xlane.xlu2 %1252  ;;  %1304 = vadd.xlane.f32.xlu2 %v1303_v4  ;;  %v6859_v4 = vld [vmem:[%s10285_s10 + $0x40] sm:$0xf0] }
 0x137   : > { %v1274_v6 = vmul.f32 %v7810_v41, %v1253_v5 }
 0x139   : > { %v7850_v7 = vsub.f32 %v7789_v9, %v1274_v6  ;;  %v6253_v6 = vor.u32 %v6859_v4, %v6252_v3  ;;  %v6300_v3 = vor.u32 %v6869_v58, %v6297_v62  ;;  %v6867_v4 = vld [vmem:[%s10287_s12 + $0x24] sm:$0xf] }
 0x13b   : > { %v1290_v8 = vmul.f32 %v7850_v7, %v7850_v7  ;;  %1231 = vmatpush.bf16.msra.mxu2 %v6253_v6  ;;  %1548 = vmatpush.bf16.msra.mxu0 %v6300_v3 }
 0x13d   : > { %v1306_v10 = vsel %vm987_vm1, %v1290_v8, 0.0  ;;  %v6240_v8 = vld [vmem:[%s10285_s10 + $0x20] sm:$0xf] }
 0x13e   : > { %v1256_v11 = vpop.xlane.xlu2 %1255  ;;  %1307 = vadd.xlane.f32.xlu1 %v1306_v10  ;;  %v6856_v10 = vld [vmem:[%s10285_s10 + $0x28] sm:$0xf0] }
 0x13f   : > { %v1275_v12 = vmul.f32 %v7810_v41, %v1256_v11  ;;  %v6241_v11 = vor.u32 %v6856_v10, %v6240_v8  ;;  %v6279_v10 = vld [vmem:[%s10287_s12 + $0x10] sm:$0xf] }
 0x141   : > { %v7857_v13 = vsub.f32 %v7797_v16, %v1275_v12  ;;  %v6228_v12 = vld [vmem:[%s10285_s10 + $0x8] sm:$0xf]  ;;  %1232 = vmatpush.bf16.msra.mxu2 %v6241_v11  ;;  %v6866_v11 = vld [vmem:[%s10287_s12 + $0x14] sm:$0xf0] }
 0x143   : > { %v1291_v14 = vmul.f32 %v7857_v13, %v7857_v13 }
 0x145   : > { %v1309_v15 = vsel %vm987_vm1, %v1291_v14, 0.0  ;;  %v6853_v14 = vld [vmem:[%s10285_s10 + $0x10] sm:$0xf0] }
 0x146   : > { %v1259_v17 = vpop.xlane.xlu2 %1258  ;;  %1310 = vadd.xlane.f32.xlu2 %v1309_v15 }
 0x147   : > { %v1276_v18 = vmul.f32 %v7810_v41, %v1259_v17 }
 0x149   : > { %v7864_v19 = vsub.f32 %v7805_v28, %v1276_v18  ;;  %v6229_v18 = vor.u32 %v6853_v14, %v6228_v12  ;;  %v6865_v12 = vld [vmem:[%s10287_s12 + $0x14] sm:$0xf]  ;;  %v6281_v14 = vld [vmem:[%s10287_s12 + $0x18] sm:$0xf0] }
 0x14b   : > { %v1292_v20 = vmul.f32 %v7864_v19, %v7864_v19  ;;  %1233 = vmatpush.bf16.msra.mxu2 %v6229_v18  ;;  %v6284_v18 = vor.u32 %v6865_v12, %v6281_v14 }
 0x14d   : > { %v1312_v21 = vsel %vm987_vm1, %v1292_v20, 0.0 }
 0x14e   : > { %1313 = vadd.xlane.f32.xlu1 %v1312_v21 }
 0x15b   : > { %v1000_v47 = vpop.f32.mrf.mxu2 }
 0x15c   : > { %v1001_v49 = vadd.f32 %v1000_v47, %v962_v40 }
 0x15e   : > { %v1005_v57 = vadd.f32 %v1004_v48, %v1001_v49  ;;  %v1191_v48 = vperm.slane %v1125_v42, 0 }
 0x160   : > { %v1006_v59 = vsub.f32 0.0, %v1005_v57 }
 0x162   : > { %v1007_v0 = vmul.f32 1.442695, %v1006_v59 }
 0x163   : > { %v1002_v5 = vpop.f32.mrf.mxu2 }
 0x164   : > { %7103 = vpow2.f32 %v1007_v0  ;;  %v6868_v0 = vld [vmem:[%s10287_s12 + $0x24] sm:$0xf0]  ;;  %v6289_v5 = vld [vmem:[%s10287_s12 + $0x28] sm:$0xf0] }
 0x165   : > { %v6288_v6 = vor.u32 %v6868_v0, %v6287_v63  ;;  %v6292_v8 = vor.u32 %v6867_v4, %v6289_v5 }
 0x167   : > { %1549 = vmatpush.bf16.msra.mxu0 %v6292_v8 }
 0x16a   : > { %v7104_v15 = vpop.eup %7103 }
 0x16b   : > { %v1009_v17 = vadd.f32 1.0, %v7104_v15  ;;  %v1193_v15 = vperm.slane %v1125_v42, 2  ;;  %1550 = vmatpush.bf16.msra.mxu0 %v6284_v18 }
 0x16d   : > { %7105 = vrcp.f32 %v1009_v17  ;;  %v1021_v23 = vand.u32 2147483648, %v1009_v17  ;;  %v1019_v25 = vand.u32 2147483647, %v1009_v17  ;;  %vm1015_vm8 = vweird.f32 %v1009_v17 }
 0x16f   : > { %v1022_v27 = vor.u32 1.1754944e-38, %v1021_v23  ;;  %vm1020_vm10 = vcmp.eq.f32.partialorder %v1019_v25, 8.507059e+37 }
 0x173   : > { %v7106_v20 = vpop.eup %7105 }
 0x174   : > { %v1011_v21 = vmul.f32 %v7106_v20, %v1009_v17  ;;  %vm1016_vm7 = vweird.f32 %v7106_v20  ;;  %v6280_v17 = vor.u32 %v6866_v11, %v6279_v10 }
 0x175   : > { %vm1017_vm9 = vmor %vm1015_vm8, %vm1016_vm7 }
 0x176   : > { %v1012_v22 = vsub.f32 1.0, %v1011_v21 }
 0x178   : > { %v1013_v24 = vmul.f32 %v7106_v20, %v1012_v22 }
 0x17a   : > { %v1014_v26 = vadd.f32 %v7106_v20, %v1013_v24 }
 0x17c   : > { %v1018_v29 = vsel %vm1017_vm9, %v7106_v20, %v1014_v26 }
 0x17d   : > { %v1023_v30 = vsel %vm1020_vm10, %v1022_v27, %v1018_v29 }
 0x17e   : > { %v1025_v31 = vmul.f32 %v1023_v30, %v1005_v57  ;;  %v6870_v57 = vld [vmem:[%s10287_s12 + $0x34] sm:$0xf0] }
 0x17f   : > { %v6296_v61 = vor.u32 %v6870_v57, %v6295_v34 }
 0x180   : > { %v7948_v32 = vpack.c.bf16 %v1025_v31, %v1025_v31  ;;  %v6271_v31 = vld [vmem:[%s10287_s12] sm:$0xf] }
 0x182   : > { %6266 = vmatmul.msk.bf16.vlgmr.msrb.gmra.mxu2 %vm987_vm1, %v7948_v32  ;;  %6267 = vmatmul.msk.bf16.vlgmr.msrb.gmra.mxu0 %vm987_vm1, %v7948_v32 }
 0x183   : > { %1519 = vmatpush.bf16.msrb.mxu2 %v6296_v61 }
 0x187   : > { %1520 = vmatpush.bf16.msrb.mxu2 %v6288_v6 }
 0x18b   : > { %1521 = vmatpush.bf16.msrb.mxu2 %v6280_v17 }
 0x191   : > { %v1296_v33 = vpop.xlane.xlu0 %1295 }
 0x192   : > { %6268 = vmatmul.msk.bf16.vlgmr.msra.gmra.mxu2 %vm987_vm1, %v7948_v32  ;;  %v1318_v24 = vmul.f32 %v1296_v33, %v7810_v41  ;;  %v6863_v33 = vld [vmem:[%s10287_s12 + $0x4] sm:$0xf] }
 0x194   : > { %v1326_v26 = vadd.f32 1e-06, %v1318_v24 }
 0x196   : > { %7107 = vrsqrt.f32 %v1326_v26  ;;  %vm1340_vm11 = vweird.f32 %v1326_v26 }
 0x199   : > { %v1262_v35 = vpop.xlane.xlu0 %1261  ;;  %v1299_v23 = vpop.xlane.xlu1 %1298 }
 0x19a   : > { %v1277_v36 = vmul.f32 %v7810_v41, %v1262_v35  ;;  %v1319_v25 = vmul.f32 %v1299_v23, %v7810_v41  ;;  %v6864_v35 = vld [vmem:[%s10287_s12 + $0x4] sm:$0xf0] }
 0x19c   : > { %v7958_v37 = vsub.f32 %v7824_v53, %v1277_v36  ;;  %v1327_v27 = vadd.f32 1e-06, %v1319_v25  ;;  %v6272_v36 = vor.u32 %v6864_v35, %v6271_v31 }
 0x19e   : > { %v1293_v39 = vmul.f32 %v7958_v37, %v7958_v37  ;;  %7109 = vrsqrt.f32 %v1327_v27  ;;  %1522 = vmatpush.bf16.msrb.mxu2 %v6272_v36  ;;  %vm1350_vm15 = vweird.f32 %v1327_v27 }
 0x1a0   : > { %v1315_v40 = vsel %vm987_vm1, %v1293_v39, 0.0  ;;  %v6273_v39 = vld [vmem:[%s10287_s12 + $0x8] sm:$0xf0] }
 0x1a1   : > { %1316 = vadd.xlane.f32.xlu2 %v1315_v40  ;;  %v1302_v29 = vpop.xlane.xlu1 %1301  ;;  %v6276_v42 = vor.u32 %v6863_v33, %v6273_v39 }
 0x1a2   : > { %v1320_v40 = vmul.f32 %v1302_v29, %v7810_v41 }
 0x1a3   : > { %1551 = vmatpush.bf16.msra.mxu0 %v6276_v42 }
 0x1a9   : > { %v1305_v30 = vpop.xlane.xlu2 %1304 }
 0x1b9   : > { %v1311_v63 = vpop.xlane.xlu2 %1310 }
 0x1ba   : > { %v1323_v5 = vmul.f32 %v1311_v63, %v7810_v41 }
 0x1bc   : > { %v8036_v14 = vadd.f32 1e-06, %v1323_v5 }
 0x1ff   : > { %v1222_v45 = vpop.f32.mrf.mxu0 }
 0x200   : > { %v7966_v47 = vadd.f32 %v1222_v45, %v1192_v43  ;;  %v1321_v43 = vmul.f32 %v1305_v30, %v7810_v41  ;;  %v7108_v45 = vpop.eup %7107 }
 0x201   : > { %vm1341_vm12 = vweird.f32 %v7108_v45 }
 0x202   : > { %vm1342_vm14 = vmor %vm1340_vm11, %vm1341_vm12  ;;  %vm1390_vm11 = vweird.f32 %v8036_v14 }
 0x205   : > { %v1209_v49 = vpop.f32.mrf.mxu2 }
 0x206   : > { %v7968_v50 = vadd.f32 %v1209_v49, %v1191_v48  ;;  %v7110_v48 = vpop.eup %7109  ;;  %v1328_v49 = vadd.f32 1e-06, %v1320_v40 }
 0x207   : > { %v1224_v51 = vpop.f32.mrf.mxu0  ;;  %vm1351_vm13 = vweird.f32 %v7110_v48 }
 0x208   : > { %v1422_v52 = vadd.f32 1.0, %v7968_v50  ;;  %v1335_v51 = vmul.f32 %v7108_v45, %v1326_v26  ;;  %7111 = vrsqrt.f32 %v1328_v49  ;;  %vm1352_vm2 = vmor %vm1350_vm15, %vm1351_vm13  ;;  %vm1360_vm3 = vweird.f32 %v1328_v49 }
 0x209   : > { %v8050_v39 = vperm.slane %v7968_v50, 0 }
 0x20a   : > { %v1423_v56 = vperm.slane %v1422_v52, 0  ;;  %v1329_v52 = vadd.f32 1e-06, %v1321_v43  ;;  %v1336_v34 = vmul.f32 %v7108_v45, %v1335_v51 }
 0x20c   : > { %1425 = vrot.lane.b32.xlu0 %v1423_v56, %s7516_s7  ;;  %v1345_v56 = vmul.f32 %v7110_v48, %v1327_v27  ;;  %7113 = vrsqrt.f32 %v1329_v52  ;;  %v1337_v58 = vmul.f32 0.5, %v1336_v34  ;;  %vm1370_vm5 = vweird.f32 %v1329_v52 }
 0x20d   : > { %v1211_v59 = vpop.f32.mrf.mxu2 }
 0x20e   : > { %v1346_v57 = vmul.f32 %v7110_v48, %v1345_v56  ;;  %v1308_v59 = vpop.xlane.xlu1 %1307  ;;  %v8026_v61 = vpop.eup %7111  ;;  %v1338_v4 = vsub.f32 1.5, %v1337_v58 }
 0x20f   : > { %v1322_v3 = vmul.f32 %v1308_v59, %v7810_v41  ;;  %v1355_v8 = vmul.f32 %v8026_v61, %v1328_v49  ;;  %vm1361_vm4 = vweird.f32 %v8026_v61 }
 0x210   : > { %v1347_v62 = vmul.f32 0.5, %v1346_v57  ;;  %v1339_v12 = vmul.f32 %v7108_v45, %v1338_v4  ;;  %vm8061_vm7 = vmor %vm1360_vm3, %vm1361_vm4 }
 0x211   : > { %v8034_v11 = vadd.f32 1e-06, %v1322_v3  ;;  %v1356_v17 = vmul.f32 %v8026_v61, %v1355_v8 }
 0x212   : > { %v8028_v0 = vpop.eup %7113  ;;  %v1348_v6 = vsub.f32 1.5, %v1347_v62 }
 0x213   : > { %v1365_v10 = vmul.f32 %v8028_v0, %v1329_v52  ;;  %7115 = vrsqrt.f32 %v8034_v11  ;;  %v1357_v23 = vmul.f32 0.5, %v1356_v17  ;;  %vm1371_vm6 = vweird.f32 %v8028_v0 }
 0x214   : > { %7117 = vrsqrt.f32 %v8036_v14  ;;  %v1317_v27 = vpop.xlane.xlu2 %1316  ;;  %vm1372_vm8 = vmor %vm1370_vm5, %vm1371_vm6  ;;  %vm1380_vm9 = vweird.f32 %v8034_v11 }
 0x215   : > { %v1235_v20 = vpop.f32.mrf.mxu2  ;;  %v1366_v18 = vmul.f32 %v8028_v0, %v1365_v10  ;;  %v1358_v31 = vsub.f32 1.5, %v1357_v23  ;;  %v1325_v42 = vmul.f32 %v1317_v27, %v7810_v41 }
 0x216   : > { %v8008_v21 = vadd.f32 %v1235_v20, %v1193_v15  ;;  %v1349_v15 = vmul.f32 %v7110_v48, %v1348_v6  ;;  %v1343_v20 = vsel %vm1342_vm14, %v7108_v45, %v1339_v12  ;;  %v1314_v29 = vpop.xlane.xlu1 %1313 }
 0x217   : > { %v1367_v24 = vmul.f32 0.5, %v1366_v18  ;;  %v1414_v25 = vmul.f32 %v1343_v20, %v7814_v46  ;;  %v1333_v58 = vadd.f32 1e-06, %v1325_v42 }
 0x219   : > { %v8044_v30 = vpop.eup %7115  ;;  %v1368_v35 = vsub.f32 1.5, %v1367_v24  ;;  %vm1410_vm5 = vweird.f32 %v1333_v58 }
 0x21a   : > { %v7118_v36 = vpop.eup %7117  ;;  %v1375_v52 = vmul.f32 %v8044_v30, %v8034_v11  ;;  %vm1381_vm10 = vweird.f32 %v8044_v30 }
 0x21b   : > { %v1369_v51 = vmul.f32 %v8028_v0, %v1368_v35  ;;  %v1385_v56 = vmul.f32 %v7118_v36, %v8036_v14  ;;  %vm1391_vm12 = vweird.f32 %v7118_v36  ;;  %vm1382_vm13 = vmor %vm1380_vm9, %vm1381_vm10 }
 0x21c   : > { %v1376_v62 = vmul.f32 %v8044_v30, %v1375_v52  ;;  %vm1392_vm14 = vmor %vm1390_vm11, %vm1391_vm12 }
 0x21d   : > { %v1237_v22 = vpop.f32.mrf.mxu2  ;;  %v1373_v59 = vsel %vm1372_vm8, %v8028_v0, %v1369_v51  ;;  %v1386_v63 = vmul.f32 %v7118_v36, %v1385_v56  ;;  %vm2554_vm8 = vcmask 392192  }
 0x21e   : > { %v1353_v22 = vsel %vm1352_vm2, %v7110_v48, %v1349_v15  ;;  %v1359_v48 = vmul.f32 %v8026_v61, %v1358_v31  ;;  %v1417_v4 = vmul.f32 %v1373_v59, %v7843_v1  ;;  %v1377_v5 = vmul.f32 0.5, %v1376_v62 }
 0x21f   : > { %v1415_v26 = vmul.f32 %v1353_v22, %v7827_v55  ;;  %v1324_v55 = vmul.f32 %v1314_v29, %v7810_v41  ;;  %v1387_v6 = vmul.f32 0.5, %v1386_v63 }
 0x220   : > { %v1363_v49 = vsel %vm8061_vm7, %v8026_v61, %v1359_v48  ;;  %v1378_v15 = vsub.f32 1.5, %v1377_v5  ;;  %vm2545_vm7 = vcmask 261120  }
 0x221   : > { %v1332_v57 = vadd.f32 1e-06, %v1324_v55  ;;  %v1416_v3 = vmul.f32 %v1363_v49, %v7836_v60  ;;  %v1388_v61 = vsub.f32 1.5, %v1387_v6 }
 0x222   : > { %v1379_v1 = vmul.f32 %v8044_v30, %v1378_v15 }
 0x223   : > { %7119 = vrsqrt.f32 %v1332_v57  ;;  %v1389_v18 = vmul.f32 %v7118_v36, %v1388_v61  ;;  %vm1400_vm15 = vweird.f32 %v1332_v57 }
 0x224   : > { %7121 = vrsqrt.f32 %v1333_v58  ;;  %v1383_v11 = vsel %vm1382_vm13, %v8044_v30, %v1379_v1 }
 0x225   : > { %v1393_v24 = vsel %vm1392_vm14, %v7118_v36, %v1389_v18  ;;  %v1418_v14 = vmul.f32 %v1383_v11, %v7850_v7 }
 0x226   : > { %v1419_v29 = vmul.f32 %v1393_v24, %v7857_v13 }
 0x229   : > { %v7120_v12 = vpop.eup %7119 }
 0x22a   : > { %v7122_v17 = vpop.eup %7121  ;;  %v1395_v20 = vmul.f32 %v7120_v12, %v1332_v57  ;;  %vm1401_vm2 = vweird.f32 %v7120_v12 }
 0x22b   : > { %v1405_v22 = vmul.f32 %v7122_v17, %v1333_v58  ;;  %vm1411_vm3 = vweird.f32 %v7122_v17  ;;  %vm1402_vm4 = vmor %vm1400_vm15, %vm1401_vm2 }
 0x22c   : > { %vm1412_vm6 = vmor %vm1410_vm5, %vm1411_vm3 }
 0x27e   : > { %v8046_v33 = vpop.permute.xlu0 %1425 }
 0x27f   : > { %v1428_v40 = vmul.f32 %v8046_v33, %v1414_v25  ;;  %v1429_v46 = vmul.f32 %v8046_v33, %v1415_v26  ;;  %v1430_v8 = vmul.f32 %v8046_v33, %v1416_v3  ;;  %v1431_v10 = vmul.f32 %v8046_v33, %v1417_v4 }
 0x280   : > { %v1396_v25 = vmul.f32 %v7120_v12, %v1395_v20  ;;  %v1406_v26 = vmul.f32 %v7122_v17, %v1405_v22  ;;  %v1432_v27 = vmul.f32 %v8046_v33, %v1418_v14 }
 0x281   : > { %v1437_v43 = vadd.f32 %v8050_v39, %v1428_v40  ;;  %v1438_v45 = vadd.f32 %v8050_v39, %v1429_v46  ;;  %v1439_v0 = vadd.f32 %v8050_v39, %v1430_v8  ;;  %v1440_v60 = vadd.f32 %v8050_v39, %v1431_v10 }
 0x282   : > { %v1397_v31 = vmul.f32 0.5, %v1396_v25  ;;  %v1407_v35 = vmul.f32 0.5, %v1406_v26  ;;  %v1433_v40 = vmul.f32 %v8046_v33, %v1419_v29  ;;  %v1441_v42 = vadd.f32 %v8050_v39, %v1432_v27 }
 0x283   : > { %v1445_v34 = vpack.c.bf16 %v1438_v45, %v1437_v43  ;;  %v1446_v23 = vpack.c.bf16 %v1440_v60, %v1439_v0 }
 0x284   : > { %v1398_v46 = vsub.f32 1.5, %v1397_v31  ;;  %v1408_v55 = vsub.f32 1.5, %v1407_v35  ;;  %v1442_v43 = vadd.f32 %v8050_v39, %v1433_v40 }
 0x285   : > { %6301 = vmatmul.msk.bf16.vlgmr.msrb.gmra.mxu2 %vm987_vm1, %v1445_v34  ;;  %6305 = vmatmul.msk.bf16.vlgmr.msra.gmra.mxu0 %vm987_vm1, %v1445_v34 }
 0x286   : > { %v1399_v30 = vmul.f32 %v7120_v12, %v1398_v46  ;;  %v1409_v36 = vmul.f32 %v7122_v17, %v1408_v55  ;;  %v1447_v7 = vpack.c.bf16 %v1442_v43, %v1441_v42 }
 0x288   : > { %v1403_v13 = vsel %vm1402_vm4, %v7120_v12, %v1399_v30  ;;  %v1413_v45 = vsel %vm1412_vm6, %v7122_v17, %v1409_v36 }
 0x289   : > { %v1420_v48 = vmul.f32 %v1403_v13, %v7864_v19  ;;  %v1421_v50 = vmul.f32 %v1413_v45, %v7958_v37 }
 0x28b   : > { %v1434_v51 = vmul.f32 %v8046_v33, %v1420_v48  ;;  %v1435_v52 = vmul.f32 %v8046_v33, %v1421_v50  ;;  %v1457_v33 = vld [vmem:[%s10288_s13] sm:$0x3] }
 0x28c   : > { %v1459_v3 = vperm.slane %v1457_v33, 0 }
 0x28d   : > { %v1443_v56 = vadd.f32 %v8050_v39, %v1434_v51  ;;  %v1444_v34 = vadd.f32 %v8050_v39, %v1435_v52 }
 0x28f   : > { %v1448_v57 = vpack.c.bf16 %v1444_v34, %v1443_v56 }
 0x295   : > { %6302 = vmatmul.msk.bf16.gmra.mxu2 %vm987_vm1, %v1446_v23  ;;  %6306 = vmatmul.msk.bf16.gmra.mxu0 %vm987_vm1, %v1446_v23  ;;  %v1460_v23 = vperm.slane %v1457_v33, 1 }
 0x2a5   : > { %6303 = vmatmul.msk.bf16.gmra.mxu2 %vm987_vm1, %v1447_v7  ;;  %6307 = vmatmul.msk.bf16.gmra.mxu0 %vm987_vm1, %v1447_v7 }
 0x2b5   : > { %6304 = vmatmul.msk.bf16.gmra.mxu2 %vm987_vm1, %v1448_v57  ;;  %6308 = vmatmul.msk.bf16.gmra.mxu0 %vm987_vm1, %v1448_v57 }
 0x302   : > { %v1553_v58 = vpop.f32.mrf.mxu0 }
 0x303   : > { %v1554_v51 = vadd.f32 %v1553_v58, %v1460_v23 }
 0x308   : > { %v1524_v49 = vpop.f32.mrf.mxu2 }
 0x309   : > { %v1525_v15 = vadd.f32 %v1524_v49, %v1459_v3 }
 0x30a   : > { %v1555_v59 = vpop.f32.mrf.mxu0 }
 0x30b   : > { %v1556_v48 = vadd.f32 %v1555_v59, %v1460_v23  ;;  %v1573_v56 = vmul.f32 0.25, %v1525_v15 }
 0x30d   : > { %v8140_v34 = vpack.c.bf16 %v1556_v48, %v1554_v51 }
 0x310   : > { %v1526_v62 = vpop.f32.mrf.mxu2 }
 0x311   : > { %v1527_v10 = vadd.f32 %v1526_v62, %v1459_v3 }
 0x312   : > { %v1558_v19 = vpop.f32.mrf.mxu0 }
 0x313   : > { %v8112_v17 = vpack.c.bf16 %v1527_v10, %v1525_v15  ;;  %v1559_v36 = vadd.f32 %v1558_v19, %v1460_v23  ;;  %v1574_v52 = vmul.f32 0.25, %v1527_v10 }
 0x315   : > { %v1581_v57 = vpack.c.bf16 %v1574_v52, %v1573_v56 }
 0x318   : > { %v1529_v63 = vpop.f32.mrf.mxu2 }
 0x319   : > { %v1530_v5 = vadd.f32 %v1529_v63, %v1459_v3 }
 0x31a   : > { %v1560_v37 = vpop.f32.mrf.mxu0 }
 0x31b   : > { %v1575_v35 = vmul.f32 0.25, %v1530_v5  ;;  %v1561_v46 = vadd.f32 %v1560_v37, %v1460_v23 }
 0x31d   : > { %v8132_v50 = vpack.c.bf16 %v1561_v46, %v1559_v36 }
 0x320   : > { %v1531_v4 = vpop.f32.mrf.mxu2 }
 0x321   : > { %v1532_v39 = vadd.f32 %v1531_v4, %v1459_v3 }
 0x322   : > { %v1563_v6 = vpop.f32.mrf.mxu0 }
 0x323   : > { %v8108_v8 = vpack.c.bf16 %v1532_v39, %v1530_v5  ;;  %v1576_v29 = vmul.f32 0.25, %v1532_v39  ;;  %v1564_v31 = vadd.f32 %v1563_v6, %v1460_v23 }
 0x325   : > { %1595 = vrot.lane.b32.xlu0 %v8108_v8, %s7516_s7  ;;  %v8127_v7 = vpack.c.bf16 %v1576_v29, %v1575_v35 }
 0x328   : > { %v1534_v12 = vpop.f32.mrf.mxu2 }
 0x329   : > { %v1535_v60 = vadd.f32 %v1534_v12, %v1459_v3 }
 0x32a   : > { %v1565_v61 = vpop.f32.mrf.mxu0 }
 0x32b   : > { %v1566_v26 = vadd.f32 %v1565_v61, %v1460_v23  ;;  %v1577_v30 = vmul.f32 0.25, %v1535_v60 }
 0x32d   : > { %1593 = vrot.lane.b32.xlu0 %v8112_v17, %s7516_s7  ;;  %v8125_v55 = vpack.c.bf16 %v1566_v26, %v1564_v31 }
 0x330   : > { %v1536_v0 = vpop.f32.mrf.mxu2 }
 0x331   : > { %v1537_v1 = vadd.f32 %v1536_v0, %v1459_v3 }
 0x332   : > { %v1568_v18 = vpop.f32.mrf.mxu0 }
 0x333   : > { %v1587_v20 = vpack.c.bf16 %v1537_v1, %v1535_v60  ;;  %v1569_v24 = vadd.f32 %v1568_v18, %v1460_v23  ;;  %v1578_v27 = vmul.f32 0.25, %v1537_v1 }
 0x335   : > { %1597 = vrot.lane.b32.xlu2 %v1587_v20, %s7516_s7  ;;  %1805 = vrot.lane.b32.xlu0 %v8108_v8, %s7517_s3  ;;  %v8130_v45 = vpack.c.bf16 %v1578_v27, %v1577_v30 }
 0x338   : > { %v1539_v22 = vpop.f32.mrf.mxu2 }
 0x339   : > { %v1540_v42 = vadd.f32 %v1539_v22, %v1459_v3 }
 0x33a   : > { %v1570_v11 = vpop.f32.mrf.mxu0 }
 0x33b   : > { %v1571_v25 = vadd.f32 %v1570_v11, %v1460_v23  ;;  %v1579_v49 = vmul.f32 0.25, %v1540_v42 }
 0x33d   : > { %v8119_v14 = vpack.c.bf16 %v1571_v25, %v1569_v24  ;;  %1807 = vrot.lane.b32.xlu2 %v1587_v20, %s7517_s3  ;;  %1803 = vrot.lane.b32.xlu0 %v8112_v17, %s7517_s3 }
 0x33f   : > { %1766 = vmatpush.bf16.msrb.mxu1 %v8119_v14 }
 0x340   : > { %v1541_v40 = vpop.f32.mrf.mxu2 }
 0x341   : > { %v1542_v43 = vadd.f32 %v1541_v40, %v1459_v3 }
 0x343   : > { %v1588_v13 = vpack.c.bf16 %v1542_v43, %v1540_v42  ;;  %1767 = vmatpush.bf16.msrb.mxu1 %v8125_v55  ;;  %v1580_v58 = vmul.f32 0.25, %v1542_v43 }
 0x345   : > { %1599 = vrot.lane.b32.xlu1 %v1588_v13, %s7516_s7  ;;  %1797 = vrot.lane.b32.xlu2 %v8127_v7, %s10311_s6  ;;  %v8150_v59 = vpack.c.bf16 %v1580_v58, %v1579_v49 }
 0x346   : > { %1799 = vrot.lane.b32.xlu0 %v8130_v45, %s10311_s6 }
 0x347   : > { %1768 = vmatpush.bf16.msrb.mxu1 %v8132_v50 }
 0x34b   : > { %1769 = vmatpush.bf16.msrb.mxu1 %v8140_v34 }
 0x34d   : > { %2227 = vrot.lane.b32.xlu2 %v1581_v57, %s10307_s25  ;;  %1795 = vrot.lane.b32.xlu1 %v1581_v57, %s10311_s6 }
 0x34e   : > { %2235 = vrot.lane.b32.xlu0 %v8112_v17, %s7520_s4 }
 0x355   : > { %2027 = vrot.lane.b32.xlu2 %v1588_v13, %s10313_s27  ;;  %2025 = vrot.lane.b32.xlu1 %v1587_v20, %s10313_s27 }
 0x356   : > { %1809 = vrot.lane.b32.xlu0 %v1588_v13, %s7517_s3 }
 0x35d   : > { %1801 = vrot.lane.b32.xlu2 %v8150_v59, %s10311_s6  ;;  %2239 = vrot.lane.b32.xlu1 %v1587_v20, %s7520_s4 }
 0x365   : > { %2023 = vrot.lane.b32.xlu1 %v8108_v8, %s10313_s27 }
 0x36d   : > { %2237 = vrot.lane.b32.xlu1 %v8108_v8, %s7520_s4 }
 0x375   : > { %2021 = vrot.lane.b32.xlu1 %v8112_v17, %s10313_s27 }
 0x37d   : > { %2013 = vrot.lane.b32.xlu1 %v1581_v57, %s10309_s8 }
 0x385   : > { %2241 = vrot.lane.b32.xlu1 %v1588_v13, %s7520_s4 }
 0x38f   : > { %v1598_v62 = vpop.permute.xlu2 %1597 }
 0x390   : > { %v1620_v17 = vsel %vm1051_vm0, %v1598_v62, 0 }
 0x397   : > { %v1808_v19 = vpop.permute.xlu2 %1807  ;;  %v1596_v63 = vpop.permute.xlu0 %1595 }
 0x398   : > { %v1617_v1 = vsel %vm1051_vm0, %v1596_v63, 0  ;;  %v1830_v11 = vsel %vm1051_vm0, %v1808_v19, 0 }
 0x39f   : > { %v1798_v37 = vpop.permute.xlu2 %1797  ;;  %v1594_v33 = vpop.permute.xlu0 %1593 }
 0x3a0   : > { %v1614_v23 = vsel %vm1051_vm0, %v1594_v33, 0 }
 0x3a7   : > { %v1806_v3 = vpop.permute.xlu0 %1805  ;;  %v2228_v4 = vpop.permute.xlu2 %2227 }
 0x3a8   : > { %v1827_v26 = vsel %vm1051_vm0, %v1806_v3, 0 }
 0x3af   : > { %v1804_v5 = vpop.permute.xlu0 %1803  ;;  %v2028_v39 = vpop.permute.xlu2 %2027 }
 0x3b0   : > { %v2051_v6 = vsel %vm1051_vm0, %v2028_v39, 0  ;;  %v1824_v31 = vsel %vm1051_vm0, %v1804_v5, 0 }
 0x3b1   : > { %2057 = vmatpush.bf16.xpose.msra.mxu1 %v2051_v6 }
 0x3b7   : > { %v1600_v8 = vpop.permute.xlu1 %1599  ;;  %v1802_v13 = vpop.permute.xlu2 %1801 }
 0x3b8   : > { %v1800_v10 = vpop.permute.xlu0 %1799  ;;  %v1623_v12 = vsel %vm1051_vm0, %v1600_v8, 0 }
 0x3b9   : > { %1629 = vmatpush.bf16.xpose.msrb.mxu3 %v1623_v12 }
 0x3bf   : > { %v1796_v15 = vpop.permute.xlu1 %1795 }
 0x3c0   : > { %v2236_v61 = vpop.permute.xlu0 %2235 }
 0x3c1   : > { %1630 = vmatpush.bf16.xpose.msrb.mxu3 %v1620_v17  ;;  %v2256_v36 = vsel %vm1051_vm0, %v2236_v61, 0 }
 0x3c7   : > { %v2026_v0 = vpop.permute.xlu1 %2025 }
 0x3c8   : > { %v1810_v60 = vpop.permute.xlu0 %1809  ;;  %v2048_v18 = vsel %vm1051_vm0, %v2026_v0, 0 }
 0x3c9   : > { %v1833_v20 = vsel %vm1051_vm0, %v1810_v60, 0  ;;  %1631 = vmatpush.bf16.xpose.msrb.mxu3 %v1617_v1  ;;  %2058 = vmatpush.bf16.xpose.msra.mxu1 %v2048_v18 }
 0x3ca   : > { %1839 = vmatpush.bf16.xpose.msra.mxu2 %v1833_v20 }
 0x3cf   : > { %v2240_v22 = vpop.permute.xlu1 %2239 }
 0x3d0   : > { %v2262_v43 = vsel %vm1051_vm0, %v2240_v22, 0 }
 0x3d1   : > { %1632 = vmatpush.bf16.xpose.msrb.mxu3 %v1614_v23 }
 0x3d2   : > { %1840 = vmatpush.bf16.xpose.msra.mxu2 %v1830_v11 }
 0x3d7   : > { %v2024_v24 = vpop.permute.xlu1 %2023 }
 0x3d8   : > { %6309 = vmatmul.msk.bf16.vlgmr.msrb.gmra.mxu3 %vm1051_vm0, %v1581_v57  ;;  %v2045_v25 = vsel %vm1051_vm0, %v2024_v24, 0 }
 0x3d9   : > { %2059 = vmatpush.bf16.xpose.msra.mxu1 %v2045_v25 }
 0x3da   : > { %1841 = vmatpush.bf16.xpose.msra.mxu2 %v1827_v26 }
 0x3df   : > { %v2238_v29 = vpop.permute.xlu1 %2237 }
 0x3e0   : > { %v2259_v30 = vsel %vm1051_vm0, %v2238_v29, 0 }
 0x3e2   : > { %1842 = vmatpush.bf16.xpose.msra.mxu2 %v1824_v31 }
 0x3e7   : > { %v2022_v35 = vpop.permute.xlu1 %2021 }
 0x3e8   : > { %6310 = vmatmul.msk.bf16.gmra.mxu3 %vm1051_vm0, %v8127_v7  ;;  %v2042_v27 = vsel %vm1051_vm0, %v2022_v35, 0 }
 0x3e9   : > { %6317 = vmatmul.msk.bf16.vlgmr.msra.gmra.mxu2 %vm1051_vm0, %v1796_v15  ;;  %2060 = vmatpush.bf16.xpose.msra.mxu1 %v2042_v27 }
 0x3ef   : > { %v8179_v40 = vpop.permute.xlu1 %2013 }
 0x3f7   : > { %v2242_v46 = vpop.permute.xlu1 %2241 }
 0x3f8   : > { %v2265_v42 = vsel %vm1051_vm0, %v2242_v46, 0  ;;  %6311 = vmatmul.msk.bf16.gmra.mxu3 %vm1051_vm0, %v8130_v45 }
 0x3f9   : > { %6318 = vmatmul.msk.bf16.gmra.mxu2 %vm1051_vm0, %v1798_v37 }
 0x3fa   : > { %2271 = vmatpush.bf16.xpose.msrb.mxu2 %v2265_v42 }
 0x402   : > { %2272 = vmatpush.bf16.xpose.msrb.mxu2 %v2262_v43 }
 0x408   : > { %6312 = vmatmul.msk.bf16.gmra.mxu3 %vm1051_vm0, %v8150_v59 }
 0x409   : > { %6319 = vmatmul.msk.bf16.gmra.mxu2 %vm1051_vm0, %v1800_v10 }
 0x40a   : > { %2273 = vmatpush.bf16.xpose.msrb.mxu2 %v2259_v30 }
 0x412   : > { %2274 = vmatpush.bf16.xpose.msrb.mxu2 %v2256_v36 }
 0x419   : > { %6320 = vmatmul.msk.bf16.gmra.mxu2 %vm1051_vm0, %v1802_v13 }
 0x429   : > { %6333 = vmatmul.msk.bf16.vlgmr.msrb.gmra.mxu2 %vm1051_vm0, %v2228_v4 }
 0x45b   : > { %v1634_v48 = vpop.f32.mrf.mxu3 }
 0x45c   : > { %v1654_v51 = vsel %vm987_vm1, %v1634_v48, -inf }
 0x45d   : > { %1655 = vmax.xlane.f32.xlu0 %v1654_v51 }
 0x463   : > { %v1636_v52 = vpop.f32.mrf.mxu3 }
 0x464   : > { %v1657_v56 = vsel %vm987_vm1, %v1636_v52, -inf }
 0x465   : > { %1658 = vmax.xlane.f32.xlu2 %v1657_v56 }
 0x46b   : > { %v1639_v57 = vpop.f32.mrf.mxu3 }
 0x46c   : > { %v1660_v58 = vsel %vm987_vm1, %v1639_v57, -inf }
 0x46d   : > { %1661 = vmax.xlane.f32.xlu1 %v1660_v58  ;;  %v8239_v58 = vpop.f32.mrf.mxu2 }
 0x473   : > { %v8196_v49 = vpop.f32.mrf.mxu3 }
 0x474   : > { %v1663_v62 = vsel %vm987_vm1, %v8196_v49, -inf }
 0x475   : > { %1664 = vmax.xlane.f32.xlu0 %v1663_v62 }
 0x47b   : > { %v1644_v19 = vpop.f32.mrf.mxu3 }
 0x47c   : > { %v1666_v63 = vsel %vm987_vm1, %v1644_v19, -inf }
 0x47d   : > { %1667 = vmax.xlane.f32.xlu2 %v1666_v63 }
 0x483   : > { %v1646_v37 = vpop.f32.mrf.mxu3 }
 0x484   : > { %v1669_v33 = vsel %vm987_vm1, %v1646_v37, -inf }
 0x485   : > { %1670 = vmax.xlane.f32.xlu1 %v1669_v33 }
 0x489   : > { %2017 = vrot.lane.b32.xlu0 %v8130_v45, %s10309_s8 }
 0x48b   : > { %v1649_v3 = vpop.f32.mrf.mxu3 }
 0x48c   : > { %v1672_v4 = vsel %vm987_vm1, %v1649_v3, -inf }
 0x48d   : > { %1673 = vmax.xlane.f32.xlu1 %v1672_v4 }
 0x493   : > { %v8205_v5 = vpop.f32.mrf.mxu3 }
 0x494   : > { %v1675_v39 = vsel %vm987_vm1, %v8205_v5, -inf }
 0x495   : > { %2229 = vrot.lane.b32.xlu2 %v8127_v7, %s10307_s25  ;;  %1676 = vmax.xlane.f32.xlu1 %v1675_v39 }
 0x4d0   : > { %v1656_v6 = vpop.xlane.xlu0 %1655 }
 0x4d1   : > { %v1678_v8 = vsub.f32 %v1634_v48, %v1656_v6 }
 0x4d3   : > { %v1686_v10 = vmul.f32 1.442695, %v1678_v8 }
 0x4d5   : > { %7123 = vpow2.f32 %v1686_v10 }
 0x4d8   : > { %v1659_v12 = vpop.xlane.xlu2 %1658 }
 0x4d9   : > { %v1679_v15 = vsub.f32 %v1636_v52, %v1659_v12 }
 0x4db   : > { %v8211_v61 = vpop.eup %7123  ;;  %v1688_v17 = vmul.f32 1.442695, %v1679_v15 }
 0x4dc   : > { %v1702_v0 = vsel %vm987_vm1, %v8211_v61, 0.0 }
 0x4dd   : > { %7125 = vpow2.f32 %v1688_v17  ;;  %1703 = vadd.xlane.f32.xlu1 %v1702_v0 }
 0x4e0   : > { %v1662_v60 = vpop.xlane.xlu1 %1661 }
 0x4e1   : > { %v1680_v1 = vsub.f32 %v1639_v57, %v1662_v60 }
 0x4e3   : > { %v8215_v18 = vpop.eup %7125  ;;  %v1690_v20 = vmul.f32 1.442695, %v1680_v1 }
 0x4e4   : > { %v1705_v22 = vsel %vm987_vm1, %v8215_v18, 0.0 }
 0x4e5   : > { %7127 = vpow2.f32 %v1690_v20  ;;  %1706 = vadd.xlane.f32.xlu2 %v1705_v22 }
 0x4e8   : > { %v1665_v51 = vpop.xlane.xlu0 %1664 }
 0x4e9   : > { %v1681_v56 = vsub.f32 %v8196_v49, %v1665_v51 }
 0x4eb   : > { %v8219_v23 = vpop.eup %7127  ;;  %v1692_v57 = vmul.f32 1.442695, %v1681_v56 }
 0x4ec   : > { %v1708_v11 = vsel %vm987_vm1, %v8219_v23, 0.0 }
 0x4ed   : > { %1709 = vadd.xlane.f32.xlu0 %v1708_v11 }
 0x4f0   : > { %v1668_v24 = vpop.xlane.xlu2 %1667 }
 0x4f1   : > { %v1682_v25 = vsub.f32 %v1644_v19, %v1668_v24  ;;  %v8243_v19 = vpop.f32.mrf.mxu2 }
 0x4f2   : > { %v1867_v10 = vsel %vm987_vm1, %v8243_v19, -inf }
 0x4f3   : > { %v1694_v26 = vmul.f32 1.442695, %v1682_v25  ;;  %v1864_v25 = vsel %vm987_vm1, %v8239_v58, -inf }
 0x4f5   : > { %7129 = vpow2.f32 %v1694_v26 }
 0x4f6   : > { %2015 = vrot.lane.b32.xlu1 %v8127_v7, %s10309_s8 }
 0x4f8   : > { %v2230_v29 = vpop.permute.xlu2 %2229  ;;  %v1671_v31 = vpop.xlane.xlu1 %1670 }
 0x4f9   : > { %v1683_v35 = vsub.f32 %v1646_v37, %v1671_v31  ;;  %6334 = vmatmul.msk.bf16.gmra.mxu2 %vm1051_vm0, %v2230_v29  ;;  %v8248_v37 = vpop.f32.mrf.mxu2 }
 0x4fb   : > { %v8226_v27 = vpop.eup %7129  ;;  %v1696_v46 = vmul.f32 1.442695, %v1683_v35 }
 0x4fc   : > { %v1714_v42 = vsel %vm987_vm1, %v8226_v27, 0.0 }
 0x4fd   : > { %7131 = vpow2.f32 %v1696_v46  ;;  %1715 = vadd.xlane.f32.xlu0 %v1714_v42 }
 0x500   : > { %v1674_v43 = vpop.xlane.xlu1 %1673 }
 0x501   : > { %v1684_v30 = vsub.f32 %v1649_v3, %v1674_v43  ;;  %v8251_v3 = vpop.f32.mrf.mxu2 }
 0x502   : > { %v1873_v29 = vsel %vm987_vm1, %v8251_v3, -inf }
 0x503   : > { %v8230_v36 = vpop.eup %7131  ;;  %v1698_v13 = vmul.f32 1.442695, %v1684_v30 }
 0x504   : > { %v1717_v7 = vsel %vm987_vm1, %v8230_v36, 0.0 }
 0x505   : > { %7133 = vpow2.f32 %v1698_v13  ;;  %1718 = vadd.xlane.f32.xlu0 %v1717_v7 }
 0x506   : > { %7135 = vpow2.f32 %v1692_v57 }
 0x508   : > { %v1677_v33 = vpop.xlane.xlu1 %1676 }
 0x509   : > { %v1685_v49 = vsub.f32 %v8205_v5, %v1677_v33  ;;  %v8255_v39 = vpop.f32.mrf.mxu2  ;;  %v1870_v5 = vsel %vm987_vm1, %v8248_v37, -inf }
 0x50a   : > { %v1876_v17 = vsel %vm987_vm1, %v8255_v39, -inf }
 0x50b   : > { %v8234_v48 = vpop.eup %7133  ;;  %v1700_v4 = vmul.f32 1.442695, %v1685_v49 }
 0x50c   : > { %v1720_v52 = vsel %vm987_vm1, %v8234_v48, 0.0  ;;  %v7136_v62 = vpop.eup %7135 }
 0x50d   : > { %1721 = vadd.xlane.f32.xlu2 %v1720_v52  ;;  %v1711_v63 = vsel %vm987_vm1, %v7136_v62, 0.0  ;;  %7137 = vpow2.f32 %v1700_v4 }
 0x513   : > { %v8257_v6 = vpop.eup %7137 }
 0x514   : > { %v1723_v8 = vsel %vm987_vm1, %v8257_v6, 0.0 }
 0x519   : > { %2233 = vrot.lane.b32.xlu0 %v8150_v59, %s10307_s25 }
 0x520   : > { %1712 = vadd.xlane.f32.xlu1 %v1711_v63 }
 0x525   : > { %2019 = vrot.lane.b32.xlu2 %v8150_v59, %s10309_s8  ;;  %v8261_v59 = vpop.f32.mrf.mxu2 }
 0x52d   : > { %v8267_v12 = vpop.f32.mrf.mxu2 }
 0x52e   : > { %v1882_v31 = vsel %vm987_vm1, %v8267_v12, -inf }
 0x535   : > { %v8273_v60 = vpop.f32.mrf.mxu2 }
 0x536   : > { %v1885_v20 = vsel %vm987_vm1, %v8273_v60, -inf }
 0x539   : > { %2231 = vrot.lane.b32.xlu1 %v8130_v45, %s10307_s25  ;;  %v1879_v45 = vsel %vm987_vm1, %v8261_v59, -inf }
 0x543   : > { %1724 = vadd.xlane.f32.xlu0 %v1723_v8 }
 0x54b   : > { %1871 = vmax.xlane.f32.xlu0 %v1870_v5 }
 0x54e   : > { %1868 = vmax.xlane.f32.xlu2 %v1867_v10 }
 0x550   : > { %v1704_v15 = vpop.xlane.xlu1 %1703 }
 0x551   : > { %7139 = vrcp.f32 %v1704_v15 }
 0x553   : > { %1880 = vmax.xlane.f32.xlu0 %v1879_v45 }
 0x556   : > { %1877 = vmax.xlane.f32.xlu2 %v1876_v17 }
 0x557   : > { %v7140_v1 = vpop.eup %7139 }
 0x558   : > { %v1707_v0 = vpop.xlane.xlu2 %1706  ;;  %v1734_v11 = vmul.f32 %v7140_v1, %v8211_v61  ;;  %v8288_v61 = vpop.f32.mrf.mxu2 }
 0x559   : > { %7141 = vrcp.f32 %v1707_v0 }
 0x55e   : > { %1886 = vmax.xlane.f32.xlu2 %v1885_v20 }
 0x55f   : > { %v7142_v22 = vpop.eup %7141 }
 0x560   : > { %v1735_v24 = vmul.f32 %v7142_v22, %v8215_v18  ;;  %v8290_v18 = vpop.permute.xlu0 %2017  ;;  %v8294_v42 = vpop.f32.mrf.mxu2 }
 0x561   : > { %v2299_v43 = vsel %vm987_vm1, %v8294_v42, -inf }
 0x562   : > { %v1742_v26 = vpack.c.bf16 %v1735_v24, %v1734_v11 }
 0x563   : > { %1865 = vmax.xlane.f32.xlu1 %v1864_v25 }
 0x564   : > { %6313 = vmatmul.msk.bf16.vlgmr.msrb.gmra.mxu1 %vm987_vm1, %v1742_v26 }
 0x567   : > { %1966 = vrot.lane.b32.xlu0 %v8119_v14, %s10311_s6 }
 0x568   : > { %v1710_v35 = vpop.xlane.xlu0 %1709  ;;  %v8292_v46 = vpop.permute.xlu1 %2015 }
 0x569   : > { %7143 = vrcp.f32 %v1710_v35 }
 0x56b   : > { %1874 = vmax.xlane.f32.xlu1 %v1873_v29 }
 0x56f   : > { %v7144_v7 = vpop.eup %7143 }
 0x570   : > { %v1716_v30 = vpop.xlane.xlu0 %1715  ;;  %v1736_v52 = vmul.f32 %v7144_v7, %v8219_v23 }
 0x573   : > { %1883 = vmax.xlane.f32.xlu1 %v1882_v31 }
 0x578   : > { %v1719_v57 = vpop.xlane.xlu0 %1718 }
 0x57c   : > { %v8310_v29 = vpop.f32.mrf.mxu2 }
 0x580   : > { %v1722_v15 = vpop.xlane.xlu2 %1721 }
 0x58b   : > { %v2234_v45 = vpop.permute.xlu0 %2233 }
 0x591   : > { %2300 = vmax.xlane.f32.xlu0 %v2299_v43 }
 0x593   : > { %v1713_v13 = vpop.xlane.xlu1 %1712 }
 0x594   : > { %7145 = vrcp.f32 %v1713_v13 }
 0x595   : > { %7147 = vrcp.f32 %v1719_v57 }
 0x596   : > { %7149 = vrcp.f32 %v1716_v30 }
 0x597   : > { %7151 = vrcp.f32 %v1722_v15 }
 0x59a   : > { %v7146_v51 = vpop.eup %7145 }
 0x59b   : > { %v1737_v56 = vmul.f32 %v7146_v51, %v7136_v62  ;;  %v7148_v33 = vpop.eup %7147  ;;  %v2020_v62 = vpop.permute.xlu2 %2019 }
 0x59c   : > { %v7150_v49 = vpop.eup %7149  ;;  %v1739_v4 = vmul.f32 %v7148_v33, %v8230_v36 }
 0x59d   : > { %v1743_v63 = vpack.c.bf16 %v1737_v56, %v1736_v52  ;;  %v1738_v5 = vmul.f32 %v7150_v49, %v8226_v27  ;;  %v7152_v17 = vpop.eup %7151 }
 0x59e   : > { %v1740_v36 = vmul.f32 %v7152_v17, %v8234_v48 }
 0x59f   : > { %6314 = vmatmul.msk.bf16.gmra.mxu1 %vm987_vm1, %v1743_v63  ;;  %v1744_v10 = vpack.c.bf16 %v1739_v4, %v1738_v5  ;;  %v2296_v63 = vsel %vm987_vm1, %v8288_v61, -inf  ;;  %v2302_v5 = vsel %vm987_vm1, %v8310_v29, -inf }
 0x5ab   : > { %v2232_v8 = vpop.permute.xlu1 %2231 }
 0x5ac   : > { %6335 = vmatmul.msk.bf16.gmra.mxu2 %vm1051_vm0, %v2232_v8 }
 0x5af   : > { %6315 = vmatmul.msk.bf16.gmra.mxu1 %vm987_vm1, %v1744_v10 }
 0x5b6   : > { %v1725_v23 = vpop.xlane.xlu0 %1724 }
 0x5b7   : > { %7153 = vrcp.f32 %v1725_v23 }
 0x5bc   : > { %6336 = vmatmul.msk.bf16.gmra.mxu2 %vm1051_vm0, %v2234_v45 }
 0x5bd   : > { %v7154_v0 = vpop.eup %7153 }
 0x5be   : > { %v1872_v1 = vpop.xlane.xlu0 %1871  ;;  %v1741_v27 = vmul.f32 %v7154_v0, %v8257_v6 }
 0x5bf   : > { %v1890_v20 = vsub.f32 %v8248_v37, %v1872_v1 }
 0x5c0   : > { %v1745_v22 = vpack.c.bf16 %v1741_v27, %v1740_v36 }
 0x5c1   : > { %v1900_v11 = vmul.f32 1.442695, %v1890_v20  ;;  %v1869_v24 = vpop.xlane.xlu2 %1868 }
 0x5c2   : > { %v1889_v25 = vsub.f32 %v8243_v19, %v1869_v24  ;;  %6316 = vmatmul.msk.bf16.gmra.mxu1 %vm987_vm1, %v1745_v22  ;;  %v8320_v19 = vpop.f32.mrf.mxu2 }
 0x5c3   : > { %7155 = vpow2.f32 %v1900_v11  ;;  %v2305_v43 = vsel %vm987_vm1, %v8320_v19, -inf }
 0x5c4   : > { %v1898_v26 = vmul.f32 1.442695, %v1889_v25 }
 0x5c6   : > { %7157 = vpow2.f32 %v1898_v26  ;;  %v1881_v35 = vpop.xlane.xlu0 %1880 }
 0x5c7   : > { %v1893_v57 = vsub.f32 %v8261_v59, %v1881_v35 }
 0x5c9   : > { %v8312_v31 = vpop.eup %7155  ;;  %v1906_v49 = vmul.f32 1.442695, %v1893_v57  ;;  %v1878_v4 = vpop.xlane.xlu2 %1877 }
 0x5ca   : > { %v1918_v48 = vsel %vm987_vm1, %v8312_v31, 0.0 }
 0x5cb   : > { %1919 = vadd.xlane.f32.xlu0 %v1918_v48 }
 0x5cc   : > { %v8316_v6 = vpop.eup %7157 }
 0x5cd   : > { %v1915_v37 = vsel %vm987_vm1, %v8316_v6, 0.0 }
 0x5ce   : > { %1916 = vadd.xlane.f32.xlu2 %v1915_v37 }
 0x5d2   : > { %6325 = vmatmul.msk.bf16.vlgmr.msra.gmra.mxu1 %vm1051_vm0, %v8179_v40 }
 0x5d3   : > { %2306 = vmax.xlane.f32.xlu0 %v2305_v43 }
 0x5d6   : > { %v1866_v30 = vpop.xlane.xlu1 %1865 }
 0x5d7   : > { %v1888_v13 = vsub.f32 %v8239_v58, %v1866_v30 }
 0x5d9   : > { %v1896_v7 = vmul.f32 1.442695, %v1888_v13  ;;  %v1967_v51 = vpop.permute.xlu0 %1966 }
 0x5da   : > { %1988 = vmatpush.bf16.msrb.mxu0 %v1967_v51 }
 0x5db   : > { %7159 = vpow2.f32 %v1896_v7  ;;  %v1887_v7 = vpop.xlane.xlu2 %1886 }
 0x5de   : > { %v1875_v40 = vpop.xlane.xlu1 %1874 }
 0x5e1   : > { %v8327_v52 = vpop.eup %7159  ;;  %v8342_v58 = vpop.f32.mrf.mxu1 }
 0x5e2   : > { %6326 = vmatmul.msk.bf16.gmra.mxu1 %vm1051_vm0, %v8292_v46  ;;  %v1912_v56 = vsel %vm987_vm1, %v8327_v52, 0.0  ;;  %v1891_v46 = vsub.f32 %v8251_v3, %v1875_v40 }
 0x5e3   : > { %1913 = vadd.xlane.f32.xlu1 %v1912_v56 }
 0x5e4   : > { %v1902_v33 = vmul.f32 1.442695, %v1891_v46  ;;  %v1895_v46 = vsub.f32 %v8273_v60, %v1887_v7 }
 0x5e6   : > { %1962 = vrot.lane.b32.xlu2 %v8132_v50, %s10311_s6  ;;  %7161 = vpow2.f32 %v1902_v33  ;;  %v1884_v10 = vpop.xlane.xlu1 %1883 }
 0x5e7   : > { %7163 = vpow2.f32 %v1906_v49  ;;  %v1894_v15 = vsub.f32 %v8267_v12, %v1884_v10 }
 0x5e9   : > { %v8349_v8 = vpop.f32.mrf.mxu1  ;;  %v1908_v17 = vmul.f32 1.442695, %v1894_v15 }
 0x5ec   : > { %v8353_v59 = vpop.eup %7161 }
 0x5ed   : > { %v8355_v45 = vpop.eup %7163 }
 0x5ee   : > { %1960 = vrot.lane.b32.xlu2 %v8140_v34, %s10311_s6 }
 0x5f2   : > { %6327 = vmatmul.msk.bf16.gmra.mxu1 %vm1051_vm0, %v8290_v18  ;;  %v1892_v18 = vsub.f32 %v8255_v39, %v1878_v4  ;;  %v1921_v39 = vsel %vm987_vm1, %v8353_v59, 0.0 }
 0x5f4   : > { %v1904_v3 = vmul.f32 1.442695, %v1892_v18 }
 0x5f6   : > { %7165 = vpow2.f32 %v1904_v3 }
 0x5f7   : > { %7167 = vpow2.f32 %v1908_v17 }
 0x5fc   : > { %1964 = vrot.lane.b32.xlu1 %v8125_v55, %s10311_s6  ;;  %v8364_v0 = vpop.eup %7165 }
 0x5fd   : > { %v1924_v1 = vsel %vm987_vm1, %v8364_v0, 0.0  ;;  %v8374_v20 = vpop.eup %7167 }
 0x5fe   : > { %v1930_v22 = vsel %vm987_vm1, %v8374_v20, 0.0 }
 0x602   : > { %6328 = vmatmul.msk.bf16.gmra.mxu1 %vm1051_vm0, %v2020_v62  ;;  %v1927_v62 = vsel %vm987_vm1, %v8355_v45, 0.0 }
 0x604   : > { %v2301_v33 = vpop.xlane.xlu0 %2300 }
 0x605   : > { %v2321_v4 = vsub.f32 %v8294_v42, %v2301_v33 }
 0x607   : > { %v2330_v3 = vmul.f32 1.442695, %v2321_v4 }
 0x617   : > { %2297 = vmax.xlane.f32.xlu2 %v2296_v63  ;;  %v1910_v63 = vmul.f32 1.442695, %v1895_v46 }
 0x61c   : > { %v8358_v23 = vpop.f32.mrf.mxu1 }
 0x61f   : > { %2303 = vmax.xlane.f32.xlu2 %v2302_v5 }
 0x624   : > { %v8368_v36 = vpop.f32.mrf.mxu1 }
 0x626   : > { %1922 = vadd.xlane.f32.xlu1 %v1921_v39 }
 0x627   : > { %1928 = vadd.xlane.f32.xlu2 %v1927_v62 }
 0x62c   : > { %v8382_v25 = vpop.f32.mrf.mxu1 }
 0x62e   : > { %1925 = vadd.xlane.f32.xlu1 %v1924_v1 }
 0x62f   : > { %v8370_v12 = vpop.f32.mrf.mxu2 }
 0x630   : > { %v2308_v27 = vsel %vm987_vm1, %v8370_v12, -inf }
 0x631   : > { %2309 = vmax.xlane.f32.xlu2 %v2308_v27 }
 0x634   : > { %v8388_v37 = vpop.f32.mrf.mxu1 }
 0x636   : > { %1931 = vadd.xlane.f32.xlu1 %v1930_v22 }
 0x637   : > { %v8378_v11 = vpop.f32.mrf.mxu2 }
 0x638   : > { %v2311_v24 = vsel %vm987_vm1, %v8378_v11, -inf }
 0x639   : > { %2312 = vmax.xlane.f32.xlu0 %v2311_v24 }
 0x63e   : > { %v1920_v46 = vpop.xlane.xlu0 %1919 }
 0x63f   : > { %v8384_v26 = vpop.f32.mrf.mxu2  ;;  %v8396_v30 = vpop.f32.mrf.mxu1 }
 0x640   : > { %v2314_v48 = vsel %vm987_vm1, %v8384_v26, -inf }
 0x641   : > { %2315 = vmax.xlane.f32.xlu1 %v2314_v48  ;;  %v1917_v56 = vpop.xlane.xlu2 %1916 }
 0x647   : > { %v8390_v35 = vpop.f32.mrf.mxu2  ;;  %v8402_v13 = vpop.f32.mrf.mxu1 }
 0x648   : > { %v2317_v43 = vsel %vm987_vm1, %v8390_v35, -inf }
 0x649   : > { %2180 = vrot.lane.b32.xlu2 %v8119_v14, %s10309_s8  ;;  %2318 = vmax.xlane.f32.xlu1 %v2317_v43 }
 0x64d   : > { %2178 = vrot.lane.b32.xlu0 %v8125_v55, %s10309_s8 }
 0x64f   : > { %v8408_v51 = vpop.f32.mrf.mxu1 }
 0x651   : > { %2394 = vrot.lane.b32.xlu2 %v8119_v14, %s10307_s25  ;;  %v1963_v14 = vpop.permute.xlu2 %1962 }
 0x655   : > { %2176 = vrot.lane.b32.xlu0 %v8132_v50, %s10309_s8 }
 0x656   : > { %v1914_v40 = vpop.xlane.xlu1 %1913 }
 0x657   : > { %v8411_v57 = vpop.f32.mrf.mxu1  ;;  %7169 = vrcp.f32 %v1914_v40 }
 0x658   : > { %7171 = vrcp.f32 %v1917_v56 }
 0x659   : > { %7173 = vpow2.f32 %v1910_v63  ;;  %v1961_v39 = vpop.permute.xlu2 %1960 }
 0x65a   : > { %7175 = vpow2.f32 %v2330_v3 }
 0x65d   : > { %2392 = vrot.lane.b32.xlu0 %v8125_v55, %s10307_s25  ;;  %v7170_v18 = vpop.eup %7169 }
 0x65e   : > { %v7172_v55 = vpop.eup %7171  ;;  %v1944_v60 = vmul.f32 %v7170_v18, %v8327_v52 }
 0x65f   : > { %v8414_v5 = vpop.f32.mrf.mxu1  ;;  %v8417_v10 = vpop.eup %7173  ;;  %v1945_v15 = vmul.f32 %v7172_v55, %v8316_v6  ;;  %v2082_v6 = vsel %vm987_vm1, %v8408_v51, -inf  ;;  %v2085_v55 = vsel %vm987_vm1, %v8411_v57, -inf }
 0x660   : > { %v1933_v17 = vsel %vm987_vm1, %v8417_v10, 0.0  ;;  %v8425_v1 = vpop.eup %7175  ;;  %v2088_v43 = vsel %vm987_vm1, %v8414_v5, -inf }
 0x661   : > { %v1952_v62 = vpack.c.bf16 %v1945_v15, %v1944_v60  ;;  %v2347_v52 = vsel %vm987_vm1, %v8425_v1, 0.0 }
 0x667   : > { %v8423_v42 = vpop.f32.mrf.mxu1 }
 0x66e   : > { %v1965_v49 = vpop.permute.xlu1 %1964 }
 0x66f   : > { %1989 = vmatpush.bf16.msrb.mxu0 %v1965_v49  ;;  %v8431_v27 = vpop.f32.mrf.mxu1 }
 0x670   : > { %v2094_v63 = vsel %vm987_vm1, %v8431_v27, -inf }
 0x673   : > { %1990 = vmatpush.bf16.msrb.mxu0 %v1963_v14 }
 0x677   : > { %1991 = vmatpush.bf16.msrb.mxu0 %v1961_v39  ;;  %v8436_v7 = vpop.f32.mrf.mxu1 }
 0x67a   : > { %1934 = vadd.xlane.f32.xlu2 %v1933_v17  ;;  %6321 = vmatmul.msk.bf16.vlgmr.msrb.gmra.mxu0 %vm987_vm1, %v1952_v62 }
 0x67f   : > { %v8448_v33 = vpop.f32.mrf.mxu1 }
 0x680   : > { %v2100_v18 = vsel %vm987_vm1, %v8448_v33, -inf }
 0x682   : > { %2348 = vadd.xlane.f32.xlu2 %v2347_v52  ;;  %v2091_v52 = vsel %vm987_vm1, %v8423_v42, -inf }
 0x687   : > { %2083 = vmax.xlane.f32.xlu0 %v2082_v6 }
 0x68a   : > { %v2298_v22 = vpop.xlane.xlu2 %2297 }
 0x68b   : > { %v2320_v24 = vsub.f32 %v8288_v61, %v2298_v22 }
 0x68d   : > { %v2328_v48 = vmul.f32 1.442695, %v2320_v24 }
 0x68f   : > { %7177 = vpow2.f32 %v2328_v48  ;;  %2089 = vmax.xlane.f32.xlu0 %v2088_v43  ;;  %v2307_v48 = vpop.xlane.xlu0 %2306 }
 0x690   : > { %7179 = vrcp.f32 %v1920_v46  ;;  %v2323_v43 = vsub.f32 %v8320_v19, %v2307_v48 }
 0x692   : > { %v8438_v56 = vpop.xlane.xlu2 %2303 }
 0x695   : > { %v8440_v40 = vpop.eup %7177 }
 0x696   : > { %v2344_v14 = vsel %vm987_vm1, %v8440_v40, 0.0  ;;  %v7180_v4 = vpop.eup %7179 }
 0x697   : > { %2095 = vmax.xlane.f32.xlu0 %v2094_v63  ;;  %2345 = vadd.xlane.f32.xlu1 %v2344_v14  ;;  %v1946_v60 = vmul.f32 %v7180_v4, %v8312_v31  ;;  %v2097_v31 = vsel %vm987_vm1, %v8436_v7, -inf  ;;  %v8466_v63 = vpop.f32.mrf.mxu1 }
 0x698   : > { %v2103_v4 = vsel %vm987_vm1, %v8466_v63, -inf }
 0x699   : > { %v1923_v61 = vpop.xlane.xlu1 %1922 }
 0x69a   : > { %7181 = vrcp.f32 %v1923_v61  ;;  %2388 = vrot.lane.b32.xlu2 %v8140_v34, %s10307_s25  ;;  %v1929_v49 = vpop.xlane.xlu2 %1928 }
 0x69f   : > { %2101 = vmax.xlane.f32.xlu0 %v2100_v18  ;;  %2086 = vmax.xlane.f32.xlu1 %v2085_v55 }
 0x6a0   : > { %v7182_v3 = vpop.eup %7181 }
 0x6a1   : > { %v1947_v15 = vmul.f32 %v7182_v3, %v8353_v59  ;;  %v1926_v39 = vpop.xlane.xlu1 %1925 }
 0x6a2   : > { %7183 = vrcp.f32 %v1926_v39 }
 0x6a3   : > { %v1953_v62 = vpack.c.bf16 %v1947_v15, %v1946_v60  ;;  %7185 = vrcp.f32 %v1929_v49  ;;  %v2334_v49 = vmul.f32 1.442695, %v2323_v43 }
 0x6a4   : > { %v8456_v17 = vpop.xlane.xlu2 %2309 }
 0x6a5   : > { %6322 = vmatmul.msk.bf16.gmra.mxu0 %vm987_vm1, %v1953_v62  ;;  %7187 = vpow2.f32 %v2334_v49 }
 0x6a7   : > { %2092 = vmax.xlane.f32.xlu1 %v2091_v52 }
 0x6a8   : > { %v7184_v6 = vpop.eup %7183 }
 0x6a9   : > { %v7186_v24 = vpop.eup %7185  ;;  %v1948_v59 = vmul.f32 %v7184_v6, %v8364_v0  ;;  %v1932_v60 = vpop.xlane.xlu1 %1931 }
 0x6aa   : > { %v1949_v46 = vmul.f32 %v7186_v24, %v8355_v45  ;;  %7189 = vrcp.f32 %v1932_v60 }
 0x6ab   : > { %v8473_v0 = vpop.eup %7187 }
 0x6ac   : > { %v2181_v22 = vpop.permute.xlu2 %2180  ;;  %v1954_v14 = vpack.c.bf16 %v1949_v46, %v1948_v59  ;;  %v8471_v18 = vpop.xlane.xlu0 %2312  ;;  %v2353_v45 = vsel %vm987_vm1, %v8473_v0, 0.0 }
 0x6ad   : > { %2202 = vmatpush.bf16.msra.mxu3 %v2181_v22 }
 0x6af   : > { %2098 = vmax.xlane.f32.xlu1 %v2097_v31 }
 0x6b0   : > { %v7190_v39 = vpop.eup %7189 }
 0x6b1   : > { %v1950_v52 = vmul.f32 %v7190_v39, %v8374_v20 }
 0x6b4   : > { %v2395_v61 = vpop.permute.xlu2 %2394  ;;  %v2316_v24 = vpop.xlane.xlu1 %2315 }
 0x6b5   : > { %6323 = vmatmul.msk.bf16.gmra.mxu0 %vm987_vm1, %v1954_v14 }
 0x6b6   : > { %2416 = vmatpush.bf16.msra.mxu0 %v2395_v61 }
 0x6b7   : > { %2104 = vmax.xlane.f32.xlu1 %v2103_v4 }
 0x6bc   : > { %v8481_v43 = vpop.xlane.xlu1 %2318 }
 0x6bf   : > { %v2179_v19 = vpop.permute.xlu0 %2178 }
 0x6c0   : > { %2203 = vmatpush.bf16.msra.mxu3 %v2179_v19 }
 0x6c3   : > { %2354 = vadd.xlane.f32.xlu2 %v2353_v45 }
 0x6c7   : > { %v2177_v55 = vpop.permute.xlu0 %2176 }
 0x6c8   : > { %2204 = vmatpush.bf16.msra.mxu3 %v2177_v55 }
 0x6cf   : > { %v2393_v3 = vpop.permute.xlu0 %2392 }
 0x6d0   : > { %2417 = vmatpush.bf16.msra.mxu0 %v2393_v3 }
 0x6ed   : > { %v1935_v15 = vpop.xlane.xlu2 %1934 }
 0x6ee   : > { %7191 = vrcp.f32 %v1935_v15 }
 0x6f4   : > { %v7192_v62 = vpop.eup %7191 }
 0x6f5   : > { %v1951_v6 = vmul.f32 %v7192_v62, %v8417_v10 }
 0x6f7   : > { %v1955_v22 = vpack.c.bf16 %v1951_v6, %v1950_v52 }
 0x6f9   : > { %6324 = vmatmul.msk.bf16.gmra.mxu0 %vm987_vm1, %v1955_v22 }
 0x6fa   : > { %v2084_v48 = vpop.xlane.xlu0 %2083 }
 0x6fb   : > { %v2106_v31 = vsub.f32 %v8408_v51, %v2084_v48 }
 0x6fd   : > { %v2114_v59 = vmul.f32 1.442695, %v2106_v31 }
 0x6ff   : > { %7193 = vpow2.f32 %v2114_v59 }
 0x702   : > { %v2090_v19 = vpop.xlane.xlu0 %2089 }
 0x703   : > { %v2108_v45 = vsub.f32 %v8414_v5, %v2090_v19 }
 0x705   : > { %v8483_v46 = vpop.eup %7193  ;;  %v2118_v55 = vmul.f32 1.442695, %v2108_v45  ;;  %v2325_v45 = vsub.f32 %v8378_v11, %v8471_v18 }
 0x706   : > { %v2130_v14 = vsel %vm987_vm1, %v8483_v46, 0.0 }
 0x707   : > { %2131 = vadd.xlane.f32.xlu0 %v2130_v14 }
 0x70a   : > { %v8487_v20 = vpop.xlane.xlu1 %2345  ;;  %v2096_v60 = vpop.xlane.xlu0 %2095 }
 0x70b   : > { %v2110_v15 = vsub.f32 %v8431_v27, %v2096_v60 }
 0x70d   : > { %v2122_v5 = vmul.f32 1.442695, %v2110_v15 }
 0x712   : > { %v2087_v10 = vpop.xlane.xlu1 %2086  ;;  %v2102_v6 = vpop.xlane.xlu0 %2101 }
 0x713   : > { %v2107_v61 = vsub.f32 %v8411_v57, %v2087_v10  ;;  %v2322_v57 = vsub.f32 %v8310_v29, %v8438_v56  ;;  %v2112_v48 = vsub.f32 %v8448_v33, %v2102_v6 }
 0x715   : > { %v2116_v49 = vmul.f32 1.442695, %v2107_v61  ;;  %v2332_v3 = vmul.f32 1.442695, %v2322_v57  ;;  %v2326_v61 = vsub.f32 %v8384_v26, %v2316_v24  ;;  %v2338_v24 = vmul.f32 1.442695, %v2325_v45 }
 0x717   : > { %7195 = vpow2.f32 %v2116_v49 }
 0x718   : > { %7197 = vpow2.f32 %v2118_v55 }
 0x719   : > { %7199 = vpow2.f32 %v2332_v3  ;;  %v1993_v3 = vpop.f32.mrf.mxu0 }
 0x71a   : > { %7201 = vpow2.f32 %v2122_v5  ;;  %v2093_v29 = vpop.xlane.xlu1 %2092 }
 0x71b   : > { %2390 = vrot.lane.b32.xlu0 %v8132_v50, %s10307_s25  ;;  %v2109_v27 = vsub.f32 %v8423_v42, %v2093_v29 }
 0x71d   : > { %v8492_v51 = vpop.eup %7195  ;;  %v2120_v59 = vmul.f32 1.442695, %v2109_v27 }
 0x71e   : > { %v2133_v4 = vsel %vm987_vm1, %v8492_v51, 0.0  ;;  %v8501_v50 = vpop.eup %7197 }
 0x71f   : > { %2134 = vadd.xlane.f32.xlu1 %v2133_v4  ;;  %v2136_v39 = vsel %vm987_vm1, %v8501_v50, 0.0  ;;  %v8506_v62 = vpop.eup %7199  ;;  %v2340_v4 = vmul.f32 1.442695, %v2326_v61 }
 0x720   : > { %v2350_v56 = vsel %vm987_vm1, %v8506_v62, 0.0  ;;  %v8512_v22 = vpop.eup %7201 }
 0x721   : > { %v2142_v31 = vsel %vm987_vm1, %v8512_v22, 0.0  ;;  %v1995_v29 = vpop.f32.mrf.mxu0 }
 0x729   : > { %v1998_v6 = vpop.f32.mrf.mxu0 }
 0x738   : > { %2174 = vrot.lane.b32.xlu1 %v8140_v34, %s10309_s8  ;;  %v2324_v34 = vsub.f32 %v8370_v12, %v8456_v17  ;;  %v2099_v12 = vpop.xlane.xlu1 %2098  ;;  %v2126_v17 = vmul.f32 1.442695, %v2112_v48  ;;  %s10339_s8 = sshll.u32 %s10341_s26, 6 }
 0x739   : > { %v2111_v10 = vsub.f32 %v8436_v7, %v2099_v12 }
 0x73a   : > { %v2336_v52 = vmul.f32 1.442695, %v2324_v34  ;;  %v2327_v34 = vsub.f32 %v8390_v35, %v8481_v43  ;;  %v2000_v43 = vpop.f32.mrf.mxu0 }
 0x73b   : > { %v2124_v49 = vmul.f32 1.442695, %v2111_v10 }
 0x73c   : > { %7203 = vpow2.f32 %v2336_v52 }
 0x73d   : > { %7205 = vpow2.f32 %v2120_v59  ;;  %v2349_v59 = vpop.xlane.xlu2 %2348 }
 0x73e   : > { %7207 = vpow2.f32 %v2126_v17  ;;  %v6986_v17 = vpack.i.bf16 %v2000_v43, %v1998_v6 }
 0x73f   : > { %7209 = vpow2.f32 %v2124_v49 }
 0x740   : > { %7211 = vpow2.f32 %v2340_v4  ;;  %v2105_v55 = vpop.xlane.xlu1 %2104 }
 0x741   : > { %7213 = vpow2.f32 %v2338_v24  ;;  %v2113_v11 = vsub.f32 %v8466_v63, %v2105_v55  ;;  %v2342_v63 = vmul.f32 1.442695, %v2327_v34 }
 0x742   : > { %v8518_v14 = vpop.eup %7203 }
 0x743   : > { %v2356_v42 = vsel %vm987_vm1, %v8518_v14, 0.0  ;;  %v8524_v33 = vpop.eup %7205 }
 0x744   : > { %v8526_v19 = vpop.eup %7207  ;;  %v2139_v7 = vsel %vm987_vm1, %v8524_v33, 0.0 }
 0x745   : > { %2137 = vadd.xlane.f32.xlu0 %v2136_v39  ;;  %v2148_v26 = vsel %vm987_vm1, %v8526_v19, 0.0  ;;  %v8534_v57 = vpop.eup %7209  ;;  %v2128_v39 = vmul.f32 1.442695, %v2113_v11  ;;  %v2389_v45 = vpop.permute.xlu2 %2388 }
 0x746   : > { %v8536_v60 = vpop.eup %7211  ;;  %v2145_v18 = vsel %vm987_vm1, %v8534_v57, 0.0 }
 0x747   : > { %v2362_v15 = vsel %vm987_vm1, %v8536_v60, 0.0  ;;  %v8543_v5 = vpop.eup %7213  ;;  %7215 = vpow2.f32 %v2128_v39 }
 0x748   : > { %7217 = vpow2.f32 %v2342_v63 }
 0x749   : > { %7219 = vrcp.f32 %v8487_v20 }
 0x74a   : > { %7221 = vrcp.f32 %v2349_v59 }
 0x74d   : > { %2351 = vadd.xlane.f32.xlu0 %v2350_v56  ;;  %v2359_v56 = vsel %vm987_vm1, %v8543_v5, 0.0  ;;  %v8549_v52 = vpop.eup %7215 }
 0x74e   : > { %v2151_v27 = vsel %vm987_vm1, %v8549_v52, 0.0  ;;  %v8553_v48 = vpop.eup %7217 }
 0x74f   : > { %v2365_v35 = vsel %vm987_vm1, %v8553_v48, 0.0  ;;  %v7220_v10 = vpop.eup %7219 }
 0x750   : > { %v2376_v49 = vmul.f32 %v7220_v10, %v8440_v40  ;;  %v2355_v40 = vpop.xlane.xlu2 %2354 }
 0x755   : > { %2143 = vadd.xlane.f32.xlu0 %v2142_v31  ;;  %v6971_v31 = vpack.i.bf16 %v1995_v29, %v1993_v3 }
 0x75d   : > { %2357 = vadd.xlane.f32.xlu0 %v2356_v42  ;;  %v7222_v42 = vpop.eup %7221 }
 0x75e   : > { %v2377_v4 = vmul.f32 %v7222_v42, %v8425_v1 }
 0x762   : > { %2140 = vadd.xlane.f32.xlu1 %v2139_v7  ;;  %v2384_v7 = vpack.c.bf16 %v2377_v4, %v2376_v49  ;;  %v2003_v4 = vpop.f32.mrf.mxu0 }
 0x765   : > { %2149 = vadd.xlane.f32.xlu0 %v2148_v26 }
 0x76a   : > { %2146 = vadd.xlane.f32.xlu1 %v2145_v18 }
 0x76d   : > { %2363 = vadd.xlane.f32.xlu0 %v2362_v15 }
 0x772   : > { %2360 = vadd.xlane.f32.xlu1 %v2359_v56 }
 0x77a   : > { %2152 = vadd.xlane.f32.xlu1 %v2151_v27  ;;  %v2132_v12 = vpop.xlane.xlu0 %2131 }
 0x781   : > { %6972 = vrot.lane.b32.xlu0 %v6971_v31, %s7520_s4 }
 0x782   : > { %2366 = vadd.xlane.f32.xlu1 %v2365_v35 }
 0x789   : > { %6987 = vrot.lane.b32.xlu0 %v6986_v17, %s7520_s4 }
 0x78d   : > { %v2391_v61 = vpop.permute.xlu0 %2390 }
 0x78e   : > { %2418 = vmatpush.bf16.msra.mxu0 %v2391_v61 }
 0x792   : > { %2419 = vmatpush.bf16.msra.mxu0 %v2389_v45  ;;  %v2135_v26 = vpop.xlane.xlu1 %2134 }
 0x793   : > { %7223 = vrcp.f32 %v2135_v26 }
 0x794   : > { %7225 = vrcp.f32 %v2132_v12 }
 0x795   : > { %6337 = vmatmul.msk.bf16.vlgmr.msra.gmra.mxu0 %vm987_vm1, %v2384_v7  ;;  %7227 = vrcp.f32 %v2355_v40 }
 0x799   : > { %v7224_v20 = vpop.eup %7223 }
 0x79a   : > { %v7226_v24 = vpop.eup %7225  ;;  %v2163_v55 = vmul.f32 %v7224_v20, %v8492_v51 }
 0x79b   : > { %v2162_v3 = vmul.f32 %v7226_v24, %v8483_v46  ;;  %v7228_v39 = vpop.eup %7227 }
 0x79c   : > { %v2379_v56 = vmul.f32 %v7228_v39, %v8473_v0 }
 0x79d   : > { %v2170_v18 = vpack.c.bf16 %v2163_v55, %v2162_v3  ;;  %v2005_v55 = vpop.f32.mrf.mxu0 }
 0x7aa   : > { %v2175_v11 = vpop.permute.xlu1 %2174 }
 0x7ab   : > { %2205 = vmatpush.bf16.msra.mxu3 %v2175_v11 }
 0x7ae   : > { %6329 = vmatmul.msk.bf16.vlgmr.msra.gmra.mxu3 %vm987_vm1, %v2170_v18 }
 0x7b8   : > { %v2138_v1 = vpop.xlane.xlu0 %2137 }
 0x7c0   : > { %v2352_v15 = vpop.xlane.xlu0 %2351 }
 0x7c1   : > { %7229 = vrcp.f32 %v2352_v15  ;;  %v2008_v15 = vpop.f32.mrf.mxu0 }
 0x7c2   : > { %7231 = vrcp.f32 %v2138_v1 }
 0x7c7   : > { %v7230_v34 = vpop.eup %7229 }
 0x7c8   : > { %v2378_v29 = vmul.f32 %v7230_v34, %v8506_v62  ;;  %v2144_v46 = vpop.xlane.xlu0 %2143  ;;  %v7232_v6 = vpop.eup %7231 }
 0x7c9   : > { %v2164_v43 = vmul.f32 %v7232_v6, %v8501_v50 }
 0x7ca   : > { %v2385_v63 = vpack.c.bf16 %v2379_v56, %v2378_v29  ;;  %v2010_v29 = vpop.f32.mrf.mxu0 }
 0x7cb   : > { %v7016_v6 = vpack.i.bf16 %v2010_v29, %v2008_v15 }
 0x7cc   : > { %6338 = vmatmul.msk.bf16.gmra.mxu0 %vm987_vm1, %v2385_v63 }
 0x7d0   : > { %v2358_v31 = vpop.xlane.xlu0 %2357 }
 0x7d5   : > { %v2141_v51 = vpop.xlane.xlu1 %2140 }
 0x7d6   : > { %7233 = vrcp.f32 %v2141_v51 }
 0x7d8   : > { %v2150_v62 = vpop.xlane.xlu0 %2149 }
 0x7dc   : > { %v7234_v27 = vpop.eup %7233 }
 0x7dd   : > { %v2147_v35 = vpop.xlane.xlu1 %2146  ;;  %v2165_v59 = vmul.f32 %v7234_v27, %v8524_v33 }
 0x7de   : > { %7235 = vrcp.f32 %v2147_v35 }
 0x7df   : > { %v2171_v12 = vpack.c.bf16 %v2165_v59, %v2164_v43  ;;  %7237 = vrcp.f32 %v2144_v46 }
 0x7e0   : > { %7239 = vrcp.f32 %v2358_v31  ;;  %v2364_v24 = vpop.xlane.xlu0 %2363 }
 0x7e1   : > { %6330 = vmatmul.msk.bf16.gmra.mxu3 %vm987_vm1, %v2171_v12 }
 0x7e4   : > { %v7236_v17 = vpop.eup %7235 }
 0x7e5   : > { %v2361_v0 = vpop.xlane.xlu1 %2360  ;;  %v7238_v10 = vpop.eup %7237  ;;  %v2167_v42 = vmul.f32 %v7236_v17, %v8534_v57 }
 0x7e6   : > { %7241 = vrcp.f32 %v2361_v0  ;;  %v7240_v61 = vpop.eup %7239  ;;  %v2166_v7 = vmul.f32 %v7238_v10, %v8512_v22  ;;  %v6874_v0 = vld [vmem:[%s10289_s14 + $0x18] sm:$0xff]  ;;  %v6872_v10 = vld [vmem:[%s10289_s14 + $0x8] sm:$0xff] }
 0x7e7   : > { %v2380_v50 = vmul.f32 %v7240_v61, %v8518_v14  ;;  %2619 = vmatpush.bf16.msrb.mxu1 %v6874_v0 }
 0x7e8   : > { %v2172_v26 = vpack.c.bf16 %v2167_v42, %v2166_v7 }
 0x7ec   : > { %v7242_v49 = vpop.eup %7241 }
 0x7ed   : > { %v2381_v33 = vmul.f32 %v7242_v49, %v8543_v5  ;;  %v2153_v45 = vpop.xlane.xlu1 %2152 }
 0x7ee   : > { %7243 = vrcp.f32 %v2153_v45 }
 0x7ef   : > { %v2386_v20 = vpack.c.bf16 %v2381_v33, %v2380_v50  ;;  %7245 = vrcp.f32 %v2150_v62  ;;  %v6873_v62 = vld [vmem:[%s10289_s14 + $0x10] sm:$0xff] }
 0x7f0   : > { %7247 = vrcp.f32 %v2364_v24  ;;  %2620 = vmatpush.bf16.msrb.mxu1 %v6873_v62  ;;  %v6871_v24 = vld [vmem:[%s10289_s14] sm:$0xff] }
 0x7f1   : > { %6331 = vmatmul.msk.bf16.gmra.mxu3 %vm987_vm1, %v2172_v26  ;;  %6339 = vmatmul.msk.bf16.gmra.mxu0 %vm987_vm1, %v2386_v20 }
 0x7f4   : > { %v7244_v3 = vpop.eup %7243  ;;  %2621 = vmatpush.bf16.msrb.mxu1 %v6872_v10 }
 0x7f5   : > { %v2367_v57 = vpop.xlane.xlu1 %2366  ;;  %v7246_v14 = vpop.eup %7245  ;;  %v2169_v5 = vmul.f32 %v7244_v3, %v8549_v52 }
 0x7f6   : > { %7249 = vrcp.f32 %v2367_v57  ;;  %v7248_v11 = vpop.eup %7247  ;;  %v2168_v40 = vmul.f32 %v7246_v14, %v8526_v19  ;;  %v6973_v57 = vpop.permute.xlu0 %6972 }
 0x7f7   : > { %v2382_v22 = vmul.f32 %v7248_v11, %v8536_v60  ;;  %v6974_v3 = vunpack.i.l.bf16 %v6973_v57 }
 0x7f8   : > { %v2173_v39 = vpack.c.bf16 %v2169_v5, %v2168_v40  ;;  %2622 = vmatpush.bf16.msrb.mxu1 %v6871_v24 }
 0x7fc   : > { %v7250_v18 = vpop.eup %7249 }
 0x7fd   : > { %v2383_v1 = vmul.f32 %v7250_v18, %v8553_v48  ;;  %v7001_v48 = vpack.i.bf16 %v2005_v55, %v2003_v4  ;;  %v6975_v55 = vunpack.i.h.bf16 %v6973_v57 }
 0x7ff   : > { %v2387_v34 = vpack.c.bf16 %v2383_v1, %v2382_v22  ;;  %v2538_v22 = vsel %vm1051_vm0, %v8349_v8, %v6975_v55  ;;  %v2537_v1 = vsel %vm1051_vm0, %v8342_v58, %v6974_v3 }
 0x801   : > { %6332 = vmatmul.msk.bf16.gmra.mxu3 %vm987_vm1, %v2173_v39  ;;  %6340 = vmatmul.msk.bf16.gmra.mxu0 %vm987_vm1, %v2387_v34 }
 0x812   : > { %v2421_v56 = vpop.f32.mrf.mxu0 }
 0x81a   : > { %v2423_v63 = vpop.f32.mrf.mxu0 }
 0x81b   : > { %v6981_v46 = vpack.i.bf16 %v2423_v63, %v2421_v56 }
 0x81d   : > { %6982 = vrot.lane.b32.xlu2 %v6981_v46, %s7517_s3  ;;  %v6988_v46 = vpop.permute.xlu0 %6987 }
 0x831   : > { %v2207_v52 = vpop.f32.mrf.mxu3 }
 0x839   : > { %v2209_v51 = vpop.f32.mrf.mxu3 }
 0x83a   : > { %v6976_v60 = vpack.i.bf16 %v2209_v51, %v2207_v52  ;;  %v6990_v52 = vunpack.i.h.bf16 %v6988_v46  ;;  %v6989_v51 = vunpack.i.l.bf16 %v6988_v46 }
 0x83c   : > { %6977 = vrot.lane.b32.xlu1 %v6976_v60, %s10313_s27 }
 0x844   : > { %7002 = vrot.lane.b32.xlu1 %v7001_v48, %s7520_s4 }
 0x849   : > { %v2426_v19 = vpop.f32.mrf.mxu0 }
 0x84c   : > { %7017 = vrot.lane.b32.xlu1 %v7016_v6, %s7520_s4  ;;  %v2539_v6 = vsel %vm1051_vm0, %v8358_v23, %v6989_v51 }
 0x851   : > { %v2428_v27 = vpop.f32.mrf.mxu0 }
 0x852   : > { %v6996_v31 = vpack.i.bf16 %v2428_v27, %v2426_v19  ;;  %v2540_v19 = vsel %vm1051_vm0, %v8368_v36, %v6990_v52 }
 0x854   : > { %6997 = vrot.lane.b32.xlu0 %v6996_v31, %s7517_s3 }
 0x864   : > { %v2212_v35 = vpop.f32.mrf.mxu3 }
 0x86c   : > { %v2214_v43 = vpop.f32.mrf.mxu3 }
 0x86d   : > { %v6991_v59 = vpack.i.bf16 %v2214_v43, %v2212_v35 }
 0x86e   : > { %v2431_v12 = vpop.f32.mrf.mxu0 }
 0x86f   : > { %6992 = vrot.lane.b32.xlu2 %v6991_v59, %s10313_s27 }
 0x874   : > { %v2217_v17 = vpop.f32.mrf.mxu3 }
 0x876   : > { %v2433_v61 = vpop.f32.mrf.mxu0 }
 0x877   : > { %v7011_v42 = vpack.i.bf16 %v2433_v61, %v2431_v12  ;;  %v6983_v14 = vpop.permute.xlu2 %6982 }
 0x878   : > { %v6985_v40 = vunpack.i.h.bf16 %v6983_v14  ;;  %v6984_v15 = vunpack.i.l.bf16 %v6983_v14 }
 0x879   : > { %7012 = vrot.lane.b32.xlu0 %v7011_v42, %s7517_s3 }
 0x87c   : > { %v2219_v49 = vpop.f32.mrf.mxu3 }
 0x87d   : > { %v7006_v4 = vpack.i.bf16 %v2219_v49, %v2217_v17 }
 0x87e   : > { %v2436_v50 = vpop.f32.mrf.mxu0 }
 0x87f   : > { %7007 = vrot.lane.b32.xlu2 %v7006_v4, %s10313_s27 }
 0x884   : > { %v2222_v33 = vpop.f32.mrf.mxu3 }
 0x886   : > { %v2438_v45 = vpop.f32.mrf.mxu0 }
 0x887   : > { %v7026_v7 = vpack.i.bf16 %v2438_v45, %v2436_v50 }
 0x889   : > { %7027 = vrot.lane.b32.xlu0 %v7026_v7, %s7517_s3 }
 0x88c   : > { %v2224_v26 = vpop.f32.mrf.mxu3 }
 0x88d   : > { %v7021_v20 = vpack.i.bf16 %v2224_v26, %v2222_v33 }
 0x88f   : > { %7022 = vrot.lane.b32.xlu2 %v7021_v20, %s10313_s27 }
 0x8ae   : > { %v6978_v11 = vpop.permute.xlu1 %6977 }
 0x8af   : > { %v6980_v5 = vunpack.i.h.bf16 %v6978_v11  ;;  %v6979_v18 = vunpack.i.l.bf16 %v6978_v11 }
 0x8b1   : > { %v2547_v39 = vsel %vm2545_vm7, %v2538_v22, %v6980_v5  ;;  %v2546_v34 = vsel %vm2545_vm7, %v2537_v1, %v6979_v18 }
 0x8b2   : > { %v2556_v29 = vsel %vm2554_vm8, %v2547_v39, %v6985_v40  ;;  %v2555_v56 = vsel %vm2554_vm8, %v2546_v34, %v6984_v15 }
 0x8b3   : > { %v2563_v63 = vpack.c.bf16 %v2556_v29, %v2555_v56 }
 0x8b5   : > { %6357 = vmatmul.msk.bf16.vlgmr.msrb.gmra.mxu1 %vm987_vm1, %v2563_v63 }
 0x8b6   : > { %v7003_v62 = vpop.permute.xlu1 %7002 }
 0x8b7   : > { %v7005_v10 = vunpack.i.h.bf16 %v7003_v62  ;;  %v7004_v36 = vunpack.i.l.bf16 %v7003_v62 }
 0x8b9   : > { %v2542_v49 = vsel %vm1051_vm0, %v8388_v37, %v7005_v10  ;;  %v2541_v4 = vsel %vm1051_vm0, %v8382_v25, %v7004_v36 }
 0x8be   : > { %v7018_v57 = vpop.permute.xlu1 %7017 }
 0x8bf   : > { %v7020_v3 = vunpack.i.h.bf16 %v7018_v57  ;;  %v7019_v37 = vunpack.i.l.bf16 %v7018_v57 }
 0x8c1   : > { %v2544_v5 = vsel %vm1051_vm0, %v8402_v13, %v7020_v3  ;;  %v2543_v18 = vsel %vm1051_vm0, %v8396_v30, %v7019_v37  ;;  %v7092_v13 = vld [vmem:[%s10290_s15] ss:$0 sm:$0xff]  ;;  %v8646_v30 = vperm.slane %v7966_v47, 0 }
 0x8c6   : > { %v6998_v8 = vpop.permute.xlu0 %6997 }
 0x8c7   : > { %v7000_v27 = vunpack.i.h.bf16 %v6998_v8  ;;  %v6999_v31 = vunpack.i.l.bf16 %v6998_v8 }
 0x8c9   : > { %v6993_v60 = vpop.permute.xlu2 %6992 }
 0x8ca   : > { %v6995_v48 = vunpack.i.h.bf16 %v6993_v60  ;;  %v6994_v58 = vunpack.i.l.bf16 %v6993_v60 }
 0x8cc   : > { %v2548_v35 = vsel %vm2545_vm7, %v2539_v6, %v6994_v58  ;;  %v2549_v43 = vsel %vm2545_vm7, %v2540_v19, %v6995_v48 }
 0x8cd   : > { %v2557_v59 = vsel %vm2554_vm8, %v2548_v35, %v6999_v31  ;;  %v2558_v12 = vsel %vm2554_vm8, %v2549_v43, %v7000_v27 }
 0x8ce   : > { %v2564_v0 = vpack.c.bf16 %v2558_v12, %v2557_v59 }
 0x8d0   : > { %6358 = vmatmul.msk.bf16.gmra.mxu1 %vm987_vm1, %v2564_v0 }
 0x8d9   : > { %v7008_v17 = vpop.permute.xlu2 %7007 }
 0x8da   : > { %v7010_v61 = vunpack.i.h.bf16 %v7008_v17  ;;  %v7009_v42 = vunpack.i.l.bf16 %v7008_v17 }
 0x8dc   : > { %v2550_v45 = vsel %vm2545_vm7, %v2541_v4, %v7009_v42  ;;  %v2551_v7 = vsel %vm2545_vm7, %v2542_v49, %v7010_v61 }
 0x8e9   : > { %v7023_v55 = vpop.permute.xlu2 %7022 }
 0x8ea   : > { %v7025_v14 = vunpack.i.h.bf16 %v7023_v55  ;;  %v7024_v11 = vunpack.i.l.bf16 %v7023_v55 }
 0x8eb   : > { %v7013_v23 = vpop.permute.xlu0 %7012 }
 0x8ec   : > { %v7015_v50 = vunpack.i.h.bf16 %v7013_v23  ;;  %v7014_v33 = vunpack.i.l.bf16 %v7013_v23  ;;  %v2552_v40 = vsel %vm2545_vm7, %v2543_v18, %v7024_v11  ;;  %v2553_v15 = vsel %vm2545_vm7, %v2544_v5, %v7025_v14 }
 0x8ee   : > { %v2559_v26 = vsel %vm2554_vm8, %v2550_v45, %v7014_v33  ;;  %v2560_v20 = vsel %vm2554_vm8, %v2551_v7, %v7015_v50 }
 0x8ef   : > { %v2565_v24 = vpack.c.bf16 %v2560_v20, %v2559_v26 }
 0x8f1   : > { %6359 = vmatmul.msk.bf16.gmra.mxu1 %vm987_vm1, %v2565_v24 }
 0x8fb   : > { %v7028_v25 = vpop.permute.xlu0 %7027 }
 0x8fc   : > { %v7030_v22 = vunpack.i.h.bf16 %v7028_v25  ;;  %v7029_v1 = vunpack.i.l.bf16 %v7028_v25 }
 0x8fe   : > { %v2561_v39 = vsel %vm2554_vm8, %v2552_v40, %v7029_v1  ;;  %v2562_v34 = vsel %vm2554_vm8, %v2553_v15, %v7030_v22 }
 0x8ff   : > { %v2566_v29 = vpack.c.bf16 %v2562_v34, %v2561_v39 }
 0x901   : > { %6360 = vmatmul.msk.bf16.gmra.mxu1 %vm987_vm1, %v2566_v29 }
 0x932   : > { %v2624_v56 = vpop.f32.mrf.mxu1 }
 0x933   : > { %v2625_v63 = vadd.f32 %v7092_v13, %v2624_v56 }
 0x935   : > { %v2645_v46 = vmul.f32 %v8646_v30, %v2625_v63 }
 0x937   : > { %v8650_v52 = vadd.f32 %v2645_v46, %v7742_v38 }
 0x939   : > { %v2661_v51 = vsel %vm987_vm1, %v8650_v52, 0.0 }
 0x93a   : > { %v2626_v8 = vpop.f32.mrf.mxu1  ;;  %2662 = vadd.xlane.f32.xlu1 %v2661_v51 }
 0x93b   : > { %v2627_v60 = vadd.f32 %v7092_v13, %v2626_v8 }
 0x93d   : > { %v2646_v48 = vmul.f32 %v8646_v30, %v2627_v60 }
 0x93f   : > { %v8656_v58 = vadd.f32 %v2646_v48, %v7753_v44 }
 0x941   : > { %v2664_v47 = vsel %vm987_vm1, %v8656_v58, 0.0 }
 0x942   : > { %2665 = vadd.xlane.f32.xlu2 %v2664_v47 }
 0x94d   : > { %v2629_v19 = vpop.f32.mrf.mxu1 }
 0x94e   : > { %v2630_v6 = vadd.f32 %v7092_v13, %v2629_v19 }
 0x950   : > { %v2647_v38 = vmul.f32 %v8646_v30, %v2630_v6 }
 0x952   : > { %v8662_v27 = vadd.f32 %v2647_v38, %v7770_v54 }
 0x954   : > { %v2667_v31 = vsel %vm987_vm1, %v8662_v27, 0.0 }
 0x955   : > { %v2631_v35 = vpop.f32.mrf.mxu1  ;;  %2668 = vadd.xlane.f32.xlu0 %v2667_v31 }
 0x956   : > { %v2632_v43 = vadd.f32 %v7092_v13, %v2631_v35 }
 0x958   : > { %v2648_v44 = vmul.f32 %v8646_v30, %v2632_v43 }
 0x95a   : > { %v8668_v59 = vadd.f32 %v2648_v44, %v7781_v2  ;;  %v6387_v44 = vld [vmem:[%s10291_s16 + $0x30] sm:$0xf] }
 0x95c   : > { %v2670_v12 = vsel %vm987_vm1, %v8668_v59, 0.0 }
 0x95d   : > { %2671 = vadd.xlane.f32.xlu1 %v2670_v12  ;;  %v6882_v12 = vld [vmem:[%s10291_s16 + $0x34] sm:$0xf0] }
 0x96e   : > { %v2634_v0 = vpop.f32.mrf.mxu1 }
 0x96f   : > { %v2635_v62 = vadd.f32 %v7092_v13, %v2634_v0  ;;  %v6881_v0 = vld [vmem:[%s10291_s16 + $0x34] sm:$0xf] }
 0x971   : > { %v2649_v54 = vmul.f32 %v8646_v30, %v2635_v62  ;;  %v6388_v62 = vor.u32 %v6882_v12, %v6387_v44  ;;  %v2837_v12 = vadd.f32 1.0, %v8008_v21 }
 0x973   : > { %v8674_v17 = vadd.f32 %v2649_v54, %v7789_v9  ;;  %v6389_v54 = vld [vmem:[%s10291_s16 + $0x38] sm:$0xf0]  ;;  %2933 = vmatpush.bf16.msrb.mxu3 %v6388_v62 }
 0x975   : > { %v2673_v10 = vsel %vm987_vm1, %v8674_v17, 0.0 }
 0x976   : > { %v2636_v36 = vpop.f32.mrf.mxu1  ;;  %2674 = vadd.xlane.f32.xlu2 %v2673_v10  ;;  %v6392_v10 = vor.u32 %v6881_v0, %v6389_v54 }
 0x977   : > { %v2637_v61 = vadd.f32 %v7092_v13, %v2636_v36  ;;  %v6379_v36 = vld [vmem:[%s10291_s16 + $0x20] sm:$0xf] }
 0x978   : > { %2962 = vmatpush.bf16.msra.mxu2 %v6392_v10 }
 0x979   : > { %v2650_v2 = vmul.f32 %v8646_v30, %v2637_v61  ;;  %v6880_v61 = vld [vmem:[%s10291_s16 + $0x24] sm:$0xf0] }
 0x97b   : > { %v8680_v42 = vadd.f32 %v2650_v2, %v7797_v16  ;;  %v6879_v2 = vld [vmem:[%s10291_s16 + $0x24] sm:$0xf] }
 0x97d   : > { %v2676_v23 = vsel %vm987_vm1, %v8680_v42, 0.0 }
 0x97e   : > { %v2639_v49 = vpop.f32.mrf.mxu1  ;;  %2677 = vadd.xlane.f32.xlu0 %v2676_v23  ;;  %v6380_v23 = vor.u32 %v6880_v61, %v6379_v36 }
 0x97f   : > { %v2640_v4 = vadd.f32 %v7092_v13, %v2639_v49  ;;  %v6381_v49 = vld [vmem:[%s10291_s16 + $0x28] sm:$0xf0] }
 0x980   : > { %2934 = vmatpush.bf16.msrb.mxu3 %v6380_v23 }
 0x981   : > { %v2651_v9 = vmul.f32 %v8646_v30, %v2640_v4  ;;  %v6384_v4 = vor.u32 %v6879_v2, %v6381_v49  ;;  %v8807_v2 = vperm.slane %v2837_v12, 0 }
 0x983   : > { %v8686_v50 = vadd.f32 %v2651_v9, %v7805_v28  ;;  %2963 = vmatpush.bf16.msra.mxu2 %v6384_v4  ;;  %v6371_v9 = vld [vmem:[%s10291_s16 + $0x10] sm:$0xf] }
 0x985   : > { %v2679_v33 = vsel %vm987_vm1, %v8686_v50, 0.0 }
 0x986   : > { %2680 = vadd.xlane.f32.xlu0 %v2679_v33  ;;  %v2641_v45 = vpop.f32.mrf.mxu1  ;;  %v6878_v33 = vld [vmem:[%s10291_s16 + $0x14] sm:$0xf0] }
 0x987   : > { %v2642_v26 = vadd.f32 %v7092_v13, %v2641_v45  ;;  %v6877_v45 = vld [vmem:[%s10291_s16 + $0x14] sm:$0xf] }
 0x989   : > { %v2652_v57 = vmul.f32 %v8646_v30, %v2642_v26 }
 0x98b   : > { %v8700_v37 = vadd.f32 %v2652_v57, %v7824_v53 }
 0x98d   : > { %v2682_v5 = vsel %vm987_vm1, %v8700_v37, 0.0 }
 0x9ad   : > { %v2663_v7 = vpop.xlane.xlu1 %2662 }
 0x9ae   : > { %v2685_v16 = vmul.f32 %v2663_v7, %v7810_v41  ;;  %v6372_v7 = vor.u32 %v6878_v33, %v6371_v9 }
 0x9b0   : > { %v8692_v20 = vsub.f32 %v8650_v52, %v2685_v16  ;;  %v6373_v16 = vld [vmem:[%s10291_s16 + $0x18] sm:$0xf0]  ;;  %2935 = vmatpush.bf16.msrb.mxu3 %v6372_v7 }
 0x9b1   : > { %v6376_v26 = vor.u32 %v6877_v45, %v6373_v16 }
 0x9b2   : > { %v2701_v24 = vmul.f32 %v8692_v20, %v8692_v20 }
 0x9b3   : > { %2964 = vmatpush.bf16.msra.mxu2 %v6376_v26 }
 0x9b4   : > { %v2709_v28 = vsel %vm987_vm1, %v2701_v24, 0.0 }
 0x9b5   : > { %v2666_v55 = vpop.xlane.xlu2 %2665  ;;  %2710 = vadd.xlane.f32.xlu1 %v2709_v28  ;;  %v6363_v28 = vld [vmem:[%s10291_s16] sm:$0xf] }
 0x9b6   : > { %v2686_v3 = vmul.f32 %v2666_v55, %v7810_v41  ;;  %v6876_v55 = vld [vmem:[%s10291_s16 + $0x4] sm:$0xf0] }
 0x9b8   : > { %v8703_v14 = vsub.f32 %v8656_v58, %v2686_v3  ;;  %v6875_v3 = vld [vmem:[%s10291_s16 + $0x4] sm:$0xf] }
 0x9ba   : > { %v2702_v11 = vmul.f32 %v8703_v14, %v8703_v14 }
 0x9bc   : > { %v2712_v25 = vsel %vm987_vm1, %v2702_v11, 0.0  ;;  %v6364_v11 = vor.u32 %v6876_v55, %v6363_v28 }
 0x9bd   : > { %2713 = vadd.xlane.f32.xlu2 %v2712_v25  ;;  %2683 = vadd.xlane.f32.xlu1 %v2682_v5  ;;  %v6365_v25 = vld [vmem:[%s10291_s16 + $0x8] sm:$0xf0] }
 0x9be   : > { %2936 = vmatpush.bf16.msrb.mxu3 %v6364_v11 }
 0x9c8   : > { %v2669_v18 = vpop.xlane.xlu0 %2668 }
 0x9c9   : > { %v2687_v22 = vmul.f32 %v2669_v18, %v7810_v41  ;;  %v6368_v18 = vor.u32 %v6875_v3, %v6365_v25 }
 0x9cb   : > { %v8712_v1 = vsub.f32 %v8662_v27, %v2687_v22  ;;  %2965 = vmatpush.bf16.msra.mxu2 %v6368_v18 }
 0x9cd   : > { %v2703_v53 = vmul.f32 %v8712_v1, %v8712_v1 }
 0x9cf   : > { %v2715_v40 = vsel %vm987_vm1, %v2703_v53, 0.0 }
 0x9d0   : > { %2716 = vadd.xlane.f32.xlu2 %v2715_v40  ;;  %v2672_v15 = vpop.xlane.xlu1 %2671 }
 0x9d1   : > { %v2688_v39 = vmul.f32 %v2672_v15, %v7810_v41 }
 0x9d3   : > { %v8719_v34 = vsub.f32 %v8668_v59, %v2688_v39 }
 0x9d5   : > { %v2704_v29 = vmul.f32 %v8719_v34, %v8719_v34 }
 0x9d6   : > { %2848 = vrot.lane.b32.xlu1 %v8646_v30, %s7516_s7 }
 0x9d7   : > { %v2718_v13 = vsel %vm987_vm1, %v2704_v29, 0.0 }
 0x9d8   : > { %2719 = vadd.xlane.f32.xlu0 %v2718_v13 }
 0x9e9   : > { %v2675_v56 = vpop.xlane.xlu2 %2674 }
 0x9ea   : > { %v2689_v63 = vmul.f32 %v2675_v56, %v7810_v41 }
 0x9ec   : > { %v8728_v46 = vsub.f32 %v8674_v17, %v2689_v63 }
 0x9ee   : > { %v2705_v51 = vmul.f32 %v8728_v46, %v8728_v46 }
 0x9f0   : > { %v2721_v8 = vsel %vm987_vm1, %v2705_v51, 0.0 }
 0x9f1   : > { %v2678_v60 = vpop.xlane.xlu0 %2677  ;;  %2722 = vadd.xlane.f32.xlu2 %v2721_v8 }
 0x9f2   : > { %v2690_v48 = vmul.f32 %v2678_v60, %v7810_v41 }
 0x9f4   : > { %v8735_v30 = vsub.f32 %v8680_v42, %v2690_v48 }
 0x9f6   : > { %v2706_v47 = vmul.f32 %v8735_v30, %v8735_v30 }
 0x9f8   : > { %v2724_v19 = vsel %vm987_vm1, %v2706_v47, 0.0 }
 0x9f9   : > { %v2681_v6 = vpop.xlane.xlu0 %2680  ;;  %2725 = vadd.xlane.f32.xlu0 %v2724_v19 }
 0x9fa   : > { %v2691_v38 = vmul.f32 %v2681_v6, %v7810_v41 }
 0x9fc   : > { %v8742_v31 = vsub.f32 %v8686_v50, %v2691_v38 }
 0x9fe   : > { %v2707_v35 = vmul.f32 %v8742_v31, %v8742_v31 }
 0xa00   : > { %v2727_v43 = vsel %vm987_vm1, %v2707_v35, 0.0 }
 0xa01   : > { %2728 = vadd.xlane.f32.xlu2 %v2727_v43 }
 0xa28   : > { %v2711_v24 = vpop.xlane.xlu1 %2710 }
 0xa29   : > { %v2733_v57 = vmul.f32 %v2711_v24, %v7810_v41 }
 0xa2b   : > { %v2741_v5 = vadd.f32 1e-06, %v2733_v57 }
 0xa2d   : > { %7251 = vrsqrt.f32 %v2741_v5  ;;  %vm2755_vm10 = vweird.f32 %v2741_v5 }
 0xa30   : > { %v2714_v22 = vpop.xlane.xlu2 %2713  ;;  %v2684_v53 = vpop.xlane.xlu1 %2683 }
 0xa31   : > { %v2734_v40 = vmul.f32 %v2714_v22, %v7810_v41  ;;  %v2692_v15 = vmul.f32 %v2684_v53, %v7810_v41 }
 0xa33   : > { %v7252_v39 = vpop.eup %7251  ;;  %v2742_v29 = vadd.f32 1e-06, %v2734_v40  ;;  %v8799_v13 = vsub.f32 %v8700_v37, %v2692_v15 }
 0xa34   : > { %v2750_v56 = vmul.f32 %v7252_v39, %v2741_v5  ;;  %vm2756_vm9 = vweird.f32 %v7252_v39 }
 0xa35   : > { %7253 = vrsqrt.f32 %v2742_v29  ;;  %v2708_v63 = vmul.f32 %v8799_v13, %v8799_v13  ;;  %vm2757_vm11 = vmor %vm2755_vm10, %vm2756_vm9  ;;  %vm2765_vm13 = vweird.f32 %v2742_v29 }
 0xa36   : > { %v2751_v51 = vmul.f32 %v7252_v39, %v2750_v56 }
 0xa37   : > { %v2730_v8 = vsel %vm987_vm1, %v2708_v63, 0.0 }
 0xa38   : > { %v2752_v60 = vmul.f32 0.5, %v2751_v51  ;;  %2731 = vadd.xlane.f32.xlu0 %v2730_v8 }
 0xa3a   : > { %v2753_v48 = vsub.f32 1.5, %v2752_v60 }
 0xa3b   : > { %v7254_v47 = vpop.eup %7253 }
 0xa3c   : > { %v2760_v19 = vmul.f32 %v7254_v47, %v2742_v29  ;;  %v2754_v6 = vmul.f32 %v7252_v39, %v2753_v48  ;;  %vm2766_vm12 = vweird.f32 %v7254_v47 }
 0xa3d   : > { %vm2767_vm14 = vmor %vm2765_vm13, %vm2766_vm12 }
 0xa3e   : > { %v2761_v38 = vmul.f32 %v7254_v47, %v2760_v19  ;;  %v2758_v43 = vsel %vm2757_vm11, %v7252_v39, %v2754_v6 }
 0xa3f   : > { %v2829_v10 = vmul.f32 %v2758_v43, %v8692_v20 }
 0xa40   : > { %v2762_v35 = vmul.f32 0.5, %v2761_v38 }
 0xa41   : > { %v2839_v4 = vmul.f32 %v8807_v2, %v2829_v10 }
 0xa42   : > { %v2763_v44 = vsub.f32 1.5, %v2762_v35 }
 0xa43   : > { %v2717_v0 = vpop.xlane.xlu2 %2716 }
 0xa44   : > { %v2764_v62 = vmul.f32 %v7254_v47, %v2763_v44  ;;  %v2735_v54 = vmul.f32 %v2717_v0, %v7810_v41 }
 0xa46   : > { %v2768_v36 = vsel %vm2767_vm14, %v7254_v47, %v2764_v62  ;;  %v2743_v61 = vadd.f32 1e-06, %v2735_v54 }
 0xa47   : > { %v2830_v23 = vmul.f32 %v2768_v36, %v8703_v14 }
 0xa48   : > { %7255 = vrsqrt.f32 %v2743_v61  ;;  %v8810_v49 = vpop.permute.xlu1 %2848  ;;  %vm2775_vm2 = vweird.f32 %v2743_v61 }
 0xa49   : > { %v2840_v9 = vmul.f32 %v8807_v2, %v2830_v23  ;;  %v2851_v45 = vadd.f32 %v8810_v49, %v2839_v4 }
 0xa4b   : > { %v2720_v33 = vpop.xlane.xlu0 %2719  ;;  %v2852_v7 = vadd.f32 %v8810_v49, %v2840_v9 }
 0xa4c   : > { %v2736_v20 = vmul.f32 %v2720_v33, %v7810_v41 }
 0xa4d   : > { %v2859_v16 = vpack.c.bf16 %v2852_v7, %v2851_v45 }
 0xa4e   : > { %v7256_v26 = vpop.eup %7255  ;;  %v2744_v24 = vadd.f32 1e-06, %v2736_v20 }
 0xa4f   : > { %v2770_v57 = vmul.f32 %v7256_v26, %v2743_v61  ;;  %6393 = vmatmul.msk.bf16.vlgmr.msrb.gmra.mxu3 %vm987_vm1, %v2859_v16  ;;  %6397 = vmatmul.msk.bf16.vlgmr.msra.gmra.mxu2 %vm987_vm1, %v2859_v16  ;;  %vm2776_vm15 = vweird.f32 %v7256_v26 }
 0xa50   : > { %7257 = vrsqrt.f32 %v2744_v24  ;;  %vm2777_vm3 = vmor %vm2775_vm2, %vm2776_vm15  ;;  %vm2785_vm5 = vweird.f32 %v2744_v24 }
 0xa51   : > { %v2771_v14 = vmul.f32 %v7256_v26, %v2770_v57 }
 0xa53   : > { %v2772_v28 = vmul.f32 0.5, %v2771_v14 }
 0xa55   : > { %v2773_v55 = vsub.f32 1.5, %v2772_v28 }
 0xa56   : > { %v7258_v3 = vpop.eup %7257 }
 0xa57   : > { %v2774_v11 = vmul.f32 %v7256_v26, %v2773_v55  ;;  %v2780_v25 = vmul.f32 %v7258_v3, %v2744_v24  ;;  %vm2786_vm4 = vweird.f32 %v7258_v3  ;;  %v6520_v55 = vld [vmem:[%s10285_s10 + $0xa8] sm:$0xf] }
 0xa58   : > { %vm2787_vm6 = vmor %vm2785_vm5, %vm2786_vm4 }
 0xa59   : > { %v2781_v5 = vmul.f32 %v7258_v3, %v2780_v25  ;;  %v2778_v18 = vsel %vm2777_vm3, %v7256_v26, %v2774_v11  ;;  %v6508_v25 = vld [vmem:[%s10285_s10 + $0x90] sm:$0xf] }
 0xa5a   : > { %v2831_v40 = vmul.f32 %v2778_v18, %v8712_v1 }
 0xa5b   : > { %v2782_v22 = vmul.f32 0.5, %v2781_v5  ;;  %v6906_v5 = vld [vmem:[%s10285_s10 + $0x98] sm:$0xf0] }
 0xa5c   : > { %v2841_v56 = vmul.f32 %v8807_v2, %v2831_v40 }
 0xa5d   : > { %v2783_v53 = vsub.f32 1.5, %v2782_v22 }
 0xa5e   : > { %v2853_v60 = vadd.f32 %v8810_v49, %v2841_v56  ;;  %v6903_v56 = vld [vmem:[%s10285_s10 + $0x80] sm:$0xf0] }
 0xa5f   : > { %v2784_v15 = vmul.f32 %v7258_v3, %v2783_v53  ;;  %v6509_v53 = vor.u32 %v6906_v5, %v6508_v25  ;;  %v6885_v5 = vld [vmem:[%s10293_s18 + $0x10] sm:$0xff] }
 0xa61   : > { %v2788_v39 = vsel %vm2787_vm6, %v7258_v3, %v2784_v15  ;;  %v6909_v3 = vld [vmem:[%s10285_s10 + $0xb0] sm:$0xf0] }
 0xa62   : > { %v2832_v29 = vmul.f32 %v2788_v39, %v8719_v34  ;;  %v6521_v11 = vor.u32 %v6909_v3, %v6520_v55  ;;  %v6899_v3 = vld [vmem:[%s10285_s10 + $0x64] sm:$0xf] }
 0xa64   : > { %v2723_v63 = vpop.xlane.xlu2 %2722  ;;  %v2842_v51 = vmul.f32 %v8807_v2, %v2832_v29  ;;  %3504 = vmatpush.bf16.msra.mxu3 %v6521_v11  ;;  %v6496_v29 = vld [vmem:[%s10285_s10 + $0x78] sm:$0xf] }
 0xa65   : > { %v2737_v8 = vmul.f32 %v2723_v63, %v7810_v41  ;;  %v6497_v63 = vor.u32 %v6903_v56, %v6496_v29  ;;  %v6891_v29 = vld [vmem:[%s10293_s18 + $0x40] sm:$0xff] }
 0xa66   : > { %v2854_v48 = vadd.f32 %v8810_v49, %v2842_v51 }
 0xa67   : > { %v2745_v47 = vadd.f32 1e-06, %v2737_v8  ;;  %v6890_v8 = vld [vmem:[%s10293_s18 + $0x38] sm:$0xff] }
 0xa68   : > { %v2860_v19 = vpack.c.bf16 %v2854_v48, %v2853_v60  ;;  %3505 = vmatpush.bf16.msra.mxu3 %v6509_v53  ;;  %v6898_v60 = vld [vmem:[%s10293_s18 + $0x78] sm:$0xff]  ;;  %v6484_v48 = vld [vmem:[%s10285_s10 + $0x60] sm:$0xf]  ;;  %3271 = vmatpush.bf16.msrb.mxu0 %v6890_v8  ;;  %v6892_v53 = vld [vmem:[%s10293_s18 + $0x48] sm:$0xff] }
 0xa69   : > { %7259 = vrsqrt.f32 %v2745_v47  ;;  %vm2795_vm10 = vweird.f32 %v2745_v47  ;;  %3300 = vmatpush.bf16.msra.mxu1 %v6898_v60  ;;  %v6528_v60 = vld [vmem:[%s10285_s10 + $0xb0] sm:$0xf] }
 0xa6a   : > { %6394 = vmatmul.msk.bf16.gmra.mxu3 %vm987_vm1, %v2860_v19  ;;  %6398 = vmatmul.msk.bf16.gmra.mxu2 %vm987_vm1, %v2860_v19 }
 0xa6c   : > { %v2726_v1 = vpop.xlane.xlu0 %2725  ;;  %3506 = vmatpush.bf16.msra.mxu3 %v6497_v63 }
 0xa6d   : > { %v2738_v34 = vmul.f32 %v2726_v1, %v7810_v41 }
 0xa6f   : > { %v7260_v6 = vpop.eup %7259  ;;  %v2746_v38 = vadd.f32 1e-06, %v2738_v34 }
 0xa70   : > { %v2790_v35 = vmul.f32 %v7260_v6, %v2745_v47  ;;  %vm2796_vm9 = vweird.f32 %v7260_v6  ;;  %v6900_v47 = vld [vmem:[%s10285_s10 + $0x68] sm:$0xf0] }
 0xa71   : > { %7261 = vrsqrt.f32 %v2746_v38  ;;  %vm2797_vm11 = vmor %vm2795_vm10, %vm2796_vm9  ;;  %vm2805_vm13 = vweird.f32 %v2746_v38  ;;  %v6485_v1 = vor.u32 %v6900_v47, %v6484_v48  ;;  %v6910_v48 = vld [vmem:[%s10285_s10 + $0xb8] sm:$0xf0] }
 0xa72   : > { %v2791_v43 = vmul.f32 %v7260_v6, %v2790_v35  ;;  %v6897_v35 = vld [vmem:[%s10293_s18 + $0x70] sm:$0xff] }
 0xa73   : > { %3507 = vmatpush.bf16.msra.mxu3 %v6485_v1  ;;  %3301 = vmatpush.bf16.msra.mxu1 %v6897_v35  ;;  %v6907_v35 = vld [vmem:[%s10285_s10 + $0xa0] sm:$0xf0] }
 0xa74   : > { %v2792_v44 = vmul.f32 0.5, %v2791_v43 }
 0xa76   : > { %v2793_v12 = vsub.f32 1.5, %v2792_v44  ;;  %v6908_v44 = vld [vmem:[%s10285_s10 + $0xac] sm:$0xf] }
 0xa77   : > { %v7262_v0 = vpop.eup %7261 }
 0xa78   : > { %v2794_v62 = vmul.f32 %v7260_v6, %v2793_v12  ;;  %v2800_v54 = vmul.f32 %v7262_v0, %v2746_v38  ;;  %vm2806_vm12 = vweird.f32 %v7262_v0  ;;  %v6889_v38 = vld [vmem:[%s10293_s18 + $0x30] sm:$0xff]  ;;  %v6522_v12 = vld [vmem:[%s10285_s10 + $0xb4] sm:$0xf0] }
 0xa79   : > { %vm2807_vm14 = vmor %vm2805_vm13, %vm2806_vm12  ;;  %3272 = vmatpush.bf16.msrb.mxu0 %v6889_v38  ;;  %v6516_v38 = vld [vmem:[%s10285_s10 + $0x98] sm:$0xf] }
 0xa7a   : > { %v2801_v10 = vmul.f32 %v7262_v0, %v2800_v54  ;;  %v2798_v36 = vsel %vm2797_vm11, %v7260_v6, %v2794_v62  ;;  %v6525_v54 = vor.u32 %v6908_v44, %v6522_v12 }
 0xa7b   : > { %v2833_v4 = vmul.f32 %v2798_v36, %v8728_v46  ;;  %v2729_v46 = vpop.xlane.xlu2 %2728  ;;  %v6888_v36 = vld [vmem:[%s10293_s18 + $0x28] sm:$0xff] }
 0xa7c   : > { %v2802_v61 = vmul.f32 0.5, %v2801_v10  ;;  %v2739_v57 = vmul.f32 %v2729_v46, %v7810_v41  ;;  %3517 = vmatpush.bf16.msrb.mxu3 %v6525_v54  ;;  %v6498_v46 = vld [vmem:[%s10285_s10 + $0x84] sm:$0xf0] }
 0xa7d   : > { %v2843_v7 = vmul.f32 %v8807_v2, %v2833_v4  ;;  %v6905_v4 = vld [vmem:[%s10285_s10 + $0x94] sm:$0xf]  ;;  %3273 = vmatpush.bf16.msrb.mxu0 %v6888_v36 }
 0xa7e   : > { %v2803_v23 = vsub.f32 1.5, %v2802_v61  ;;  %v2747_v14 = vadd.f32 1e-06, %v2739_v57  ;;  %v6896_v61 = vld [vmem:[%s10293_s18 + $0x68] sm:$0xff] }
 0xa7f   : > { %v2855_v16 = vadd.f32 %v8810_v49, %v2843_v7  ;;  %3302 = vmatpush.bf16.msra.mxu1 %v6896_v61  ;;  %v6504_v61 = vld [vmem:[%s10285_s10 + $0x80] sm:$0xf] }
 0xa80   : > { %v2804_v9 = vmul.f32 %v7262_v0, %v2803_v23  ;;  %7263 = vrsqrt.f32 %v2747_v14  ;;  %vm2815_vm2 = vweird.f32 %v2747_v14 }
 0xa82   : > { %v2808_v33 = vsel %vm2807_vm14, %v7262_v0, %v2804_v9  ;;  %v6510_v9 = vld [vmem:[%s10285_s10 + $0x9c] sm:$0xf0] }
 0xa83   : > { %v2834_v45 = vmul.f32 %v2808_v33, %v8735_v30 }
 0xa85   : > { %v2844_v20 = vmul.f32 %v8807_v2, %v2834_v45  ;;  %v6513_v45 = vor.u32 %v6905_v4, %v6510_v9 }
 0xa86   : > { %v7264_v28 = vpop.eup %7263 }
 0xa87   : > { %v2856_v26 = vadd.f32 %v8810_v49, %v2844_v20  ;;  %v2810_v30 = vmul.f32 %v7264_v28, %v2747_v14  ;;  %vm2816_vm15 = vweird.f32 %v7264_v28  ;;  %3518 = vmatpush.bf16.msrb.mxu3 %v6513_v45  ;;  %v6895_v20 = vld [vmem:[%s10293_s18 + $0x60] sm:$0xff] }
 0xa88   : > { %vm2817_vm3 = vmor %vm2815_vm2, %vm2816_vm15  ;;  %3303 = vmatpush.bf16.msra.mxu1 %v6895_v20 }
 0xa89   : > { %v2861_v24 = vpack.c.bf16 %v2856_v26, %v2855_v16  ;;  %v2811_v18 = vmul.f32 %v7264_v28, %v2810_v30 }
 0xa8b   : > { %6395 = vmatmul.msk.bf16.gmra.mxu3 %vm987_vm1, %v2861_v24  ;;  %6399 = vmatmul.msk.bf16.gmra.mxu2 %vm987_vm1, %v2861_v24  ;;  %v2812_v39 = vmul.f32 0.5, %v2811_v18  ;;  %v6902_v24 = vld [vmem:[%s10285_s10 + $0x7c] sm:$0xf]  ;;  %v2871_v18 = vld [vmem:[%s10292_s17] sm:$0x3] }
 0xa8c   : > { %v6501_v57 = vor.u32 %v6902_v24, %v6498_v46 }
 0xa8d   : > { %v2813_v51 = vsub.f32 1.5, %v2812_v39  ;;  %v6883_v39 = vld [vmem:[%s10293_s18] sm:$0xff] }
 0xa8e   : > { %3519 = vmatpush.bf16.msrb.mxu3 %v6501_v57 }
 0xa8f   : > { %v2814_v34 = vmul.f32 %v7264_v28, %v2813_v51 }
 0xa91   : > { %v2818_v0 = vsel %vm2817_vm3, %v7264_v28, %v2814_v34  ;;  %v6894_v28 = vld [vmem:[%s10293_s18 + $0x58] sm:$0xff] }
 0xa92   : > { %v2835_v23 = vmul.f32 %v2818_v0, %v8742_v31  ;;  %v6887_v31 = vld [vmem:[%s10293_s18 + $0x20] sm:$0xff]  ;;  %3304 = vmatpush.bf16.msra.mxu1 %v6894_v28 }
 0xa93   : > { %3274 = vmatpush.bf16.msrb.mxu0 %v6887_v31 }
 0xa94   : > { %v2845_v26 = vmul.f32 %v8807_v2, %v2835_v23  ;;  %v6904_v23 = vld [vmem:[%s10285_s10 + $0x88] sm:$0xf0] }
 0xa95   : > { %v6505_v45 = vor.u32 %v6904_v23, %v6504_v61 }
 0xa96   : > { %v2857_v30 = vadd.f32 %v8810_v49, %v2845_v26  ;;  %v6901_v26 = vld [vmem:[%s10285_s10 + $0x70] sm:$0xf0] }
 0xaab   : > { %v2732_v22 = vpop.xlane.xlu0 %2731 }
 0xaac   : > { %v2740_v40 = vmul.f32 %v2732_v22, %v7810_v41  ;;  %v6884_v22 = vld [vmem:[%s10293_s18 + $0x8] sm:$0xff] }
 0xaae   : > { %v2748_v15 = vadd.f32 1e-06, %v2740_v40  ;;  %v8940_v40 = vperm.slane %v2871_v18, 0 }
 0xab0   : > { %7265 = vrsqrt.f32 %v2748_v15  ;;  %vm2825_vm5 = vweird.f32 %v2748_v15 }
 0xab6   : > { %v7266_v19 = vpop.eup %7265 }
 0xab7   : > { %v2820_v6 = vmul.f32 %v7266_v19, %v2748_v15  ;;  %vm2826_vm4 = vweird.f32 %v7266_v19  ;;  %v8942_v15 = vperm.slane %v2871_v18, 1 }
 0xab8   : > { %vm2827_vm6 = vmor %vm2825_vm5, %vm2826_vm4 }
 0xab9   : > { %v2821_v43 = vmul.f32 %v7266_v19, %v2820_v6  ;;  %v6529_v6 = vor.u32 %v6910_v48, %v6528_v60 }
 0xabb   : > { %v2822_v62 = vmul.f32 0.5, %v2821_v43 }
 0xabd   : > { %v2823_v10 = vsub.f32 1.5, %v2822_v62 }
 0xabf   : > { %v2824_v33 = vmul.f32 %v7266_v19, %v2823_v10  ;;  %v6517_v10 = vor.u32 %v6907_v35, %v6516_v38 }
 0xac1   : > { %v2828_v7 = vsel %vm2827_vm6, %v7266_v19, %v2824_v33 }
 0xac2   : > { %v2836_v16 = vmul.f32 %v2828_v7, %v8799_v13  ;;  %v6886_v13 = vld [vmem:[%s10293_s18 + $0x18] sm:$0xff] }
 0xac3   : > { %3275 = vmatpush.bf16.msrb.mxu0 %v6886_v13 }
 0xac4   : > { %v2846_v14 = vmul.f32 %v8807_v2, %v2836_v16  ;;  %v6486_v2 = vld [vmem:[%s10285_s10 + $0x6c] sm:$0xf0]  ;;  %v6492_v16 = vld [vmem:[%s10285_s10 + $0x68] sm:$0xf] }
 0xac5   : > { %v6489_v11 = vor.u32 %v6899_v3, %v6486_v2 }
 0xac6   : > { %v2858_v55 = vadd.f32 %v8810_v49, %v2846_v14  ;;  %v6893_v49 = vld [vmem:[%s10293_s18 + $0x50] sm:$0xff]  ;;  %v6493_v14 = vor.u32 %v6901_v26, %v6492_v16 }
 0xac7   : > { %3520 = vmatpush.bf16.msrb.mxu3 %v6489_v11  ;;  %3276 = vmatpush.bf16.msrb.mxu0 %v6885_v5 }
 0xac8   : > { %v2862_v25 = vpack.c.bf16 %v2858_v55, %v2857_v30  ;;  %3305 = vmatpush.bf16.msra.mxu1 %v6893_v49 }
 0xaca   : > { %6396 = vmatmul.msk.bf16.gmra.mxu3 %vm987_vm1, %v2862_v25  ;;  %6400 = vmatmul.msk.bf16.gmra.mxu2 %vm987_vm1, %v2862_v25 }
 0xacb   : > { %3277 = vmatpush.bf16.msrb.mxu0 %v6884_v22 }
 0xacc   : > { %3306 = vmatpush.bf16.msra.mxu1 %v6892_v53 }
 0xacf   : > { %3278 = vmatpush.bf16.msrb.mxu0 %v6883_v39 }
 0xad0   : > { %3307 = vmatpush.bf16.msra.mxu1 %v6891_v29 }
 0xad2   : > { %v2938_v56 = vpop.f32.mrf.mxu3  ;;  %v2967_v63 = vpop.f32.mrf.mxu2 }
 0xad3   : > { %v2939_v51 = vadd.f32 %v2938_v56, %v8940_v40  ;;  %v2968_v8 = vadd.f32 %v2967_v63, %v8942_v15 }
 0xad5   : > { %v3003_v47 = vmul.f32 0.044715, %v2939_v51  ;;  %v3004_v19 = vmul.f32 0.044715, %v2968_v8  ;;  %v2987_v29 = vmul.f32 0.5, %v2939_v51  ;;  %v2988_v56 = vmul.f32 0.5, %v2968_v8 }
 0xad7   : > { %v3019_v1 = vmul.f32 %v3003_v47, %v2939_v51  ;;  %v3020_v34 = vmul.f32 %v3004_v19, %v2968_v8 }
 0xad9   : > { %v3035_v43 = vmul.f32 %v3019_v1, %v2939_v51  ;;  %v3036_v44 = vmul.f32 %v3020_v34, %v2968_v8 }
 0xada   : > { %v2940_v12 = vpop.f32.mrf.mxu3  ;;  %v2969_v0 = vpop.f32.mrf.mxu2  ;;  %6530 = vmatmul.msk.bf16.vlgmr.msra.gmra.mxu3 %vm987_vm1, %v7948_v32 }
 0xadb   : > { %v2941_v62 = vadd.f32 %v2940_v12, %v8940_v40  ;;  %v2970_v54 = vadd.f32 %v2969_v0, %v8942_v15  ;;  %3530 = vmatpush.bf16.msra.mxu3 %v6529_v6  ;;  %v3051_v36 = vadd.f32 %v3035_v43, %v2939_v51  ;;  %v3052_v4 = vadd.f32 %v3036_v44, %v2968_v8 }
 0xadd   : > { %v3005_v9 = vmul.f32 0.044715, %v2941_v62  ;;  %v3006_v33 = vmul.f32 0.044715, %v2970_v54  ;;  %v3067_v7 = vmul.f32 0.7978846, %v3051_v36 }
 0xade   : > { %v3068_v24 = vmul.f32 0.7978846, %v3052_v4  ;;  %v2989_v63 = vmul.f32 0.5, %v2941_v62  ;;  %v2990_v48 = vmul.f32 0.5, %v2970_v54 }
 0xadf   : > { %3531 = vmatpush.bf16.msra.mxu3 %v6517_v10  ;;  %v3021_v31 = vmul.f32 %v3005_v9, %v2941_v62  ;;  %v3022_v20 = vmul.f32 %v3006_v33, %v2970_v54  ;;  %7267 = vtanh.f32 %v3067_v7 }
 0xae0   : > { %7269 = vtanh.f32 %v3068_v24 }
 0xae1   : > { %v3037_v46 = vmul.f32 %v3021_v31, %v2941_v62  ;;  %v3038_v57 = vmul.f32 %v3022_v20, %v2970_v54 }
 0xae3   : > { %3532 = vmatpush.bf16.msra.mxu3 %v6505_v45  ;;  %v3053_v13 = vadd.f32 %v3037_v46, %v2941_v62  ;;  %v3054_v28 = vadd.f32 %v3038_v57, %v2970_v54 }
 0xae5   : > { %v3069_v30 = vmul.f32 0.7978846, %v3053_v13  ;;  %v3070_v55 = vmul.f32 0.7978846, %v3054_v28  ;;  %v7268_v3 = vpop.eup %7267 }
 0xae6   : > { %v7270_v2 = vpop.eup %7269  ;;  %v3099_v11 = vadd.f32 1.0, %v7268_v3 }
 0xae7   : > { %3533 = vmatpush.bf16.msra.mxu3 %v6493_v14  ;;  %7271 = vtanh.f32 %v3069_v30  ;;  %v3100_v18 = vadd.f32 1.0, %v7270_v2 }
 0xae8   : > { %7273 = vtanh.f32 %v3070_v55  ;;  %v3115_v34 = vmul.f32 %v3099_v11, %v2987_v29 }
 0xae9   : > { %v3116_v43 = vmul.f32 %v3100_v18, %v2988_v56 }
 0xaea   : > { %6531 = vmatmul.msk.bf16.vlgmr.msrb.gmra.mxu3 %vm987_vm1, %v7948_v32 }
 0xaed   : > { %v2943_v25 = vpop.f32.mrf.mxu3  ;;  %v2972_v5 = vpop.f32.mrf.mxu2 }
 0xaee   : > { %v7272_v49 = vpop.eup %7271  ;;  %v2944_v22 = vadd.f32 %v2943_v25, %v8940_v40  ;;  %v2973_v53 = vadd.f32 %v2972_v5, %v8942_v15 }
 0xaef   : > { %v7274_v39 = vpop.eup %7273  ;;  %v3101_v60 = vadd.f32 1.0, %v7272_v49 }
 0xaf0   : > { %v3007_v47 = vmul.f32 0.044715, %v2944_v22  ;;  %v3008_v19 = vmul.f32 0.044715, %v2973_v53  ;;  %v3102_v1 = vadd.f32 1.0, %v7274_v39  ;;  %v2991_v2 = vmul.f32 0.5, %v2944_v22 }
 0xaf1   : > { %v3117_v6 = vmul.f32 %v3101_v60, %v2989_v63  ;;  %v2992_v5 = vmul.f32 0.5, %v2973_v53 }
 0xaf2   : > { %v3023_v38 = vmul.f32 %v3007_v47, %v2944_v22  ;;  %v3024_v35 = vmul.f32 %v3008_v19, %v2973_v53  ;;  %v3118_v44 = vmul.f32 %v3102_v1, %v2990_v48 }
 0xaf3   : > { %v3131_v12 = vpack.c.bf16 %v3117_v6, %v3115_v34 }
 0xaf4   : > { %v3132_v0 = vpack.c.bf16 %v3118_v44, %v3116_v43  ;;  %v3039_v10 = vmul.f32 %v3023_v38, %v2944_v22  ;;  %v3040_v36 = vmul.f32 %v3024_v35, %v2973_v53 }
 0xaf5   : > { %3279 = vmatmul.bf16.vlgmr.msrb.gmra.mxu0 %v3131_v12  ;;  %v2945_v61 = vpop.f32.mrf.mxu3  ;;  %v2974_v51 = vpop.f32.mrf.mxu2 }
 0xaf6   : > { %3308 = vmatmul.bf16.vlgmr.msra.gmra.mxu1 %v3132_v0  ;;  %v2946_v8 = vadd.f32 %v2945_v61, %v8940_v40  ;;  %v2975_v62 = vadd.f32 %v2974_v51, %v8942_v15  ;;  %v3055_v54 = vadd.f32 %v3039_v10, %v2944_v22  ;;  %v3056_v23 = vadd.f32 %v3040_v36, %v2973_v53 }
 0xaf8   : > { %v3009_v4 = vmul.f32 0.044715, %v2946_v8  ;;  %v3010_v9 = vmul.f32 0.044715, %v2975_v62  ;;  %v3071_v7 = vmul.f32 0.7978846, %v3055_v54 }
 0xaf9   : > { %v3072_v31 = vmul.f32 0.7978846, %v3056_v23  ;;  %v2993_v11 = vmul.f32 0.5, %v2946_v8  ;;  %v2994_v49 = vmul.f32 0.5, %v2975_v62 }
 0xafa   : > { %v3025_v33 = vmul.f32 %v3009_v4, %v2946_v8  ;;  %v3026_v45 = vmul.f32 %v3010_v9, %v2975_v62  ;;  %6532 = vmatmul.msk.bf16.vlgmr.msra.gmra.mxu3 %vm987_vm1, %v7948_v32  ;;  %7275 = vtanh.f32 %v3071_v7 }
 0xafb   : > { %7277 = vtanh.f32 %v3072_v31 }
 0xafc   : > { %v3041_v20 = vmul.f32 %v3025_v33, %v2946_v8  ;;  %v3042_v16 = vmul.f32 %v3026_v45, %v2975_v62 }
 0xafe   : > { %v3057_v26 = vadd.f32 %v3041_v20, %v2946_v8  ;;  %v3058_v24 = vadd.f32 %v3042_v16, %v2975_v62 }
 0xb00   : > { %v3073_v46 = vmul.f32 0.7978846, %v3057_v26  ;;  %v3074_v57 = vmul.f32 0.7978846, %v3058_v24  ;;  %v7276_v14 = vpop.eup %7275 }
 0xb01   : > { %v7278_v13 = vpop.eup %7277  ;;  %v3103_v28 = vadd.f32 1.0, %v7276_v14 }
 0xb02   : > { %7279 = vtanh.f32 %v3073_v46  ;;  %v3104_v55 = vadd.f32 1.0, %v7278_v13 }
 0xb03   : > { %7281 = vtanh.f32 %v3074_v57  ;;  %v3119_v39 = vmul.f32 %v3103_v28, %v2991_v2 }
 0xb04   : > { %v3120_v56 = vmul.f32 %v3104_v55, %v2992_v5 }
 0xb08   : > { %v7280_v30 = vpop.eup %7279 }
 0xb09   : > { %v7282_v3 = vpop.eup %7281  ;;  %v3105_v25 = vadd.f32 1.0, %v7280_v30 }
 0xb0a   : > { %v3106_v18 = vadd.f32 1.0, %v7282_v3 }
 0xb0b   : > { %v3121_v29 = vmul.f32 %v3105_v25, %v2993_v11 }
 0xb0c   : > { %v3122_v63 = vmul.f32 %v3106_v18, %v2994_v49 }
 0xb0d   : > { %v3133_v60 = vpack.c.bf16 %v3121_v29, %v3119_v39 }
 0xb0e   : > { %v2948_v48 = vpop.f32.mrf.mxu3  ;;  %v2977_v47 = vpop.f32.mrf.mxu2  ;;  %v3134_v19 = vpack.c.bf16 %v3122_v63, %v3120_v56 }
 0xb0f   : > { %v2949_v1 = vadd.f32 %v2948_v48, %v8940_v40  ;;  %v2978_v34 = vadd.f32 %v2977_v47, %v8942_v15  ;;  %3284 = vmatmul.bf16.gmra.mxu0 %v3133_v60 }
 0xb10   : > { %3313 = vmatmul.bf16.gmra.mxu1 %v3134_v19 }
 0xb11   : > { %v3011_v22 = vmul.f32 0.044715, %v2949_v1  ;;  %v3012_v6 = vmul.f32 0.044715, %v2978_v34  ;;  %v2995_v13 = vmul.f32 0.5, %v2949_v1  ;;  %v2996_v55 = vmul.f32 0.5, %v2978_v34 }
 0xb13   : > { %v3027_v38 = vmul.f32 %v3011_v22, %v2949_v1  ;;  %v3028_v53 = vmul.f32 %v3012_v6, %v2978_v34 }
 0xb15   : > { %v3043_v35 = vmul.f32 %v3027_v38, %v2949_v1  ;;  %v3044_v43 = vmul.f32 %v3028_v53, %v2978_v34 }
 0xb16   : > { %v2950_v44 = vpop.f32.mrf.mxu3  ;;  %v2979_v12 = vpop.f32.mrf.mxu2 }
 0xb17   : > { %v2951_v0 = vadd.f32 %v2950_v44, %v8940_v40  ;;  %v2980_v10 = vadd.f32 %v2979_v12, %v8942_v15  ;;  %v3059_v36 = vadd.f32 %v3043_v35, %v2949_v1  ;;  %v3060_v61 = vadd.f32 %v3044_v43, %v2978_v34 }
 0xb19   : > { %v3013_v51 = vmul.f32 0.044715, %v2951_v0  ;;  %v3014_v8 = vmul.f32 0.044715, %v2980_v10  ;;  %v3075_v23 = vmul.f32 0.7978846, %v3059_v36 }
 0xb1a   : > { %v3076_v4 = vmul.f32 0.7978846, %v3060_v61  ;;  %v2997_v28 = vmul.f32 0.5, %v2951_v0  ;;  %v2998_v3 = vmul.f32 0.5, %v2980_v10 }
 0xb1b   : > { %v3029_v62 = vmul.f32 %v3013_v51, %v2951_v0  ;;  %v3030_v54 = vmul.f32 %v3014_v8, %v2980_v10  ;;  %7283 = vtanh.f32 %v3075_v23 }
 0xb1c   : > { %7285 = vtanh.f32 %v3076_v4 }
 0xb1d   : > { %v3045_v9 = vmul.f32 %v3029_v62, %v2951_v0  ;;  %v3046_v33 = vmul.f32 %v3030_v54, %v2980_v10 }
 0xb1f   : > { %v3061_v45 = vadd.f32 %v3045_v9, %v2951_v0  ;;  %v3062_v7 = vadd.f32 %v3046_v33, %v2980_v10 }
 0xb21   : > { %v3077_v31 = vmul.f32 0.7978846, %v3061_v45  ;;  %v3078_v20 = vmul.f32 0.7978846, %v3062_v7  ;;  %v7284_v16 = vpop.eup %7283 }
 0xb22   : > { %v7286_v26 = vpop.eup %7285  ;;  %v3107_v24 = vadd.f32 1.0, %v7284_v16 }
 0xb23   : > { %7287 = vtanh.f32 %v3077_v31  ;;  %v3108_v57 = vadd.f32 1.0, %v7286_v26  ;;  %v9001_v26 = vld [vmem:[%s10286_s11 + $0x3] sm:$0x7] }
 0xb24   : > { %7289 = vtanh.f32 %v3078_v20  ;;  %v3123_v11 = vmul.f32 %v3107_v24, %v2995_v13 }
 0xb25   : > { %v3124_v5 = vmul.f32 %v3108_v57, %v2996_v55 }
 0xb29   : > { %v7288_v46 = vpop.eup %7287 }
 0xb2a   : > { %v7290_v14 = vpop.eup %7289  ;;  %v3109_v30 = vadd.f32 1.0, %v7288_v46 }
 0xb2b   : > { %v3110_v2 = vadd.f32 1.0, %v7290_v14  ;;  %v3495_v14 = vperm.slane %v9001_v26, 1 }
 0xb2c   : > { %v3125_v25 = vmul.f32 %v3109_v30, %v2997_v28 }
 0xb2d   : > { %v3126_v49 = vmul.f32 %v3110_v2, %v2998_v3 }
 0xb2e   : > { %v3135_v18 = vpack.c.bf16 %v3125_v25, %v3123_v11 }
 0xb2f   : > { %v3136_v39 = vpack.c.bf16 %v3126_v49, %v3124_v5 }
 0xb30   : > { %3289 = vmatmul.bf16.gmra.mxu0 %v3135_v18 }
 0xb31   : > { %3318 = vmatmul.bf16.gmra.mxu1 %v3136_v39  ;;  %v7093_v39 = vld [vmem:[%s10294_s19] ss:$0 sm:$0xff] }
 0xb4d   : > { %v2953_v29 = vpop.f32.mrf.mxu3  ;;  %v2982_v56 = vpop.f32.mrf.mxu2 }
 0xb4e   : > { %v2954_v63 = vadd.f32 %v2953_v29, %v8940_v40  ;;  %v2983_v60 = vadd.f32 %v2982_v56, %v8942_v15 }
 0xb50   : > { %v3015_v48 = vmul.f32 0.044715, %v2954_v63  ;;  %v3016_v47 = vmul.f32 0.044715, %v2983_v60  ;;  %v2999_v24 = vmul.f32 0.5, %v2954_v63  ;;  %v3000_v13 = vmul.f32 0.5, %v2983_v60 }
 0xb52   : > { %v3031_v19 = vmul.f32 %v3015_v48, %v2954_v63  ;;  %v3032_v1 = vmul.f32 %v3016_v47, %v2983_v60 }
 0xb54   : > { %v3047_v34 = vmul.f32 %v3031_v19, %v2954_v63  ;;  %v3048_v22 = vmul.f32 %v3032_v1, %v2983_v60  ;;  %v3496_v19 = vperm.slane %v9001_v26, 2 }
 0xb55   : > { %v2955_v6 = vpop.f32.mrf.mxu3  ;;  %v2984_v38 = vpop.f32.mrf.mxu2 }
 0xb56   : > { %v2956_v53 = vadd.f32 %v2955_v6, %v8940_v40  ;;  %v2985_v35 = vadd.f32 %v2984_v38, %v8942_v15  ;;  %v3063_v43 = vadd.f32 %v3047_v34, %v2954_v63  ;;  %v3064_v44 = vadd.f32 %v3048_v22, %v2983_v60 }
 0xb58   : > { %v3017_v12 = vmul.f32 0.044715, %v2956_v53  ;;  %v3018_v0 = vmul.f32 0.044715, %v2985_v35  ;;  %v3079_v61 = vmul.f32 0.7978846, %v3063_v43 }
 0xb59   : > { %v3080_v51 = vmul.f32 0.7978846, %v3064_v44  ;;  %v3001_v46 = vmul.f32 0.5, %v2956_v53  ;;  %v3002_v28 = vmul.f32 0.5, %v2985_v35 }
 0xb5a   : > { %v3033_v10 = vmul.f32 %v3017_v12, %v2956_v53  ;;  %v3034_v36 = vmul.f32 %v3018_v0, %v2985_v35  ;;  %7291 = vtanh.f32 %v3079_v61 }
 0xb5b   : > { %7293 = vtanh.f32 %v3080_v51 }
 0xb5c   : > { %v3049_v8 = vmul.f32 %v3033_v10, %v2956_v53  ;;  %v3050_v62 = vmul.f32 %v3034_v36, %v2985_v35 }
 0xb5d   : > { %v8996_v54 = vpop.f32.mrf.mxu3 }
 0xb5e   : > { %v3065_v23 = vadd.f32 %v3049_v8, %v2956_v53  ;;  %v3066_v4 = vadd.f32 %v3050_v62, %v2985_v35 }
 0xb60   : > { %v3081_v9 = vmul.f32 0.7978846, %v3065_v23  ;;  %v3082_v40 = vmul.f32 0.7978846, %v3066_v4  ;;  %v7292_v15 = vpop.eup %7291 }
 0xb61   : > { %v7294_v33 = vpop.eup %7293  ;;  %v3111_v7 = vadd.f32 1.0, %v7292_v15 }
 0xb62   : > { %7295 = vtanh.f32 %v3081_v9  ;;  %v3112_v20 = vadd.f32 1.0, %v7294_v33  ;;  %v3329_v33 = vperm.slane %v8008_v21, 0 }
 0xb63   : > { %7297 = vtanh.f32 %v3082_v40  ;;  %v3127_v55 = vmul.f32 %v3111_v7, %v2999_v24 }
 0xb64   : > { %v3128_v2 = vmul.f32 %v3112_v20, %v3000_v13 }
 0xb65   : > { %v3511_v45 = vpop.f32.mrf.mxu3 }
 0xb68   : > { %v7296_v31 = vpop.eup %7295 }
 0xb69   : > { %v7298_v16 = vpop.eup %7297  ;;  %v3113_v57 = vadd.f32 1.0, %v7296_v31 }
 0xb6a   : > { %v3114_v30 = vadd.f32 1.0, %v7298_v16 }
 0xb6b   : > { %v3129_v3 = vmul.f32 %v3113_v57, %v3001_v46 }
 0xb6c   : > { %v3130_v11 = vmul.f32 %v3114_v30, %v3002_v28 }
 0xb6d   : > { %v3522_v25 = vpop.f32.mrf.mxu3  ;;  %v3137_v5 = vpack.c.bf16 %v3129_v3, %v3127_v55 }
 0xb6e   : > { %v9004_v49 = vadd.f32 %v3522_v25, %v3495_v14  ;;  %v3138_v18 = vpack.c.bf16 %v3130_v11, %v3128_v2 }
 0xb6f   : > { %3294 = vmatmul.bf16.gmra.mxu0 %v3137_v5 }
 0xb70   : > { %3323 = vmatmul.bf16.gmra.mxu1 %v3138_v18 }
 0xb72   : > { %v3280_v29 = vpop.f32.mrf.mxu0 }
 0xb73   : > { %v3281_v56 = vadd.f32 %v7093_v39, %v3280_v29  ;;  %v3309_v63 = vpop.f32.mrf.mxu1 }
 0xb75   : > { %v3310_v60 = vadd.f32 %v3309_v63, %v3281_v56  ;;  %v3524_v48 = vpop.f32.mrf.mxu3 }
 0xb77   : > { %3338 = vrot.lane.b32.xlu2 %v3310_v60, %s7516_s7 }
 0xb7a   : > { %v3282_v47 = vpop.f32.mrf.mxu0 }
 0xb7b   : > { %v3283_v1 = vadd.f32 %v7093_v39, %v3282_v47  ;;  %v3311_v34 = vpop.f32.mrf.mxu1 }
 0xb7d   : > { %v3312_v22 = vadd.f32 %v3311_v34, %v3283_v1  ;;  %v3535_v6 = vpop.f32.mrf.mxu3 }
 0xb7e   : > { %v9011_v38 = vadd.f32 %v3535_v6, %v3496_v19 }
 0xb7f   : > { %3340 = vrot.lane.b32.xlu0 %v3312_v22, %s7516_s7 }
 0xb85   : > { %v3537_v53 = vpop.f32.mrf.mxu3 }
 0xb8c   : > { %v3285_v35 = vpop.f32.mrf.mxu0 }
 0xb8d   : > { %v3286_v43 = vadd.f32 %v7093_v39, %v3285_v35  ;;  %v3314_v44 = vpop.f32.mrf.mxu1 }
 0xb8f   : > { %v3315_v12 = vadd.f32 %v3314_v44, %v3286_v43 }
 0xb91   : > { %3342 = vrot.lane.b32.xlu1 %v3315_v12, %s7516_s7 }
 0xb94   : > { %v3287_v0 = vpop.f32.mrf.mxu0 }
 0xb95   : > { %v3288_v10 = vadd.f32 %v7093_v39, %v3287_v0  ;;  %v3316_v36 = vpop.f32.mrf.mxu1 }
 0xb97   : > { %v3317_v61 = vadd.f32 %v3316_v36, %v3288_v10 }
 0xb99   : > { %3344 = vrot.lane.b32.xlu1 %v3317_v61, %s7516_s7 }
 0xbad   : > { %v3290_v51 = vpop.f32.mrf.mxu0 }
 0xbae   : > { %v3291_v8 = vadd.f32 %v7093_v39, %v3290_v51  ;;  %v3319_v62 = vpop.f32.mrf.mxu1 }
 0xbb0   : > { %v3320_v23 = vadd.f32 %v3319_v62, %v3291_v8 }
 0xbb2   : > { %3346 = vrot.lane.b32.xlu1 %v3320_v23, %s7516_s7 }
 0xbb5   : > { %v3292_v4 = vpop.f32.mrf.mxu0 }
 0xbb6   : > { %v3293_v9 = vadd.f32 %v7093_v39, %v3292_v4  ;;  %v3321_v40 = vpop.f32.mrf.mxu1 }
 0xbb8   : > { %v3322_v15 = vadd.f32 %v3321_v40, %v3293_v9 }
 0xbba   : > { %3348 = vrot.lane.b32.xlu0 %v3322_v15, %s7516_s7 }
 0xbd1   : > { %v3339_v45 = vpop.permute.xlu2 %3338 }
 0xbd2   : > { %v3362_v7 = vmul.f32 %v3339_v45, %v3329_v33 }
 0xbd4   : > { %3378 = vrot.lane.b32.xlu2 %v3362_v7, %s7516_s7  ;;  %v3494_v7 = vperm.slane %v9001_v26, 0 }
 0xbec   : > { %v3295_v31 = vpop.f32.mrf.mxu0 }
 0xbed   : > { %v3296_v20 = vadd.f32 %v7093_v39, %v3295_v31  ;;  %v3324_v16 = vpop.f32.mrf.mxu1  ;;  %v9085_v31 = vadd.f32 %v8996_v54, %v3494_v7  ;;  %v6911_v7 = vld [vmem:[%s10287_s12 + $0x44] sm:$0xf] }
 0xbef   : > { %v3325_v24 = vadd.f32 %v3324_v16, %v3296_v20  ;;  %v3715_v20 = vadd.f32 1.0, %v9085_v31 }
 0xbf1   : > { %v3341_v46 = vpop.permute.xlu0 %3340  ;;  %3350 = vrot.lane.b32.xlu0 %v3325_v24, %s7516_s7 }
 0xbf2   : > { %v3363_v57 = vmul.f32 %v3341_v46, %v3329_v33  ;;  %v3716_v46 = vperm.slane %v3715_v20, 0 }
 0xbf4   : > { %3380 = vrot.lane.b32.xlu1 %v3363_v57, %s7516_s7  ;;  %v3297_v14 = vpop.f32.mrf.mxu0 }
 0xbf5   : > { %v3298_v13 = vadd.f32 %v7093_v39, %v3297_v14  ;;  %v3326_v28 = vpop.f32.mrf.mxu1 }
 0xbf7   : > { %v3327_v30 = vadd.f32 %v3326_v28, %v3298_v13 }
 0xbf9   : > { %3352 = vrot.lane.b32.xlu2 %v3327_v30, %s7516_s7 }
 0xc03   : > { %v3343_v21 = vpop.permute.xlu1 %3342 }
 0xc04   : > { %v3364_v55 = vmul.f32 %v3343_v21, %v3329_v33 }
 0xc06   : > { %3382 = vrot.lane.b32.xlu1 %v3364_v55, %s7516_s7 }
 0xc0b   : > { %v3345_v3 = vpop.permute.xlu1 %3344 }
 0xc0c   : > { %v3365_v2 = vmul.f32 %v3345_v3, %v3329_v33 }
 0xc0e   : > { %3384 = vrot.lane.b32.xlu0 %v3365_v2, %s7516_s7 }
 0xc24   : > { %v3347_v11 = vpop.permute.xlu1 %3346 }
 0xc25   : > { %v3366_v25 = vmul.f32 %v3347_v11, %v3329_v33 }
 0xc27   : > { %3386 = vrot.lane.b32.xlu2 %v3366_v25, %s7516_s7 }
 0xc2c   : > { %v3349_v5 = vpop.permute.xlu0 %3348 }
 0xc2d   : > { %v3367_v18 = vmul.f32 %v3349_v5, %v3329_v33 }
 0xc2e   : > { %v3379_v39 = vpop.permute.xlu2 %3378 }
 0xc2f   : > { %3388 = vrot.lane.b32.xlu1 %v3367_v18, %s7516_s7  ;;  %v9028_v29 = vadd.f32 %v3379_v39, %v8650_v52 }
 0xc31   : > { %v3539_v56 = vsel %vm987_vm1, %v9028_v29, 0.0 }
 0xc38   : > { %3540 = vadd.xlane.f32.xlu0 %v3539_v56 }
 0xc53   : > { %v3353_v19 = vpop.permute.xlu2 %3352 }
 0xc54   : > { %v3369_v34 = vmul.f32 %v3353_v19, %v3329_v33  ;;  %v6918_v19 = vld [vmem:[%s10287_s12 + $0x74] sm:$0xf0] }
 0xc63   : > { %v3351_v63 = vpop.permute.xlu0 %3350 }
 0xc64   : > { %v3368_v60 = vmul.f32 %v3351_v63, %v3329_v33 }
 0xc66   : > { %v3381_v48 = vpop.permute.xlu1 %3380  ;;  %3390 = vrot.lane.b32.xlu1 %v3368_v60, %s7516_s7 }
 0xc67   : > { %v9034_v47 = vadd.f32 %v3381_v48, %v8656_v58  ;;  %v6568_v48 = vld [vmem:[%s10287_s12 + $0x70] sm:$0xf] }
 0xc69   : > { %v3542_v1 = vsel %vm987_vm1, %v9034_v47, 0.0 }
 0xc6a   : > { %3543 = vadd.xlane.f32.xlu2 %v3542_v1  ;;  %v6917_v1 = vld [vmem:[%s10287_s12 + $0x74] sm:$0xf] }
 0xc6e   : > { %3392 = vrot.lane.b32.xlu1 %v3369_v34, %s7516_s7  ;;  %v6569_v34 = vor.u32 %v6918_v19, %v6568_v48 }
 0xc70   : > { %3814 = vmatpush.bf16.msrb.mxu2 %v6569_v34 }
 0xc78   : > { %v3383_v43 = vpop.permute.xlu1 %3382 }
 0xc79   : > { %v9050_v44 = vadd.f32 %v3383_v43, %v8662_v27  ;;  %v6916_v43 = vld [vmem:[%s10287_s12 + $0x64] sm:$0xf0] }
 0xc80   : > { %v3385_v52 = vpop.permute.xlu0 %3384 }
 0xc81   : > { %v9040_v22 = vadd.f32 %v3385_v52, %v8668_v59  ;;  %v3387_v6 = vpop.permute.xlu2 %3386  ;;  %v3545_v59 = vsel %vm987_vm1, %v9050_v44, 0.0  ;;  %v6570_v52 = vld [vmem:[%s10287_s12 + $0x78] sm:$0xf0] }
 0xc82   : > { %v9043_v53 = vadd.f32 %v3387_v6, %v8674_v17  ;;  %v6573_v6 = vor.u32 %v6917_v1, %v6570_v52 }
 0xc83   : > { %v3548_v58 = vsel %vm987_vm1, %v9040_v22, 0.0 }
 0xc84   : > { %3549 = vadd.xlane.f32.xlu0 %v3548_v58  ;;  %v3551_v35 = vsel %vm987_vm1, %v9043_v53, 0.0  ;;  %3843 = vmatpush.bf16.msrb.mxu3 %v6573_v6 }
 0xc85   : > { %3552 = vadd.xlane.f32.xlu2 %v3551_v35  ;;  %v6560_v35 = vld [vmem:[%s10287_s12 + $0x60] sm:$0xf] }
 0xc98   : > { %3546 = vadd.xlane.f32.xlu1 %v3545_v59  ;;  %v6915_v59 = vld [vmem:[%s10287_s12 + $0x64] sm:$0xf] }
 0xca1   : > { %v3389_v12 = vpop.permute.xlu1 %3388 }
 0xca2   : > { %v9055_v17 = vadd.f32 %v3389_v12, %v8680_v42  ;;  %v6561_v12 = vor.u32 %v6916_v43, %v6560_v35 }
 0xca4   : > { %v3554_v0 = vsel %vm987_vm1, %v9055_v17, 0.0  ;;  %3815 = vmatpush.bf16.msrb.mxu2 %v6561_v12 }
 0xca5   : > { %3555 = vadd.xlane.f32.xlu0 %v3554_v0  ;;  %v6562_v0 = vld [vmem:[%s10287_s12 + $0x68] sm:$0xf0] }
 0xcab   : > { %v3541_v10 = vpop.xlane.xlu0 %3540 }
 0xcac   : > { %v3563_v36 = vmul.f32 %v3541_v10, %v7810_v41  ;;  %v6565_v10 = vor.u32 %v6915_v59, %v6562_v0  ;;  %v9186_v0 = vperm.slane %v9085_v31, 0 }
 0xcae   : > { %v9061_v61 = vsub.f32 %v9028_v29, %v3563_v36  ;;  %3844 = vmatpush.bf16.msrb.mxu3 %v6565_v10  ;;  %v6552_v36 = vld [vmem:[%s10287_s12 + $0x50] sm:$0xf] }
 0xcb0   : > { %v3579_v27 = vmul.f32 %v9061_v61, %v9061_v61 }
 0xcb2   : > { %v3587_v51 = vsel %vm987_vm1, %v3579_v27, 0.0  ;;  %v6914_v27 = vld [vmem:[%s10287_s12 + $0x54] sm:$0xf0] }
 0xcb3   : > { %3588 = vadd.xlane.f32.xlu2 %v3587_v51  ;;  %v6913_v51 = vld [vmem:[%s10287_s12 + $0x54] sm:$0xf] }
 0xcd8   : > { %v3391_v8 = vpop.permute.xlu1 %3390 }
 0xcd9   : > { %v9067_v42 = vadd.f32 %v3391_v8, %v8686_v50 }
 0xcdb   : > { %v3557_v62 = vsel %vm987_vm1, %v9067_v42, 0.0 }
 0xcdc   : > { %3558 = vadd.xlane.f32.xlu2 %v3557_v62  ;;  %v6553_v62 = vor.u32 %v6914_v27, %v6552_v36 }
 0xcdd   : > { %v3544_v23 = vpop.xlane.xlu2 %3543 }
 0xcde   : > { %v3564_v4 = vmul.f32 %v3544_v23, %v7810_v41  ;;  %v6554_v23 = vld [vmem:[%s10287_s12 + $0x58] sm:$0xf0]  ;;  %3816 = vmatpush.bf16.msrb.mxu2 %v6553_v62 }
 0xce0   : > { %v9073_v9 = vsub.f32 %v9034_v47, %v3564_v4  ;;  %v3393_v40 = vpop.permute.xlu1 %3392 }
 0xce1   : > { %v9076_v15 = vadd.f32 %v3393_v40, %v8700_v37  ;;  %v6557_v40 = vor.u32 %v6913_v51, %v6554_v23 }
 0xce2   : > { %v3580_v33 = vmul.f32 %v9073_v9, %v9073_v9 }
 0xce3   : > { %v3560_v50 = vsel %vm987_vm1, %v9076_v15, 0.0  ;;  %3845 = vmatpush.bf16.msrb.mxu3 %v6557_v40 }
 0xce4   : > { %3561 = vadd.xlane.f32.xlu1 %v3560_v50  ;;  %v3590_v45 = vsel %vm987_vm1, %v3580_v33, 0.0  ;;  %v6544_v50 = vld [vmem:[%s10287_s12 + $0x40] sm:$0xf] }
 0xce5   : > { %3591 = vadd.xlane.f32.xlu0 %v3590_v45  ;;  %v6912_v45 = vld [vmem:[%s10287_s12 + $0x44] sm:$0xf0] }
 0xce6   : > { %v6545_v20 = vor.u32 %v6912_v45, %v6544_v50 }
 0xce8   : > { %3817 = vmatpush.bf16.msrb.mxu2 %v6545_v20 }
 0xcf7   : > { %v3550_v16 = vpop.xlane.xlu0 %3549 }
 0xcf8   : > { %v3566_v37 = vmul.f32 %v3550_v16, %v7810_v41  ;;  %v3553_v26 = vpop.xlane.xlu2 %3552  ;;  %v6546_v16 = vld [vmem:[%s10287_s12 + $0x48] sm:$0xf0] }
 0xcf9   : > { %v3567_v28 = vmul.f32 %v3553_v26, %v7810_v41 }
 0xcfa   : > { %v9090_v24 = vsub.f32 %v9040_v22, %v3566_v37 }
 0xcfb   : > { %v9104_v55 = vsub.f32 %v9043_v53, %v3567_v28 }
 0xcfc   : > { %v3582_v57 = vmul.f32 %v9090_v24, %v9090_v24 }
 0xcfd   : > { %3718 = vrot.lane.b32.xlu1 %v3716_v46, %s7516_s7  ;;  %v3583_v2 = vmul.f32 %v9104_v55, %v9104_v55 }
 0xcfe   : > { %v3596_v14 = vsel %vm987_vm1, %v3582_v57, 0.0  ;;  %v6549_v57 = vor.u32 %v6911_v7, %v6546_v16 }
 0xcff   : > { %3597 = vadd.xlane.f32.xlu2 %v3596_v14  ;;  %v3599_v5 = vsel %vm987_vm1, %v3583_v2, 0.0 }
 0xd00   : > { %3846 = vmatpush.bf16.msrb.mxu3 %v6549_v57 }
 0xd0b   : > { %v3547_v54 = vpop.xlane.xlu1 %3546 }
 0xd0c   : > { %v3565_v13 = vmul.f32 %v3547_v54, %v7810_v41 }
 0xd0e   : > { %v9099_v30 = vsub.f32 %v9050_v44, %v3565_v13 }
 0xd10   : > { %v3581_v21 = vmul.f32 %v9099_v30, %v9099_v30 }
 0xd12   : > { %v3593_v3 = vsel %vm987_vm1, %v3581_v21, 0.0 }
 0xd13   : > { %3594 = vadd.xlane.f32.xlu0 %v3593_v3 }
 0xd18   : > { %v3556_v11 = vpop.xlane.xlu0 %3555 }
 0xd19   : > { %v3568_v25 = vmul.f32 %v3556_v11, %v7810_v41 }
 0xd1b   : > { %v9112_v18 = vsub.f32 %v9055_v17, %v3568_v25  ;;  %3600 = vadd.xlane.f32.xlu0 %v3599_v5 }
 0xd1d   : > { %v3584_v39 = vmul.f32 %v9112_v18, %v9112_v18 }
 0xd1f   : > { %v3602_v56 = vsel %vm987_vm1, %v3584_v39, 0.0 }
 0xd20   : > { %3603 = vadd.xlane.f32.xlu2 %v3602_v56 }
 0xd26   : > { %v3589_v63 = vpop.xlane.xlu2 %3588 }
 0xd27   : > { %v3611_v60 = vmul.f32 %v3589_v63, %v7810_v41 }
 0xd29   : > { %v3619_v58 = vadd.f32 1e-06, %v3611_v60 }
 0xd2b   : > { %7299 = vrsqrt.f32 %v3619_v58  ;;  %vm3633_vm10 = vweird.f32 %v3619_v58 }
 0xd31   : > { %v7300_v37 = vpop.eup %7299 }
 0xd32   : > { %v3628_v26 = vmul.f32 %v7300_v37, %v3619_v58  ;;  %vm3634_vm9 = vweird.f32 %v7300_v37 }
 0xd33   : > { %vm3635_vm11 = vmor %vm3633_vm10, %vm3634_vm9 }
 0xd34   : > { %v3629_v2 = vmul.f32 %v7300_v37, %v3628_v26 }
 0xd36   : > { %v3630_v39 = vmul.f32 0.5, %v3629_v2 }
 0xd38   : > { %v3631_v63 = vsub.f32 1.5, %v3630_v39 }
 0xd3a   : > { %v3632_v19 = vmul.f32 %v7300_v37, %v3631_v63 }
 0xd3c   : > { %v3636_v52 = vsel %vm3635_vm11, %v7300_v37, %v3632_v19 }
 0xd3d   : > { %v3707_v35 = vmul.f32 %v3636_v52, %v9061_v61 }
 0xd4f   : > { %v3559_v8 = vpop.xlane.xlu2 %3558 }
 0xd50   : > { %v3569_v4 = vmul.f32 %v3559_v8, %v7810_v41 }
 0xd52   : > { %v9156_v33 = vsub.f32 %v9067_v42, %v3569_v4 }
 0xd54   : > { %v3585_v46 = vmul.f32 %v9156_v33, %v9156_v33 }
 0xd56   : > { %v3605_v14 = vsel %vm987_vm1, %v3585_v46, 0.0 }
 0xd57   : > { %v3562_v54 = vpop.xlane.xlu1 %3561  ;;  %3606 = vadd.xlane.f32.xlu0 %v3605_v14 }
 0xd58   : > { %v3570_v13 = vmul.f32 %v3562_v54, %v7810_v41  ;;  %v3592_v28 = vpop.xlane.xlu0 %3591 }
 0xd59   : > { %v3612_v21 = vmul.f32 %v3592_v28, %v7810_v41 }
 0xd5a   : > { %v9176_v3 = vsub.f32 %v9076_v15, %v3570_v13 }
 0xd5b   : > { %v3620_v11 = vadd.f32 1e-06, %v3612_v21 }
 0xd5c   : > { %v3586_v25 = vmul.f32 %v9176_v3, %v9176_v3 }
 0xd5d   : > { %7301 = vrsqrt.f32 %v3620_v11  ;;  %vm3643_vm13 = vweird.f32 %v3620_v11 }
 0xd5e   : > { %v3608_v5 = vsel %vm987_vm1, %v3586_v25, 0.0 }
 0xd5f   : > { %3609 = vadd.xlane.f32.xlu2 %v3608_v5 }
 0xd63   : > { %v7302_v56 = vpop.eup %7301 }
 0xd64   : > { %v3638_v60 = vmul.f32 %v7302_v56, %v3620_v11  ;;  %vm3644_vm12 = vweird.f32 %v7302_v56 }
 0xd65   : > { %vm3645_vm14 = vmor %vm3643_vm13, %vm3644_vm12 }
 0xd66   : > { %v3639_v48 = vmul.f32 %v7302_v56, %v3638_v60 }
 0xd68   : > { %v3640_v1 = vmul.f32 0.5, %v3639_v48 }
 0xd6a   : > { %v3641_v34 = vsub.f32 1.5, %v3640_v1 }
 0xd6c   : > { %v3642_v6 = vmul.f32 %v7302_v56, %v3641_v34 }
 0xd6e   : > { %v3646_v43 = vsel %vm3645_vm14, %v7302_v56, %v3642_v6 }
 0xd6f   : > { %v3708_v59 = vmul.f32 %v3646_v43, %v9073_v9  ;;  %v9183_v12 = vpop.permute.xlu1 %3718 }
 0xd70   : > { %v3721_v10 = vmul.f32 %v9183_v12, %v3707_v35 }
 0xd71   : > { %v3722_v58 = vmul.f32 %v9183_v12, %v3708_v59 }
 0xd72   : > { %v3598_v36 = vpop.xlane.xlu2 %3597  ;;  %v3730_v27 = vadd.f32 %v9186_v0, %v3721_v10 }
 0xd73   : > { %v3614_v51 = vmul.f32 %v3598_v36, %v7810_v41  ;;  %v3731_v8 = vadd.f32 %v9186_v0, %v3722_v58 }
 0xd75   : > { %v3622_v61 = vadd.f32 1e-06, %v3614_v51  ;;  %v3738_v62 = vpack.c.bf16 %v3731_v8, %v3730_v27 }
 0xd77   : > { %6574 = vmatmul.msk.bf16.vlgmr.msrb.gmra.mxu2 %vm987_vm1, %v3738_v62  ;;  %6578 = vmatmul.msk.bf16.vlgmr.msrb.gmra.mxu3 %vm987_vm1, %v3738_v62  ;;  %7303 = vrsqrt.f32 %v3622_v61  ;;  %vm3663_vm2 = vweird.f32 %v3622_v61 }
 0xd7d   : > { %v7304_v9 = vpop.eup %7303 }
 0xd7e   : > { %v3658_v31 = vmul.f32 %v7304_v9, %v3622_v61  ;;  %vm3664_vm15 = vweird.f32 %v7304_v9 }
 0xd7f   : > { %vm3665_vm3 = vmor %vm3663_vm2, %vm3664_vm15 }
 0xd80   : > { %v3659_v23 = vmul.f32 %v7304_v9, %v3658_v31 }
 0xd82   : > { %v3660_v45 = vmul.f32 0.5, %v3659_v23 }
 0xd84   : > { %v3661_v7 = vsub.f32 1.5, %v3660_v45 }
 0xd86   : > { %v3595_v4 = vpop.xlane.xlu0 %3594  ;;  %v3662_v57 = vmul.f32 %v7304_v9, %v3661_v7 }
 0xd87   : > { %v3613_v40 = vmul.f32 %v3595_v4, %v7810_v41 }
 0xd88   : > { %v3666_v28 = vsel %vm3665_vm3, %v7304_v9, %v3662_v57 }
 0xd89   : > { %v3621_v50 = vadd.f32 1e-06, %v3613_v40  ;;  %v3710_v5 = vmul.f32 %v3666_v28, %v9090_v24 }
 0xd8b   : > { %7305 = vrsqrt.f32 %v3621_v50  ;;  %vm3653_vm5 = vweird.f32 %v3621_v50  ;;  %v3724_v19 = vmul.f32 %v9183_v12, %v3710_v5 }
 0xd8d   : > { %v3733_v24 = vadd.f32 %v9186_v0, %v3724_v19 }
 0xd8e   : > { %v3601_v20 = vpop.xlane.xlu0 %3600 }
 0xd8f   : > { %v3615_v16 = vmul.f32 %v3601_v20, %v7810_v41 }
 0xd91   : > { %v7306_v37 = vpop.eup %7305  ;;  %v3623_v46 = vadd.f32 1e-06, %v3615_v16 }
 0xd92   : > { %v3648_v14 = vmul.f32 %v7306_v37, %v3621_v50  ;;  %vm3654_vm4 = vweird.f32 %v7306_v37 }
 0xd93   : > { %7307 = vrsqrt.f32 %v3623_v46  ;;  %v3604_v26 = vpop.xlane.xlu2 %3603  ;;  %vm3655_vm6 = vmor %vm3653_vm5, %vm3654_vm4  ;;  %vm3673_vm10 = vweird.f32 %v3623_v46 }
 0xd94   : > { %v3649_v54 = vmul.f32 %v7306_v37, %v3648_v14  ;;  %v3616_v13 = vmul.f32 %v3604_v26, %v7810_v41 }
 0xd96   : > { %v3650_v21 = vmul.f32 0.5, %v3649_v54  ;;  %v3624_v2 = vadd.f32 1e-06, %v3616_v13 }
 0xd98   : > { %v3651_v11 = vsub.f32 1.5, %v3650_v21  ;;  %7309 = vrsqrt.f32 %v3624_v2  ;;  %vm3683_vm13 = vweird.f32 %v3624_v2 }
 0xd99   : > { %v7308_v25 = vpop.eup %7307 }
 0xd9a   : > { %v3652_v39 = vmul.f32 %v7306_v37, %v3651_v11  ;;  %v3668_v56 = vmul.f32 %v7308_v25, %v3623_v46  ;;  %vm3674_vm9 = vweird.f32 %v7308_v25 }
 0xd9b   : > { %vm3675_vm11 = vmor %vm3673_vm10, %vm3674_vm9 }
 0xd9c   : > { %v3656_v63 = vsel %vm3655_vm6, %v7306_v37, %v3652_v39  ;;  %v3669_v60 = vmul.f32 %v7308_v25, %v3668_v56 }
 0xd9d   : > { %v3709_v48 = vmul.f32 %v3656_v63, %v9099_v30 }
 0xd9e   : > { %v7310_v1 = vpop.eup %7309  ;;  %v3670_v34 = vmul.f32 0.5, %v3669_v60 }
 0xd9f   : > { %v3678_v52 = vmul.f32 %v7310_v1, %v3624_v2  ;;  %v3723_v6 = vmul.f32 %v9183_v12, %v3709_v48  ;;  %vm3684_vm12 = vweird.f32 %v7310_v1 }
 0xda0   : > { %v3671_v35 = vsub.f32 1.5, %v3670_v34  ;;  %vm3685_vm14 = vmor %vm3683_vm13, %vm3684_vm12 }
 0xda1   : > { %v3679_v43 = vmul.f32 %v7310_v1, %v3678_v52  ;;  %v3732_v59 = vadd.f32 %v9186_v0, %v3723_v6 }
 0xda2   : > { %v3672_v10 = vmul.f32 %v7308_v25, %v3671_v35 }
 0xda3   : > { %v3680_v58 = vmul.f32 0.5, %v3679_v43  ;;  %v3739_v36 = vpack.c.bf16 %v3733_v24, %v3732_v59 }
 0xda4   : > { %v3676_v27 = vsel %vm3675_vm11, %v7308_v25, %v3672_v10 }
 0xda5   : > { %v3681_v30 = vsub.f32 1.5, %v3680_v58  ;;  %6575 = vmatmul.msk.bf16.gmra.mxu2 %vm987_vm1, %v3739_v36  ;;  %6579 = vmatmul.msk.bf16.gmra.mxu3 %vm987_vm1, %v3739_v36  ;;  %v3711_v8 = vmul.f32 %v3676_v27, %v9104_v55 }
 0xda7   : > { %v3682_v51 = vmul.f32 %v7310_v1, %v3681_v30  ;;  %v3725_v31 = vmul.f32 %v9183_v12, %v3711_v8 }
 0xda9   : > { %v3686_v61 = vsel %vm3685_vm14, %v7310_v1, %v3682_v51  ;;  %v3734_v4 = vadd.f32 %v9186_v0, %v3725_v31 }
 0xdaa   : > { %v3712_v62 = vmul.f32 %v3686_v61, %v9112_v18 }
 0xdac   : > { %v3726_v9 = vmul.f32 %v9183_v12, %v3712_v62 }
 0xdae   : > { %v3735_v23 = vadd.f32 %v9186_v0, %v3726_v9 }
 0xdb0   : > { %v3740_v40 = vpack.c.bf16 %v3735_v23, %v3734_v4 }
 0xdb5   : > { %6576 = vmatmul.msk.bf16.gmra.mxu2 %vm987_vm1, %v3740_v40  ;;  %6580 = vmatmul.msk.bf16.gmra.mxu3 %vm987_vm1, %v3740_v40 }
 0xdca   : > { %v3607_v50 = vpop.xlane.xlu0 %3606 }
 0xdcb   : > { %v3617_v45 = vmul.f32 %v3607_v50, %v7810_v41 }
 0xdcd   : > { %v3625_v55 = vadd.f32 1e-06, %v3617_v45 }
 0xdcf   : > { %7311 = vrsqrt.f32 %v3625_v55  ;;  %vm3693_vm2 = vweird.f32 %v3625_v55 }
 0xdd2   : > { %v3610_v7 = vpop.xlane.xlu2 %3609 }
 0xdd3   : > { %v3618_v18 = vmul.f32 %v3610_v7, %v7810_v41 }
 0xdd5   : > { %v7312_v20 = vpop.eup %7311  ;;  %v3626_v16 = vadd.f32 1e-06, %v3618_v18 }
 0xdd6   : > { %v3688_v37 = vmul.f32 %v7312_v20, %v3625_v55  ;;  %vm3694_vm15 = vweird.f32 %v7312_v20 }
 0xdd7   : > { %7313 = vrsqrt.f32 %v3626_v16  ;;  %vm3695_vm3 = vmor %vm3693_vm2, %vm3694_vm15  ;;  %vm3703_vm5 = vweird.f32 %v3626_v16 }
 0xdd8   : > { %v3689_v46 = vmul.f32 %v7312_v20, %v3688_v37 }
 0xdda   : > { %v3690_v57 = vmul.f32 0.5, %v3689_v46 }
 0xddc   : > { %v3691_v14 = vsub.f32 1.5, %v3690_v57 }
 0xddd   : > { %v7314_v26 = vpop.eup %7313 }
 0xdde   : > { %v3692_v54 = vmul.f32 %v7312_v20, %v3691_v14  ;;  %v3698_v13 = vmul.f32 %v7314_v26, %v3626_v16  ;;  %vm3704_vm4 = vweird.f32 %v7314_v26 }
 0xddf   : > { %vm3705_vm6 = vmor %vm3703_vm5, %vm3704_vm4 }
 0xde0   : > { %v3699_v28 = vmul.f32 %v7314_v26, %v3698_v13  ;;  %v3696_v21 = vsel %vm3695_vm3, %v7312_v20, %v3692_v54 }
 0xde1   : > { %v3713_v25 = vmul.f32 %v3696_v21, %v9156_v33  ;;  %v6541_v33 = vld [vmem:[%s10288_s13 + $0x2] sm:$0x3] }
 0xde2   : > { %v3700_v2 = vmul.f32 0.5, %v3699_v28  ;;  %v9227_v34 = vperm.slane %v6541_v33, 1  ;;  %v3754_v24 = vperm.slane %v6541_v33, 0 }
 0xde3   : > { %v3727_v63 = vmul.f32 %v9183_v12, %v3713_v25 }
 0xde4   : > { %v3701_v11 = vsub.f32 1.5, %v3700_v2 }
 0xde5   : > { %v3736_v48 = vadd.f32 %v9186_v0, %v3727_v63 }
 0xde6   : > { %v3702_v5 = vmul.f32 %v7314_v26, %v3701_v11 }
 0xde8   : > { %v3706_v39 = vsel %vm3705_vm6, %v7314_v26, %v3702_v5 }
 0xde9   : > { %v3714_v56 = vmul.f32 %v3706_v39, %v9176_v3 }
 0xdeb   : > { %v3728_v60 = vmul.f32 %v9183_v12, %v3714_v56 }
 0xded   : > { %v3737_v19 = vadd.f32 %v9186_v0, %v3728_v60 }
 0xdef   : > { %v3741_v1 = vpack.c.bf16 %v3737_v19, %v3736_v48 }
 0xdf1   : > { %6577 = vmatmul.msk.bf16.gmra.mxu2 %vm987_vm1, %v3741_v1  ;;  %6581 = vmatmul.msk.bf16.gmra.mxu3 %vm987_vm1, %v3741_v1 }
 0xdfa   : > { %v3848_v3 = vpop.f32.mrf.mxu3  ;;  %v3819_v0 = vpop.f32.mrf.mxu2 }
 0xdfb   : > { %v3849_v52 = vadd.f32 %v3848_v3, %v9227_v34  ;;  %v3820_v8 = vadd.f32 %v3819_v0, %v3754_v24 }
 0xdfd   : > { %v3868_v16 = vmul.f32 0.25, %v3820_v8 }
 0xe02   : > { %v3850_v6 = vpop.f32.mrf.mxu3  ;;  %v3821_v43 = vpop.f32.mrf.mxu2 }
 0xe03   : > { %v3851_v12 = vadd.f32 %v3850_v6, %v9227_v34  ;;  %v3822_v27 = vadd.f32 %v3821_v43, %v3754_v24 }
 0xe05   : > { %v9231_v35 = vpack.c.bf16 %v3851_v12, %v3849_v52  ;;  %v3880_v61 = vpack.c.bf16 %v3822_v27, %v3820_v8  ;;  %v3869_v20 = vmul.f32 0.25, %v3822_v27 }
 0xe07   : > { %v9247_v37 = vpack.c.bf16 %v3869_v20, %v3868_v16 }
 0xe28   : > { %v3824_v59 = vpop.f32.mrf.mxu2  ;;  %v3853_v4 = vpop.f32.mrf.mxu3 }
 0xe29   : > { %v3825_v58 = vadd.f32 %v3824_v59, %v3754_v24  ;;  %v3854_v19 = vadd.f32 %v3853_v4, %v9227_v34 }
 0xe2b   : > { %v3870_v50 = vmul.f32 0.25, %v3825_v58 }
 0xe30   : > { %v3826_v10 = vpop.f32.mrf.mxu2  ;;  %v3855_v55 = vpop.f32.mrf.mxu3 }
 0xe31   : > { %v3827_v36 = vadd.f32 %v3826_v10, %v3754_v24  ;;  %v3856_v60 = vadd.f32 %v3855_v55, %v9227_v34 }
 0xe33   : > { %v3881_v30 = vpack.c.bf16 %v3827_v36, %v3825_v58  ;;  %v3871_v40 = vmul.f32 0.25, %v3827_v36  ;;  %v9271_v1 = vpack.c.bf16 %v3856_v60, %v3854_v19 }
 0xe35   : > { %4100 = vrot.lane.b32.xlu1 %v3881_v30, %s7517_s3  ;;  %v9239_v45 = vpack.c.bf16 %v3871_v40, %v3870_v50 }
 0xe38   : > { %v3829_v51 = vpop.f32.mrf.mxu2  ;;  %v3858_v7 = vpop.f32.mrf.mxu3 }
 0xe39   : > { %v3830_v9 = vadd.f32 %v3829_v51, %v3754_v24  ;;  %v3859_v63 = vadd.f32 %v3858_v7, %v9227_v34 }
 0xe3b   : > { %v3872_v26 = vmul.f32 0.25, %v3830_v9 }
 0xe3d   : > { %4098 = vrot.lane.b32.xlu1 %v3880_v61, %s7517_s3 }
 0xe40   : > { %v3831_v62 = vpop.f32.mrf.mxu2  ;;  %v3860_v18 = vpop.f32.mrf.mxu3 }
 0xe41   : > { %v3832_v31 = vadd.f32 %v3831_v62, %v3754_v24  ;;  %v3861_v5 = vadd.f32 %v3860_v18, %v9227_v34 }
 0xe43   : > { %v3882_v23 = vpack.c.bf16 %v3832_v31, %v3830_v9  ;;  %v3873_v14 = vmul.f32 0.25, %v3832_v31  ;;  %v9265_v48 = vpack.c.bf16 %v3861_v5, %v3859_v63 }
 0xe45   : > { %3888 = vrot.lane.b32.xlu1 %v3880_v61, %s7516_s7  ;;  %4102 = vrot.lane.b32.xlu2 %v3882_v23, %s7517_s3  ;;  %v9251_v54 = vpack.c.bf16 %v3873_v14, %v3872_v26 }
 0xe4d   : > { %4530 = vrot.lane.b32.xlu1 %v3880_v61, %s7520_s4  ;;  %3890 = vrot.lane.b32.xlu2 %v3881_v30, %s7516_s7 }
 0xe55   : > { %4316 = vrot.lane.b32.xlu1 %v3880_v61, %s10335_s1  ;;  %4092 = vrot.lane.b32.xlu2 %v9239_v45, %s10336_s28 }
 0xe5d   : > { %4534 = vrot.lane.b32.xlu2 %v3882_v23, %s7520_s4 }
 0xe65   : > { %4532 = vrot.lane.b32.xlu2 %v3881_v30, %s7520_s4 }
 0xe6d   : > { %4318 = vrot.lane.b32.xlu2 %v3881_v30, %s10335_s1 }
 0xe74   : > { %v3834_v46 = vpop.f32.mrf.mxu2  ;;  %v3863_v57 = vpop.f32.mrf.mxu3 }
 0xe75   : > { %4308 = vrot.lane.b32.xlu2 %v9247_v37, %s10337_s2  ;;  %v3835_v21 = vadd.f32 %v3834_v46, %v3754_v24  ;;  %v3864_v2 = vadd.f32 %v3863_v57, %v9227_v34 }
 0xe7c   : > { %v3836_v13 = vpop.f32.mrf.mxu2  ;;  %v3865_v28 = vpop.f32.mrf.mxu3 }
 0xe7d   : > { %v3837_v11 = vadd.f32 %v3836_v13, %v3754_v24  ;;  %v3866_v25 = vadd.f32 %v3865_v28, %v9227_v34  ;;  %4526 = vrot.lane.b32.xlu2 %v9251_v54, %s10338_s30  ;;  %v3874_v34 = vmul.f32 0.25, %v3835_v21 }
 0xe7f   : > { %v3883_v39 = vpack.c.bf16 %v3837_v11, %v3835_v21  ;;  %v9258_v56 = vpack.c.bf16 %v3866_v25, %v3864_v2  ;;  %v3875_v33 = vmul.f32 0.25, %v3837_v11 }
 0xe81   : > { %4061 = vmatpush.bf16.msrb.mxu1 %v9258_v56  ;;  %3894 = vrot.lane.b32.xlu1 %v3883_v39, %s7516_s7  ;;  %v9283_v3 = vpack.c.bf16 %v3875_v33, %v3874_v34 }
 0xe82   : > { %4104 = vrot.lane.b32.xlu0 %v3883_v39, %s7517_s3 }
 0xe85   : > { %4261 = vrot.lane.b32.xlu2 %v9258_v56, %s10336_s28  ;;  %4062 = vmatpush.bf16.msrb.mxu1 %v9265_v48 }
 0xe89   : > { %4063 = vmatpush.bf16.msrb.mxu1 %v9271_v1  ;;  %4536 = vrot.lane.b32.xlu1 %v3883_v39, %s7520_s4 }
 0xe8a   : > { %3892 = vrot.lane.b32.xlu0 %v3882_v23, %s7516_s7 }
 0xe8d   : > { %4689 = vrot.lane.b32.xlu2 %v9258_v56, %s10338_s30  ;;  %4064 = vmatpush.bf16.msrb.mxu1 %v9231_v35 }
 0xe91   : > { %4310 = vrot.lane.b32.xlu1 %v9239_v45, %s10337_s2 }
 0xe92   : > { %4090 = vrot.lane.b32.xlu0 %v9247_v37, %s10336_s28 }
 0xe95   : > { %4314 = vrot.lane.b32.xlu2 %v9283_v3, %s10337_s2 }
 0xe99   : > { %4257 = vrot.lane.b32.xlu1 %v9271_v1, %s10336_s28 }
 0xe9a   : > { %4094 = vrot.lane.b32.xlu0 %v9251_v54, %s10336_s28 }
 0xe9f   : > { %v4103_v52 = vpop.permute.xlu2 %4102 }
 0xea0   : > { %v4125_v40 = vsel %vm1051_vm0, %v4103_v52, 0 }
 0xea1   : > { %4096 = vrot.lane.b32.xlu1 %v9283_v3, %s10336_s28 }
 0xea2   : > { %4320 = vrot.lane.b32.xlu0 %v3882_v23, %s10335_s1 }
 0xea7   : > { %v3891_v6 = vpop.permute.xlu2 %3890  ;;  %v4101_v59 = vpop.permute.xlu1 %4100 }
 0xea8   : > { %v3912_v55 = vsel %vm1051_vm0, %v3891_v6, 0  ;;  %v4122_v7 = vsel %vm1051_vm0, %v4101_v59, 0 }
 0xea9   : > { %4528 = vrot.lane.b32.xlu1 %v9283_v3, %s10338_s30 }
 0xeaa   : > { %4522 = vrot.lane.b32.xlu0 %v9247_v37, %s10338_s30 }
 0xeaf   : > { %v4093_v12 = vpop.permute.xlu2 %4092  ;;  %v4099_v10 = vpop.permute.xlu1 %4098 }
 0xeb0   : > { %v4119_v46 = vsel %vm1051_vm0, %v4099_v10, 0 }
 0xeb2   : > { %4322 = vrot.lane.b32.xlu0 %v3883_v39, %s10335_s1 }
 0xeb7   : > { %v4535_v0 = vpop.permute.xlu2 %4534  ;;  %v3889_v36 = vpop.permute.xlu1 %3888 }
 0xeb8   : > { %v3909_v16 = vsel %vm1051_vm0, %v3889_v36, 0  ;;  %v4557_v26 = vsel %vm1051_vm0, %v4535_v0, 0 }
 0xeba   : > { %4524 = vrot.lane.b32.xlu0 %v9239_v45, %s10338_s30 }
 0xebf   : > { %v4533_v43 = vpop.permute.xlu2 %4532  ;;  %v4531_v51 = vpop.permute.xlu1 %4530 }
 0xec0   : > { %v4554_v28 = vsel %vm1051_vm0, %v4533_v43, 0 }
 0xec2   : > { %4312 = vrot.lane.b32.xlu0 %v9251_v54, %s10337_s2 }
 0xec7   : > { %v4319_v24 = vpop.permute.xlu2 %4318  ;;  %v4317_v8 = vpop.permute.xlu1 %4316 }
 0xec8   : > { %v4340_v63 = vsel %vm1051_vm0, %v4319_v24, 0  ;;  %v4337_v19 = vsel %vm1051_vm0, %v4317_v8, 0 }
 0xeca   : > { %4259 = vrot.lane.b32.xlu0 %v9265_v48, %s10336_s28 }
 0xecf   : > { %v9305_v58 = vpop.permute.xlu2 %4308 }
 0xed2   : > { %4255 = vrot.lane.b32.xlu0 %v9231_v35, %s10336_s28 }
 0xed7   : > { %v9309_v30 = vpop.permute.xlu2 %4526 }
 0xedf   : > { %v4262_v27 = vpop.permute.xlu2 %4261 }
 0xee0   : > { %4283 = vmatpush.bf16.msra.mxu3 %v4262_v27 }
 0xee7   : > { %v4690_v52 = vpop.permute.xlu2 %4689 }
 0xef3   : > { %v3895_v61 = vpop.permute.xlu1 %3894 }
 0xef4   : > { %v3918_v62 = vsel %vm1051_vm0, %v3895_v61, 0  ;;  %v4105_v9 = vpop.permute.xlu0 %4104 }
 0xef5   : > { %v4128_v31 = vsel %vm1051_vm0, %v4105_v9, 0  ;;  %3924 = vmatpush.bf16.xpose.msra.mxu0 %v3918_v62 }
 0xef6   : > { %4134 = vmatpush.bf16.xpose.msra.mxu2 %v4128_v31 }
 0xefb   : > { %v4537_v18 = vpop.permute.xlu1 %4536 }
 0xefc   : > { %v3893_v23 = vpop.permute.xlu0 %3892  ;;  %v4560_v57 = vsel %vm1051_vm0, %v4537_v18, 0 }
 0xefd   : > { %v3915_v4 = vsel %vm1051_vm0, %v3893_v23, 0 }
 0xefe   : > { %3925 = vmatpush.bf16.xpose.msra.mxu0 %v3915_v4  ;;  %4135 = vmatpush.bf16.xpose.msra.mxu2 %v4125_v40 }
 0xf03   : > { %v4311_v5 = vpop.permute.xlu1 %4310 }
 0xf04   : > { %v4091_v50 = vpop.permute.xlu0 %4090 }
 0xf06   : > { %3926 = vmatpush.bf16.xpose.msra.mxu0 %v3912_v55  ;;  %4136 = vmatpush.bf16.xpose.msra.mxu2 %v4122_v7 }
 0xf0c   : > { %v4095_v20 = vpop.permute.xlu0 %4094 }
 0xf0e   : > { %3927 = vmatpush.bf16.xpose.msra.mxu0 %v3909_v16  ;;  %4137 = vmatpush.bf16.xpose.msra.mxu2 %v4119_v46 }
 0xf14   : > { %v4321_v14 = vpop.permute.xlu0 %4320 }
 0xf15   : > { %6582 = vmatmul.msk.bf16.vlgmr.msra.gmra.mxu0 %vm1051_vm0, %v9247_v37  ;;  %6590 = vmatmul.msk.bf16.vlgmr.msra.gmra.mxu2 %vm1051_vm0, %v4091_v50  ;;  %v4551_v37 = vsel %vm1051_vm0, %v4531_v51, 0  ;;  %v4343_v25 = vsel %vm1051_vm0, %v4321_v14, 0 }
 0xf16   : > { %4566 = vmatpush.bf16.xpose.msrb.mxu2 %v4560_v57 }
 0xf1c   : > { %v4523_v13 = vpop.permute.xlu0 %4522 }
 0xf1e   : > { %4567 = vmatpush.bf16.xpose.msrb.mxu2 %v4557_v26 }
 0xf24   : > { %v4323_v21 = vpop.permute.xlu0 %4322 }
 0xf25   : > { %v4346_v2 = vsel %vm1051_vm0, %v4323_v21, 0  ;;  %6583 = vmatmul.msk.bf16.gmra.mxu0 %vm1051_vm0, %v9239_v45  ;;  %6591 = vmatmul.msk.bf16.gmra.mxu2 %vm1051_vm0, %v4093_v12  ;;  %v4258_v45 = vpop.permute.xlu1 %4257 }
 0xf26   : > { %4568 = vmatpush.bf16.xpose.msrb.mxu2 %v4554_v28  ;;  %4352 = vmatpush.bf16.xpose.msrb.mxu0 %v4346_v2 }
 0xf2c   : > { %v4525_v11 = vpop.permute.xlu0 %4524 }
 0xf2d   : > { %v4097_v33 = vpop.permute.xlu1 %4096 }
 0xf2e   : > { %4569 = vmatpush.bf16.xpose.msrb.mxu2 %v4551_v37  ;;  %4353 = vmatpush.bf16.xpose.msrb.mxu0 %v4343_v25 }
 0xf34   : > { %v4313_v39 = vpop.permute.xlu0 %4312 }
 0xf35   : > { %6584 = vmatmul.msk.bf16.gmra.mxu0 %vm1051_vm0, %v9251_v54  ;;  %6592 = vmatmul.msk.bf16.gmra.mxu2 %vm1051_vm0, %v4095_v20  ;;  %v4315_v54 = vpop.permute.xlu2 %4314 }
 0xf36   : > { %4354 = vmatpush.bf16.xpose.msrb.mxu0 %v4340_v63 }
 0xf3c   : > { %v4260_v60 = vpop.permute.xlu0 %4259 }
 0xf3d   : > { %4284 = vmatpush.bf16.msra.mxu3 %v4260_v60 }
 0xf3e   : > { %4355 = vmatpush.bf16.xpose.msrb.mxu0 %v4337_v19 }
 0xf41   : > { %4285 = vmatpush.bf16.msra.mxu3 %v4258_v45 }
 0xf44   : > { %v4256_v34 = vpop.permute.xlu0 %4255 }
 0xf45   : > { %6585 = vmatmul.msk.bf16.gmra.mxu0 %vm1051_vm0, %v9283_v3  ;;  %6593 = vmatmul.msk.bf16.gmra.mxu2 %vm1051_vm0, %v4097_v33  ;;  %v4529_v3 = vpop.permute.xlu1 %4528 }
 0xf46   : > { %4286 = vmatpush.bf16.msra.mxu3 %v4256_v34 }
 0xf4a   : > { %4711 = vmatpush.bf16.msrb.mxu3 %v4690_v52 }
 0xf55   : > { %6598 = vmatmul.msk.bf16.vlgmr.msrb.gmra.mxu0 %vm1051_vm0, %v9305_v58  ;;  %6606 = vmatmul.msk.bf16.vlgmr.msrb.gmra.mxu2 %vm1051_vm0, %v4523_v13 }
 0xf65   : > { %6599 = vmatmul.msk.bf16.gmra.mxu0 %vm1051_vm0, %v4311_v5  ;;  %6607 = vmatmul.msk.bf16.gmra.mxu2 %vm1051_vm0, %v4525_v11 }
 0xf75   : > { %6600 = vmatmul.msk.bf16.gmra.mxu0 %vm1051_vm0, %v4313_v39  ;;  %6608 = vmatmul.msk.bf16.gmra.mxu2 %vm1051_vm0, %v9309_v30 }
 0xf85   : > { %6601 = vmatmul.msk.bf16.gmra.mxu0 %vm1051_vm0, %v4315_v54  ;;  %6609 = vmatmul.msk.bf16.gmra.mxu2 %vm1051_vm0, %v4529_v3 }
 0xf92   : > { %v9349_v6 = vpop.f32.mrf.mxu0 }
 0xf93   : > { %v3949_v12 = vsel %vm987_vm1, %v9349_v6, -inf }
 0xf94   : > { %3950 = vmax.xlane.f32.xlu2 %v3949_v12 }
 0xf98   : > { %v9353_v0 = vpop.f32.mrf.mxu2 }
 0xf99   : > { %v4159_v43 = vsel %vm987_vm1, %v9353_v0, -inf }
 0xf9a   : > { %4160 = vmax.xlane.f32.xlu0 %v4159_v43  ;;  %v9357_v59 = vpop.f32.mrf.mxu0 }
 0xf9b   : > { %v3952_v58 = vsel %vm987_vm1, %v9357_v59, -inf }
 0xfa0   : > { %v9359_v24 = vpop.f32.mrf.mxu2 }
 0xfa1   : > { %v4162_v10 = vsel %vm987_vm1, %v9359_v24, -inf }
 0xfa2   : > { %4163 = vmax.xlane.f32.xlu1 %v4162_v10  ;;  %3953 = vmax.xlane.f32.xlu0 %v3952_v58  ;;  %v9365_v36 = vpop.f32.mrf.mxu0 }
 0xfa3   : > { %v3955_v27 = vsel %vm987_vm1, %v9365_v36, -inf }
 0xfa8   : > { %v9367_v30 = vpop.f32.mrf.mxu2 }
 0xfa9   : > { %v4165_v51 = vsel %vm987_vm1, %v9367_v30, -inf }
 0xfaa   : > { %3956 = vmax.xlane.f32.xlu0 %v3955_v27  ;;  %v9373_v8 = vpop.f32.mrf.mxu0  ;;  %4166 = vmax.xlane.f32.xlu1 %v4165_v51 }
 0xfab   : > { %v3958_v62 = vsel %vm987_vm1, %v9373_v8, -inf }
 0xfb0   : > { %v9375_v61 = vpop.f32.mrf.mxu2 }
 0xfb1   : > { %v4168_v9 = vsel %vm987_vm1, %v9375_v61, -inf }
 0xfb2   : > { %v9381_v31 = vpop.f32.mrf.mxu0  ;;  %3959 = vmax.xlane.f32.xlu1 %v3958_v62  ;;  %4169 = vmax.xlane.f32.xlu2 %v4168_v9 }
 0xfb3   : > { %v3961_v4 = vsel %vm987_vm1, %v9381_v31, -inf }
 0xfb8   : > { %v9383_v23 = vpop.f32.mrf.mxu2 }
 0xfb9   : > { %v4171_v40 = vsel %vm987_vm1, %v9383_v23, -inf }
 0xfba   : > { %v9389_v50 = vpop.f32.mrf.mxu0  ;;  %3962 = vmax.xlane.f32.xlu1 %v3961_v4  ;;  %4172 = vmax.xlane.f32.xlu2 %v4171_v40 }
 0xfbb   : > { %v3964_v7 = vsel %vm987_vm1, %v9389_v50, -inf }
 0xfc0   : > { %v9391_v55 = vpop.f32.mrf.mxu2 }
 0xfc1   : > { %v4174_v18 = vsel %vm987_vm1, %v9391_v55, -inf }
 0xfc2   : > { %v9397_v20 = vpop.f32.mrf.mxu0  ;;  %3965 = vmax.xlane.f32.xlu2 %v3964_v7  ;;  %4175 = vmax.xlane.f32.xlu0 %v4174_v18 }
 0xfc3   : > { %v3967_v46 = vsel %vm987_vm1, %v9397_v20, -inf }
 0xfc8   : > { %v9399_v16 = vpop.f32.mrf.mxu2 }
 0xfc9   : > { %v4177_v13 = vsel %vm987_vm1, %v9399_v16, -inf }
 0xfca   : > { %v9403_v57 = vpop.f32.mrf.mxu0  ;;  %3968 = vmax.xlane.f32.xlu0 %v3967_v46 }
 0xfcb   : > { %v3970_v14 = vsel %vm987_vm1, %v9403_v57, -inf }
 0xfcc   : > { %3971 = vmax.xlane.f32.xlu1 %v3970_v14 }
 0xfd0   : > { %v9407_v26 = vpop.f32.mrf.mxu2 }
 0xfd1   : > { %v4180_v21 = vsel %vm987_vm1, %v9407_v26, -inf }
 0xfd2   : > { %4178 = vmax.xlane.f32.xlu0 %v4177_v13  ;;  %v9411_v28 = vpop.f32.mrf.mxu0 }
 0xfd3   : > { %v4377_v2 = vsel %vm987_vm1, %v9411_v28, -inf }
 0xfd4   : > { %4181 = vmax.xlane.f32.xlu1 %v4180_v21  ;;  %4378 = vmax.xlane.f32.xlu2 %v4377_v2 }
 0xfd8   : > { %v9417_v37 = vpop.f32.mrf.mxu2 }
 0xfd9   : > { %v4591_v11 = vsel %vm987_vm1, %v9417_v37, -inf }
 0xfda   : > { %4592 = vmax.xlane.f32.xlu0 %v4591_v11  ;;  %v9421_v25 = vpop.f32.mrf.mxu0 }
 0xfdb   : > { %v4380_v5 = vsel %vm987_vm1, %v9421_v25, -inf }
 0xfdc   : > { %4381 = vmax.xlane.f32.xlu2 %v4380_v5 }
 0xfe0   : > { %v9425_v39 = vpop.f32.mrf.mxu2 }
 0xfe1   : > { %v4594_v63 = vsel %vm987_vm1, %v9425_v39, -inf }
 0xfe2   : > { %4595 = vmax.xlane.f32.xlu1 %v4594_v63  ;;  %v9429_v45 = vpop.f32.mrf.mxu0 }
 0xfe3   : > { %v4383_v60 = vsel %vm987_vm1, %v9429_v45, -inf }
 0xfe4   : > { %4384 = vmax.xlane.f32.xlu0 %v4383_v60 }
 0xfe8   : > { %v9433_v19 = vpop.f32.mrf.mxu2 }
 0xfe9   : > { %v4597_v33 = vsel %vm987_vm1, %v9433_v19, -inf }
 0xfea   : > { %4598 = vmax.xlane.f32.xlu2 %v4597_v33  ;;  %v9437_v34 = vpop.f32.mrf.mxu0 }
 0xfeb   : > { %v4386_v52 = vsel %vm987_vm1, %v9437_v34, -inf }
 0xfec   : > { %4387 = vmax.xlane.f32.xlu1 %v4386_v52 }
 0xff0   : > { %v9441_v54 = vpop.f32.mrf.mxu2 }
 0xff1   : > { %v4600_v3 = vsel %vm987_vm1, %v9441_v54, -inf }
 0xff2   : > { %4601 = vmax.xlane.f32.xlu0 %v4600_v3  ;;  %v9445_v12 = vpop.f32.mrf.mxu0 }
 0xff3   : > { %v4389_v43 = vsel %vm987_vm1, %v9445_v12, -inf }
 0xff4   : > { %4390 = vmax.xlane.f32.xlu2 %v4389_v43 }
 0xff8   : > { %v9449_v10 = vpop.f32.mrf.mxu2 }
 0xff9   : > { %v4603_v58 = vsel %vm987_vm1, %v9449_v10, -inf }
 0xffa   : > { %v9453_v27 = vpop.f32.mrf.mxu0  ;;  %4604 = vmax.xlane.f32.xlu1 %v4603_v58 }
 0xffb   : > { %v4392_v51 = vsel %vm987_vm1, %v9453_v27, -inf }
 0xffc   : > { %4393 = vmax.xlane.f32.xlu0 %v4392_v51 }
0x1000   : > { %v9457_v62 = vpop.f32.mrf.mxu2 }
0x1001   : > { %v4606_v9 = vsel %vm987_vm1, %v9457_v62, -inf }
0x1002   : > { %4607 = vmax.xlane.f32.xlu2 %v4606_v9  ;;  %v9461_v4 = vpop.f32.mrf.mxu0 }
0x1003   : > { %v4395_v40 = vsel %vm987_vm1, %v9461_v4, -inf }
0x1004   : > { %4396 = vmax.xlane.f32.xlu0 %v4395_v40 }
0x1007   : > { %v3951_v7 = vpop.xlane.xlu2 %3950 }
0x1008   : > { %v9465_v18 = vpop.f32.mrf.mxu2  ;;  %v3973_v46 = vsub.f32 %v9349_v6, %v3951_v7 }
0x1009   : > { %v4609_v13 = vsel %vm987_vm1, %v9465_v18, -inf }
0x100a   : > { %v9468_v14 = vpop.f32.mrf.mxu0  ;;  %v3981_v2 = vmul.f32 1.442695, %v3973_v46 }
0x100b   : > { %v4398_v21 = vsel %vm987_vm1, %v9468_v14, -inf }
0x100c   : > { %4610 = vmax.xlane.f32.xlu0 %v4609_v13  ;;  %4399 = vmax.xlane.f32.xlu1 %v4398_v21  ;;  %7315 = vpow2.f32 %v3981_v2 }
0x100d   : > { %v4161_v11 = vpop.xlane.xlu0 %4160 }
0x100e   : > { %v4183_v5 = vsub.f32 %v9353_v0, %v4161_v11 }
0x1010   : > { %v4191_v63 = vmul.f32 1.442695, %v4183_v5  ;;  %v9475_v60 = vpop.f32.mrf.mxu2 }
0x1011   : > { %v4612_v6 = vsel %vm987_vm1, %v9475_v60, -inf }
0x1012   : > { %7317 = vpow2.f32 %v4191_v63  ;;  %v9482_v43 = vpop.eup %7315 }
0x1013   : > { %v3997_v9 = vsel %vm987_vm1, %v9482_v43, 0.0 }
0x1014   : > { %4613 = vmax.xlane.f32.xlu1 %v4612_v6 }
0x1015   : > { %v9479_v33 = vpop.xlane.xlu1 %4163  ;;  %v3954_v52 = vpop.xlane.xlu0 %3953 }
0x1016   : > { %v3974_v3 = vsub.f32 %v9357_v59, %v3954_v52 }
0x1018   : > { %v9484_v58 = vpop.eup %7317  ;;  %v3983_v51 = vmul.f32 1.442695, %v3974_v3 }
0x1019   : > { %v4207_v0 = vsel %vm987_vm1, %v9484_v58, 0.0 }
0x101a   : > { %4208 = vadd.xlane.f32.xlu0 %v4207_v0  ;;  %7319 = vpow2.f32 %v3983_v51 }
0x101c   : > { %3998 = vadd.xlane.f32.xlu1 %v3997_v9 }
0x101d   : > { %v4167_v40 = vpop.xlane.xlu1 %4166 }
0x101e   : > { %v4185_v7 = vsub.f32 %v9367_v30, %v4167_v40  ;;  %v3957_v30 = vpop.xlane.xlu0 %3956 }
0x1020   : > { %v4195_v46 = vmul.f32 1.442695, %v4185_v7  ;;  %v9491_v13 = vpop.eup %7319 }
0x1021   : > { %v4000_v59 = vsel %vm987_vm1, %v9491_v13, 0.0 }
0x1022   : > { %7321 = vpow2.f32 %v4195_v46  ;;  %4001 = vadd.xlane.f32.xlu2 %v4000_v59 }
0x1025   : > { %v9495_v21 = vpop.xlane.xlu1 %3959  ;;  %v4170_v2 = vpop.xlane.xlu2 %4169 }
0x1026   : > { %v4186_v11 = vsub.f32 %v9375_v61, %v4170_v2 }
0x1028   : > { %v4197_v5 = vmul.f32 1.442695, %v4186_v11  ;;  %v9498_v63 = vpop.eup %7321 }
0x1029   : > { %v4213_v6 = vsel %vm987_vm1, %v9498_v63, 0.0 }
0x102a   : > { %7323 = vpow2.f32 %v4197_v5  ;;  %4214 = vadd.xlane.f32.xlu2 %v4213_v6 }
0x102d   : > { %v3963_v52 = vpop.xlane.xlu1 %3962  ;;  %v9509_v9 = vpop.xlane.xlu2 %4172 }
0x102e   : > { %v3977_v3 = vsub.f32 %v9381_v31, %v3963_v52  ;;  %4687 = vrot.lane.b32.xlu0 %v9265_v48, %s10338_s30  ;;  %v3975_v52 = vsub.f32 %v9365_v36, %v3957_v30 }
0x1030   : > { %v3989_v51 = vmul.f32 1.442695, %v3977_v3  ;;  %v9505_v0 = vpop.eup %7323 }
0x1031   : > { %v4216_v61 = vsel %vm987_vm1, %v9505_v0, 0.0 }
0x1032   : > { %7325 = vpow2.f32 %v3989_v51  ;;  %4217 = vadd.xlane.f32.xlu2 %v4216_v61 }
0x1035   : > { %v4176_v40 = vpop.xlane.xlu0 %4175  ;;  %4475 = vrot.lane.b32.xlu1 %v9258_v56, %s10337_s2  ;;  %v3966_v2 = vpop.xlane.xlu2 %3965 }
0x1036   : > { %v4188_v7 = vsub.f32 %v9391_v55, %v4176_v40 }
0x1038   : > { %v9514_v31 = vpop.eup %7325  ;;  %v4201_v46 = vmul.f32 1.442695, %v4188_v7  ;;  %v3985_v7 = vmul.f32 1.442695, %v3975_v52 }
0x1039   : > { %v4009_v59 = vsel %vm987_vm1, %v9514_v31, 0.0 }
0x103a   : > { %7327 = vpow2.f32 %v4201_v46  ;;  %4010 = vadd.xlane.f32.xlu2 %v4009_v59 }
0x103d   : > { %4685 = vrot.lane.b32.xlu1 %v9271_v1, %s10338_s30  ;;  %v9528_v3 = vpop.xlane.xlu0 %3968 }
0x103f   : > { %v3972_v11 = vpop.xlane.xlu1 %3971 }
0x1040   : > { %v9520_v5 = vpop.eup %7327  ;;  %v3980_v6 = vsub.f32 %v9403_v57, %v3972_v11 }
0x1041   : > { %v4222_v56 = vsel %vm987_vm1, %v9520_v5, 0.0 }
0x1042   : > { %v3995_v55 = vmul.f32 1.442695, %v3980_v6  ;;  %4223 = vadd.xlane.f32.xlu2 %v4222_v56 }
0x1044   : > { %7329 = vpow2.f32 %v3995_v55 }
0x1045   : > { %4473 = vrot.lane.b32.xlu1 %v9265_v48, %s10337_s2  ;;  %v3978_v48 = vsub.f32 %v9389_v50, %v3966_v2  ;;  %v4179_v36 = vpop.xlane.xlu0 %4178 }
0x1046   : > { %v4189_v6 = vsub.f32 %v9399_v16, %v4179_v36 }
0x1047   : > { %v4379_v51 = vpop.xlane.xlu2 %4378  ;;  %v3991_v30 = vmul.f32 1.442695, %v3978_v48 }
0x1048   : > { %v4401_v61 = vsub.f32 %v9411_v28, %v4379_v51  ;;  %v4203_v55 = vmul.f32 1.442695, %v4189_v6  ;;  %v9550_v51 = vpop.xlane.xlu1 %4181 }
0x104a   : > { %v9531_v40 = vpop.eup %7329  ;;  %v4409_v57 = vmul.f32 1.442695, %v4401_v61 }
0x104b   : > { %v4018_v46 = vsel %vm987_vm1, %v9531_v40, 0.0 }
0x104c   : > { %4019 = vadd.xlane.f32.xlu2 %v4018_v46  ;;  %7331 = vpow2.f32 %v4409_v57  ;;  %v4184_v46 = vsub.f32 %v9359_v24, %v9479_v33 }
0x104d   : > { %4683 = vrot.lane.b32.xlu1 %v9231_v35, %s10338_s30  ;;  %7333 = vpow2.f32 %v3985_v7  ;;  %v4593_v52 = vpop.xlane.xlu0 %4592 }
0x104e   : > { %7335 = vpow2.f32 %v3991_v30  ;;  %v4615_v2 = vsub.f32 %v9417_v37, %v4593_v52  ;;  %v4193_v30 = vmul.f32 1.442695, %v4184_v46  ;;  %v3976_v52 = vsub.f32 %v9373_v8, %v9495_v21 }
0x104f   : > { %7337 = vpow2.f32 %v4203_v55  ;;  %v4382_v57 = vpop.xlane.xlu2 %4381 }
0x1050   : > { %v4623_v7 = vmul.f32 1.442695, %v4615_v2  ;;  %v4402_v48 = vsub.f32 %v9421_v25, %v4382_v57  ;;  %v3987_v2 = vmul.f32 1.442695, %v3976_v52 }
0x1052   : > { %v9538_v59 = vpop.eup %7331  ;;  %7339 = vpow2.f32 %v4623_v7 }
0x1053   : > { %v9540_v28 = vpop.eup %7333  ;;  %v4425_v11 = vsel %vm987_vm1, %v9538_v59, 0.0  ;;  %7341 = vpow2.f32 %v4193_v30 }
0x1054   : > { %4426 = vadd.xlane.f32.xlu2 %v4425_v11  ;;  %v4003_v56 = vsel %vm987_vm1, %v9540_v28, 0.0  ;;  %v9547_v50 = vpop.eup %7335  ;;  %v4411_v11 = vmul.f32 1.442695, %v4402_v48 }
0x1055   : > { %v4012_v61 = vsel %vm987_vm1, %v9547_v50, 0.0  ;;  %v9554_v16 = vpop.eup %7337  ;;  %v9559_v36 = vpop.xlane.xlu1 %4595 }
0x1056   : > { %v4225_v37 = vsel %vm987_vm1, %v9554_v16, 0.0  ;;  %7343 = vpow2.f32 %v4411_v11 }
0x1057   : > { %v4385_v55 = vpop.xlane.xlu0 %4384  ;;  %7345 = vpow2.f32 %v3987_v2 }
0x1058   : > { %4004 = vadd.xlane.f32.xlu0 %v4003_v56  ;;  %v9563_v56 = vpop.eup %7339  ;;  %v4403_v8 = vsub.f32 %v9429_v45, %v4385_v55  ;;  %v3979_v45 = vsub.f32 %v9397_v20, %v9528_v3 }
0x1059   : > { %v4639_v33 = vsel %vm987_vm1, %v9563_v56, 0.0  ;;  %v9572_v7 = vpop.eup %7341 }
0x105a   : > { %v4413_v30 = vmul.f32 1.442695, %v4403_v8  ;;  %v3993_v2 = vmul.f32 1.442695, %v3979_v45 }
0x105c   : > { %v9574_v57 = vpop.eup %7343 }
0x105d   : > { %v4599_v6 = vpop.xlane.xlu2 %4598  ;;  %v4428_v48 = vsel %vm987_vm1, %v9574_v57, 0.0  ;;  %v9585_v11 = vpop.eup %7345 }
0x105e   : > { %v4617_v24 = vsub.f32 %v9433_v19, %v4599_v6  ;;  %v4210_v19 = vsel %vm987_vm1, %v9572_v7, 0.0  ;;  %v4006_v55 = vsel %vm987_vm1, %v9585_v11, 0.0 }
0x105f   : > { %v4388_v25 = vpop.xlane.xlu1 %4387 }
0x1060   : > { %4013 = vadd.xlane.f32.xlu0 %v4012_v61  ;;  %v4627_v61 = vmul.f32 1.442695, %v4617_v24  ;;  %v4404_v20 = vsub.f32 %v9437_v34, %v4388_v25 }
0x1062   : > { %7347 = vpow2.f32 %v4627_v61 }
0x1065   : > { %v9576_v46 = vpop.xlane.xlu0 %4601 }
0x1067   : > { %v4391_v6 = vpop.xlane.xlu2 %4390 }
0x1068   : > { %4226 = vadd.xlane.f32.xlu0 %v4225_v37  ;;  %v9587_v52 = vpop.eup %7347 }
0x106c   : > { %4471 = vrot.lane.b32.xlu2 %v9271_v1, %s10337_s2  ;;  %v4187_v1 = vsub.f32 %v9383_v23, %v9509_v9  ;;  %v4405_v9 = vsub.f32 %v9445_v12, %v4391_v6  ;;  %v4190_v12 = vsub.f32 %v9407_v26, %v9550_v51  ;;  %v4616_v26 = vsub.f32 %v9425_v39, %v9559_v36 }
0x106d   : > { %v4605_v21 = vpop.xlane.xlu1 %4604 }
0x106e   : > { %v4199_v37 = vmul.f32 1.442695, %v4187_v1  ;;  %v4417_v61 = vmul.f32 1.442695, %v4405_v9  ;;  %v4619_v3 = vsub.f32 %v9449_v10, %v4605_v21  ;;  %v4205_v45 = vmul.f32 1.442695, %v4190_v12 }
0x106f   : > { %v9589_v23 = vpop.xlane.xlu0 %4393 }
0x1070   : > { %4640 = vadd.xlane.f32.xlu0 %v4639_v33  ;;  %7349 = vpow2.f32 %v4199_v37  ;;  %v4645_v33 = vsel %vm987_vm1, %v9587_v52, 0.0  ;;  %v4631_v34 = vmul.f32 1.442695, %v4619_v3 }
0x1071   : > { %7351 = vpow2.f32 %v4413_v30  ;;  %v4415_v30 = vmul.f32 1.442695, %v4404_v20 }
0x1072   : > { %7353 = vpow2.f32 %v3993_v2 }
0x1073   : > { %7355 = vpow2.f32 %v4417_v61 }
0x1074   : > { %7357 = vpow2.f32 %v4415_v30 }
0x1075   : > { %v4608_v51 = vpop.xlane.xlu2 %4607  ;;  %7359 = vpow2.f32 %v4205_v45 }
0x1076   : > { %v9600_v1 = vpop.eup %7349  ;;  %7361 = vpow2.f32 %v4631_v34  ;;  %v4620_v9 = vsub.f32 %v9457_v62, %v4608_v51 }
0x1077   : > { %4211 = vadd.xlane.f32.xlu1 %v4210_v19  ;;  %v9602_v8 = vpop.eup %7351  ;;  %v4397_v19 = vpop.xlane.xlu0 %4396 }
0x1078   : > { %4429 = vadd.xlane.f32.xlu0 %v4428_v48  ;;  %v4219_v48 = vsel %vm987_vm1, %v9600_v1, 0.0  ;;  %v4431_v37 = vsel %vm987_vm1, %v9602_v8, 0.0  ;;  %v9612_v25 = vpop.eup %7353  ;;  %v4407_v21 = vsub.f32 %v9461_v4, %v4397_v19  ;;  %v4633_v20 = vmul.f32 1.442695, %v4620_v9 }
0x1079   : > { %v9616_v10 = vpop.eup %7355  ;;  %v4406_v19 = vsub.f32 %v9453_v27, %v9589_v23 }
0x107a   : > { %v4437_v2 = vsel %vm987_vm1, %v9616_v10, 0.0  ;;  %v4421_v61 = vmul.f32 1.442695, %v4407_v21  ;;  %v9626_v36 = vpop.eup %7357 }
0x107b   : > { %v9628_v12 = vpop.eup %7359  ;;  %v4434_v3 = vsel %vm987_vm1, %v9626_v36, 0.0  ;;  %v4419_v51 = vmul.f32 1.442695, %v4406_v19 }
0x107c   : > { %v9630_v62 = vpop.eup %7361 }
0x107d   : > { %v4651_v30 = vsel %vm987_vm1, %v9630_v62, 0.0 }
0x107f   : > { %v9596_v24 = vpop.xlane.xlu1 %4399  ;;  %4007 = vadd.xlane.f32.xlu1 %v4006_v55  ;;  %v4015_v55 = vsel %vm987_vm1, %v9612_v25, 0.0  ;;  %v9624_v39 = vpop.xlane.xlu0 %4610 }
0x1080   : > { %4646 = vadd.xlane.f32.xlu0 %v4645_v33  ;;  %v4625_v33 = vmul.f32 1.442695, %v4616_v26 }
0x1082   : > { %7363 = vpow2.f32 %v4625_v33 }
0x1083   : > { %7365 = vpow2.f32 %v4421_v61 }
0x1087   : > { %4220 = vadd.xlane.f32.xlu1 %v4219_v48  ;;  %v4614_v6 = vpop.xlane.xlu1 %4613 }
0x1088   : > { %4432 = vadd.xlane.f32.xlu0 %v4431_v37  ;;  %v4228_v37 = vsel %vm987_vm1, %v9628_v12, 0.0  ;;  %v9642_v34 = vpop.eup %7363  ;;  %v4622_v33 = vsub.f32 %v9475_v60, %v4614_v6 }
0x1089   : > { %v9644_v26 = vpop.eup %7365 }
0x108a   : > { %v4443_v9 = vsel %vm987_vm1, %v9644_v26, 0.0 }
0x108d   : > { %v9640_v45 = vpop.xlane.xlu0 %4208 }
0x108f   : > { %4016 = vadd.xlane.f32.xlu1 %v4015_v55  ;;  %v3999_v4 = vpop.xlane.xlu1 %3998  ;;  %v4642_v55 = vsel %vm987_vm1, %v9642_v34, 0.0 }
0x1090   : > { %4438 = vadd.xlane.f32.xlu0 %v4437_v2  ;;  %7367 = vrcp.f32 %v3999_v4 }
0x1091   : > { %7369 = vpow2.f32 %v4633_v20 }
0x1095   : > { %4435 = vadd.xlane.f32.xlu2 %v4434_v3  ;;  %v4002_v48 = vpop.xlane.xlu2 %4001 }
0x1096   : > { %7371 = vrcp.f32 %v4002_v48  ;;  %v7368_v27 = vpop.eup %7367  ;;  %v4637_v48 = vmul.f32 1.442695, %v4622_v33 }
0x1097   : > { %4229 = vadd.xlane.f32.xlu1 %v4228_v37  ;;  %v9646_v23 = vpop.eup %7369  ;;  %7373 = vpow2.f32 %v4419_v51  ;;  %v4029_v2 = vmul.f32 %v7368_v27, %v9482_v43 }
0x1098   : > { %4652 = vadd.xlane.f32.xlu0 %v4651_v30  ;;  %v4654_v4 = vsel %vm987_vm1, %v9646_v23, 0.0 }
0x109c   : > { %v7372_v21 = vpop.eup %7371 }
0x109d   : > { %v4030_v61 = vmul.f32 %v7372_v21, %v9491_v13  ;;  %4444 = vadd.xlane.f32.xlu2 %v4443_v9  ;;  %v4215_v20 = vpop.xlane.xlu2 %4214  ;;  %v9658_v37 = vpop.eup %7373 }
0x109e   : > { %7375 = vrcp.f32 %v4215_v20  ;;  %v4440_v13 = vsel %vm987_vm1, %v9658_v37, 0.0 }
0x109f   : > { %4643 = vadd.xlane.f32.xlu1 %v4642_v55  ;;  %v4037_v3 = vpack.c.bf16 %v4030_v61, %v4029_v2  ;;  %7377 = vpow2.f32 %v4637_v48 }
0x10a0   : > { %v4688_v19 = vpop.permute.xlu0 %4687  ;;  %4655 = vadd.xlane.f32.xlu0 %v4654_v4 }
0x10a1   : > { %4712 = vmatpush.bf16.msrb.mxu3 %v4688_v19  ;;  %6586 = vmatmul.msk.bf16.vlgmr.msrb.gmra.mxu1 %vm987_vm1, %v4037_v3  ;;  %v4618_v3 = vsub.f32 %v9441_v54, %v9576_v46 }
0x10a3   : > { %v4629_v48 = vmul.f32 1.442695, %v4618_v3 }
0x10a4   : > { %v7376_v6 = vpop.eup %7375 }
0x10a5   : > { %v4218_v60 = vpop.xlane.xlu2 %4217  ;;  %v9662_v30 = vpop.eup %7377  ;;  %v9665_v27 = vmul.f32 %v7376_v6, %v9498_v63 }
0x10a6   : > { %7379 = vrcp.f32 %v4218_v60  ;;  %v4660_v33 = vsel %vm987_vm1, %v9662_v30, 0.0  ;;  %v4621_v60 = vsub.f32 %v9465_v18, %v9624_v39 }
0x10a7   : > { %v4476_v43 = vpop.permute.xlu1 %4475  ;;  %7381 = vpow2.f32 %v4629_v48 }
0x10a8   : > { %4497 = vmatpush.bf16.msra.mxu1 %v4476_v43  ;;  %4441 = vadd.xlane.f32.xlu0 %v4440_v13  ;;  %v4635_v13 = vmul.f32 1.442695, %v4621_v60 }
0x10aa   : > { %7383 = vpow2.f32 %v4635_v13 }
0x10ac   : > { %v7380_v51 = vpop.eup %7379 }
0x10ad   : > { %v9668_v21 = vmul.f32 %v7380_v51, %v9505_v0  ;;  %v4011_v9 = vpop.xlane.xlu2 %4010  ;;  %v9684_v6 = vpop.eup %7381 }
0x10ae   : > { %v4648_v51 = vsel %vm987_vm1, %v9684_v6, 0.0 }
0x10af   : > { %v4686_v55 = vpop.permute.xlu1 %4685  ;;  %v4248_v2 = vpack.c.bf16 %v9668_v21, %v9665_v27 }
0x10b0   : > { %4713 = vmatpush.bf16.msrb.mxu3 %v4686_v55  ;;  %4661 = vadd.xlane.f32.xlu0 %v4660_v33  ;;  %v9690_v46 = vpop.eup %7383 }
0x10b1   : > { %v4657_v18 = vsel %vm987_vm1, %v9690_v46, 0.0 }
0x10b5   : > { %v4224_v61 = vpop.xlane.xlu2 %4223 }
0x10b7   : > { %v4474_v20 = vpop.permute.xlu1 %4473 }
0x10b8   : > { %4498 = vmatpush.bf16.msra.mxu1 %v4474_v20  ;;  %4469 = vrot.lane.b32.xlu1 %v9231_v35, %s10337_s2  ;;  %v4408_v35 = vsub.f32 %v9468_v14, %v9596_v24 }
0x10ba   : > { %v4423_v54 = vmul.f32 1.442695, %v4408_v35 }
0x10bc   : > { %7385 = vpow2.f32 %v4423_v54 }
0x10bd   : > { %7387 = vrcp.f32 %v9640_v45 }
0x10bf   : > { %v4684_v63 = vpop.permute.xlu1 %4683  ;;  %v9676_v4 = vpop.xlane.xlu2 %4019 }
0x10c0   : > { %4714 = vmatpush.bf16.msrb.mxu3 %v4684_v63 }
0x10c2   : > { %v9695_v55 = vpop.eup %7385 }
0x10c3   : > { %v7388_v14 = vpop.eup %7387  ;;  %v4446_v33 = vsel %vm987_vm1, %v9695_v55, 0.0 }
0x10c4   : > { %v4239_v20 = vmul.f32 %v7388_v14, %v9484_v58 }
0x10c7   : > { %v9678_v0 = vpop.xlane.xlu2 %4426 }
0x10cb   : > { %v4005_v43 = vpop.xlane.xlu0 %4004 }
0x10cf   : > { %v4472_v19 = vpop.permute.xlu2 %4471 }
0x10d0   : > { %4499 = vmatpush.bf16.msra.mxu1 %v4472_v19 }
0x10d3   : > { %v4014_v27 = vpop.xlane.xlu0 %4013 }
0x10db   : > { %v4227_v21 = vpop.xlane.xlu0 %4226 }
0x10e2   : > { %4649 = vadd.xlane.f32.xlu1 %v4648_v51 }
0x10e3   : > { %v4641_v19 = vpop.xlane.xlu0 %4640 }
0x10ea   : > { %v4212_v39 = vpop.xlane.xlu1 %4211  ;;  %4658 = vadd.xlane.f32.xlu1 %v4657_v18 }
0x10eb   : > { %7389 = vrcp.f32 %v4212_v39  ;;  %v4430_v58 = vpop.xlane.xlu0 %4429 }
0x10ec   : > { %7391 = vrcp.f32 %v4005_v43 }
0x10f1   : > { %v7390_v24 = vpop.eup %7389 }
0x10f2   : > { %v4240_v63 = vmul.f32 %v7390_v24, %v9572_v7  ;;  %v4008_v45 = vpop.xlane.xlu1 %4007  ;;  %4447 = vadd.xlane.f32.xlu1 %v4446_v33  ;;  %v7392_v48 = vpop.eup %7391 }
0x10f3   : > { %7393 = vrcp.f32 %v4008_v45  ;;  %v4031_v13 = vmul.f32 %v7392_v48, %v9540_v28  ;;  %v9708_v28 = vpop.xlane.xlu0 %4646 }
0x10f4   : > { %v4247_v3 = vpack.c.bf16 %v4240_v63, %v4239_v20  ;;  %7395 = vrcp.f32 %v4014_v27 }
0x10f5   : > { %7397 = vrcp.f32 %v4011_v9 }
0x10f6   : > { %6594 = vmatmul.msk.bf16.vlgmr.msra.gmra.mxu3 %vm987_vm1, %v4247_v3 }
0x10f9   : > { %v7394_v60 = vpop.eup %7393 }
0x10fa   : > { %v4032_v43 = vmul.f32 %v7394_v60, %v9585_v11  ;;  %v4221_v51 = vpop.xlane.xlu1 %4220  ;;  %v7396_v7 = vpop.eup %7395 }
0x10fb   : > { %v7398_v54 = vpop.eup %7397  ;;  %7399 = vrcp.f32 %v4221_v51  ;;  %v4034_v18 = vmul.f32 %v7396_v7, %v9547_v50  ;;  %v4433_v33 = vpop.xlane.xlu0 %4432 }
0x10fc   : > { %v4038_v35 = vpack.c.bf16 %v4032_v43, %v4031_v13  ;;  %7401 = vrcp.f32 %v4224_v61  ;;  %v4033_v39 = vmul.f32 %v7398_v54, %v9514_v31 }
0x10fe   : > { %6587 = vmatmul.msk.bf16.gmra.mxu1 %vm987_vm1, %v4038_v35  ;;  %v4039_v14 = vpack.c.bf16 %v4034_v18, %v4033_v39 }
0x1101   : > { %v7400_v24 = vpop.eup %7399 }
0x1102   : > { %v4017_v11 = vpop.xlane.xlu1 %4016  ;;  %v7402_v27 = vpop.eup %7401  ;;  %v4243_v9 = vmul.f32 %v7400_v24, %v9600_v1 }
0x1103   : > { %7403 = vrcp.f32 %v4017_v11  ;;  %v4439_v1 = vpop.xlane.xlu0 %4438 }
0x1104   : > { %7405 = vrcp.f32 %v9676_v4 }
0x1106   : > { %6595 = vmatmul.msk.bf16.gmra.mxu3 %vm987_vm1, %v4248_v2  ;;  %v4244_v2 = vmul.f32 %v7402_v27, %v9520_v5 }
0x1108   : > { %v4249_v61 = vpack.c.bf16 %v4244_v2, %v4243_v9  ;;  %v4436_v7 = vpop.xlane.xlu2 %4435 }
0x1109   : > { %v7404_v20 = vpop.eup %7403 }
0x110a   : > { %v4230_v50 = vpop.xlane.xlu1 %4229  ;;  %v7406_v31 = vpop.eup %7405  ;;  %v4035_v63 = vmul.f32 %v7404_v20, %v9612_v25 }
0x110b   : > { %7407 = vrcp.f32 %v4230_v50  ;;  %v4036_v45 = vmul.f32 %v7406_v31, %v9531_v40 }
0x110c   : > { %7409 = vrcp.f32 %v4227_v21  ;;  %v4653_v21 = vpop.xlane.xlu0 %4652 }
0x110d   : > { %v4040_v3 = vpack.c.bf16 %v4036_v45, %v4035_v63  ;;  %7411 = vrcp.f32 %v4430_v58 }
0x110e   : > { %6588 = vmatmul.msk.bf16.gmra.mxu1 %vm987_vm1, %v4039_v14  ;;  %7413 = vrcp.f32 %v9678_v0 }
0x1110   : > { %v4445_v45 = vpop.xlane.xlu2 %4444 }
0x1111   : > { %v7408_v48 = vpop.eup %7407 }
0x1112   : > { %v7410_v4 = vpop.eup %7409  ;;  %v4246_v5 = vmul.f32 %v7408_v48, %v9628_v12  ;;  %v4644_v13 = vpop.xlane.xlu1 %4643 }
0x1113   : > { %v4245_v60 = vmul.f32 %v7410_v4, %v9554_v16  ;;  %v7412_v35 = vpop.eup %7411  ;;  %7415 = vrcp.f32 %v4644_v13 }
0x1114   : > { %v7414_v25 = vpop.eup %7413  ;;  %v4458_v40 = vmul.f32 %v7412_v35, %v9574_v57  ;;  %7417 = vrcp.f32 %v4641_v19  ;;  %v4656_v39 = vpop.xlane.xlu0 %4655 }
0x1115   : > { %v4250_v43 = vpack.c.bf16 %v4246_v5, %v4245_v60  ;;  %v4457_v51 = vmul.f32 %v7414_v25, %v9538_v59  ;;  %7419 = vrcp.f32 %v4436_v7 }
0x1116   : > { %6596 = vmatmul.msk.bf16.gmra.mxu3 %vm987_vm1, %v4249_v61  ;;  %7421 = vrcp.f32 %v4433_v33 }
0x1117   : > { %v4465_v12 = vpack.c.bf16 %v4458_v40, %v4457_v51 }
0x1119   : > { %v7416_v0 = vpop.eup %7415 }
0x111a   : > { %v7418_v16 = vpop.eup %7417  ;;  %v4672_v54 = vmul.f32 %v7416_v0, %v9642_v34 }
0x111b   : > { %v4671_v18 = vmul.f32 %v7418_v16, %v9563_v56  ;;  %v7420_v11 = vpop.eup %7419 }
0x111c   : > { %v7422_v59 = vpop.eup %7421  ;;  %v4460_v19 = vmul.f32 %v7420_v11, %v9626_v36  ;;  %v4442_v24 = vpop.xlane.xlu0 %4441 }
0x111d   : > { %v4679_v57 = vpack.c.bf16 %v4672_v54, %v4671_v18  ;;  %v4459_v14 = vmul.f32 %v7422_v59, %v9602_v8  ;;  %7423 = vrcp.f32 %v4442_v24 }
0x111e   : > { %6589 = vmatmul.msk.bf16.gmra.mxu1 %vm987_vm1, %v4040_v3  ;;  %7425 = vrcp.f32 %v4439_v1  ;;  %v9738_v3 = vpop.f32.mrf.mxu1 }
0x111f   : > { %v4466_v27 = vpack.c.bf16 %v4460_v19, %v4459_v14  ;;  %7427 = vrcp.f32 %v9708_v28 }
0x1123   : > { %v7424_v34 = vpop.eup %7423 }
0x1124   : > { %v7426_v9 = vpop.eup %7425  ;;  %v4462_v56 = vmul.f32 %v7424_v34, %v9658_v37 }
0x1125   : > { %v4461_v2 = vmul.f32 %v7426_v9, %v9616_v10  ;;  %v7428_v8 = vpop.eup %7427 }
0x1126   : > { %6597 = vmatmul.msk.bf16.gmra.mxu3 %vm987_vm1, %v4250_v43  ;;  %v4673_v61 = vmul.f32 %v7428_v8, %v9587_v52  ;;  %v4662_v43 = vpop.xlane.xlu0 %4661  ;;  %v9746_v35 = vpop.f32.mrf.mxu1 }
0x1127   : > { %v4467_v33 = vpack.c.bf16 %v4462_v56, %v4461_v2 }
0x112a   : > { %v4470_v58 = vpop.permute.xlu1 %4469 }
0x112b   : > { %4500 = vmatpush.bf16.msra.mxu1 %v4470_v58 }
0x112e   : > { %6602 = vmatmul.msk.bf16.vlgmr.msra.gmra.mxu1 %vm987_vm1, %v4465_v12 }
0x1136   : > { %6610 = vmatmul.msk.bf16.vlgmr.msrb.gmra.mxu3 %vm987_vm1, %v4679_v57 }
0x113e   : > { %6603 = vmatmul.msk.bf16.gmra.mxu1 %vm987_vm1, %v4466_v27 }
0x114e   : > { %6604 = vmatmul.msk.bf16.gmra.mxu1 %vm987_vm1, %v4467_v33 }
0x1155   : > { %v4650_v36 = vpop.xlane.xlu1 %4649 }
0x1156   : > { %7429 = vrcp.f32 %v4650_v36 }
0x1157   : > { %7431 = vrcp.f32 %v4656_v39 }
0x1158   : > { %7433 = vrcp.f32 %v4653_v21 }
0x1159   : > { %7435 = vrcp.f32 %v4445_v45 }
0x115c   : > { %v7430_v50 = vpop.eup %7429 }
0x115d   : > { %v4674_v20 = vmul.f32 %v7430_v50, %v9684_v6  ;;  %v4659_v31 = vpop.xlane.xlu1 %4658  ;;  %v7432_v37 = vpop.eup %7431 }
0x115e   : > { %v7434_v28 = vpop.eup %7433  ;;  %v4676_v1 = vmul.f32 %v7432_v37, %v9646_v23  ;;  %v6922_v37 = vld [vmem:[%s10289_s14 + $0x38] sm:$0xff] }
0x115f   : > { %v4680_v63 = vpack.c.bf16 %v4674_v20, %v4673_v61  ;;  %v7436_v48 = vpop.eup %7435  ;;  %v4675_v6 = vmul.f32 %v7434_v28, %v9630_v62  ;;  %4914 = vmatpush.bf16.msra.mxu0 %v6922_v37 }
0x1160   : > { %v4463_v4 = vmul.f32 %v7436_v48, %v9644_v26 }
0x1161   : > { %6611 = vmatmul.msk.bf16.gmra.mxu3 %vm987_vm1, %v4680_v63  ;;  %v4681_v13 = vpack.c.bf16 %v4676_v1, %v4675_v6 }
0x1165   : > { %v4448_v10 = vpop.xlane.xlu1 %4447 }
0x1166   : > { %7437 = vrcp.f32 %v4448_v10 }
0x1167   : > { %7439 = vrcp.f32 %v4659_v31 }
0x1168   : > { %7441 = vrcp.f32 %v4662_v43  ;;  %v6920_v43 = vld [vmem:[%s10289_s14 + $0x28] sm:$0xff] }
0x116c   : > { %v7438_v52 = vpop.eup %7437 }
0x116d   : > { %v4464_v5 = vmul.f32 %v7438_v52, %v9695_v55  ;;  %v7440_v25 = vpop.eup %7439 }
0x116e   : > { %v7442_v40 = vpop.eup %7441  ;;  %v4677_v62 = vmul.f32 %v7440_v25, %v9690_v46  ;;  %v6919_v25 = vld [vmem:[%s10289_s14 + $0x20] sm:$0xff] }
0x116f   : > { %v4468_v60 = vpack.c.bf16 %v4464_v5, %v4463_v4  ;;  %v4678_v26 = vmul.f32 %v7442_v40, %v9662_v30  ;;  %v6921_v4 = vld [vmem:[%s10289_s14 + $0x30] sm:$0xff] }
0x1170   : > { %4915 = vmatpush.bf16.msra.mxu0 %v6921_v4 }
0x1171   : > { %6605 = vmatmul.msk.bf16.gmra.mxu1 %vm987_vm1, %v4468_v60  ;;  %6612 = vmatmul.msk.bf16.gmra.mxu3 %vm987_vm1, %v4681_v13  ;;  %v4682_v55 = vpack.c.bf16 %v4678_v26, %v4677_v62 }
0x1174   : > { %4916 = vmatpush.bf16.msra.mxu0 %v6920_v43 }
0x1178   : > { %4917 = vmatpush.bf16.msra.mxu0 %v6919_v25 }
0x1179   : > { %v4288_v23 = vpop.f32.mrf.mxu3 }
0x117b   : > { %v9749_v21 = vpop.f32.mrf.mxu1 }
0x1181   : > { %v4290_v51 = vpop.f32.mrf.mxu3  ;;  %6613 = vmatmul.msk.bf16.gmra.mxu3 %vm987_vm1, %v4682_v55 }
0x1182   : > { %v7031_v58 = vpack.i.bf16 %v4290_v51, %v4288_v23 }
0x1183   : > { %v9753_v12 = vpop.f32.mrf.mxu1 }
0x1184   : > { %7032 = vrot.lane.b32.xlu0 %v7031_v58, %s7520_s4 }
0x1189   : > { %v4293_v7 = vpop.f32.mrf.mxu3 }
0x118b   : > { %v9756_v0 = vpop.f32.mrf.mxu1 }
0x1191   : > { %v4295_v16 = vpop.f32.mrf.mxu3 }
0x1192   : > { %v7046_v54 = vpack.i.bf16 %v4295_v16, %v4293_v7 }
0x1193   : > { %v9758_v18 = vpop.f32.mrf.mxu1 }
0x1194   : > { %7047 = vrot.lane.b32.xlu0 %v7046_v54, %s7520_s4 }
0x1199   : > { %v4298_v46 = vpop.f32.mrf.mxu3 }
0x119b   : > { %v9761_v30 = vpop.f32.mrf.mxu1 }
0x11a1   : > { %v4300_v39 = vpop.f32.mrf.mxu3 }
0x11a2   : > { %v7061_v36 = vpack.i.bf16 %v4300_v39, %v4298_v46 }
0x11a3   : > { %v9763_v57 = vpop.f32.mrf.mxu1 }
0x11a9   : > { %v4303_v11 = vpop.f32.mrf.mxu3 }
0x11ab   : > { %v4502_v59 = vpop.f32.mrf.mxu1 }
0x11b1   : > { %v4305_v19 = vpop.f32.mrf.mxu3 }
0x11b2   : > { %v7076_v50 = vpack.i.bf16 %v4305_v19, %v4303_v11 }
0x11b3   : > { %v4504_v14 = vpop.f32.mrf.mxu1 }
0x11b4   : > { %v7036_v24 = vpack.i.bf16 %v4504_v14, %v4502_v59 }
0x11b6   : > { %7037 = vrot.lane.b32.xlu2 %v7036_v24, %s10335_s1 }
0x11b9   : > { %v4716_v27 = vpop.f32.mrf.mxu3 }
0x11bb   : > { %v4507_v34 = vpop.f32.mrf.mxu1 }
0x11c1   : > { %v4718_v9 = vpop.f32.mrf.mxu3 }
0x11c2   : > { %v7041_v56 = vpack.i.bf16 %v4718_v9, %v4716_v27 }
0x11c3   : > { %v4509_v2 = vpop.f32.mrf.mxu1 }
0x11c4   : > { %v7051_v33 = vpack.i.bf16 %v4509_v2, %v4507_v34  ;;  %7042 = vrot.lane.b32.xlu1 %v7041_v56, %s7517_s3 }
0x11c6   : > { %7052 = vrot.lane.b32.xlu2 %v7051_v33, %s10335_s1 }
0x11cb   : > { %v4512_v8 = vpop.f32.mrf.mxu1 }
0x11cc   : > { %7062 = vrot.lane.b32.xlu1 %v7061_v36, %s7520_s4 }
0x11d3   : > { %v4514_v61 = vpop.f32.mrf.mxu1 }
0x11d4   : > { %v7066_v20 = vpack.i.bf16 %v4514_v61, %v4512_v8  ;;  %7077 = vrot.lane.b32.xlu1 %v7076_v50, %s7520_s4 }
0x11d6   : > { %7067 = vrot.lane.b32.xlu2 %v7066_v20, %s10335_s1 }
0x11e4   : > { %v4721_v31 = vpop.f32.mrf.mxu3 }
0x11ec   : > { %v4723_v63 = vpop.f32.mrf.mxu3 }
0x11ed   : > { %v7056_v45 = vpack.i.bf16 %v4723_v63, %v4721_v31 }
0x11ee   : > { %v4517_v10 = vpop.f32.mrf.mxu1 }
0x11ef   : > { %7057 = vrot.lane.b32.xlu0 %v7056_v45, %s7517_s3 }
0x11f4   : > { %v4726_v28 = vpop.f32.mrf.mxu3 }
0x11f6   : > { %v4519_v48 = vpop.f32.mrf.mxu1  ;;  %v7033_v23 = vpop.permute.xlu0 %7032 }
0x11f7   : > { %v7081_v1 = vpack.i.bf16 %v4519_v48, %v4517_v10  ;;  %v7035_v62 = vunpack.i.h.bf16 %v7033_v23  ;;  %v7034_v26 = vunpack.i.l.bf16 %v7033_v23 }
0x11f9   : > { %7082 = vrot.lane.b32.xlu2 %v7081_v1, %s10335_s1  ;;  %v4832_v7 = vsel %vm1051_vm0, %v9738_v3, %v7034_v26  ;;  %v4833_v16 = vsel %vm1051_vm0, %v9746_v35, %v7035_v62 }
0x11fc   : > { %v4728_v52 = vpop.f32.mrf.mxu3 }
0x11fd   : > { %v7071_v6 = vpack.i.bf16 %v4728_v52, %v4726_v28 }
0x11ff   : > { %7072 = vrot.lane.b32.xlu0 %v7071_v6, %s7517_s3 }
0x1204   : > { %v4731_v5 = vpop.f32.mrf.mxu3 }
0x1206   : > { %v7048_v24 = vpop.permute.xlu0 %7047 }
0x1207   : > { %v7050_v34 = vunpack.i.h.bf16 %v7048_v24  ;;  %v7049_v3 = vunpack.i.l.bf16 %v7048_v24 }
0x1209   : > { %v4835_v2 = vsel %vm1051_vm0, %v9753_v12, %v7050_v34  ;;  %v4834_v33 = vsel %vm1051_vm0, %v9749_v21, %v7049_v3 }
0x120c   : > { %v4733_v60 = vpop.f32.mrf.mxu3 }
0x120d   : > { %v7086_v13 = vpack.i.bf16 %v4733_v60, %v4731_v5 }
0x120f   : > { %7087 = vrot.lane.b32.xlu0 %v7086_v13, %s7517_s3 }
0x1210   : > { %v7038_v40 = vpop.permute.xlu2 %7037 }
0x1211   : > { %v7040_v55 = vunpack.i.h.bf16 %v7038_v40  ;;  %v7039_v51 = vunpack.i.l.bf16 %v7038_v40 }
0x1213   : > { %v4841_v39 = vsel %vm2545_vm7, %v4833_v16, %v7040_v55  ;;  %v4840_v11 = vsel %vm2545_vm7, %v4832_v7, %v7039_v51 }
0x1220   : > { %v7053_v27 = vpop.permute.xlu2 %7052 }
0x1221   : > { %v7055_v9 = vunpack.i.h.bf16 %v7053_v27  ;;  %v7054_v56 = vunpack.i.l.bf16 %v7053_v27 }
0x1223   : > { %v4843_v50 = vsel %vm2545_vm7, %v4835_v2, %v7055_v9  ;;  %v4842_v61 = vsel %vm2545_vm7, %v4834_v33, %v7054_v56 }
0x1230   : > { %v7068_v12 = vpop.permute.xlu2 %7067 }
0x1231   : > { %v7070_v48 = vunpack.i.h.bf16 %v7068_v12  ;;  %v7069_v1 = vunpack.i.l.bf16 %v7068_v12 }
0x1236   : > { %v7043_v58 = vpop.permute.xlu1 %7042 }
0x1237   : > { %v7045_v54 = vunpack.i.h.bf16 %v7043_v58  ;;  %v7044_v46 = vunpack.i.l.bf16 %v7043_v58 }
0x1239   : > { %v4848_v59 = vsel %vm2554_vm8, %v4840_v11, %v7044_v46  ;;  %v4849_v19 = vsel %vm2554_vm8, %v4841_v39, %v7045_v54 }
0x123a   : > { %v4856_v14 = vpack.c.bf16 %v4849_v19, %v4848_v59 }
0x123c   : > { %6639 = vmatmul.msk.bf16.vlgmr.msra.gmra.mxu0 %vm987_vm1, %v4856_v14 }
0x123e   : > { %v7063_v45 = vpop.permute.xlu1 %7062 }
0x123f   : > { %v7065_v10 = vunpack.i.h.bf16 %v7063_v45  ;;  %v7064_v37 = vunpack.i.l.bf16 %v7063_v45 }
0x1241   : > { %v4837_v21 = vsel %vm1051_vm0, %v9758_v18, %v7065_v10  ;;  %v4836_v28 = vsel %vm1051_vm0, %v9756_v0, %v7064_v37 }
0x1242   : > { %v4844_v5 = vsel %vm2545_vm7, %v4836_v28, %v7069_v1  ;;  %v4845_v60 = vsel %vm2545_vm7, %v4837_v21, %v7070_v48 }
0x1246   : > { %v7078_v18 = vpop.permute.xlu1 %7077 }
0x1247   : > { %v7080_v40 = vunpack.i.h.bf16 %v7078_v18  ;;  %v7079_v0 = vunpack.i.l.bf16 %v7078_v18 }
0x1249   : > { %v4838_v51 = vsel %vm1051_vm0, %v9761_v30, %v7079_v0  ;;  %v4839_v58 = vsel %vm1051_vm0, %v9763_v57, %v7080_v40  ;;  %v7094_v30 = vld [vmem:[%s10290_s15 + $0x1] ss:$0 sm:$0xff]  ;;  %v4939_v57 = vperm.slane %v9004_v49, 0 }
0x1253   : > { %v7083_v23 = vpop.permute.xlu2 %7082 }
0x1254   : > { %v7085_v62 = vunpack.i.h.bf16 %v7083_v23  ;;  %v7084_v26 = vunpack.i.l.bf16 %v7083_v23 }
0x1256   : > { %v4847_v54 = vsel %vm2545_vm7, %v4839_v58, %v7085_v62  ;;  %v4846_v46 = vsel %vm2545_vm7, %v4838_v51, %v7084_v26 }
0x1261   : > { %v7058_v35 = vpop.permute.xlu0 %7057 }
0x1262   : > { %v7060_v36 = vunpack.i.h.bf16 %v7058_v35  ;;  %v7059_v8 = vunpack.i.l.bf16 %v7058_v35 }
0x1264   : > { %v4850_v20 = vsel %vm2554_vm8, %v4842_v61, %v7059_v8  ;;  %v4851_v31 = vsel %vm2554_vm8, %v4843_v50, %v7060_v36 }
0x1265   : > { %v4857_v63 = vpack.c.bf16 %v4851_v31, %v4850_v20 }
0x1267   : > { %6640 = vmatmul.msk.bf16.gmra.mxu0 %vm987_vm1, %v4857_v63 }
0x1271   : > { %v7073_v52 = vpop.permute.xlu0 %7072 }
0x1272   : > { %v7075_v6 = vunpack.i.h.bf16 %v7073_v52  ;;  %v7074_v4 = vunpack.i.l.bf16 %v7073_v52 }
0x1274   : > { %v4852_v13 = vsel %vm2554_vm8, %v4844_v5, %v7074_v4  ;;  %v4853_v43 = vsel %vm2554_vm8, %v4845_v60, %v7075_v6 }
0x1275   : > { %v4858_v25 = vpack.c.bf16 %v4853_v43, %v4852_v13 }
0x1277   : > { %6641 = vmatmul.msk.bf16.gmra.mxu0 %vm987_vm1, %v4858_v25 }
0x1281   : > { %v7088_v55 = vpop.permute.xlu0 %7087 }
0x1282   : > { %v7090_v7 = vunpack.i.h.bf16 %v7088_v55  ;;  %v7089_v16 = vunpack.i.l.bf16 %v7088_v55 }
0x1284   : > { %v4854_v39 = vsel %vm2554_vm8, %v4846_v46, %v7089_v16  ;;  %v4855_v11 = vsel %vm2554_vm8, %v4847_v54, %v7090_v7 }
0x1285   : > { %v4859_v59 = vpack.c.bf16 %v4855_v11, %v4854_v39 }
0x1287   : > { %6642 = vmatmul.msk.bf16.gmra.mxu0 %vm987_vm1, %v4859_v59 }
0x12b9   : > { %v4919_v19 = vpop.f32.mrf.mxu0 }
0x12ba   : > { %v4920_v14 = vadd.f32 %v7094_v30, %v4919_v19 }
0x12bc   : > { %v4940_v24 = vmul.f32 %v4939_v57, %v4920_v14 }
0x12be   : > { %v9828_v27 = vadd.f32 %v4940_v24, %v9028_v29 }
0x12c0   : > { %v4956_v34 = vsel %vm987_vm1, %v9828_v27, 0.0 }
0x12c1   : > { %v4921_v3 = vpop.f32.mrf.mxu0  ;;  %4957 = vadd.xlane.f32.xlu1 %v4956_v34 }
0x12c2   : > { %v4922_v9 = vadd.f32 %v7094_v30, %v4921_v3 }
0x12c4   : > { %v4941_v56 = vmul.f32 %v4939_v57, %v4922_v9 }
0x12c6   : > { %v9833_v35 = vadd.f32 %v4941_v56, %v9034_v47 }
0x12c8   : > { %v4959_v2 = vsel %vm987_vm1, %v9833_v35, 0.0 }
0x12c9   : > { %4960 = vadd.xlane.f32.xlu2 %v4959_v2 }
0x12e4   : > { %v4924_v49 = vpop.f32.mrf.mxu0 }
0x12e5   : > { %v4925_v33 = vadd.f32 %v7094_v30, %v4924_v49 }
0x12e7   : > { %v4942_v36 = vmul.f32 %v4939_v57, %v4925_v33 }
0x12e9   : > { %v9838_v29 = vadd.f32 %v4942_v36, %v9050_v44 }
0x12eb   : > { %v4962_v8 = vsel %vm987_vm1, %v9838_v29, 0.0 }
0x12ec   : > { %v4926_v50 = vpop.f32.mrf.mxu0  ;;  %4963 = vadd.xlane.f32.xlu0 %v4962_v8 }
0x12ed   : > { %v4927_v61 = vadd.f32 %v7094_v30, %v4926_v50 }
0x12ef   : > { %v4943_v20 = vmul.f32 %v4939_v57, %v4927_v61 }
0x12f1   : > { %v9843_v47 = vadd.f32 %v4943_v20, %v9040_v22  ;;  %v6678_v20 = vld [vmem:[%s10291_s16 + $0x70] sm:$0xf] }
0x12f3   : > { %v4965_v31 = vsel %vm987_vm1, %v9843_v47, 0.0 }
0x12f4   : > { %v4929_v63 = vpop.f32.mrf.mxu0  ;;  %4966 = vadd.xlane.f32.xlu1 %v4965_v31  ;;  %v6930_v31 = vld [vmem:[%s10291_s16 + $0x74] sm:$0xf0] }
0x12f5   : > { %v4930_v45 = vadd.f32 %v7094_v30, %v4929_v63  ;;  %v6929_v63 = vld [vmem:[%s10291_s16 + $0x74] sm:$0xf] }
0x12f7   : > { %v4944_v10 = vmul.f32 %v4939_v57, %v4930_v45  ;;  %v6679_v45 = vor.u32 %v6930_v31, %v6678_v20  ;;  %v5132_v31 = vadd.f32 1.0, %v9011_v38 }
0x12f9   : > { %v9848_v44 = vadd.f32 %v4944_v10, %v9043_v53  ;;  %v6680_v10 = vld [vmem:[%s10291_s16 + $0x78] sm:$0xf0]  ;;  %5230 = vmatpush.bf16.msrb.mxu1 %v6679_v45 }
0x12fb   : > { %v4968_v37 = vsel %vm987_vm1, %v9848_v44, 0.0 }
0x12fc   : > { %v4931_v12 = vpop.f32.mrf.mxu0  ;;  %4969 = vadd.xlane.f32.xlu2 %v4968_v37  ;;  %v6683_v37 = vor.u32 %v6929_v63, %v6680_v10 }
0x12fd   : > { %v4932_v21 = vadd.f32 %v7094_v30, %v4931_v12  ;;  %v6670_v12 = vld [vmem:[%s10291_s16 + $0x60] sm:$0xf] }
0x12fe   : > { %5259 = vmatpush.bf16.msra.mxu2 %v6683_v37  ;;  %v9976_v37 = vperm.slane %v5132_v31, 0 }
0x12ff   : > { %v4945_v28 = vmul.f32 %v4939_v57, %v4932_v21  ;;  %v6928_v21 = vld [vmem:[%s10291_s16 + $0x64] sm:$0xf0] }
0x1301   : > { %v9853_v22 = vadd.f32 %v4945_v28, %v9055_v17  ;;  %v6927_v28 = vld [vmem:[%s10291_s16 + $0x64] sm:$0xf] }
0x1303   : > { %v4971_v48 = vsel %vm987_vm1, %v9853_v22, 0.0 }
0x1304   : > { %v4934_v1 = vpop.f32.mrf.mxu0  ;;  %4972 = vadd.xlane.f32.xlu0 %v4971_v48  ;;  %v6671_v48 = vor.u32 %v6928_v21, %v6670_v12 }
0x1305   : > { %v4935_v52 = vadd.f32 %v7094_v30, %v4934_v1  ;;  %v6672_v1 = vld [vmem:[%s10291_s16 + $0x68] sm:$0xf0] }
0x1306   : > { %5231 = vmatpush.bf16.msrb.mxu1 %v6671_v48 }
0x1307   : > { %v4946_v6 = vmul.f32 %v4939_v57, %v4935_v52  ;;  %v6675_v52 = vor.u32 %v6927_v28, %v6672_v1 }
0x1309   : > { %v9858_v53 = vadd.f32 %v4946_v6, %v9067_v42  ;;  %5260 = vmatpush.bf16.msra.mxu2 %v6675_v52  ;;  %v6662_v6 = vld [vmem:[%s10291_s16 + $0x50] sm:$0xf] }
0x130b   : > { %v4974_v4 = vsel %vm987_vm1, %v9858_v53, 0.0 }
0x130c   : > { %4975 = vadd.xlane.f32.xlu0 %v4974_v4  ;;  %v4936_v5 = vpop.f32.mrf.mxu0  ;;  %v6926_v4 = vld [vmem:[%s10291_s16 + $0x54] sm:$0xf0] }
0x130d   : > { %v4937_v17 = vadd.f32 %v7094_v30, %v4936_v5  ;;  %v6925_v5 = vld [vmem:[%s10291_s16 + $0x54] sm:$0xf] }
0x130f   : > { %v4947_v18 = vmul.f32 %v4939_v57, %v4937_v17 }
0x1311   : > { %v9871_v0 = vadd.f32 %v4947_v18, %v9076_v15 }
0x1313   : > { %v4977_v51 = vsel %vm987_vm1, %v9871_v0, 0.0 }
0x1334   : > { %v4958_v60 = vpop.xlane.xlu1 %4957 }
0x1335   : > { %v4980_v13 = vmul.f32 %v4958_v60, %v7810_v41  ;;  %v6663_v60 = vor.u32 %v6926_v4, %v6662_v6 }
0x1337   : > { %v9864_v43 = vsub.f32 %v9828_v27, %v4980_v13  ;;  %v6664_v13 = vld [vmem:[%s10291_s16 + $0x58] sm:$0xf0]  ;;  %5232 = vmatpush.bf16.msrb.mxu1 %v6663_v60 }
0x1339   : > { %v4996_v25 = vmul.f32 %v9864_v43, %v9864_v43 }
0x133b   : > { %v5004_v23 = vsel %vm987_vm1, %v4996_v25, 0.0  ;;  %v6667_v25 = vor.u32 %v6925_v5, %v6664_v13 }
0x133c   : > { %v4961_v42 = vpop.xlane.xlu2 %4960  ;;  %5005 = vadd.xlane.f32.xlu1 %v5004_v23  ;;  %v6654_v23 = vld [vmem:[%s10291_s16 + $0x40] sm:$0xf] }
0x133d   : > { %v4981_v40 = vmul.f32 %v4961_v42, %v7810_v41  ;;  %v6924_v42 = vld [vmem:[%s10291_s16 + $0x44] sm:$0xf0]  ;;  %5261 = vmatpush.bf16.msra.mxu2 %v6667_v25 }
0x133f   : > { %v9874_v62 = vsub.f32 %v9833_v35, %v4981_v40  ;;  %v6923_v40 = vld [vmem:[%s10291_s16 + $0x44] sm:$0xf] }
0x1341   : > { %v4997_v26 = vmul.f32 %v9874_v62, %v9874_v62 }
0x1343   : > { %v5007_v55 = vsel %vm987_vm1, %v4997_v26, 0.0  ;;  %v6655_v26 = vor.u32 %v6924_v42, %v6654_v23 }
0x1344   : > { %5008 = vadd.xlane.f32.xlu2 %v5007_v55  ;;  %4978 = vadd.xlane.f32.xlu1 %v4977_v51  ;;  %v6656_v55 = vld [vmem:[%s10291_s16 + $0x48] sm:$0xf0] }
0x1345   : > { %5233 = vmatpush.bf16.msrb.mxu1 %v6655_v26 }
0x135d   : > { %5143 = vrot.lane.b32.xlu1 %v4939_v57, %s7516_s7 }
0x135f   : > { %v4964_v58 = vpop.xlane.xlu0 %4963 }
0x1360   : > { %v4982_v7 = vmul.f32 %v4964_v58, %v7810_v41  ;;  %v6659_v58 = vor.u32 %v6923_v40, %v6656_v55 }
0x1362   : > { %v9884_v15 = vsub.f32 %v9838_v29, %v4982_v7  ;;  %5262 = vmatpush.bf16.msra.mxu2 %v6659_v58 }
0x1364   : > { %v4998_v16 = vmul.f32 %v9884_v15, %v9884_v15 }
0x1366   : > { %v5010_v54 = vsel %vm987_vm1, %v4998_v16, 0.0 }
0x1367   : > { %5011 = vadd.xlane.f32.xlu2 %v5010_v54  ;;  %v4967_v46 = vpop.xlane.xlu1 %4966 }
0x1368   : > { %v4983_v39 = vmul.f32 %v4967_v46, %v7810_v41 }
0x136a   : > { %v9891_v11 = vsub.f32 %v9843_v47, %v4983_v39 }
0x136c   : > { %v4999_v59 = vmul.f32 %v9891_v11, %v9891_v11 }
0x136e   : > { %v5013_v30 = vsel %vm987_vm1, %v4999_v59, 0.0 }
0x136f   : > { %v4970_v19 = vpop.xlane.xlu2 %4969  ;;  %5014 = vadd.xlane.f32.xlu0 %v5013_v30 }
0x1370   : > { %v4984_v57 = vmul.f32 %v4970_v19, %v7810_v41 }
0x1372   : > { %v9898_v14 = vsub.f32 %v9848_v44, %v4984_v57 }
0x1374   : > { %v5000_v24 = vmul.f32 %v9898_v14, %v9898_v14 }
0x1376   : > { %v5016_v34 = vsel %vm987_vm1, %v5000_v24, 0.0 }
0x1377   : > { %v4973_v3 = vpop.xlane.xlu0 %4972  ;;  %5017 = vadd.xlane.f32.xlu2 %v5016_v34 }
0x1378   : > { %v4985_v9 = vmul.f32 %v4973_v3, %v7810_v41 }
0x137a   : > { %v9905_v56 = vsub.f32 %v9853_v22, %v4985_v9 }
0x137c   : > { %v5001_v2 = vmul.f32 %v9905_v56, %v9905_v56 }
0x137e   : > { %v5019_v49 = vsel %vm987_vm1, %v5001_v2, 0.0 }
0x137f   : > { %v4976_v33 = vpop.xlane.xlu0 %4975  ;;  %5020 = vadd.xlane.f32.xlu0 %v5019_v49 }
0x1380   : > { %v4986_v36 = vmul.f32 %v4976_v33, %v7810_v41 }
0x1382   : > { %v9912_v8 = vsub.f32 %v9858_v53, %v4986_v36 }
0x1384   : > { %v5002_v50 = vmul.f32 %v9912_v8, %v9912_v8 }
0x1386   : > { %v5022_v61 = vsel %vm987_vm1, %v5002_v50, 0.0 }
0x1387   : > { %5023 = vadd.xlane.f32.xlu2 %v5022_v61 }
0x13af   : > { %v5006_v17 = vpop.xlane.xlu1 %5005 }
0x13b0   : > { %v5028_v18 = vmul.f32 %v5006_v17, %v7810_v41 }
0x13b2   : > { %v5036_v51 = vadd.f32 1e-06, %v5028_v18 }
0x13b4   : > { %7443 = vrsqrt.f32 %v5036_v51  ;;  %vm5050_vm8 = vweird.f32 %v5036_v51 }
0x13b7   : > { %v5009_v7 = vpop.xlane.xlu2 %5008  ;;  %v4979_v16 = vpop.xlane.xlu1 %4978 }
0x13b8   : > { %v5029_v54 = vmul.f32 %v5009_v7, %v7810_v41  ;;  %v4987_v46 = vmul.f32 %v4979_v16, %v7810_v41 }
0x13ba   : > { %v7444_v39 = vpop.eup %7443  ;;  %v5037_v59 = vadd.f32 1e-06, %v5029_v54  ;;  %v9969_v30 = vsub.f32 %v9871_v0, %v4987_v46 }
0x13bb   : > { %v5045_v19 = vmul.f32 %v7444_v39, %v5036_v51  ;;  %vm5051_vm0 = vweird.f32 %v7444_v39 }
0x13bc   : > { %7445 = vrsqrt.f32 %v5037_v59  ;;  %v5003_v57 = vmul.f32 %v9969_v30, %v9969_v30  ;;  %vm5052_vm9 = vmor %vm5050_vm8, %vm5051_vm0  ;;  %vm5060_vm11 = vweird.f32 %v5037_v59 }
0x13bd   : > { %v5046_v24 = vmul.f32 %v7444_v39, %v5045_v19 }
0x13be   : > { %v5025_v34 = vsel %vm987_vm1, %v5003_v57, 0.0 }
0x13bf   : > { %v5047_v3 = vmul.f32 0.5, %v5046_v24  ;;  %5026 = vadd.xlane.f32.xlu0 %v5025_v34 }
0x13c1   : > { %v5048_v9 = vsub.f32 1.5, %v5047_v3 }
0x13c2   : > { %v7446_v2 = vpop.eup %7445 }
0x13c3   : > { %v5055_v49 = vmul.f32 %v7446_v2, %v5037_v59  ;;  %v5049_v33 = vmul.f32 %v7444_v39, %v5048_v9  ;;  %vm5061_vm10 = vweird.f32 %v7446_v2 }
0x13c4   : > { %vm5062_vm12 = vmor %vm5060_vm11, %vm5061_vm10 }
0x13c5   : > { %v5056_v36 = vmul.f32 %v7446_v2, %v5055_v49  ;;  %v5053_v61 = vsel %vm5052_vm9, %v7444_v39, %v5049_v33 }
0x13c6   : > { %v5124_v45 = vmul.f32 %v5053_v61, %v9864_v43 }
0x13c7   : > { %v5057_v50 = vmul.f32 0.5, %v5056_v36 }
0x13c8   : > { %v5134_v28 = vmul.f32 %v9976_v37, %v5124_v45 }
0x13c9   : > { %v5058_v20 = vsub.f32 1.5, %v5057_v50 }
0x13cb   : > { %v5059_v63 = vmul.f32 %v7446_v2, %v5058_v20 }
0x13cd   : > { %v5063_v10 = vsel %vm5062_vm12, %v7446_v2, %v5059_v63 }
0x13ce   : > { %v5125_v12 = vmul.f32 %v5063_v10, %v9874_v62 }
0x13cf   : > { %v9979_v21 = vpop.permute.xlu1 %5143 }
0x13d0   : > { %v5135_v48 = vmul.f32 %v9976_v37, %v5125_v12  ;;  %v5146_v1 = vadd.f32 %v9979_v21, %v5134_v28 }
0x13d2   : > { %v5147_v52 = vadd.f32 %v9979_v21, %v5135_v48 }
0x13d4   : > { %v5154_v6 = vpack.c.bf16 %v5147_v52, %v5146_v1 }
0x13d6   : > { %6684 = vmatmul.msk.bf16.vlgmr.msrb.gmra.mxu1 %vm987_vm1, %v5154_v6  ;;  %6688 = vmatmul.msk.bf16.vlgmr.msra.gmra.mxu2 %vm987_vm1, %v5154_v6 }
0x13da   : > { %v5012_v43 = vpop.xlane.xlu2 %5011 }
0x13db   : > { %v5030_v4 = vmul.f32 %v5012_v43, %v7810_v41 }
0x13dd   : > { %v5038_v5 = vadd.f32 1e-06, %v5030_v4 }
0x13df   : > { %7447 = vrsqrt.f32 %v5038_v5  ;;  %vm5070_vm14 = vweird.f32 %v5038_v5 }
0x13e2   : > { %v5015_v62 = vpop.xlane.xlu0 %5014 }
0x13e3   : > { %v5031_v60 = vmul.f32 %v5015_v62, %v7810_v41 }
0x13e5   : > { %v7448_v13 = vpop.eup %7447  ;;  %v5039_v17 = vadd.f32 1e-06, %v5031_v60 }
0x13e6   : > { %v5065_v25 = vmul.f32 %v7448_v13, %v5038_v5  ;;  %vm5071_vm13 = vweird.f32 %v7448_v13 }
0x13e7   : > { %7449 = vrsqrt.f32 %v5039_v17  ;;  %vm5072_vm15 = vmor %vm5070_vm14, %vm5071_vm13  ;;  %vm5080_vm3 = vweird.f32 %v5039_v17 }
0x13e8   : > { %v5066_v18 = vmul.f32 %v7448_v13, %v5065_v25 }
0x13ea   : > { %v5067_v23 = vmul.f32 0.5, %v5066_v18  ;;  %v5018_v42 = vpop.xlane.xlu2 %5017 }
0x13eb   : > { %v5032_v40 = vmul.f32 %v5018_v42, %v7810_v41  ;;  %v6950_v42 = vld [vmem:[%s10295_s20 + $0x18] sm:$0xff] }
0x13ec   : > { %v5068_v26 = vsub.f32 1.5, %v5067_v23  ;;  %5746 = vmatpush.bf16.msra.mxu1 %v6950_v42 }
0x13ed   : > { %v7450_v55 = vpop.eup %7449  ;;  %v5040_v51 = vadd.f32 1e-06, %v5032_v40 }
0x13ee   : > { %v5069_v58 = vmul.f32 %v7448_v13, %v5068_v26  ;;  %v5075_v7 = vmul.f32 %v7450_v55, %v5039_v17  ;;  %vm5081_vm2 = vweird.f32 %v7450_v55 }
0x13ef   : > { %7451 = vrsqrt.f32 %v5040_v51  ;;  %vm5082_vm4 = vmor %vm5080_vm3, %vm5081_vm2  ;;  %vm5090_vm6 = vweird.f32 %v5040_v51 }
0x13f0   : > { %v5076_v16 = vmul.f32 %v7450_v55, %v5075_v7  ;;  %v5073_v54 = vsel %vm5072_vm15, %v7448_v13, %v5069_v58  ;;  %v6938_v58 = vld [vmem:[%s10293_s18 + $0xb8] sm:$0xff]  ;;  %v6949_v7 = vld [vmem:[%s10295_s20 + $0x10] sm:$0xff] }
0x13f1   : > { %v5126_v24 = vmul.f32 %v5073_v54, %v9884_v15  ;;  %5570 = vmatpush.bf16.msra.mxu3 %v6938_v58  ;;  %5747 = vmatpush.bf16.msra.mxu1 %v6949_v7  ;;  %v6937_v54 = vld [vmem:[%s10293_s18 + $0xb0] sm:$0xff] }
0x13f2   : > { %v5077_v46 = vmul.f32 0.5, %v5076_v16  ;;  %v5021_v39 = vpop.xlane.xlu0 %5020 }
0x13f3   : > { %v5033_v59 = vmul.f32 %v5021_v39, %v7810_v41  ;;  %v5136_v36 = vmul.f32 %v9976_v37, %v5126_v24  ;;  %v6947_v24 = vld [vmem:[%s10295_s20] sm:$0xff] }
0x13f4   : > { %v5078_v19 = vsub.f32 1.5, %v5077_v46  ;;  %v6948_v46 = vld [vmem:[%s10295_s20 + $0x8] sm:$0xff] }
0x13f5   : > { %v7452_v57 = vpop.eup %7451  ;;  %v5041_v34 = vadd.f32 1e-06, %v5033_v59  ;;  %v5148_v63 = vadd.f32 %v9979_v21, %v5136_v36  ;;  %5571 = vmatpush.bf16.msra.mxu3 %v6937_v54  ;;  %5748 = vmatpush.bf16.msra.mxu1 %v6948_v46  ;;  %v6946_v59 = vld [vmem:[%s10293_s18 + $0xf8] sm:$0xff] }
0x13f6   : > { %v5079_v3 = vmul.f32 %v7450_v55, %v5078_v19  ;;  %v5085_v9 = vmul.f32 %v7452_v57, %v5040_v51  ;;  %vm5091_vm5 = vweird.f32 %v7452_v57  ;;  %5599 = vmatpush.bf16.msrb.mxu0 %v6946_v59 }
0x13f7   : > { %7453 = vrsqrt.f32 %v5041_v34  ;;  %vm5092_vm0 = vmor %vm5090_vm6, %vm5091_vm5  ;;  %vm5100_vm9 = vweird.f32 %v5041_v34 }
0x13f8   : > { %v5083_v2 = vsel %vm5082_vm4, %v7450_v55, %v5079_v3  ;;  %v5086_v49 = vmul.f32 %v7452_v57, %v5085_v9  ;;  %v6945_v9 = vld [vmem:[%s10293_s18 + $0xf0] sm:$0xff] }
0x13f9   : > { %v5127_v33 = vmul.f32 %v5083_v2, %v9891_v11  ;;  %5749 = vmatpush.bf16.msra.mxu1 %v6947_v24 }
0x13fa   : > { %v5087_v50 = vmul.f32 0.5, %v5086_v49  ;;  %5600 = vmatpush.bf16.msrb.mxu0 %v6945_v9  ;;  %v6935_v49 = vld [vmem:[%s10293_s18 + $0xa0] sm:$0xff] }
0x13fb   : > { %v5137_v61 = vmul.f32 %v9976_v37, %v5127_v33 }
0x13fc   : > { %v5088_v20 = vsub.f32 1.5, %v5087_v50  ;;  %v6944_v50 = vld [vmem:[%s10293_s18 + $0xe8] sm:$0xff] }
0x13fd   : > { %v7454_v31 = vpop.eup %7453  ;;  %v5149_v15 = vadd.f32 %v9979_v21, %v5137_v61 }
0x13fe   : > { %v5089_v45 = vmul.f32 %v7452_v57, %v5088_v20  ;;  %v5095_v10 = vmul.f32 %v7454_v31, %v5041_v34  ;;  %vm5101_vm8 = vweird.f32 %v7454_v31  ;;  %5601 = vmatpush.bf16.msrb.mxu0 %v6944_v50 }
0x13ff   : > { %v5155_v12 = vpack.c.bf16 %v5149_v15, %v5148_v63  ;;  %vm5102_vm10 = vmor %vm5100_vm9, %vm5101_vm8  ;;  %v6943_v15 = vld [vmem:[%s10293_s18 + $0xe0] sm:$0xff] }
0x1400   : > { %v5096_v28 = vmul.f32 %v7454_v31, %v5095_v10  ;;  %v5093_v11 = vsel %vm5092_vm0, %v7452_v57, %v5089_v45  ;;  %v6936_v57 = vld [vmem:[%s10293_s18 + $0xa8] sm:$0xff] }
0x1401   : > { %6685 = vmatmul.msk.bf16.gmra.mxu1 %vm987_vm1, %v5155_v12  ;;  %6689 = vmatmul.msk.bf16.gmra.mxu2 %vm987_vm1, %v5155_v12  ;;  %v5128_v52 = vmul.f32 %v5093_v11, %v9898_v14  ;;  %v5024_v14 = vpop.xlane.xlu2 %5023  ;;  %v6942_v11 = vld [vmem:[%s10293_s18 + $0xd8] sm:$0xff] }
0x1402   : > { %v5097_v48 = vmul.f32 0.5, %v5096_v28  ;;  %v5034_v25 = vmul.f32 %v5024_v14, %v7810_v41  ;;  %5572 = vmatpush.bf16.msra.mxu3 %v6936_v57  ;;  %5602 = vmatpush.bf16.msrb.mxu0 %v6943_v15 }
0x1403   : > { %v5138_v5 = vmul.f32 %v9976_v37, %v5128_v52  ;;  %v6932_v52 = vld [vmem:[%s10293_s18 + $0x88] sm:$0xff] }
0x1404   : > { %v5098_v1 = vsub.f32 1.5, %v5097_v48  ;;  %v5042_v18 = vadd.f32 1e-06, %v5034_v25 }
0x1405   : > { %v5150_v60 = vadd.f32 %v9979_v21, %v5138_v5  ;;  %v6940_v5 = vld [vmem:[%s10293_s18 + $0xc8] sm:$0xff] }
0x1406   : > { %v5099_v6 = vmul.f32 %v7454_v31, %v5098_v1  ;;  %7455 = vrsqrt.f32 %v5042_v18  ;;  %vm5110_vm12 = vweird.f32 %v5042_v18  ;;  %5573 = vmatpush.bf16.msra.mxu3 %v6935_v49  ;;  %5603 = vmatpush.bf16.msrb.mxu0 %v6942_v11 }
0x1408   : > { %v5103_v43 = vsel %vm5102_vm10, %v7454_v31, %v5099_v6  ;;  %v6934_v31 = vld [vmem:[%s10293_s18 + $0x98] sm:$0xff] }
0x1409   : > { %v5129_v4 = vmul.f32 %v5103_v43, %v9905_v56 }
0x140a   : > { %5574 = vmatpush.bf16.msra.mxu3 %v6934_v31 }
0x140b   : > { %v5139_v62 = vmul.f32 %v9976_v37, %v5129_v4 }
0x140c   : > { %v7456_v23 = vpop.eup %7455 }
0x140d   : > { %v5151_v13 = vadd.f32 %v9979_v21, %v5139_v62  ;;  %v5105_v56 = vmul.f32 %v7456_v23, %v5042_v18  ;;  %vm5111_vm11 = vweird.f32 %v7456_v23 }
0x140e   : > { %vm5112_vm13 = vmor %vm5110_vm12, %vm5111_vm11 }
0x140f   : > { %v5156_v17 = vpack.c.bf16 %v5151_v13, %v5150_v60  ;;  %v5106_v40 = vmul.f32 %v7456_v23, %v5105_v56 }
0x1411   : > { %6686 = vmatmul.msk.bf16.gmra.mxu1 %vm987_vm1, %v5156_v17  ;;  %6690 = vmatmul.msk.bf16.gmra.mxu2 %vm987_vm1, %v5156_v17  ;;  %v5107_v16 = vmul.f32 0.5, %v5106_v40  ;;  %v6939_v17 = vld [vmem:[%s10293_s18 + $0xc0] sm:$0xff] }
0x1413   : > { %v5108_v39 = vsub.f32 1.5, %v5107_v16 }
0x1415   : > { %v5109_v34 = vmul.f32 %v7456_v23, %v5108_v39 }
0x1417   : > { %v5113_v33 = vsel %vm5112_vm13, %v7456_v23, %v5109_v34 }
0x1418   : > { %v5130_v20 = vmul.f32 %v5113_v33, %v9912_v8  ;;  %v6933_v8 = vld [vmem:[%s10293_s18 + $0x90] sm:$0xff] }
0x1419   : > { %5575 = vmatpush.bf16.msra.mxu3 %v6933_v8 }
0x141a   : > { %v5140_v12 = vmul.f32 %v9976_v37, %v5130_v20 }
0x141c   : > { %v5152_v48 = vadd.f32 %v9979_v21, %v5140_v12 }
0x141d   : > { %5576 = vmatpush.bf16.msra.mxu3 %v6932_v52 }
0x1432   : > { %v5027_v26 = vpop.xlane.xlu0 %5026 }
0x1433   : > { %v5035_v55 = vmul.f32 %v5027_v26, %v7810_v41 }
0x1435   : > { %v5043_v51 = vadd.f32 1e-06, %v5035_v55 }
0x1437   : > { %7457 = vrsqrt.f32 %v5043_v51  ;;  %vm5120_vm15 = vweird.f32 %v5043_v51 }
0x143d   : > { %v7458_v19 = vpop.eup %7457 }
0x143e   : > { %v5115_v3 = vmul.f32 %v7458_v19, %v5043_v51  ;;  %vm5121_vm14 = vweird.f32 %v7458_v19 }
0x143f   : > { %vm5122_vm2 = vmor %vm5120_vm15, %vm5121_vm14 }
0x1440   : > { %v5116_v2 = vmul.f32 %v7458_v19, %v5115_v3 }
0x1442   : > { %v5117_v36 = vmul.f32 0.5, %v5116_v2 }
0x1444   : > { %v5118_v61 = vsub.f32 1.5, %v5117_v36 }
0x1446   : > { %v5119_v63 = vmul.f32 %v7458_v19, %v5118_v61 }
0x1448   : > { %v5123_v45 = vsel %vm5122_vm2, %v7458_v19, %v5119_v63 }
0x1449   : > { %v5131_v10 = vmul.f32 %v5123_v45, %v9969_v30  ;;  %v6651_v30 = vld [vmem:[%s10292_s17 + $0x2] sm:$0x3] }
0x144a   : > { %v10069_v43 = vperm.slane %v6651_v30, 0  ;;  %v10080_v13 = vperm.slane %v6651_v30, 1 }
0x144b   : > { %v5141_v28 = vmul.f32 %v9976_v37, %v5131_v10  ;;  %v6941_v37 = vld [vmem:[%s10293_s18 + $0xd0] sm:$0xff] }
0x144c   : > { %5604 = vmatpush.bf16.msrb.mxu0 %v6941_v37 }
0x144d   : > { %v5153_v1 = vadd.f32 %v9979_v21, %v5141_v28  ;;  %v6931_v21 = vld [vmem:[%s10293_s18 + $0x80] sm:$0xff] }
0x144e   : > { %5577 = vmatpush.bf16.msra.mxu3 %v6931_v21 }
0x144f   : > { %v5157_v6 = vpack.c.bf16 %v5153_v1, %v5152_v48 }
0x1450   : > { %5605 = vmatpush.bf16.msrb.mxu0 %v6940_v5 }
0x1451   : > { %6687 = vmatmul.msk.bf16.gmra.mxu1 %vm987_vm1, %v5157_v6  ;;  %6691 = vmatmul.msk.bf16.gmra.mxu2 %vm987_vm1, %v5157_v6 }
0x1453   : > { %v5235_v4 = vpop.f32.mrf.mxu1 }
0x1454   : > { %v5236_v62 = vadd.f32 %v5235_v4, %v10069_v43  ;;  %5606 = vmatpush.bf16.msrb.mxu0 %v6939_v17 }
0x1456   : > { %v5300_v60 = vmul.f32 0.044715, %v5236_v62 }
0x1458   : > { %v5316_v14 = vmul.f32 %v5300_v60, %v5236_v62 }
0x1459   : > { %v5264_v25 = vpop.f32.mrf.mxu2 }
0x145a   : > { %v5332_v18 = vmul.f32 %v5316_v14, %v5236_v62  ;;  %v5265_v23 = vadd.f32 %v5264_v25, %v10080_v13 }
0x145b   : > { %v5237_v56 = vpop.f32.mrf.mxu1 }
0x145c   : > { %v5348_v42 = vadd.f32 %v5332_v18, %v5236_v62  ;;  %v5301_v40 = vmul.f32 0.044715, %v5265_v23  ;;  %v5238_v26 = vadd.f32 %v5237_v56, %v10069_v43  ;;  %v5285_v8 = vmul.f32 0.5, %v5265_v23 }
0x145e   : > { %v5317_v55 = vmul.f32 %v5301_v40, %v5265_v23  ;;  %v5302_v51 = vmul.f32 0.044715, %v5238_v26  ;;  %v5364_v58 = vmul.f32 0.7978846, %v5348_v42  ;;  %v5286_v61 = vmul.f32 0.5, %v5238_v26 }
0x1460   : > { %v5333_v7 = vmul.f32 %v5317_v55, %v5265_v23  ;;  %v5318_v16 = vmul.f32 %v5302_v51, %v5238_v26  ;;  %7459 = vtanh.f32 %v5364_v58 }
0x1461   : > { %v5266_v54 = vpop.f32.mrf.mxu2  ;;  %6805 = vmatmul.msk.bf16.vlgmr.msra.gmra.mxu1 %vm987_vm1, %v7948_v32  ;;  %v5284_v32 = vmul.f32 0.5, %v5236_v62 }
0x1462   : > { %v5349_v46 = vadd.f32 %v5333_v7, %v5265_v23  ;;  %v5334_v39 = vmul.f32 %v5318_v16, %v5238_v26  ;;  %v5267_v59 = vadd.f32 %v5266_v54, %v10080_v13 }
0x1464   : > { %v5350_v19 = vadd.f32 %v5334_v39, %v5238_v26  ;;  %v5303_v57 = vmul.f32 0.044715, %v5267_v59  ;;  %v5365_v24 = vmul.f32 0.7978846, %v5349_v46  ;;  %v5287_v28 = vmul.f32 0.5, %v5267_v59 }
0x1466   : > { %v5366_v34 = vmul.f32 0.7978846, %v5350_v19  ;;  %v5319_v3 = vmul.f32 %v5303_v57, %v5267_v59  ;;  %v7460_v2 = vpop.eup %7459 }
0x1467   : > { %v5396_v36 = vadd.f32 1.0, %v7460_v2 }
0x1468   : > { %7461 = vtanh.f32 %v5366_v34  ;;  %v5335_v9 = vmul.f32 %v5319_v3, %v5267_v59 }
0x1469   : > { %7463 = vtanh.f32 %v5365_v24  ;;  %v5412_v63 = vmul.f32 %v5396_v36, %v5284_v32 }
0x146a   : > { %v5351_v49 = vadd.f32 %v5335_v9, %v5267_v59 }
0x146c   : > { %v5367_v33 = vmul.f32 0.7978846, %v5351_v49 }
0x146e   : > { %v7462_v50 = vpop.eup %7461  ;;  %7465 = vtanh.f32 %v5367_v33 }
0x146f   : > { %v5398_v20 = vadd.f32 1.0, %v7462_v50  ;;  %v7464_v31 = vpop.eup %7463 }
0x1470   : > { %v5397_v45 = vadd.f32 1.0, %v7464_v31 }
0x1471   : > { %v5414_v15 = vmul.f32 %v5398_v20, %v5286_v61 }
0x1472   : > { %v5413_v48 = vmul.f32 %v5397_v45, %v5285_v8 }
0x1473   : > { %v5428_v10 = vpack.c.bf16 %v5414_v15, %v5412_v63 }
0x1474   : > { %v7466_v12 = vpop.eup %7465 }
0x1475   : > { %v5399_v11 = vadd.f32 1.0, %v7466_v12  ;;  %5578 = vmatmul.bf16.vlgmr.msra.gmra.mxu3 %v5428_v10 }
0x1477   : > { %v5415_v1 = vmul.f32 %v5399_v11, %v5287_v28 }
0x1479   : > { %v5429_v30 = vpack.c.bf16 %v5415_v1, %v5413_v48 }
0x147b   : > { %5607 = vmatmul.bf16.vlgmr.msrb.gmra.mxu0 %v5429_v30 }
0x147e   : > { %v5240_v52 = vpop.f32.mrf.mxu1 }
0x147f   : > { %v5241_v6 = vadd.f32 %v5240_v52, %v10069_v43 }
0x1481   : > { %v5304_v37 = vmul.f32 0.044715, %v5241_v6  ;;  %v5288_v10 = vmul.f32 0.5, %v5241_v6 }
0x1483   : > { %v5320_v21 = vmul.f32 %v5304_v37, %v5241_v6 }
0x1484   : > { %v5269_v4 = vpop.f32.mrf.mxu2 }
0x1485   : > { %v5270_v5 = vadd.f32 %v5269_v4, %v10080_v13  ;;  %v5336_v62 = vmul.f32 %v5320_v21, %v5241_v6 }
0x1486   : > { %v5242_v60 = vpop.f32.mrf.mxu1 }
0x1487   : > { %v5305_v17 = vmul.f32 0.044715, %v5270_v5  ;;  %v5243_v14 = vadd.f32 %v5242_v60, %v10069_v43  ;;  %v5352_v25 = vadd.f32 %v5336_v62, %v5241_v6  ;;  %v5289_v6 = vmul.f32 0.5, %v5270_v5 }
0x1489   : > { %v5321_v18 = vmul.f32 %v5305_v17, %v5270_v5  ;;  %v5306_v23 = vmul.f32 0.044715, %v5243_v14  ;;  %v5368_v42 = vmul.f32 0.7978846, %v5352_v25  ;;  %v5290_v12 = vmul.f32 0.5, %v5243_v14 }
0x148b   : > { %v5322_v56 = vmul.f32 %v5306_v23, %v5243_v14  ;;  %v5337_v40 = vmul.f32 %v5321_v18, %v5270_v5  ;;  %7467 = vtanh.f32 %v5368_v42 }
0x148c   : > { %v5271_v26 = vpop.f32.mrf.mxu2 }
0x148d   : > { %v5272_v55 = vadd.f32 %v5271_v26, %v10080_v13  ;;  %v5338_v51 = vmul.f32 %v5322_v56, %v5243_v14  ;;  %v5353_v58 = vadd.f32 %v5337_v40, %v5270_v5 }
0x148e   : > { %v5245_v7 = vpop.f32.mrf.mxu1 }
0x148f   : > { %v5307_v16 = vmul.f32 0.044715, %v5272_v55  ;;  %v10095_v54 = vadd.f32 %v5245_v7, %v10069_v43  ;;  %v5354_v46 = vadd.f32 %v5338_v51, %v5243_v14  ;;  %v5369_v57 = vmul.f32 0.7978846, %v5353_v58 }
0x1490   : > { %v5291_v14 = vmul.f32 0.5, %v5272_v55 }
0x1491   : > { %v5323_v39 = vmul.f32 %v5307_v16, %v5272_v55  ;;  %v5308_v59 = vmul.f32 0.044715, %v10095_v54  ;;  %v5370_v19 = vmul.f32 0.7978846, %v5354_v46  ;;  %v7468_v9 = vpop.eup %7467  ;;  %v5292_v5 = vmul.f32 0.5, %v10095_v54 }
0x1492   : > { %v5400_v31 = vadd.f32 1.0, %v7468_v9 }
0x1493   : > { %v5324_v24 = vmul.f32 %v5308_v59, %v10095_v54  ;;  %7469 = vtanh.f32 %v5370_v19  ;;  %v5339_v34 = vmul.f32 %v5323_v39, %v5272_v55 }
0x1494   : > { %v5274_v3 = vpop.f32.mrf.mxu2  ;;  %7471 = vtanh.f32 %v5369_v57  ;;  %v5416_v52 = vmul.f32 %v5400_v31, %v5288_v10 }
0x1495   : > { %v5275_v2 = vadd.f32 %v5274_v3, %v10080_v13  ;;  %v5355_v49 = vadd.f32 %v5339_v34, %v5272_v55  ;;  %v5340_v33 = vmul.f32 %v5324_v24, %v10095_v54 }
0x1496   : > { %v5247_v36 = vpop.f32.mrf.mxu1 }
0x1497   : > { %v5309_v50 = vmul.f32 0.044715, %v5275_v2  ;;  %v5248_v32 = vadd.f32 %v5247_v36, %v10069_v43  ;;  %v5371_v61 = vmul.f32 0.7978846, %v5355_v49  ;;  %v5356_v20 = vadd.f32 %v5340_v33, %v10095_v54 }
0x1499   : > { %v7470_v63 = vpop.eup %7469  ;;  %v5325_v15 = vmul.f32 %v5309_v50, %v5275_v2  ;;  %v5310_v45 = vmul.f32 0.044715, %v5248_v32  ;;  %7473 = vtanh.f32 %v5371_v61  ;;  %v5372_v48 = vmul.f32 0.7978846, %v5356_v20 }
0x149a   : > { %v5402_v8 = vadd.f32 1.0, %v7470_v63  ;;  %v7472_v28 = vpop.eup %7471  ;;  %v5294_v55 = vmul.f32 0.5, %v5248_v32  ;;  %v5293_v50 = vmul.f32 0.5, %v5275_v2 }
0x149b   : > { %v5326_v11 = vmul.f32 %v5310_v45, %v5248_v32  ;;  %v5341_v1 = vmul.f32 %v5325_v15, %v5275_v2  ;;  %v5401_v17 = vadd.f32 1.0, %v7472_v28  ;;  %7475 = vtanh.f32 %v5372_v48 }
0x149c   : > { %v5276_v30 = vpop.f32.mrf.mxu2  ;;  %v5418_v37 = vmul.f32 %v5402_v8, %v5290_v12 }
0x149d   : > { %v5277_v21 = vadd.f32 %v5276_v30, %v10080_v13  ;;  %v5342_v4 = vmul.f32 %v5326_v11, %v5248_v32  ;;  %v5357_v62 = vadd.f32 %v5341_v1, %v5275_v2  ;;  %v5417_v51 = vmul.f32 %v5401_v17, %v5289_v6 }
0x149e   : > { %v5430_v60 = vpack.c.bf16 %v5418_v37, %v5416_v52 }
0x149f   : > { %v7474_v25 = vpop.eup %7473  ;;  %v5311_v18 = vmul.f32 0.044715, %v5277_v21  ;;  %v5358_v23 = vadd.f32 %v5342_v4, %v5248_v32  ;;  %v5373_v26 = vmul.f32 0.7978846, %v5357_v62  ;;  %v5295_v61 = vmul.f32 0.5, %v5277_v21 }
0x14a0   : > { %5583 = vmatmul.bf16.gmra.mxu3 %v5430_v60  ;;  %v5403_v56 = vadd.f32 1.0, %v7474_v25 }
0x14a1   : > { %v5327_v42 = vmul.f32 %v5311_v18, %v5277_v21  ;;  %v5374_v40 = vmul.f32 0.7978846, %v5358_v23  ;;  %v7476_v46 = vpop.eup %7475 }
0x14a2   : > { %v5419_v58 = vmul.f32 %v5403_v56, %v5291_v14  ;;  %v5404_v19 = vadd.f32 1.0, %v7476_v46 }
0x14a3   : > { %7477 = vtanh.f32 %v5374_v40  ;;  %v5343_v7 = vmul.f32 %v5327_v42, %v5277_v21 }
0x14a4   : > { %v5431_v16 = vpack.c.bf16 %v5419_v58, %v5417_v51  ;;  %7479 = vtanh.f32 %v5373_v26  ;;  %v5420_v3 = vmul.f32 %v5404_v19, %v5292_v5 }
0x14a5   : > { %v5359_v39 = vadd.f32 %v5343_v7, %v5277_v21 }
0x14a6   : > { %5612 = vmatmul.bf16.gmra.mxu0 %v5431_v16 }
0x14a7   : > { %v5375_v59 = vmul.f32 0.7978846, %v5359_v39 }
0x14a9   : > { %v7478_v57 = vpop.eup %7477  ;;  %7481 = vtanh.f32 %v5375_v59 }
0x14aa   : > { %v5406_v24 = vadd.f32 1.0, %v7478_v57  ;;  %v7480_v34 = vpop.eup %7479 }
0x14ab   : > { %v5405_v33 = vadd.f32 1.0, %v7480_v34 }
0x14ac   : > { %v5422_v9 = vmul.f32 %v5406_v24, %v5294_v55 }
0x14ad   : > { %v5421_v31 = vmul.f32 %v5405_v33, %v5293_v50  ;;  %v7095_v50 = vld [vmem:[%s10294_s19 + $0x1] ss:$0 sm:$0xff] }
0x14ae   : > { %v5432_v49 = vpack.c.bf16 %v5422_v9, %v5420_v3 }
0x14af   : > { %v7482_v36 = vpop.eup %7481 }
0x14b0   : > { %5588 = vmatmul.bf16.gmra.mxu3 %v5432_v49  ;;  %v5407_v20 = vadd.f32 1.0, %v7482_v36 }
0x14b2   : > { %v5423_v63 = vmul.f32 %v5407_v20, %v5295_v61 }
0x14b4   : > { %v5433_v15 = vpack.c.bf16 %v5423_v63, %v5421_v31 }
0x14b6   : > { %5617 = vmatmul.bf16.gmra.mxu0 %v5433_v15 }
0x14ce   : > { %v5250_v45 = vpop.f32.mrf.mxu1 }
0x14cf   : > { %v5251_v10 = vadd.f32 %v5250_v45, %v10069_v43 }
0x14d1   : > { %v5312_v54 = vmul.f32 0.044715, %v5251_v10 }
0x14d3   : > { %v5328_v32 = vmul.f32 %v5312_v54, %v5251_v10 }
0x14d4   : > { %v5279_v12 = vpop.f32.mrf.mxu2 }
0x14d5   : > { %v5280_v8 = vadd.f32 %v5279_v12, %v10080_v13  ;;  %v5344_v28 = vmul.f32 %v5328_v32, %v5251_v10 }
0x14d6   : > { %v5252_v11 = vpop.f32.mrf.mxu1 }
0x14d7   : > { %v5313_v48 = vmul.f32 0.044715, %v5280_v8  ;;  %v5253_v1 = vadd.f32 %v5252_v11, %v10069_v43  ;;  %v5360_v2 = vadd.f32 %v5344_v28, %v5251_v10  ;;  %v5297_v34 = vmul.f32 0.5, %v5280_v8 }
0x14d9   : > { %v5329_v30 = vmul.f32 %v5313_v48, %v5280_v8  ;;  %v5314_v52 = vmul.f32 0.044715, %v5253_v1  ;;  %v5376_v21 = vmul.f32 0.7978846, %v5360_v2  ;;  %v5298_v46 = vmul.f32 0.5, %v5253_v1 }
0x14db   : > { %v5330_v37 = vmul.f32 %v5314_v52, %v5253_v1  ;;  %v5345_v4 = vmul.f32 %v5329_v30, %v5280_v8  ;;  %7483 = vtanh.f32 %v5376_v21 }
0x14dc   : > { %v5281_v62 = vpop.f32.mrf.mxu2 }
0x14dd   : > { %v5282_v60 = vadd.f32 %v5281_v62, %v10080_v13  ;;  %v5346_v17 = vmul.f32 %v5330_v37, %v5253_v1  ;;  %v5361_v25 = vadd.f32 %v5345_v4, %v5280_v8  ;;  %v5296_v13 = vmul.f32 0.5, %v5251_v10 }
0x14de   : > { %v10109_v18 = vpop.f32.mrf.mxu1 }
0x14df   : > { %v5315_v23 = vmul.f32 0.044715, %v5282_v60  ;;  %v5362_v6 = vadd.f32 %v5346_v17, %v5253_v1  ;;  %v5377_v42 = vmul.f32 0.7978846, %v5361_v25  ;;  %v5299_v3 = vmul.f32 0.5, %v5282_v60 }
0x14e0   : > { %v5628_v25 = vperm.slane %v9011_v38, 0 }
0x14e1   : > { %v5331_v14 = vmul.f32 %v5315_v23, %v5282_v60  ;;  %v5378_v56 = vmul.f32 0.7978846, %v5362_v6  ;;  %v7484_v40 = vpop.eup %7483 }
0x14e2   : > { %v5408_v7 = vadd.f32 1.0, %v7484_v40 }
0x14e3   : > { %7485 = vtanh.f32 %v5378_v56  ;;  %v5347_v43 = vmul.f32 %v5331_v14, %v5282_v60 }
0x14e4   : > { %7487 = vtanh.f32 %v5377_v42  ;;  %v5424_v19 = vmul.f32 %v5408_v7, %v5296_v13 }
0x14e5   : > { %v5363_v26 = vadd.f32 %v5347_v43, %v5282_v60 }
0x14e6   : > { %v5753_v51 = vpop.f32.mrf.mxu1 }
0x14e7   : > { %v5379_v58 = vmul.f32 0.7978846, %v5363_v26 }
0x14e9   : > { %v7486_v16 = vpop.eup %7485  ;;  %7489 = vtanh.f32 %v5379_v58 }
0x14ea   : > { %v5410_v39 = vadd.f32 1.0, %v7486_v16  ;;  %v7488_v59 = vpop.eup %7487 }
0x14eb   : > { %v5409_v55 = vadd.f32 1.0, %v7488_v59 }
0x14ec   : > { %v5426_v57 = vmul.f32 %v5410_v39, %v5298_v46 }
0x14ed   : > { %v5425_v49 = vmul.f32 %v5409_v55, %v5297_v34 }
0x14ee   : > { %v5434_v5 = vpack.c.bf16 %v5426_v57, %v5424_v19 }
0x14ef   : > { %v7490_v24 = vpop.eup %7489 }
0x14f0   : > { %5593 = vmatmul.bf16.gmra.mxu3 %v5434_v5  ;;  %v5411_v9 = vadd.f32 1.0, %v7490_v24 }
0x14f2   : > { %v5427_v33 = vmul.f32 %v5411_v9, %v5299_v3 }
0x14f4   : > { %v5435_v36 = vpack.c.bf16 %v5427_v33, %v5425_v49 }
0x14f6   : > { %5622 = vmatmul.bf16.gmra.mxu0 %v5435_v36 }
0x14f8   : > { %v5579_v61 = vpop.f32.mrf.mxu3  ;;  %v5608_v20 = vpop.f32.mrf.mxu0 }
0x14f9   : > { %v5580_v31 = vadd.f32 %v7095_v50, %v5579_v61 }
0x14fb   : > { %v5609_v63 = vadd.f32 %v5608_v20, %v5580_v31 }
0x14fd   : > { %5637 = vrot.lane.b32.xlu2 %v5609_v63, %s7516_s7 }
0x1500   : > { %v5581_v15 = vpop.f32.mrf.mxu3  ;;  %v5610_v10 = vpop.f32.mrf.mxu0 }
0x1501   : > { %v5582_v45 = vadd.f32 %v7095_v50, %v5581_v15 }
0x1503   : > { %v5611_v54 = vadd.f32 %v5610_v10, %v5582_v45 }
0x1505   : > { %5639 = vrot.lane.b32.xlu0 %v5611_v54, %s7516_s7 }
0x1523   : > { %v5584_v32 = vpop.f32.mrf.mxu3  ;;  %v5613_v12 = vpop.f32.mrf.mxu0 }
0x1524   : > { %v5585_v8 = vadd.f32 %v7095_v50, %v5584_v32 }
0x1526   : > { %v5614_v28 = vadd.f32 %v5613_v12, %v5585_v8 }
0x1528   : > { %5641 = vrot.lane.b32.xlu1 %v5614_v28, %s7516_s7 }
0x152b   : > { %v5586_v11 = vpop.f32.mrf.mxu3  ;;  %v5615_v48 = vpop.f32.mrf.mxu0 }
0x152c   : > { %v5587_v1 = vadd.f32 %v7095_v50, %v5586_v11 }
0x152e   : > { %v5616_v2 = vadd.f32 %v5615_v48, %v5587_v1 }
0x1530   : > { %5643 = vrot.lane.b32.xlu1 %v5616_v2, %s7516_s7 }
0x1533   : > { %v5589_v30 = vpop.f32.mrf.mxu3  ;;  %v5618_v52 = vpop.f32.mrf.mxu0 }
0x1534   : > { %v5590_v37 = vadd.f32 %v7095_v50, %v5589_v30 }
0x1536   : > { %v5619_v21 = vadd.f32 %v5618_v52, %v5590_v37 }
0x1538   : > { %5645 = vrot.lane.b32.xlu1 %v5619_v21, %s7516_s7 }
0x153b   : > { %v5591_v4 = vpop.f32.mrf.mxu3  ;;  %v5620_v60 = vpop.f32.mrf.mxu0 }
0x153c   : > { %v5592_v62 = vadd.f32 %v7095_v50, %v5591_v4 }
0x153e   : > { %v5621_v17 = vadd.f32 %v5620_v60, %v5592_v62 }
0x1540   : > { %5647 = vrot.lane.b32.xlu0 %v5621_v17, %s7516_s7 }
0x1557   : > { %v5638_v23 = vpop.permute.xlu2 %5637 }
0x1558   : > { %v5661_v6 = vmul.f32 %v5638_v23, %v5628_v25 }
0x155a   : > { %5677 = vrot.lane.b32.xlu2 %v5661_v6, %s7516_s7 }
0x1573   : > { %v5594_v14 = vpop.f32.mrf.mxu3  ;;  %v5623_v56 = vpop.f32.mrf.mxu0 }
0x1574   : > { %v5595_v42 = vadd.f32 %v7095_v50, %v5594_v14 }
0x1576   : > { %v5624_v43 = vadd.f32 %v5623_v56, %v5595_v42 }
0x1577   : > { %v5640_v40 = vpop.permute.xlu0 %5639 }
0x1578   : > { %v5662_v26 = vmul.f32 %v5640_v40, %v5628_v25  ;;  %5649 = vrot.lane.b32.xlu0 %v5624_v43, %s7516_s7 }
0x157a   : > { %5679 = vrot.lane.b32.xlu1 %v5662_v26, %s7516_s7 }
0x157b   : > { %v5596_v51 = vpop.f32.mrf.mxu3  ;;  %v5625_v7 = vpop.f32.mrf.mxu0 }
0x157c   : > { %v5597_v58 = vadd.f32 %v7095_v50, %v5596_v51 }
0x157e   : > { %v5626_v16 = vadd.f32 %v5625_v7, %v5597_v58 }
0x1580   : > { %5651 = vrot.lane.b32.xlu2 %v5626_v16, %s7516_s7 }
0x159a   : > { %v5642_v38 = vpop.permute.xlu1 %5641 }
0x159b   : > { %v5663_v13 = vmul.f32 %v5642_v38, %v5628_v25 }
0x159d   : > { %5681 = vrot.lane.b32.xlu1 %v5663_v13, %s7516_s7 }
0x15a2   : > { %v5644_v46 = vpop.permute.xlu1 %5643 }
0x15a3   : > { %v5664_v39 = vmul.f32 %v5644_v46, %v5628_v25 }
0x15a5   : > { %5683 = vrot.lane.b32.xlu0 %v5664_v39, %s7516_s7 }
0x15aa   : > { %v5646_v59 = vpop.permute.xlu1 %5645 }
0x15ab   : > { %v5665_v19 = vmul.f32 %v5646_v59, %v5628_v25 }
0x15ad   : > { %5685 = vrot.lane.b32.xlu2 %v5665_v19, %s7516_s7 }
0x15b2   : > { %v5648_v57 = vpop.permute.xlu0 %5647 }
0x15b3   : > { %v5666_v5 = vmul.f32 %v5648_v57, %v5628_v25 }
0x15b4   : > { %v5678_v55 = vpop.permute.xlu2 %5677 }
0x15b5   : > { %5687 = vrot.lane.b32.xlu1 %v5666_v5, %s7516_s7  ;;  %v5701_v24 = vadd.f32 %v5678_v55, %v9828_v27 }
0x15b7   : > { %v5755_v34 = vsel %vm987_vm1, %v5701_v24, 0.0 }
0x15cf   : > { %5756 = vadd.xlane.f32.xlu0 %v5755_v34 }
0x15da   : > { %v5652_v50 = vpop.permute.xlu2 %5651 }
0x15db   : > { %v5668_v61 = vmul.f32 %v5652_v50, %v5628_v25  ;;  %v6951_v50 = vld [vmem:[%s10297_s22] sm:$0xff] }
0x15ea   : > { %v5650_v3 = vpop.permute.xlu0 %5649 }
0x15eb   : > { %v5667_v9 = vmul.f32 %v5650_v3, %v5628_v25  ;;  %v6953_v3 = vld [vmem:[%s10297_s22 + $0x10] sm:$0xff] }
0x15ec   : > { %v5680_v49 = vpop.permute.xlu1 %5679 }
0x15ed   : > { %v5702_v33 = vadd.f32 %v5680_v49, %v9833_v35  ;;  %5689 = vrot.lane.b32.xlu1 %v5667_v9, %s7516_s7  ;;  %v6952_v9 = vld [vmem:[%s10297_s22 + $0x8] sm:$0xff] }
0x15ef   : > { %v5758_v36 = vsel %vm987_vm1, %v5702_v33, 0.0 }
0x15f0   : > { %5759 = vadd.xlane.f32.xlu2 %v5758_v36 }
0x15f5   : > { %5691 = vrot.lane.b32.xlu1 %v5668_v61, %s7516_s7 }
0x1607   : > { %v5686_v20 = vpop.permute.xlu2 %5685 }
0x1608   : > { %v5705_v27 = vadd.f32 %v5686_v20, %v9848_v44 }
0x160a   : > { %v5767_v31 = vsel %vm987_vm1, %v5705_v27, 0.0 }
0x160b   : > { %5768 = vadd.xlane.f32.xlu2 %v5767_v31 }
0x160f   : > { %v5682_v63 = vpop.permute.xlu1 %5681 }
0x1610   : > { %v5703_v35 = vadd.f32 %v5682_v63, %v9838_v29 }
0x1612   : > { %v5761_v54 = vsel %vm987_vm1, %v5703_v35, 0.0 }
0x1617   : > { %v5684_v15 = vpop.permute.xlu0 %5683 }
0x1618   : > { %v5704_v45 = vadd.f32 %v5684_v15, %v9843_v47 }
0x161a   : > { %v5764_v10 = vsel %vm987_vm1, %v5704_v45, 0.0 }
0x161b   : > { %5765 = vadd.xlane.f32.xlu0 %v5764_v10 }
0x161f   : > { %5762 = vadd.xlane.f32.xlu1 %v5761_v54 }
0x1627   : > { %v5688_v32 = vpop.permute.xlu1 %5687 }
0x1628   : > { %v5706_v12 = vadd.f32 %v5688_v32, %v9853_v22 }
0x162a   : > { %v5770_v44 = vsel %vm987_vm1, %v5706_v12, 0.0 }
0x162b   : > { %5771 = vadd.xlane.f32.xlu0 %v5770_v44 }
0x1642   : > { %v5757_v8 = vpop.xlane.xlu0 %5756 }
0x1643   : > { %v5779_v28 = vmul.f32 %v5757_v8, %v7810_v41 }
0x1645   : > { %v10144_v11 = vsub.f32 %v5701_v24, %v5779_v28  ;;  %v6954_v24 = vld [vmem:[%s10297_s22 + $0x18] sm:$0xff] }
0x1646   : > { %6010 = vmatpush.bf16.msrb.mxu1 %v6954_v24 }
0x1647   : > { %v5795_v29 = vmul.f32 %v10144_v11, %v10144_v11 }
0x1649   : > { %v5803_v47 = vsel %vm987_vm1, %v5795_v29, 0.0 }
0x164a   : > { %5804 = vadd.xlane.f32.xlu2 %v5803_v47  ;;  %6011 = vmatpush.bf16.msrb.mxu1 %v6953_v3 }
0x164e   : > { %6012 = vmatpush.bf16.msrb.mxu1 %v6952_v9 }
0x1652   : > { %6013 = vmatpush.bf16.msrb.mxu1 %v6951_v50 }
0x165f   : > { %v5690_v48 = vpop.permute.xlu1 %5689 }
0x1660   : > { %v5707_v1 = vadd.f32 %v5690_v48, %v9858_v53  ;;  %v5717_v53 = vld [vmem:[%s10296_s21] sm:$0x1] }
0x1661   : > { %v10163_v17 = vadd.f32 %v10109_v18, %v5717_v53 }
0x1662   : > { %v5773_v2 = vsel %vm987_vm1, %v5707_v1, 0.0 }
0x1663   : > { %5774 = vadd.xlane.f32.xlu2 %v5773_v2  ;;  %v5760_v22 = vpop.xlane.xlu2 %5759  ;;  %v5931_v25 = vadd.f32 1.0, %v10163_v17  ;;  %v10222_v53 = vperm.slane %v10163_v17, 0 }
0x1664   : > { %v5780_v30 = vmul.f32 %v5760_v22, %v7810_v41 }
0x1665   : > { %v5932_v23 = vperm.slane %v5931_v25, 0 }
0x1666   : > { %v10152_v52 = vsub.f32 %v5702_v33, %v5780_v30 }
0x1667   : > { %v5692_v37 = vpop.permute.xlu1 %5691 }
0x1668   : > { %v5708_v21 = vadd.f32 %v5692_v37, %v9871_v0  ;;  %v5796_v4 = vmul.f32 %v10152_v52, %v10152_v52 }
0x166a   : > { %v5776_v62 = vsel %vm987_vm1, %v5708_v21, 0.0  ;;  %v5806_v60 = vsel %vm987_vm1, %v5796_v4, 0.0 }
0x166b   : > { %5777 = vadd.xlane.f32.xlu1 %v5776_v62  ;;  %5807 = vadd.xlane.f32.xlu0 %v5806_v60 }
0x167e   : > { %v5769_v56 = vpop.xlane.xlu2 %5768 }
0x167f   : > { %v5783_v18 = vmul.f32 %v5769_v56, %v7810_v41 }
0x1681   : > { %v10179_v7 = vsub.f32 %v5705_v27, %v5783_v18 }
0x1683   : > { %v5799_v38 = vmul.f32 %v10179_v7, %v10179_v7 }
0x1684   : > { %5934 = vrot.lane.b32.xlu1 %v5932_v23, %s7516_s7  ;;  %s768_s7 = scalar_lea.vmem %s10299_s24, %s10339_s8 }
0x1685   : > { %v5815_v59 = vsel %vm987_vm1, %v5799_v38, 0.0 }
0x168e   : > { %v5766_v0 = vpop.xlane.xlu0 %5765 }
0x168f   : > { %v5782_v6 = vmul.f32 %v5766_v0, %v7810_v41 }
0x1691   : > { %v10168_v14 = vsub.f32 %v5704_v45, %v5782_v6 }
0x1692   : > { %v5763_v42 = vpop.xlane.xlu1 %5762 }
0x1693   : > { %v5781_v43 = vmul.f32 %v5763_v42, %v7810_v41  ;;  %v5798_v40 = vmul.f32 %v10168_v14, %v10168_v14 }
0x1695   : > { %v10174_v26 = vsub.f32 %v5703_v35, %v5781_v43  ;;  %v5812_v51 = vsel %vm987_vm1, %v5798_v40, 0.0 }
0x1696   : > { %5813 = vadd.xlane.f32.xlu2 %v5812_v51 }
0x1697   : > { %v5797_v58 = vmul.f32 %v10174_v26, %v10174_v26 }
0x1699   : > { %v5809_v16 = vsel %vm987_vm1, %v5797_v58, 0.0 }
0x169a   : > { %5810 = vadd.xlane.f32.xlu0 %v5809_v16 }
0x169e   : > { %v5772_v13 = vpop.xlane.xlu0 %5771 }
0x169f   : > { %v5784_v46 = vmul.f32 %v5772_v13, %v7810_v41 }
0x16a1   : > { %v10185_v39 = vsub.f32 %v5706_v12, %v5784_v46 }
0x16a2   : > { %5816 = vadd.xlane.f32.xlu0 %v5815_v59 }
0x16a3   : > { %v5800_v19 = vmul.f32 %v10185_v39, %v10185_v39 }
0x16a5   : > { %v5818_v57 = vsel %vm987_vm1, %v5800_v19, 0.0 }
0x16a6   : > { %5819 = vadd.xlane.f32.xlu2 %v5818_v57 }
0x16bd   : > { %v5805_v5 = vpop.xlane.xlu2 %5804 }
0x16be   : > { %v5827_v55 = vmul.f32 %v5805_v5, %v7810_v41 }
0x16c0   : > { %v5835_v34 = vadd.f32 1e-06, %v5827_v55 }
0x16c2   : > { %7491 = vrsqrt.f32 %v5835_v34  ;;  %vm5849_vm4 = vweird.f32 %v5835_v34 }
0x16c8   : > { %v7492_v61 = vpop.eup %7491 }
0x16c9   : > { %v5844_v31 = vmul.f32 %v7492_v61, %v5835_v34  ;;  %vm5850_vm3 = vweird.f32 %v7492_v61 }
0x16ca   : > { %vm5851_vm6 = vmor %vm5849_vm4, %vm5850_vm3 }
0x16cb   : > { %v5845_v32 = vmul.f32 %v7492_v61, %v5844_v31 }
0x16cd   : > { %v5846_v8 = vmul.f32 0.5, %v5845_v32 }
0x16cf   : > { %v5847_v29 = vsub.f32 1.5, %v5846_v8 }
0x16d6   : > { %v5775_v49 = vpop.xlane.xlu2 %5774 }
0x16d7   : > { %v5785_v33 = vmul.f32 %v5775_v49, %v7810_v41 }
0x16d9   : > { %v10202_v36 = vsub.f32 %v5707_v1, %v5785_v33  ;;  %v5848_v1 = vmul.f32 %v7492_v61, %v5847_v29 }
0x16db   : > { %v5801_v20 = vmul.f32 %v10202_v36, %v10202_v36  ;;  %v5852_v30 = vsel %vm5851_vm6, %v7492_v61, %v5848_v1 }
0x16dc   : > { %v5923_v4 = vmul.f32 %v5852_v30, %v10144_v11 }
0x16dd   : > { %v5821_v27 = vsel %vm987_vm1, %v5801_v20, 0.0 }
0x16de   : > { %v5778_v63 = vpop.xlane.xlu1 %5777  ;;  %v5808_v15 = vpop.xlane.xlu0 %5807  ;;  %5822 = vadd.xlane.f32.xlu0 %v5821_v27 }
0x16df   : > { %v5786_v45 = vmul.f32 %v5778_v63, %v7810_v41  ;;  %v5828_v35 = vmul.f32 %v5808_v15, %v7810_v41 }
0x16e1   : > { %v10212_v10 = vsub.f32 %v5708_v21, %v5786_v45  ;;  %v5836_v54 = vadd.f32 1e-06, %v5828_v35 }
0x16e3   : > { %7493 = vrsqrt.f32 %v5836_v54  ;;  %v5802_v12 = vmul.f32 %v10212_v10, %v10212_v10  ;;  %vm5859_vm0 = vweird.f32 %v5836_v54 }
0x16e5   : > { %v5824_v44 = vsel %vm987_vm1, %v5802_v12, 0.0 }
0x16e6   : > { %5825 = vadd.xlane.f32.xlu2 %v5824_v44 }
0x16e9   : > { %v7494_v28 = vpop.eup %7493 }
0x16ea   : > { %v5854_v47 = vmul.f32 %v7494_v28, %v5836_v54  ;;  %vm5860_vm5 = vweird.f32 %v7494_v28 }
0x16eb   : > { %vm5861_vm8 = vmor %vm5859_vm0, %vm5860_vm5 }
0x16ec   : > { %v5855_v48 = vmul.f32 %v7494_v28, %v5854_v47 }
0x16ee   : > { %v5856_v2 = vmul.f32 0.5, %v5855_v48 }
0x16f0   : > { %v5857_v22 = vsub.f32 1.5, %v5856_v2 }
0x16f2   : > { %v5858_v37 = vmul.f32 %v7494_v28, %v5857_v22 }
0x16f4   : > { %v5862_v21 = vsel %vm5861_vm8, %v7494_v28, %v5858_v37 }
0x16f5   : > { %v5924_v62 = vmul.f32 %v5862_v21, %v10152_v52 }
0x16f6   : > { %v10219_v60 = vpop.permute.xlu1 %5934 }
0x16f7   : > { %v5937_v25 = vmul.f32 %v10219_v60, %v5923_v4  ;;  %v5938_v23 = vmul.f32 %v10219_v60, %v5924_v62 }
0x16f9   : > { %v5946_v0 = vadd.f32 %v10222_v53, %v5937_v25  ;;  %v5947_v6 = vadd.f32 %v10222_v53, %v5938_v23 }
0x16fb   : > { %v5954_v56 = vpack.c.bf16 %v5947_v6, %v5946_v0 }
0x16fd   : > { %6822 = vmatmul.msk.bf16.vlgmr.msrb.gmra.mxu1 %vm987_vm1, %v5954_v56 }
0x1709   : > { %v5814_v42 = vpop.xlane.xlu2 %5813 }
0x170a   : > { %v5830_v11 = vmul.f32 %v5814_v42, %v7810_v41 }
0x170c   : > { %v5838_v52 = vadd.f32 1e-06, %v5830_v11 }
0x170d   : > { %v5811_v43 = vpop.xlane.xlu0 %5810 }
0x170e   : > { %7495 = vrsqrt.f32 %v5838_v52  ;;  %v5829_v17 = vmul.f32 %v5811_v43, %v7810_v41  ;;  %vm5879_vm10 = vweird.f32 %v5838_v52 }
0x1710   : > { %v5837_v40 = vadd.f32 1e-06, %v5829_v17 }
0x1712   : > { %7497 = vrsqrt.f32 %v5837_v40  ;;  %vm5869_vm13 = vweird.f32 %v5837_v40 }
0x1714   : > { %v7496_v18 = vpop.eup %7495 }
0x1715   : > { %v5874_v51 = vmul.f32 %v7496_v18, %v5838_v52  ;;  %v5817_v58 = vpop.xlane.xlu0 %5816  ;;  %vm5880_vm9 = vweird.f32 %v7496_v18 }
0x1716   : > { %v5831_v16 = vmul.f32 %v5817_v58, %v7810_v41  ;;  %vm5881_vm11 = vmor %vm5879_vm10, %vm5880_vm9 }
0x1717   : > { %v5875_v38 = vmul.f32 %v7496_v18, %v5874_v51 }
0x1718   : > { %v7498_v13 = vpop.eup %7497  ;;  %v5839_v46 = vadd.f32 1e-06, %v5831_v16 }
0x1719   : > { %v5876_v59 = vmul.f32 0.5, %v5875_v38  ;;  %v5864_v19 = vmul.f32 %v7498_v13, %v5837_v40  ;;  %v5820_v57 = vpop.xlane.xlu2 %5819  ;;  %vm5870_vm12 = vweird.f32 %v7498_v13 }
0x171a   : > { %7499 = vrsqrt.f32 %v5839_v46  ;;  %v5832_v5 = vmul.f32 %v5820_v57, %v7810_v41  ;;  %vm5871_vm14 = vmor %vm5869_vm13, %vm5870_vm12  ;;  %vm5889_vm2 = vweird.f32 %v5839_v46 }
0x171b   : > { %v5877_v55 = vsub.f32 1.5, %v5876_v59  ;;  %v5865_v24 = vmul.f32 %v7498_v13, %v5864_v19 }
0x171c   : > { %v5840_v34 = vadd.f32 1e-06, %v5832_v5 }
0x171d   : > { %v5878_v3 = vmul.f32 %v7496_v18, %v5877_v55  ;;  %v5866_v9 = vmul.f32 0.5, %v5865_v24 }
0x171e   : > { %7501 = vrsqrt.f32 %v5840_v34  ;;  %vm5899_vm5 = vweird.f32 %v5840_v34 }
0x171f   : > { %v5882_v49 = vsel %vm5881_vm11, %v7496_v18, %v5878_v3  ;;  %v5867_v33 = vsub.f32 1.5, %v5866_v9  ;;  %v7096_v9 = vld [vmem:[%s10298_s23] ss:$0 sm:$0xff] }
0x1720   : > { %v7500_v50 = vpop.eup %7499  ;;  %v5926_v61 = vmul.f32 %v5882_v49, %v10168_v14 }
0x1721   : > { %v5868_v20 = vmul.f32 %v7498_v13, %v5867_v33  ;;  %v5884_v27 = vmul.f32 %v7500_v50, %v5839_v46  ;;  %vm5890_vm15 = vweird.f32 %v7500_v50 }
0x1722   : > { %v5940_v35 = vmul.f32 %v10219_v60, %v5926_v61  ;;  %vm5891_vm4 = vmor %vm5889_vm2, %vm5890_vm15 }
0x1723   : > { %v5872_v31 = vsel %vm5871_vm14, %v7498_v13, %v5868_v20  ;;  %v5885_v63 = vmul.f32 %v7500_v50, %v5884_v27 }
0x1724   : > { %v7502_v15 = vpop.eup %7501  ;;  %v5925_v45 = vmul.f32 %v5872_v31, %v10174_v26  ;;  %v5949_v14 = vadd.f32 %v10222_v53, %v5940_v35 }
0x1725   : > { %v5886_v54 = vmul.f32 0.5, %v5885_v63  ;;  %v5894_v32 = vmul.f32 %v7502_v15, %v5840_v34  ;;  %vm5900_vm3 = vweird.f32 %v7502_v15 }
0x1726   : > { %v5939_v12 = vmul.f32 %v10219_v60, %v5925_v45  ;;  %vm5901_vm6 = vmor %vm5899_vm5, %vm5900_vm3 }
0x1727   : > { %v5887_v44 = vsub.f32 1.5, %v5886_v54  ;;  %v5895_v8 = vmul.f32 %v7502_v15, %v5894_v32 }
0x1728   : > { %v5948_v28 = vadd.f32 %v10222_v53, %v5939_v12 }
0x1729   : > { %v5888_v29 = vmul.f32 %v7500_v50, %v5887_v44  ;;  %v5896_v47 = vmul.f32 0.5, %v5895_v8 }
0x172a   : > { %v5955_v48 = vpack.c.bf16 %v5949_v14, %v5948_v28 }
0x172b   : > { %v5897_v1 = vsub.f32 1.5, %v5896_v47  ;;  %v5892_v26 = vsel %vm5891_vm4, %v7500_v50, %v5888_v29 }
0x172c   : > { %6823 = vmatmul.msk.bf16.gmra.mxu1 %vm987_vm1, %v5955_v48  ;;  %v5927_v30 = vmul.f32 %v5892_v26, %v10179_v7 }
0x172d   : > { %v5898_v2 = vmul.f32 %v7502_v15, %v5897_v1 }
0x172e   : > { %v5941_v4 = vmul.f32 %v10219_v60, %v5927_v30 }
0x172f   : > { %v5902_v22 = vsel %vm5901_vm6, %v7502_v15, %v5898_v2 }
0x1730   : > { %v5928_v37 = vmul.f32 %v5902_v22, %v10185_v39  ;;  %v5950_v25 = vadd.f32 %v10222_v53, %v5941_v4 }
0x1732   : > { %v5942_v21 = vmul.f32 %v10219_v60, %v5928_v37 }
0x1734   : > { %v5951_v62 = vadd.f32 %v10222_v53, %v5942_v21 }
0x1736   : > { %v5956_v23 = vpack.c.bf16 %v5951_v62, %v5950_v25 }
0x173c   : > { %6824 = vmatmul.msk.bf16.gmra.mxu1 %vm987_vm1, %v5956_v23 }
0x1751   : > { %v5823_v0 = vpop.xlane.xlu0 %5822 }
0x1752   : > { %v5833_v6 = vmul.f32 %v5823_v0, %v7810_v41 }
0x1754   : > { %v5841_v56 = vadd.f32 1e-06, %v5833_v6 }
0x1756   : > { %7503 = vrsqrt.f32 %v5841_v56  ;;  %vm5909_vm8 = vweird.f32 %v5841_v56 }
0x1759   : > { %v5826_v42 = vpop.xlane.xlu2 %5825 }
0x175a   : > { %v5834_v7 = vmul.f32 %v5826_v42, %v7810_v41 }
0x175c   : > { %v7504_v39 = vpop.eup %7503  ;;  %v5842_v11 = vadd.f32 1e-06, %v5834_v7 }
0x175d   : > { %v5904_v52 = vmul.f32 %v7504_v39, %v5841_v56  ;;  %vm5910_vm0 = vweird.f32 %v7504_v39 }
0x175e   : > { %7505 = vrsqrt.f32 %v5842_v11  ;;  %vm5911_vm9 = vmor %vm5909_vm8, %vm5910_vm0  ;;  %vm5919_vm11 = vweird.f32 %v5842_v11 }
0x175f   : > { %v5905_v43 = vmul.f32 %v7504_v39, %v5904_v52 }
0x1761   : > { %v5906_v17 = vmul.f32 0.5, %v5905_v43 }
0x1763   : > { %v5907_v40 = vsub.f32 1.5, %v5906_v17 }
0x1764   : > { %v7506_v18 = vpop.eup %7505 }
0x1765   : > { %v5908_v51 = vmul.f32 %v7504_v39, %v5907_v40  ;;  %v5914_v58 = vmul.f32 %v7506_v18, %v5842_v11  ;;  %vm5920_vm10 = vweird.f32 %v7506_v18 }
0x1766   : > { %vm5921_vm12 = vmor %vm5919_vm11, %vm5920_vm10 }
0x1767   : > { %v5915_v16 = vmul.f32 %v7506_v18, %v5914_v58  ;;  %v5912_v38 = vsel %vm5911_vm9, %v7504_v39, %v5908_v51 }
0x1768   : > { %v5929_v41 = vmul.f32 %v5912_v38, %v10202_v36 }
0x1769   : > { %v5916_v13 = vmul.f32 0.5, %v5915_v16 }
0x176a   : > { %v5943_v5 = vmul.f32 %v10219_v60, %v5929_v41 }
0x176b   : > { %v5917_v46 = vsub.f32 1.5, %v5916_v13 }
0x176c   : > { %v5952_v24 = vadd.f32 %v10222_v53, %v5943_v5 }
0x176d   : > { %v5918_v59 = vmul.f32 %v7506_v18, %v5917_v46 }
0x176f   : > { %v5922_v19 = vsel %vm5921_vm12, %v7506_v18, %v5918_v59 }
0x1770   : > { %v5930_v57 = vmul.f32 %v5922_v19, %v10212_v10 }
0x1772   : > { %v5944_v55 = vmul.f32 %v10219_v60, %v5930_v57 }
0x1774   : > { %v5953_v34 = vadd.f32 %v10222_v53, %v5944_v55 }
0x1776   : > { %v5957_v3 = vpack.c.bf16 %v5953_v34, %v5952_v24 }
0x1778   : > { %6825 = vmatmul.msk.bf16.gmra.mxu1 %vm987_vm1, %v5957_v3 }
0x177a   : > { %v6015_v36 = vpop.f32.mrf.mxu1 }
0x177b   : > { %v6016_v10 = vadd.f32 %v7096_v9, %v6015_v36 }
0x177d   : > { %6035 = vst.msk [vmem:[%s768_s7] sm:$0xff] %vm2545_vm7, %v6016_v10 }
0x1782   : > { %v6017_v60 = vpop.f32.mrf.mxu1 }
0x1783   : > { %v6018_v49 = vadd.f32 %v7096_v9, %v6017_v60 }
0x1785   : > { %6036 = vst.msk [vmem:[%s768_s7 + $0x8] sm:$0xff] %vm2545_vm7, %v6018_v49 }
0x17a9   : > { %v6020_v53 = vpop.f32.mrf.mxu1 }
0x17aa   : > { %v6021_v33 = vadd.f32 %v7096_v9, %v6020_v53 }
0x17ac   : > { %6037 = vst.msk [vmem:[%s768_s7 + $0x10] sm:$0xff] %vm2545_vm7, %v6021_v33 }
0x17b1   : > { %v6022_v50 = vpop.f32.mrf.mxu1 }
0x17b2   : > { %v6023_v61 = vadd.f32 %v7096_v9, %v6022_v50 }
0x17b4   : > { %6038 = vst.msk [vmem:[%s768_s7 + $0x18] sm:$0xff] %vm2545_vm7, %v6023_v61 }
0x17b9   : > { %v6025_v20 = vpop.f32.mrf.mxu1 }
0x17ba   : > { %v6026_v27 = vadd.f32 %v7096_v9, %v6025_v20 }
0x17bc   : > { %6039 = vst.msk [vmem:[%s768_s7 + $0x20] sm:$0xff] %vm2545_vm7, %v6026_v27 }
0x17c1   : > { %v6027_v31 = vpop.f32.mrf.mxu1 }
0x17c2   : > { %v6028_v63 = vadd.f32 %v7096_v9, %v6027_v31 }
0x17c4   : > { %6040 = vst.msk [vmem:[%s768_s7 + $0x28] sm:$0xff] %vm2545_vm7, %v6028_v63 }
0x17f5   : > { %v6030_v15 = vpop.f32.mrf.mxu1 }
0x17f6   : > { %v6031_v45 = vadd.f32 %v7096_v9, %v6030_v15 }
0x17f8   : > { %6041 = vst.msk [vmem:[%s768_s7 + $0x30] sm:$0xff] %vm2545_vm7, %v6031_v45 }
0x17fd   : > { %v6032_v35 = vpop.f32.mrf.mxu1 }
0x17fe   : > { %v6033_v54 = vadd.f32 %v7096_v9, %v6032_v35 }
0x1800   : > { %6042 = vst.msk [vmem:[%s768_s7 + $0x38] sm:$0xff] %vm2545_vm7, %v6033_v54 }
0x1801 PF: > { %s34_s5 = sadd.s32 1, %s7513_s5  }
0x1802   : > { %p31_p4 = scmp.ge.s32.totalorder %s34_s5, 4  }
0x1804   :  { %33 = sbr.rel (!%p31_p4) target bundleno = 10 (0xa), region = 162 }

</bundles_post_ra>
